<compile_context>
chip_gen: v5e
topology: v5e:2x2
jax: 0.10.0
libtpu: 0.0.40
codegen_flags: <defaults>
</compile_context>

<pallas_src>
import functools

import jax
import jax.numpy as jnp
from jax.experimental import pallas as pl
from jax.experimental.pallas import tpu as pltpu

LANES = 128                 # lanes per row
BOXES_PER_ROW = LANES // 4  # 32 boxes per 128-lane row (4 coords each)
MAX_BLOCK_ROWS = 1024       # 1024 rows * 32 boxes = 32768 boxes per grid step


def _round_up(x, m):
    return ((x + m - 1) // m) * m


def _pick_block_rows(t_rows):
    """Rows (of 32 boxes) per grid step.

    Multiple of 8, <= MAX_BLOCK_ROWS, aiming for >= 2 grid steps (v7x
    TensorCore split) and preferring an exact divisor of t_rows so that no
    pad copy is needed in the wrapper.
    """
    target = min(MAX_BLOCK_ROWS, max(8, _round_up(-(-t_rows // 2), 8)))
    for blk in range(target, 7, -8):
        if t_rows % blk == 0:
            return blk
    return target


def _giou_kernel(*refs, eps, n_boxes, has_weight, emit_elem):
    """GIoU loss on lane-interleaved boxes.

    pred_ref / tgt_ref : (blk, 128) f32, lane l = 4*box + coord (x1,y1,x2,y2)
    w_ref (optional)   : (blk, 128) f32, per-box weight at lanes 4g, 0 elsewhere
    psum_ref           : (8, 128)   f32, per-step partial sums
    loss_ref (optional): (blk, 128) f32, per-box loss at lanes 4g
    """
    it = iter(refs)
    pred_ref = next(it)
    tgt_ref = next(it)
    w_ref = next(it) if has_weight else None
    psum_ref = next(it)
    loss_ref = next(it) if emit_elem else None

    p = pred_ref[...]
    t = tgt_ref[...]
    blk, lanes = p.shape
    step = pl.program_id(0)

    lane_i = jax.lax.broadcasted_iota(jnp.int32, (blk, lanes), 1)
    row_i = jax.lax.broadcasted_iota(jnp.int32, (blk, lanes), 0)

    # pltpu.roll is a circular lane rotation; establish its sign convention at
    # run time from a rolled iota so the kernel is correct under either
    # convention.  The probe is constant-foldable, so it is effectively free.
    lane_f = lane_i.astype(jnp.float32)
    prev_lane = jnp.bitwise_and(lane_i + (lanes - 1), lanes - 1).astype(jnp.float32)
    is_np = pltpu.roll(lane_f, 1, axis=1) == prev_lane  # uniformly True/False

    def shift_down(x, k):
        # result[..., i] = x[..., i + k]; wrapped tail lanes are don't-care
        # (a 4-lane box never straddles the 128-lane boundary).
        return jnp.where(is_np,
                         pltpu.roll(x, lanes - k, axis=1),
                         pltpu.roll(x, k, axis=1))

    p2 = shift_down(p, 2)   # lane 4g -> pred x2, lane 4g+1 -> pred y2
    t2 = shift_down(t, 2)

    d_p = p2 - p                                                     # pred  w,h
    d_t = t2 - t                                                     # tgt   w,h
    d_i = jnp.maximum(jnp.minimum(p2, t2) - jnp.maximum(p, t), 0.0)  # inter w,h
    d_e = jnp.maximum(jnp.maximum(p2, t2) - jnp.minimum(p, t), 0.0)  # encl  w,h

    area_p = d_p * shift_down(d_p, 1)          # valid at lanes 4g
    area_t = d_t * shift_down(d_t, 1)
    overlap = d_i * shift_down(d_i, 1)
    enclose = jnp.maximum(d_e * shift_down(d_e, 1), eps)

    union = jnp.maximum(area_p + area_t - overlap, eps)
    ious = overlap * pl.reciprocal(union, approx=True)
    gious = ious - (enclose - union) * pl.reciprocal(enclose, approx=True)
    loss = 1.0 - gious                         # valid at lanes 4g only

    if has_weight:
        loss = loss * w_ref[...]

    # Validity mask built in-kernel (no wmask HBM stream): keep lanes where
    # the coordinate is x1 (lane % 4 == 0) and the box index is < n_boxes.
    flat = (step * blk + row_i) * lanes + lane_i
    mask = jnp.logical_and(flat < 4 * n_boxes,
                           jnp.bitwise_and(lane_i, 3) == 0)
    loss = jnp.where(mask, loss, 0.0)

    if emit_elem:
        loss_ref[...] = loss
    # (blk, 128) -> (8, 128) by summing corresponding vregs (pure VALU); the
    # wrapper finishes with a tiny jnp.sum.
    psum_ref[...] = jnp.sum(loss.reshape(blk // 8, 8, lanes), axis=0)


def _run_giou_kernel(pred2d, tgt2d, w2d, eps, n, blk, need_elem):
    """pred2d/tgt2d[/w2d]: (t_pad, 128) f32 with t_pad % blk == 0."""
    t_pad = pred2d.shape[0]
    assert t_pad % blk == 0 and blk % 8 == 0
    num_steps = t_pad // blk
    has_weight = w2d is not None

    in_specs = [pl.BlockSpec((blk, LANES), lambda i: (i, 0)),
                pl.BlockSpec((blk, LANES), lambda i: (i, 0))]
    operands = [pred2d, tgt2d]
    if has_weight:
        in_specs.append(pl.BlockSpec((blk, LANES), lambda i: (i, 0)))
        operands.append(w2d)

    out_shape = [jax.ShapeDtypeStruct((num_steps * 8, LANES), jnp.float32)]
    out_specs = [pl.BlockSpec((8, LANES), lambda i: (i, 0))]
    if need_elem:
        out_shape.append(jax.ShapeDtypeStruct((t_pad, LANES), jnp.float32))
        out_specs.append(pl.BlockSpec((blk, LANES), lambda i: (i, 0)))

    kernel = functools.partial(_giou_kernel, eps=eps, n_boxes=n,
                               has_weight=has_weight, emit_elem=need_elem)

    outs = pl.pallas_call(
        kernel,
        out_shape=tuple(out_shape),
        grid_spec=pltpu.PrefetchScalarGridSpec(
            num_scalar_prefetch=0,
            grid=(num_steps,),
            in_specs=in_specs,
            out_specs=tuple(out_specs),
        ),
        compiler_params=pltpu.CompilerParams(
            dimension_semantics=("parallel",),
            vmem_limit_bytes=32 * 1024 * 1024),
    )(*operands)

    loss_sum = jnp.sum(outs[0])
    loss_elem = None
    if need_elem:
        # lane 4g of the flattened output == element [box, 0] of an (N, 4) view
        loss_elem = outs[1].reshape(-1, 4)[:n, 0]
    return loss_elem, loss_sum


def _giou_loss_elem_ref(pred, target, eps):
    """Pure-JAX elementwise GIoU loss (mmdet bbox_overlaps giou, aligned)."""
    area_p = (pred[:, 2] - pred[:, 0]) * (pred[:, 3] - pred[:, 1])
    area_t = (target[:, 2] - target[:, 0]) * (target[:, 3] - target[:, 1])
    lt = jnp.maximum(pred[:, :2], target[:, :2])
    rb = jnp.minimum(pred[:, 2:], target[:, 2:])
    wh = jnp.clip(rb - lt, 0)
    overlap = wh[:, 0] * wh[:, 1]
    union = jnp.maximum(area_p + area_t - overlap, eps)
    ious = overlap / union
    elt = jnp.minimum(pred[:, :2], target[:, :2])
    erb = jnp.maximum(pred[:, 2:], target[:, 2:])
    ewh = jnp.clip(erb - elt, 0)
    enclose = jnp.maximum(ewh[:, 0] * ewh[:, 1], eps)
    gious = ious - (enclose - union) / enclose
    return 1.0 - gious


class GIoULoss:
    """JAX/Pallas reimplementation of the PyTorch GIoULoss module."""

    def __init__(self, eps=1e-6, reduction="mean", loss_weight=1.0,
                 min_kernel_boxes=2048):
        self.eps = float(eps)
        self.reduction = reduction
        self.loss_weight = float(loss_weight)
        self.min_kernel_boxes = int(min_kernel_boxes)

    def _pallas_path(self, pred, target, weight, n, need_elem):
        t_rows = -(-n // BOXES_PER_ROW)          # rows of 32 boxes
        blk = _pick_block_rows(t_rows)
        t_pad = _round_up(t_rows, blk)
        n_pad = t_pad * BOXES_PER_ROW

        if n_pad != n:
            # TODO(synk): this pad is a full copy; producers whose ceil(n/32)
            # has a multiple-of-8 divisor hit the zero-copy path instead.
            pred = jnp.pad(pred, ((0, n_pad - n), (0, 0)))
            target = jnp.pad(target, ((0, n_pad - n), (0, 0)))

        # Zero-copy relayout: (n_pad, 4) -> (t_pad, 128), coords interleaved
        # along lanes; de-interleaving happens in-kernel on the idle XLU.
        pred2d = pred.reshape(t_pad, LANES)
        tgt2d = target.reshape(t_pad, LANES)

        w2d = None
        if weight is not None:
            w_col = jnp.pad(weight, (0, n_pad - n)) if n_pad != n else weight
            w2d = (w_col[:, None]
                   * jnp.array([1.0, 0.0, 0.0, 0.0], jnp.float32)
                   ).reshape(t_pad, LANES)

        return _run_giou_kernel(pred2d, tgt2d, w2d, self.eps, n, blk, need_elem)

    def __call__(self, pred, target, weight=None, avg_factor=None,
                 reduction_override=None):
        assert reduction_override in (None, "none", "mean", "sum")
        reduction = reduction_override if reduction_override else self.reduction

        pred = jnp.asarray(pred, jnp.float32)
        target = jnp.asarray(target, jnp.float32)
        n = pred.shape[0]

        if weight is not None:
            weight = jnp.asarray(weight, jnp.float32)
            if weight.ndim > 1:
                assert weight.shape == pred.shape
                weight = weight.mean(-1)

        need_elem = (reduction == "none")

        if n < self.min_kernel_boxes:
            # Small-N path: single fused XLA elementwise graph, no kernel.
            loss_elem = _giou_loss_elem_ref(pred, target, self.eps)
            if weight is not None:
                loss_elem = loss_elem * weight
            loss_sum = jnp.sum(loss_elem)
        else:
            loss_elem, loss_sum = self._pallas_path(pred, target, weight, n,
                                                    need_elem)

        if avg_factor is None:
            if reduction == "none":
                out = loss_elem
            elif reduction == "mean":
                out = loss_sum / jnp.float32(n)
            elif reduction == "sum":
                out = loss_sum
            else:
                raise ValueError(reduction)
        else:
            if reduction == "mean":
                out = loss_sum / jnp.float32(avg_factor)
            elif reduction == "none":
                out = loss_elem
            else:
                raise ValueError(
                    'avg_factor can not be used with reduction="sum"')

        return self.loss_weight * out


if __name__ == "__main__":
    key = jax.random.PRNGKey(0)
    k1, k2, k3, k4, k5 = jax.random.split(key, 5)

    # 20480 boxes = 640 rows of 32 -> zero-copy relayout, 2 parallel grid steps.
    n = 20480
    xy_p = jax.random.uniform(k1, (n, 2), jnp.float32, 0.0, 10.0)
    wh_p = jax.random.uniform(k2, (n, 2), jnp.float32, 0.5, 5.0)
    pred = jnp.concatenate([xy_p, xy_p + wh_p], axis=-1)        # (n, 4)

    xy_t = jax.random.uniform(k3, (n, 2), jnp.float32, 0.0, 10.0)
    wh_t = jax.random.uniform(k4, (n, 2), jnp.float32, 0.5, 5.0)
    target = jnp.concatenate([xy_t, xy_t + wh_t], axis=-1)      # (n, 4)

    weight = jax.random.uniform(k5, (n,), jnp.float32, 0.5, 1.5)

    loss_mod = GIoULoss(eps=1e-6, reduction="mean", loss_weight=1.0)

    # Kernel paths (approx-reciprocal => 2e-3 tolerance vs f32 reference).
    out_mean = jax.block_until_ready(loss_mod(pred, target))
    out_none = jax.block_until_ready(
        loss_mod(pred, target, reduction_override="none"))
    out_wavg = jax.block_until_ready(
        loss_mod(pred, target, weight=weight, avg_factor=n / 2))

    ref_elem = _giou_loss_elem_ref(pred, target, 1e-6)
    assert jnp.allclose(out_mean, ref_elem.mean(), rtol=2e-3, atol=2e-3)
    assert jnp.allclose(out_none, ref_elem, rtol=2e-3, atol=2e-3)
    assert jnp.allclose(out_wavg, (ref_elem * weight).sum() / (n / 2),
                        rtol=2e-3, atol=2e-3)

    # Non-32-aligned box count: exercises the (padded) kernel path as well.
    n2 = 20000
    out_mean2 = jax.block_until_ready(loss_mod(pred[:n2], target[:n2]))
    ref2 = _giou_loss_elem_ref(pred[:n2], target[:n2], 1e-6).mean()
    assert jnp.allclose(out_mean2, ref2, rtol=2e-3, atol=2e-3)

    # Small-N fallback path (pure JAX, no kernel launch, exact math).
    n_s = 16
    out_small = jax.block_until_ready(loss_mod(pred[:n_s], target[:n_s]))
    assert jnp.allclose(
        out_small, _giou_loss_elem_ref(pred[:n_s], target[:n_s], 1e-6).mean(),
        rtol=1e-5, atol=1e-5)

    print("KERNEL_OK")
</pallas_src>

<mosaic_0001>
module attributes {stable_mosaic.version = 11 : i64} {
  func.func @_giou_kernel(%arg0: i32, %arg1: memref<320x128xf32, #tpu.memory_space<vmem>>, %arg2: memref<320x128xf32, #tpu.memory_space<vmem>>, %arg3: memref<8x128xf32, #tpu.memory_space<vmem>>) attributes {dimension_semantics = [#tpu.dimension_semantics<parallel>], iteration_bounds = array<i64: 2>, scalar_prefetch = 0 : i64, scratch_operands = 0 : i64, tpu.core_type = #tpu.core_type<tc>, window_params = [{transform_indices = @transform_0, window_bounds = array<i64: 320, 128>}, {transform_indices = @transform_1, window_bounds = array<i64: 320, 128>}, {transform_indices = @transform_2, window_bounds = array<i64: 8, 128>}]} {
    %c0 = arith.constant 0 : index
    %c0_0 = arith.constant 0 : index
    %0 = vector.load %arg1[%c0, %c0_0] : memref<320x128xf32, #tpu.memory_space<vmem>>, vector<320x128xf32>
    %c0_1 = arith.constant 0 : index
    %c0_2 = arith.constant 0 : index
    %1 = vector.load %arg2[%c0_1, %c0_2] : memref<320x128xf32, #tpu.memory_space<vmem>>, vector<320x128xf32>
    %2 = tpu.iota {dimensions = array<i32: 1>} : vector<320x128xi32>
    %3 = tpu.iota {dimensions = array<i32: 0>} : vector<320x128xi32>
    %4 = arith.sitofp %2 : vector<320x128xi32> to vector<320x128xf32>
    %c127_i32 = arith.constant 127 : i32
    %5 = vector.broadcast %c127_i32 : i32 to vector<320x128xi32>
    %6 = arith.addi %2, %5 : vector<320x128xi32>
    %c127_i32_3 = arith.constant 127 : i32
    %7 = vector.broadcast %c127_i32_3 : i32 to vector<320x128xi32>
    %8 = arith.andi %6, %7 : vector<320x128xi32>
    %9 = arith.sitofp %8 : vector<320x128xi32> to vector<320x128xf32>
    %c1_i32 = arith.constant 1 : i32
    %10 = tpu.dynamic_rotate %4 by %c1_i32 dim 1 : vector<320x128xf32>, i32 -> vector<320x128xf32>
    %11 = arith.cmpf oeq, %10, %9 : vector<320x128xf32>
    %c126_i32 = arith.constant 126 : i32
    %12 = tpu.dynamic_rotate %0 by %c126_i32 dim 1 : vector<320x128xf32>, i32 -> vector<320x128xf32>
    %c2_i32 = arith.constant 2 : i32
    %13 = tpu.dynamic_rotate %0 by %c2_i32 dim 1 : vector<320x128xf32>, i32 -> vector<320x128xf32>
    %14 = arith.select %11, %12, %13 : vector<320x128xi1>, vector<320x128xf32>
    %c126_i32_4 = arith.constant 126 : i32
    %15 = tpu.dynamic_rotate %1 by %c126_i32_4 dim 1 : vector<320x128xf32>, i32 -> vector<320x128xf32>
    %c2_i32_5 = arith.constant 2 : i32
    %16 = tpu.dynamic_rotate %1 by %c2_i32_5 dim 1 : vector<320x128xf32>, i32 -> vector<320x128xf32>
    %17 = arith.select %11, %15, %16 : vector<320x128xi1>, vector<320x128xf32>
    %18 = arith.subf %14, %0 : vector<320x128xf32>
    %19 = arith.subf %17, %1 : vector<320x128xf32>
    %20 = arith.minimumf %14, %17 : vector<320x128xf32>
    %21 = arith.maximumf %0, %1 : vector<320x128xf32>
    %22 = arith.subf %20, %21 : vector<320x128xf32>
    %cst = arith.constant 0.000000e+00 : f32
    %23 = vector.broadcast %cst : f32 to vector<320x128xf32>
    %24 = arith.maximumf %22, %23 : vector<320x128xf32>
    %25 = arith.maximumf %14, %17 : vector<320x128xf32>
    %26 = arith.minimumf %0, %1 : vector<320x128xf32>
    %27 = arith.subf %25, %26 : vector<320x128xf32>
    %cst_6 = arith.constant 0.000000e+00 : f32
    %28 = vector.broadcast %cst_6 : f32 to vector<320x128xf32>
    %29 = arith.maximumf %27, %28 : vector<320x128xf32>
    %c127_i32_7 = arith.constant 127 : i32
    %30 = tpu.dynamic_rotate %18 by %c127_i32_7 dim 1 : vector<320x128xf32>, i32 -> vector<320x128xf32>
    %c1_i32_8 = arith.constant 1 : i32
    %31 = tpu.dynamic_rotate %18 by %c1_i32_8 dim 1 : vector<320x128xf32>, i32 -> vector<320x128xf32>
    %32 = arith.select %11, %30, %31 : vector<320x128xi1>, vector<320x128xf32>
    %33 = arith.mulf %18, %32 : vector<320x128xf32>
    %c127_i32_9 = arith.constant 127 : i32
    %34 = tpu.dynamic_rotate %19 by %c127_i32_9 dim 1 : vector<320x128xf32>, i32 -> vector<320x128xf32>
    %c1_i32_10 = arith.constant 1 : i32
    %35 = tpu.dynamic_rotate %19 by %c1_i32_10 dim 1 : vector<320x128xf32>, i32 -> vector<320x128xf32>
    %36 = arith.select %11, %34, %35 : vector<320x128xi1>, vector<320x128xf32>
    %37 = arith.mulf %19, %36 : vector<320x128xf32>
    %c127_i32_11 = arith.constant 127 : i32
    %38 = tpu.dynamic_rotate %24 by %c127_i32_11 dim 1 : vector<320x128xf32>, i32 -> vector<320x128xf32>
    %c1_i32_12 = arith.constant 1 : i32
    %39 = tpu.dynamic_rotate %24 by %c1_i32_12 dim 1 : vector<320x128xf32>, i32 -> vector<320x128xf32>
    %40 = arith.select %11, %38, %39 : vector<320x128xi1>, vector<320x128xf32>
    %41 = arith.mulf %24, %40 : vector<320x128xf32>
    %c127_i32_13 = arith.constant 127 : i32
    %42 = tpu.dynamic_rotate %29 by %c127_i32_13 dim 1 : vector<320x128xf32>, i32 -> vector<320x128xf32>
    %c1_i32_14 = arith.constant 1 : i32
    %43 = tpu.dynamic_rotate %29 by %c1_i32_14 dim 1 : vector<320x128xf32>, i32 -> vector<320x128xf32>
    %44 = arith.select %11, %42, %43 : vector<320x128xi1>, vector<320x128xf32>
    %45 = arith.mulf %29, %44 : vector<320x128xf32>
    %cst_15 = arith.constant 9.99999997E-7 : f32
    %46 = vector.broadcast %cst_15 : f32 to vector<320x128xf32>
    %47 = arith.maximumf %45, %46 : vector<320x128xf32>
    %48 = arith.addf %33, %37 : vector<320x128xf32>
    %49 = arith.subf %48, %41 : vector<320x128xf32>
    %cst_16 = arith.constant 9.99999997E-7 : f32
    %50 = vector.broadcast %cst_16 : f32 to vector<320x128xf32>
    %51 = arith.maximumf %49, %50 : vector<320x128xf32>
    %52 = tpu.reciprocal %51 {approx = true} : vector<320x128xf32> -> vector<320x128xf32>
    %53 = arith.mulf %41, %52 : vector<320x128xf32>
    %54 = arith.subf %47, %51 : vector<320x128xf32>
    %55 = tpu.reciprocal %47 {approx = true} : vector<320x128xf32> -> vector<320x128xf32>
    %56 = arith.mulf %54, %55 : vector<320x128xf32>
    %57 = arith.subf %53, %56 : vector<320x128xf32>
    %cst_17 = arith.constant 1.000000e+00 : f32
    %58 = vector.broadcast %cst_17 : f32 to vector<320x128xf32>
    %59 = arith.subf %58, %57 : vector<320x128xf32>
    %c320_i32 = arith.constant 320 : i32
    %60 = arith.muli %arg0, %c320_i32 : i32
    %61 = vector.broadcast %60 : i32 to vector<320x128xi32>
    %62 = arith.addi %61, %3 : vector<320x128xi32>
    %c128_i32 = arith.constant 128 : i32
    %63 = vector.broadcast %c128_i32 : i32 to vector<320x128xi32>
    %64 = arith.muli %62, %63 : vector<320x128xi32>
    %65 = arith.addi %64, %2 : vector<320x128xi32>
    %c81920_i32 = arith.constant 81920 : i32
    %66 = vector.broadcast %c81920_i32 : i32 to vector<320x128xi32>
    %67 = arith.cmpi slt, %65, %66 : vector<320x128xi32>
    %c3_i32 = arith.constant 3 : i32
    %68 = vector.broadcast %c3_i32 : i32 to vector<320x128xi32>
    %69 = arith.andi %2, %68 : vector<320x128xi32>
    %c0_i32 = arith.constant 0 : i32
    %70 = vector.broadcast %c0_i32 : i32 to vector<320x128xi32>
    %71 = arith.cmpi eq, %69, %70 : vector<320x128xi32>
    %72 = arith.andi %67, %71 : vector<320x128xi1>
    %cst_18 = arith.constant 0.000000e+00 : f32
    %73 = vector.broadcast %cst_18 : f32 to vector<320x128xf32>
    %74 = arith.select %72, %59, %73 : vector<320x128xi1>, vector<320x128xf32>
    %75 = vector.shape_cast %74 : vector<320x128xf32> to vector<40x8x128xf32>
    %cst_19 = arith.constant dense<0.000000e+00> : vector<8x128xf32>
    %76 = vector.multi_reduction <add>, %75, %cst_19 [0] : vector<40x8x128xf32> to vector<8x128xf32>
    %c0_20 = arith.constant 0 : index
    %c0_21 = arith.constant 0 : index
    %77 = vector.load %arg3[%c0_20, %c0_21] : memref<8x128xf32, #tpu.memory_space<vmem>>, vector<8x128xf32>
    tpu.vector_store %arg3[%c0_20, %c0_21], %76 {strides = array<i32>} : memref<8x128xf32, #tpu.memory_space<vmem>>, vector<8x128xf32>,
    return
  }
  func.func @transform_0(%arg0: i32) -> (i32, i32) {
    %c0_i32 = arith.constant 0 : i32
    %c0_i32_0 = arith.constant 0 : i32
    return %arg0, %c0_i32 : i32, i32
  }
  func.func @transform_1(%arg0: i32) -> (i32, i32) {
    %c0_i32 = arith.constant 0 : i32
    %c0_i32_0 = arith.constant 0 : i32
    return %arg0, %c0_i32 : i32, i32
  }
  func.func @transform_2(%arg0: i32) -> (i32, i32) {
    %c0_i32 = arith.constant 0 : i32
    %c0_i32_0 = arith.constant 0 : i32
    return %arg0, %c0_i32 : i32, i32
  }
}

</mosaic_0001>

<bundles_post_ra>
// kernel: tpu_custom_call.1
= control target key start
LH: loop header
LB: loop body
LE: loop exit
PB: predicated region body
PF: predicated region fallthrough
CT: control target
= control target key end

     0   :  { %7 = vsyncpa [#allocation3], 0  ;;  %s9318_s0 = inlined_call_operand.hbm [shape: f32[640,128], index: 0, kind: input, shape index: {}]   ;;  %s9319_s1 = inlined_call_operand.hbm [shape: f32[640,128], index: 1, kind: input, shape index: {}]   ;;  %s9320_s2 = inlined_call_operand.hbm [shape: f32[16,128], index: 2, kind: output, shape index: {}]  }
   0x1   :  { %9 = vsyncpa [#allocation3 + $0x1], 0 }
   0x2   :  { %10 = vsyncpa [#allocation6], 0 }
   0x3   :  { %12 = vsyncpa [#allocation6 + $0x1], 0 }
   0x4   :  { %13 = vsyncpa [#allocation4], 0 }
   0x5   :  { %15 = vsyncpa [#allocation4 + $0x1], 0  ;;  %s3397_s9 = smov 0   ;;  %s3399_s10 = smov 0  }
   0x6   :  { %s3401_s11 = smov 0   ;;  %s3403_s12 = smov 0  }
   0x7 LB: > { %s3418_s13 = sadd.s32 4294967295, %s3374_s12   ;;  %s2931_s14 = sadd.s32 4294967294, %s3374_s12   ;;  %s3374_s12 = sphi %s3403_s12, %s11752_s12   ;;  %s3370_s11 = sphi %s3401_s11, %s11751_s11   ;;  %s3366_s10 = sphi %s3399_s10, %s11750_s10   ;;  %s3362_s9 = sphi %s3397_s9, %s11749_s9  }
   0x8   : > { %s3422_s15 = sadd.s32 1, %s3374_s12   ;;  %s28_s16 = sadd.s32 1, %s3370_s11 }
   0x9   : > { %s25_s17 = ssub.s32 %s3374_s12, %s3422_s15  ;;  %p35_p0 = scmp.ne.s32.totalorder %s3370_s11, %s3366_s10 }
   0xa   : > { %p26_p1 = scmp.eq.s32.totalorder %s25_s17, 0  ;;  %p36_p2 = scmp.eq.s32.totalorder %s3374_s12, 0 }
   0xb   : > { %p41_p3 = scmp.ne.s32.totalorder %s3366_s10, %s3362_s9  ;;  %p42_p4 = scmp.eq.s32.totalorder %s3418_s13, 0 }
   0xc   : > { %s3434_s18 = scalar_select %p26_p1, %s3370_s11, %s28_s16  }
   0xd   : > { %p37_p5 = por %p36_p2, %p35_p0  ;;  %p3436_p6 = por %p42_p4, %p41_p3 }
   0xe   : > { %p91_p7 = scmp.eq.s32.totalorder %s3418_s13, 1  ;;  %p97_p8 = scmp.eq.s32.totalorder %s2931_s14, 1 }
   0xf   : > { %p2933_p9 = scmp.ge.s32.totalorder %s3374_s12, 2  ;;  %p2964_p10 = scmp.lt.s32.totalorder %s3374_s12, 2 }
  0x10   : > { %p3443_p11 = por %p91_p7, %p35_p0  ;;  %p3447_p12 = por %p97_p8, %p41_p3 }
  0x11   : > { %s3452_s22 = sand.u32 1, %s3370_s11   ;;  %s2942_s23 = smul.u32 320, %s3374_s12 }
  0x12   : > { %s2944_s24 = smul.u32 320, %s3452_s22  ;;  %p3461_p13 = pnand %p2964_p10, %p37_p5 }
  0x13   : > { %s126_s27 = scalar_lea.hbm %s9318_s0, %s2942_s23  ;;  %s118_s4 = scalar_lea.sflag [#allocation3], %s3452_s22 }
  0x14   : > { %s127_s29 = sshll.u32 %s126_s27, 4  ;;  %s121_s30 = scalar_lea.vmem [#allocation2], %s2944_s24  ;;  %s128_s29 = int_to_ptr.hbm [resolvable:$true] %s127_s29 }
  0x15   : > { %s129_s3 = sshll.u32 %s121_s30, 4  ;;  %s3244_s5 = sshra.s32 %s128_s29, 4  ;;  %s130_s3 = int_to_ptr.vmem [resolvable:$true] %s129_s3  ;;  %s3245_s5 = int_to_ptr.hbm [resolvable:$true] %s3244_s5 }
  0x16   : > { %s3246_s6 = scalar_lea.hbm %s3245_s5, 320  ;;  %p3248_p1 = pneg %p3461_p13 }
  0x17   : > { %p3247_p0 = scmp.ne.s32.totalorder %s3245_s5, %s3246_s6  ;;  %s3251_s14 = scalar_lea.hbm %s9318_s0, 640 }
  0x18   : > { %p3252_p4 = scmp.lt.s32.totalorder %s3245_s5, %s9318_s0  ;;  %p3253_p5 = scmp.lt.s32.totalorder %s3251_s14, %s3246_s6 }
  0x19   : > { %p3249_p2 = pnand %p3248_p1, %p3247_p0 }
  0x1a   : > { %p3254_p7 = por %p3253_p5, %p3252_p4 }
  0x1b   : > { %p3250_p3 = pneg %p3249_p2 }
  0x1d   : > { %p3255_p8 = pnand %p3254_p7, %p3250_p3 }
  0x1f   : > { %3258 = shalt.err (!%p3255_p8)
}
  0x20   : > { %s3376_s25 = smov 128   ;;  %s3377_s26 = smov 8  }
  0x21   : > { %2956 = dma.hbm_to_vmem [thread:$0]  (!%p3461_p13), %s128_s29, 5120, %s130_s3, %s118_s4, %s3376_s25, %s3376_s25, %s3377_s26  }
  0x22   : > { %p2936_p10 = scmp.ge.s32.totalorder %s3374_s12, 1  ;;  %p159_p0 = scmp.lt.s32.totalorder %s3374_s12, 3 }
  0x23   : > { %s148_s6 = scalar_lea.hbm %s9319_s1, %s2942_s23  ;;  %s143_s8 = scalar_lea.vmem [#allocation5], %s2944_s24 }
  0x24   : > { %p3483_p2 = pnand %p2936_p10, %p159_p0  ;;  %s149_s7 = sshll.u32 %s148_s6, 4  ;;  %s150_s7 = int_to_ptr.hbm [resolvable:$true] %s149_s7 }
  0x25   : > { %s151_s14 = sshll.u32 %s143_s8, 4  ;;  %s140_s16 = scalar_lea.sflag [#allocation6], %s3452_s22  ;;  %s152_s14 = int_to_ptr.vmem [resolvable:$true] %s151_s14 }
  0x26   : > { %s3274_s17 = sshra.s32 %s150_s7, 4  ;;  %s3281_s30 = scalar_lea.hbm %s9319_s1, 640  ;;  %s3275_s17 = int_to_ptr.hbm [resolvable:$true] %s3274_s17 }
  0x27   : > { %s3276_s29 = scalar_lea.hbm %s3275_s17, 320  ;;  %p3282_p7 = scmp.lt.s32.totalorder %s3275_s17, %s9319_s1 }
  0x28   : > { %p3277_p3 = scmp.ne.s32.totalorder %s3275_s17, %s3276_s29  ;;  %p3283_p8 = scmp.lt.s32.totalorder %s3281_s30, %s3276_s29 }
  0x2a   : > { %p3279_p4 = pnand %p3277_p3, %p3248_p1  ;;  %p3284_p10 = por %p3283_p8, %p3282_p7 }
  0x2c   : > { %p3280_p5 = pneg %p3279_p4 }
  0x2e   : > { %p3285_p0 = pnand %p3284_p10, %p3280_p5 }
  0x30   : > { %3288 = shalt.err (!%p3285_p0)
}
  0x31   : > { %2959 = dma.hbm_to_vmem [thread:$0]  (!%p3461_p13), %s150_s7, 5120, %s152_s14, %s140_s16, %s3376_s25, %s3376_s25, %s3377_s26  }
  0x32   : > { %163 = sbr.rel (%p3483_p2) target bundleno = 1560 (0x618), region = 28 }
  0x37   : > { %s3509_s22 = sand.u32 1, %s3366_s10  }
  0x38   : > { %s2946_s24 = smul.u32 320, %s3509_s22  ;;  %s166_s6 = scalar_lea.sflag [#allocation3], %s3509_s22 }
  0x3a   : > { %s3513_s8 = scalar_lea.vmem [#allocation2], %s2946_s24 }
  0x3b   : > { %3349 = dma.done.wait (%p3436_p6), %s166_s6, 5120  }
  0x3c   : > { %3351 = vsyncadd (%p3436_p6), %s166_s6, 4294962176  ;;  %s176_s28 = scalar_lea.sflag [#allocation6], %s3509_s22  ;;  %s3520_s25 = scalar_lea.vmem [#allocation5], %s2946_s24 }
  0x3d   : > { %3353 = dma.done.wait (%p3436_p6), %s176_s28, 5120  }
  0x3e   : > { %3355 = vsyncadd (%p3436_p6), %s176_s28, 4294962176  ;;  %v9321_v0 = vlaneseq  ;;  %s3378_s26 = smov 1   ;;  %v3532_v3 = vld [vmem:[%s3513_s8 + $0x18] sm:$0xff]  ;;  %v3535_v4 = vld [vmem:[%s3513_s8 + $0x8] sm:$0xff]  ;;  %s3379_s19 = smov 126  }
  0x3f   : > { %344 = vrot.lane.b32.xlu2 %v3532_v3, %s3379_s19  ;;  %340 = vrot.lane.b32.xlu1 %v3535_v4, %s3379_s19  ;;  %v3542_v5 = vld [vmem:[%s3513_s8] sm:$0xff]  ;;  %v3548_v7 = vld [vmem:[%s3513_s8 + $0x10] sm:$0xff]  ;;  %s3380_s27 = smov 2   ;;  %s3381_s7 = smov 127  }
  0x40   : > { %v3527_v1 = vand.u32 127, %v9321_v0  ;;  %v3545_v6 = vld [vmem:[%s3513_s8 + $0x20] sm:$0xff]  ;;  %v3557_v8 = vld [vmem:[%s3513_s8 + $0x28] sm:$0xff]  ;;  %v3560_v9 = vld [vmem:[%s3513_s8 + $0x38] sm:$0xff]  ;;  %s2538_s14 = smul.u32 320, %s3418_s13  ;;  %s2937_s16 = sshll.u32 %s3509_s22, 3 }
  0x41   : > { %9850 = vst [vmem:[#allocation12_spill] sm:$0xff] %v3545_v6  ;;  %v3563_v10 = vld [vmem:[%s3513_s8 + $0x30] sm:$0xff]  ;;  %v3572_v11 = vld [vmem:[%s3513_s8 + $0x40] sm:$0xff]  ;;  %v3578_v13 = vld [vmem:[%s3513_s8 + $0x48] sm:$0xff]  ;;  %s2939_s17 = sshll.u32 %s3418_s13, 3  ;;  %s205_s13 = scalar_lea.vmem [#allocation7], %s2937_s16 }
  0x42   : > { %9849 = vst [vmem:[#allocation11_spill] sm:$0xff] %v3527_v1  ;;  %v331_v2 = vcvt.s32.f32 %v3527_v1  ;;  %v3575_v12 = vld [vmem:[%s3513_s8 + $0x50] sm:$0xff]  ;;  %v3587_v14 = vld [vmem:[%s3513_s8 + $0x58] sm:$0xff]  ;;  %v3590_v15 = vld [vmem:[%s3513_s8 + $0x68] sm:$0xff]  ;;  %s2833_s4 = scalar_lea.hbm %s9320_s2, %s2939_s17  ;;  %s2835_s30 = sshll.u32 %s205_s13, 4  ;;  %s2836_s30 = int_to_ptr.vmem [resolvable:$true] %s2835_s30 }
  0x43   : > { %9851 = vst [vmem:[#allocation13_spill] sm:$0xff] %v3557_v8  ;;  %v3593_v16 = vld [vmem:[%s3513_s8 + $0x60] sm:$0xff]  ;;  %v3602_v17 = vld [vmem:[%s3513_s8 + $0x70] sm:$0xff]  ;;  %v3608_v19 = vld [vmem:[%s3513_s8 + $0x78] sm:$0xff]  ;;  %s2837_s23 = sshll.u32 %s2833_s4, 4  ;;  %s2823_s5 = scalar_lea.sflag [#allocation4], %s3509_s22  ;;  %s2838_s23 = int_to_ptr.hbm [resolvable:$true] %s2837_s23 }
  0x44   : > { %335 = vrot.lane.b32.xlu0 %v331_v2, %s3378_s26  ;;  %9852 = vst [vmem:[#allocation14_spill] sm:$0xff] %v3560_v9  ;;  %v3605_v18 = vld [vmem:[%s3513_s8 + $0x80] sm:$0xff]  ;;  %v3617_v20 = vld [vmem:[%s3513_s8 + $0x88] sm:$0xff]  ;;  %v3620_v21 = vld [vmem:[%s3513_s8 + $0x98] sm:$0xff]  ;;  %s3318_s24 = sshra.s32 %s2838_s23, 4  ;;  %s3319_s24 = int_to_ptr.hbm [resolvable:$true] %s3318_s24 }
  0x45   : > { %9853 = vst [vmem:[#allocation15_spill] sm:$0xff] %v3563_v10  ;;  %v3623_v22 = vld [vmem:[%s3513_s8 + $0x90] sm:$0xff]  ;;  %v3632_v23 = vld [vmem:[%s3513_s8 + $0xa0] sm:$0xff]  ;;  %v3638_v25 = vld [vmem:[%s3513_s8 + $0xa8] sm:$0xff]  ;;  %s3320_s6 = scalar_lea.hbm %s3319_s24, 8  ;;  %p3325_p2 = scmp.lt.s32.totalorder %s3319_s24, %s9320_s2 }
  0x46   : > { %9854 = vst [vmem:[#allocation16_spill] sm:$0xff] %v3572_v11  ;;  %v3635_v24 = vld [vmem:[%s3513_s8 + $0xb0] sm:$0xff]  ;;  %v3647_v26 = vld [vmem:[%s3513_s8 + $0xb8] sm:$0xff]  ;;  %v3650_v27 = vld [vmem:[%s3513_s8 + $0xc8] sm:$0xff]  ;;  %p3321_p6 = scmp.ne.s32.totalorder %s3319_s24, %s3320_s6 }
  0x47   : > { %346 = vrot.lane.b32.xlu2 %v3545_v6, %s3379_s19  ;;  %342 = vrot.lane.b32.xlu1 %v3548_v7, %s3379_s19  ;;  %9855 = vst [vmem:[#allocation17_spill] sm:$0xff] %v3575_v12  ;;  %v3653_v28 = vld [vmem:[%s3513_s8 + $0xc0] sm:$0xff]  ;;  %v3662_v29 = vld [vmem:[%s3513_s8 + $0xd0] sm:$0xff] }
  0x48   : > { %9856 = vst [vmem:[#allocation18_spill] sm:$0xff] %v3578_v13  ;;  %v3665_v30 = vld [vmem:[%s3513_s8 + $0xe0] sm:$0xff]  ;;  %v3668_v31 = vld [vmem:[%s3513_s8 + $0xd8] sm:$0xff]  ;;  %v3677_v32 = vld [vmem:[%s3513_s8 + $0xe8] sm:$0xff]  ;;  %p3322_p13 = pnand %p3321_p6, %p3443_p11 }
  0x49   : > { %9857 = vst [vmem:[#allocation19_spill] sm:$0xff] %v3587_v14  ;;  %v3680_v33 = vld [vmem:[%s3513_s8 + $0xf8] sm:$0xff]  ;;  %v3683_v34 = vld [vmem:[%s3513_s8 + $0xf0] sm:$0xff]  ;;  %v3692_v35 = vld [vmem:[%s3513_s8 + $0x100] sm:$0xff] }
  0x4a   : > { %9858 = vst [vmem:[#allocation20_spill] sm:$0xff] %v3590_v15  ;;  %v3695_v36 = vld [vmem:[%s3513_s8 + $0x110] sm:$0xff]  ;;  %v3698_v37 = vld [vmem:[%s3513_s8 + $0x108] sm:$0xff]  ;;  %v3709_v39 = vld [vmem:[%s3513_s8 + $0x118] sm:$0xff]  ;;  %p3323_p1 = pneg %p3322_p13 }
  0x4b   : > { %9859 = vst [vmem:[#allocation21_spill] sm:$0xff] %v3593_v16  ;;  %v3712_v40 = vld [vmem:[%s3513_s8 + $0x128] sm:$0xff]  ;;  %v3715_v41 = vld [vmem:[%s3513_s8 + $0x120] sm:$0xff]  ;;  %v3726_v43 = vld [vmem:[%s3513_s8 + $0x130] sm:$0xff] }
  0x4c   : > { %338 = vrot.lane.b32.xlu0 %v3542_v5, %s3379_s19  ;;  %9860 = vst [vmem:[#allocation22_spill] sm:$0xff] %v3602_v17  ;;  %v3729_v44 = vld [vmem:[%s3513_s8 + $0x138] sm:$0xff] }
  0x4d   : > { %9861 = vst [vmem:[#allocation23_spill] sm:$0xff] %v3605_v18 }
  0x4e   : > { %9862 = vst [vmem:[#allocation24_spill] sm:$0xff] %v3608_v19 }
  0x4f   : > { %352 = vrot.lane.b32.xlu2 %v3560_v9, %s3379_s19  ;;  %350 = vrot.lane.b32.xlu1 %v3563_v10, %s3379_s19  ;;  %9863 = vst [vmem:[#allocation25_spill] sm:$0xff] %v3617_v20 }
  0x50   : > { %9864 = vst [vmem:[#allocation26_spill] sm:$0xff] %v3620_v21 }
  0x51   : > { %9865 = vst [vmem:[#allocation27_spill] sm:$0xff] %v3623_v22 }
  0x52   : > { %9866 = vst [vmem:[#allocation28_spill] sm:$0xff] %v3632_v23 }
  0x53   : > { %9867 = vst [vmem:[#allocation29_spill] sm:$0xff] %v3635_v24 }
  0x54   : > { %348 = vrot.lane.b32.xlu0 %v3557_v8, %s3379_s19  ;;  %9868 = vst [vmem:[#allocation30_spill] sm:$0xff] %v3638_v25 }
  0x55   : > { %9869 = vst [vmem:[#allocation31_spill] sm:$0xff] %v3647_v26 }
  0x56   : > { %9870 = vst [vmem:[#allocation32_spill] sm:$0xff] %v3650_v27 }
  0x57   : > { %358 = vrot.lane.b32.xlu2 %v3575_v12, %s3379_s19  ;;  %356 = vrot.lane.b32.xlu1 %v3578_v13, %s3379_s19  ;;  %9871 = vst [vmem:[#allocation33_spill] sm:$0xff] %v3653_v28 }
  0x58   : > { %9872 = vst [vmem:[#allocation34_spill] sm:$0xff] %v3662_v29 }
  0x59   : > { %9873 = vst [vmem:[#allocation35_spill] sm:$0xff] %v3665_v30 }
  0x5a   : > { %9874 = vst [vmem:[#allocation36_spill] sm:$0xff] %v3668_v31 }
  0x5b   : > { %9875 = vst [vmem:[#allocation37_spill] sm:$0xff] %v3677_v32 }
  0x5c   : > { %354 = vrot.lane.b32.xlu0 %v3572_v11, %s3379_s19  ;;  %9876 = vst [vmem:[#allocation38_spill] sm:$0xff] %v3680_v33 }
  0x5d   : > { %9877 = vst [vmem:[#allocation39_spill] sm:$0xff] %v3683_v34 }
  0x5e   : > { %9878 = vst [vmem:[#allocation40_spill] sm:$0xff] %v3692_v35 }
  0x5f   : > { %364 = vrot.lane.b32.xlu2 %v3590_v15, %s3379_s19  ;;  %362 = vrot.lane.b32.xlu1 %v3593_v16, %s3379_s19  ;;  %9879 = vst [vmem:[#allocation41_spill] sm:$0xff] %v3695_v36 }
  0x60   : > { %9880 = vst [vmem:[#allocation42_spill] sm:$0xff] %v3698_v37 }
  0x61   : > { %9881 = vst [vmem:[#allocation43_spill] sm:$0xff] %v3709_v39 }
  0x62   : > { %9882 = vst [vmem:[#allocation44_spill] sm:$0xff] %v3712_v40 }
  0x63   : > { %9883 = vst [vmem:[#allocation45_spill] sm:$0xff] %v3715_v41 }
  0x64   : > { %360 = vrot.lane.b32.xlu0 %v3587_v14, %s3379_s19  ;;  %9884 = vst [vmem:[#allocation46_spill] sm:$0xff] %v3726_v43 }
  0x65   : > { %9885 = vst [vmem:[#allocation47_spill] sm:$0xff] %v3729_v44 }
  0x67   : > { %370 = vrot.lane.b32.xlu2 %v3605_v18, %s3379_s19  ;;  %368 = vrot.lane.b32.xlu1 %v3608_v19, %s3379_s19 }
  0x6c   : > { %366 = vrot.lane.b32.xlu0 %v3602_v17, %s3379_s19 }
  0x6f   : > { %376 = vrot.lane.b32.xlu2 %v3620_v21, %s3379_s19  ;;  %374 = vrot.lane.b32.xlu1 %v3623_v22, %s3379_s19 }
  0x74   : > { %372 = vrot.lane.b32.xlu0 %v3617_v20, %s3379_s19 }
  0x77   : > { %382 = vrot.lane.b32.xlu2 %v3635_v24, %s3379_s19  ;;  %380 = vrot.lane.b32.xlu1 %v3638_v25, %s3379_s19 }
  0x7c   : > { %378 = vrot.lane.b32.xlu0 %v3632_v23, %s3379_s19 }
  0x7f   : > { %388 = vrot.lane.b32.xlu2 %v3650_v27, %s3379_s19  ;;  %386 = vrot.lane.b32.xlu1 %v3653_v28, %s3379_s19 }
  0x84   : > { %384 = vrot.lane.b32.xlu0 %v3647_v26, %s3379_s19 }
  0x87   : > { %394 = vrot.lane.b32.xlu2 %v3665_v30, %s3379_s19  ;;  %392 = vrot.lane.b32.xlu1 %v3668_v31, %s3379_s19 }
  0x8c   : > { %390 = vrot.lane.b32.xlu0 %v3662_v29, %s3379_s19 }
  0x8f   : > { %400 = vrot.lane.b32.xlu2 %v3680_v33, %s3379_s19  ;;  %398 = vrot.lane.b32.xlu1 %v3683_v34, %s3379_s19 }
  0x94   : > { %396 = vrot.lane.b32.xlu0 %v3677_v32, %s3379_s19 }
  0x97   : > { %406 = vrot.lane.b32.xlu2 %v3695_v36, %s3379_s19  ;;  %404 = vrot.lane.b32.xlu1 %v3698_v37, %s3379_s19 }
  0x99   : > { %v3706_v38 = vpop.permute.xlu2 %344 }
  0x9c   : > { %402 = vrot.lane.b32.xlu0 %v3692_v35, %s3379_s19 }
  0x9f   : > { %412 = vrot.lane.b32.xlu2 %v3712_v40, %s3379_s19  ;;  %410 = vrot.lane.b32.xlu1 %v3715_v41, %s3379_s19 }
  0xa1   : > { %v3723_v42 = vpop.permute.xlu2 %346 }
  0xa4   : > { %408 = vrot.lane.b32.xlu0 %v3709_v39, %s3379_s19 }
  0xa7   : > { %416 = vrot.lane.b32.xlu1 %v3729_v44, %s3379_s19  ;;  %418 = vrot.lane.b32.xlu2 %v3542_v5, %s3380_s27 }
  0xa9   : > { %v3737_v45 = vpop.permute.xlu2 %352 }
  0xaa   : > { %9886 = vst [vmem:[#allocation48_spill] sm:$0xff] %v3737_v45  ;;  %v4148_v45 = vld [vmem:[%s3520_s25 + $0x120] sm:$0xff] }
  0xab   : > { %9985 = vst [vmem:[#allocation147_spill] sm:$0xff] %v4148_v45 }
  0xac   : > { %414 = vrot.lane.b32.xlu0 %v3726_v43, %s3379_s19 }
  0xaf   : > { %422 = vrot.lane.b32.xlu1 %v3548_v7, %s3380_s27  ;;  %424 = vrot.lane.b32.xlu2 %v3532_v3, %s3380_s27 }
  0xb1   : > { %v3747_v47 = vpop.permute.xlu2 %358  ;;  %v3749_v48 = vpop.permute.xlu1 %340 }
  0xb2   : > { %9887 = vst [vmem:[#allocation49_spill] sm:$0xff] %v3747_v47  ;;  %v4085_v47 = vld [vmem:[%s3520_s25 + $0xd8] sm:$0xff] }
  0xb3   : > { %9967 = vst [vmem:[#allocation129_spill] sm:$0xff] %v4085_v47 }
  0xb4   : > { %420 = vrot.lane.b32.xlu0 %v3535_v4, %s3380_s27 }
  0xb6   : > { %v3741_v46 = vpop.permute.xlu0 %335 }
  0xb7   : > { %428 = vrot.lane.b32.xlu1 %v3557_v8, %s3380_s27  ;;  %430 = vrot.lane.b32.xlu2 %v3563_v10, %s3380_s27  ;;  %v4154_v8 = vld [vmem:[%s3520_s25 + $0x130] sm:$0xff]  ;;  %v4169_v10 = vld [vmem:[%s3520_s25 + $0x138] sm:$0xff] }
  0xb8   : > { %9987 = vst [vmem:[#allocation149_spill] sm:$0xff] %v4154_v8 }
  0xb9   : > { %v3759_v50 = vpop.permute.xlu2 %364  ;;  %v3761_v51 = vpop.permute.xlu1 %342  ;;  %9990 = vst [vmem:[#allocation152_spill] sm:$0xff] %v4169_v10 }
  0xba   : > { %9888 = vst [vmem:[#allocation50_spill] sm:$0xff] %v3759_v50  ;;  %v4025_v50 = vld [vmem:[%s3520_s25 + $0x98] sm:$0xff] }
  0xbb   : > { %9950 = vst [vmem:[#allocation112_spill] sm:$0xff] %v4025_v50 }
  0xbc   : > { %426 = vrot.lane.b32.xlu0 %v3545_v6, %s3380_s27 }
  0xbe   : > { %v3757_v49 = vpop.permute.xlu0 %338 }
  0xbf   : > { %434 = vrot.lane.b32.xlu1 %v3572_v11, %s3380_s27  ;;  %436 = vrot.lane.b32.xlu2 %v3578_v13, %s3380_s27  ;;  %v4091_v11 = vld [vmem:[%s3520_s25 + $0xe8] sm:$0xff]  ;;  %v4106_v13 = vld [vmem:[%s3520_s25 + $0xf0] sm:$0xff] }
  0xc0   : > { %9969 = vst [vmem:[#allocation131_spill] sm:$0xff] %v4091_v11 }
  0xc1   : > { %v3771_v53 = vpop.permute.xlu2 %370  ;;  %v3773_v54 = vpop.permute.xlu1 %350  ;;  %9973 = vst [vmem:[#allocation135_spill] sm:$0xff] %v4106_v13 }
  0xc2   : > { %9890 = vst [vmem:[#allocation52_spill] sm:$0xff] %v3771_v53 }
  0xc4   : > { %432 = vrot.lane.b32.xlu0 %v3560_v9, %s3380_s27  ;;  %v4109_v9 = vld [vmem:[%s3520_s25 + $0xf8] sm:$0xff] }
  0xc5   : > { %9974 = vst [vmem:[#allocation136_spill] sm:$0xff] %v4109_v9 }
  0xc6   : > { %v3769_v52 = vpop.permute.xlu0 %348 }
  0xc7   : > { %9889 = vst [vmem:[#allocation51_spill] sm:$0xff] %v3769_v52  ;;  %440 = vrot.lane.b32.xlu1 %v3587_v14, %s3380_s27  ;;  %442 = vrot.lane.b32.xlu2 %v3593_v16, %s3380_s27  ;;  %v4028_v14 = vld [vmem:[%s3520_s25 + $0xa0] sm:$0xff]  ;;  %v4043_v16 = vld [vmem:[%s3520_s25 + $0xa8] sm:$0xff] }
  0xc8   : > { %9951 = vst [vmem:[#allocation113_spill] sm:$0xff] %v4028_v14 }
  0xc9   : > { %v3783_v56 = vpop.permute.xlu2 %376  ;;  %v3785_v57 = vpop.permute.xlu1 %356  ;;  %9955 = vst [vmem:[#allocation117_spill] sm:$0xff] %v4043_v16 }
  0xca   : > { %9892 = vst [vmem:[#allocation54_spill] sm:$0xff] %v3783_v56 }
  0xcb   : > { %9893 = vst [vmem:[#allocation55_spill] sm:$0xff] %v3785_v57  ;;  %v4130_v57 = vld [vmem:[%s3520_s25 + $0x110] sm:$0xff] }
  0xcc   : > { %438 = vrot.lane.b32.xlu0 %v3575_v12, %s3380_s27  ;;  %v4046_v12 = vld [vmem:[%s3520_s25 + $0xb0] sm:$0xff]  ;;  %9980 = vst [vmem:[#allocation142_spill] sm:$0xff] %v4130_v57 }
  0xcd   : > { %9956 = vst [vmem:[#allocation118_spill] sm:$0xff] %v4046_v12 }
  0xce   : > { %v3781_v55 = vpop.permute.xlu0 %354 }
  0xcf   : > { %9891 = vst [vmem:[#allocation53_spill] sm:$0xff] %v3781_v55  ;;  %446 = vrot.lane.b32.xlu1 %v3602_v17, %s3380_s27  ;;  %448 = vrot.lane.b32.xlu2 %v3608_v19, %s3380_s27  ;;  %v4001_v17 = vld [vmem:[%s3520_s25 + $0x78] sm:$0xff]  ;;  %v4004_v19 = vld [vmem:[%s3520_s25 + $0x80] sm:$0xff] }
  0xd0   : > { %9943 = vst [vmem:[#allocation105_spill] sm:$0xff] %v4001_v17  ;;  %v4112_v55 = vld [vmem:[%s3520_s25 + $0x100] sm:$0xff] }
  0xd1   : > { %v3795_v59 = vpop.permute.xlu2 %382  ;;  %v3797_v60 = vpop.permute.xlu1 %362  ;;  %9944 = vst [vmem:[#allocation106_spill] sm:$0xff] %v4004_v19 }
  0xd2   : > { %9895 = vst [vmem:[#allocation57_spill] sm:$0xff] %v3795_v59 }
  0xd3   : > { %9896 = vst [vmem:[#allocation58_spill] sm:$0xff] %v3797_v60  ;;  %v4067_v60 = vld [vmem:[%s3520_s25 + $0xc8] sm:$0xff] }
  0xd4   : > { %444 = vrot.lane.b32.xlu0 %v3590_v15, %s3380_s27  ;;  %v4007_v15 = vld [vmem:[%s3520_s25 + $0x88] sm:$0xff]  ;;  %9962 = vst [vmem:[#allocation124_spill] sm:$0xff] %v4067_v60 }
  0xd5   : > { %9945 = vst [vmem:[#allocation107_spill] sm:$0xff] %v4007_v15 }
  0xd6   : > { %v3793_v58 = vpop.permute.xlu0 %360  ;;  %9975 = vst [vmem:[#allocation137_spill] sm:$0xff] %v4112_v55 }
  0xd7   : > { %9894 = vst [vmem:[#allocation56_spill] sm:$0xff] %v3793_v58  ;;  %452 = vrot.lane.b32.xlu1 %v3617_v20, %s3380_s27  ;;  %454 = vrot.lane.b32.xlu2 %v3623_v22, %s3380_s27  ;;  %v3980_v22 = vld [vmem:[%s3520_s25 + $0x60] sm:$0xff]  ;;  %v4049_v58 = vld [vmem:[%s3520_s25 + $0xb8] sm:$0xff] }
  0xd8   : > { %9937 = vst [vmem:[#allocation99_spill] sm:$0xff] %v3980_v22 }
  0xd9   : > { %v3807_v62 = vpop.permute.xlu2 %388  ;;  %v3809_v63 = vpop.permute.xlu1 %368  ;;  %9957 = vst [vmem:[#allocation119_spill] sm:$0xff] %v4049_v58 }
  0xda   : > { %9898 = vst [vmem:[#allocation60_spill] sm:$0xff] %v3807_v62 }
  0xdb   : > { %9899 = vst [vmem:[#allocation61_spill] sm:$0xff] %v3809_v63 }
  0xdc   : > { %450 = vrot.lane.b32.xlu0 %v3605_v18, %s3380_s27  ;;  %v3983_v18 = vld [vmem:[%s3520_s25 + $0x68] sm:$0xff] }
  0xdd   : > { %9938 = vst [vmem:[#allocation100_spill] sm:$0xff] %v3983_v18 }
  0xde   : > { %v3805_v61 = vpop.permute.xlu0 %366 }
  0xdf   : > { %9897 = vst [vmem:[#allocation59_spill] sm:$0xff] %v3805_v61  ;;  %458 = vrot.lane.b32.xlu1 %v3632_v23, %s3380_s27  ;;  %460 = vrot.lane.b32.xlu2 %v3638_v25, %s3380_s27 }
  0xe1   : > { %v3819_v0 = vpop.permute.xlu2 %394  ;;  %v3821_v59 = vpop.permute.xlu1 %374 }
  0xe2   : > { %9901 = vst [vmem:[#allocation63_spill] sm:$0xff] %v3819_v0 }
  0xe3   : > { %9902 = vst [vmem:[#allocation64_spill] sm:$0xff] %v3821_v59 }
  0xe4   : > { %456 = vrot.lane.b32.xlu0 %v3620_v21, %s3380_s27  ;;  %v3962_v21 = vld [vmem:[%s3520_s25 + $0x50] sm:$0xff] }
  0xe5   : > { %9932 = vst [vmem:[#allocation94_spill] sm:$0xff] %v3962_v21 }
  0xe6   : > { %v3817_v2 = vpop.permute.xlu0 %372 }
  0xe7   : > { %9900 = vst [vmem:[#allocation62_spill] sm:$0xff] %v3817_v2  ;;  %464 = vrot.lane.b32.xlu1 %v3647_v26, %s3380_s27  ;;  %466 = vrot.lane.b32.xlu2 %v3653_v28, %s3380_s27  ;;  %v3986_v2 = vld [vmem:[%s3520_s25 + $0x70] sm:$0xff] }
  0xe8   : > { %9939 = vst [vmem:[#allocation101_spill] sm:$0xff] %v3986_v2 }
  0xe9   : > { %v3831_v23 = vpop.permute.xlu2 %400  ;;  %v3833_v25 = vpop.permute.xlu1 %380 }
  0xea   : > { %9904 = vst [vmem:[#allocation66_spill] sm:$0xff] %v3831_v23 }
  0xeb   : > { %9905 = vst [vmem:[#allocation67_spill] sm:$0xff] %v3833_v25 }
  0xec   : > { %462 = vrot.lane.b32.xlu0 %v3635_v24, %s3380_s27 }
  0xee   : > { %v3829_v62 = vpop.permute.xlu0 %378 }
  0xef   : > { %9903 = vst [vmem:[#allocation65_spill] sm:$0xff] %v3829_v62  ;;  %470 = vrot.lane.b32.xlu1 %v3662_v29, %s3380_s27  ;;  %472 = vrot.lane.b32.xlu2 %v3668_v31, %s3380_s27  ;;  %v3965_v62 = vld [vmem:[%s3520_s25 + $0x58] sm:$0xff] }
  0xf0   : > { %9933 = vst [vmem:[#allocation95_spill] sm:$0xff] %v3965_v62 }
  0xf1   : > { %v3843_v26 = vpop.permute.xlu2 %406  ;;  %v3845_v28 = vpop.permute.xlu1 %386 }
  0xf2   : > { %9907 = vst [vmem:[#allocation69_spill] sm:$0xff] %v3843_v26 }
  0xf3   : > { %9908 = vst [vmem:[#allocation70_spill] sm:$0xff] %v3845_v28  ;;  %v3959_v28 = vld [vmem:[%s3520_s25 + $0x48] sm:$0xff] }
  0xf4   : > { %468 = vrot.lane.b32.xlu0 %v3650_v27, %s3380_s27  ;;  %v3941_v27 = vld [vmem:[%s3520_s25 + $0x38] sm:$0xff]  ;;  %9931 = vst [vmem:[#allocation93_spill] sm:$0xff] %v3959_v28 }
  0xf5   : > { %9928 = vst [vmem:[#allocation90_spill] sm:$0xff] %v3941_v27 }
  0xf6   : > { %v3841_v0 = vpop.permute.xlu0 %384 }
  0xf7   : > { %9906 = vst [vmem:[#allocation68_spill] sm:$0xff] %v3841_v0  ;;  %476 = vrot.lane.b32.xlu1 %v3677_v32, %s3380_s27  ;;  %478 = vrot.lane.b32.xlu2 %v3683_v34, %s3380_s27 }
  0xf9   : > { %v3855_v29 = vpop.permute.xlu2 %412  ;;  %v3857_v31 = vpop.permute.xlu1 %392 }
  0xfa   : > { %9910 = vst [vmem:[#allocation72_spill] sm:$0xff] %v3855_v29 }
  0xfb   : > { %9911 = vst [vmem:[#allocation73_spill] sm:$0xff] %v3857_v31 }
  0xfc   : > { %474 = vrot.lane.b32.xlu0 %v3665_v30, %s3380_s27  ;;  %v3923_v30 = vld [vmem:[%s3520_s25 + $0x28] sm:$0xff] }
  0xfd   : > { %9925 = vst [vmem:[#allocation87_spill] sm:$0xff] %v3923_v30 }
  0xfe   : > { %v3853_v23 = vpop.permute.xlu0 %390 }
  0xff   : > { %9909 = vst [vmem:[#allocation71_spill] sm:$0xff] %v3853_v23  ;;  %482 = vrot.lane.b32.xlu1 %v3692_v35, %s3380_s27  ;;  %484 = vrot.lane.b32.xlu2 %v3698_v37, %s3380_s27  ;;  %v3944_v23 = vld [vmem:[%s3520_s25 + $0x40] sm:$0xff] }
 0x100   : > { %9929 = vst [vmem:[#allocation91_spill] sm:$0xff] %v3944_v23 }
 0x101   : > { %v3867_v32 = vpop.permute.xlu1 %398  ;;  %v3869_v34 = vpop.permute.xlu2 %418 }
 0x102   : > { %9913 = vst [vmem:[#allocation75_spill] sm:$0xff] %v3867_v32  ;;  %v3938_v32 = vld [vmem:[%s3520_s25 + $0x30] sm:$0xff] }
 0x103   : > { %9927 = vst [vmem:[#allocation89_spill] sm:$0xff] %v3938_v32 }
 0x104   : > { %480 = vrot.lane.b32.xlu0 %v3680_v33, %s3380_s27  ;;  %v3896_v33 = vld [vmem:[%s3520_s25] sm:$0xff] }
 0x105   : > { %9918 = vst [vmem:[#allocation80_spill] sm:$0xff] %v3896_v33 }
 0x106   : > { %v3865_v26 = vpop.permute.xlu0 %396 }
 0x107   : > { %9912 = vst [vmem:[#allocation74_spill] sm:$0xff] %v3865_v26  ;;  %488 = vrot.lane.b32.xlu1 %v3709_v39, %s3380_s27  ;;  %490 = vrot.lane.b32.xlu2 %v3715_v41, %s3380_s27 }
 0x109   : > { %v3879_v35 = vpop.permute.xlu1 %404  ;;  %v3881_v37 = vpop.permute.xlu2 %424 }
 0x10a   : > { %9915 = vst [vmem:[#allocation77_spill] sm:$0xff] %v3879_v35  ;;  %v3902_v35 = vld [vmem:[%s3520_s25 + $0x10] sm:$0xff] }
 0x10c   : > { %486 = vrot.lane.b32.xlu0 %v3695_v36, %s3380_s27 }
 0x10e   : > { %v3877_v29 = vpop.permute.xlu0 %402 }
 0x10f   : > { %9914 = vst [vmem:[#allocation76_spill] sm:$0xff] %v3877_v29  ;;  %494 = vrot.lane.b32.xlu1 %v3726_v43, %s3380_s27  ;;  %496 = vrot.lane.b32.xlu2 %v3729_v44, %s3380_s27  ;;  %v3899_v29 = vld [vmem:[%s3520_s25 + $0x8] sm:$0xff] }
 0x110   : > { %9919 = vst [vmem:[#allocation81_spill] sm:$0xff] %v3899_v29 }
 0x111   : > { %v3891_v41 = vpop.permute.xlu1 %410  ;;  %v3893_v36 = vpop.permute.xlu2 %430 }
 0x112   : > { %9917 = vst [vmem:[#allocation79_spill] sm:$0xff] %v3891_v41  ;;  %v3920_v41 = vld [vmem:[%s3520_s25 + $0x20] sm:$0xff] }
 0x113   : > { %9924 = vst [vmem:[#allocation86_spill] sm:$0xff] %v3920_v41 }
 0x114   : > { %492 = vrot.lane.b32.xlu0 %v3712_v40, %s3380_s27 }
 0x116   : > { %v3889_v39 = vpop.permute.xlu0 %408 }
 0x117   : > { %9916 = vst [vmem:[#allocation78_spill] sm:$0xff] %v3889_v39  ;;  %540 = vrot.lane.b32.xlu1 %v3899_v29, %s3379_s19  ;;  %542 = vrot.lane.b32.xlu2 %v3902_v35, %s3379_s19  ;;  %v3917_v39 = vld [vmem:[%s3520_s25 + $0x18] sm:$0xff] }
 0x118   : > { %9923 = vst [vmem:[#allocation85_spill] sm:$0xff] %v3917_v39 }
 0x119   : > { %v3912_v44 = vpop.permute.xlu1 %416  ;;  %v3914_v40 = vpop.permute.xlu2 %436 }
 0x11a   : > { %9921 = vst [vmem:[#allocation83_spill] sm:$0xff] %v3912_v44 }
 0x11b   : > { %9922 = vst [vmem:[#allocation84_spill] sm:$0xff] %v3914_v40  ;;  %v4133_v40 = vld [vmem:[%s3520_s25 + $0x118] sm:$0xff] }
 0x11c   : > { %538 = vrot.lane.b32.xlu0 %v3896_v33, %s3379_s19  ;;  %9981 = vst [vmem:[#allocation143_spill] sm:$0xff] %v4133_v40 }
 0x11e   : > { %v3910_v43 = vpop.permute.xlu0 %414 }
 0x11f   : > { %9920 = vst [vmem:[#allocation82_spill] sm:$0xff] %v3910_v43  ;;  %546 = vrot.lane.b32.xlu1 %v3920_v41, %s3379_s19  ;;  %548 = vrot.lane.b32.xlu2 %v3923_v30, %s3379_s19 }
 0x121   : > { %v3933_v44 = vpop.permute.xlu1 %422  ;;  %v3935_v26 = vpop.permute.xlu2 %442 }
 0x122   : > { %9926 = vst [vmem:[#allocation88_spill] sm:$0xff] %v3935_v26  ;;  %v4070_v26 = vld [vmem:[%s3520_s25 + $0xd0] sm:$0xff] }
 0x123   : > { %9963 = vst [vmem:[#allocation125_spill] sm:$0xff] %v4070_v26 }
 0x124   : > { %544 = vrot.lane.b32.xlu0 %v3917_v39, %s3379_s19 }
 0x126   : > { %v3931_v43 = vpop.permute.xlu0 %420 }
 0x127   : > { %552 = vrot.lane.b32.xlu1 %v3941_v27, %s3379_s19  ;;  %554 = vrot.lane.b32.xlu2 %v3944_v23, %s3379_s19 }
 0x129   : > { %v3954_v24 = vpop.permute.xlu1 %428  ;;  %v3956_v0 = vpop.permute.xlu2 %448 }
 0x12a   : > { %9930 = vst [vmem:[#allocation92_spill] sm:$0xff] %v3956_v0  ;;  %v4022_v0 = vld [vmem:[%s3520_s25 + $0x90] sm:$0xff] }
 0x12b   : > { %9949 = vst [vmem:[#allocation111_spill] sm:$0xff] %v4022_v0 }
 0x12c   : > { %550 = vrot.lane.b32.xlu0 %v3938_v32, %s3379_s19 }
 0x12e   : > { %v3952_v31 = vpop.permute.xlu0 %426 }
 0x12f   : > { %558 = vrot.lane.b32.xlu1 %v3962_v21, %s3379_s19  ;;  %560 = vrot.lane.b32.xlu2 %v3965_v62, %s3379_s19 }
 0x131   : > { %v3975_v56 = vpop.permute.xlu1 %434  ;;  %v3977_v20 = vpop.permute.xlu2 %454 }
 0x132   : > { %9935 = vst [vmem:[#allocation97_spill] sm:$0xff] %v3975_v56  ;;  %v4127_v56 = vld [vmem:[%s3520_s25 + $0x108] sm:$0xff] }
 0x133   : > { %9936 = vst [vmem:[#allocation98_spill] sm:$0xff] %v3977_v20 }
 0x134   : > { %556 = vrot.lane.b32.xlu0 %v3959_v28, %s3379_s19  ;;  %9979 = vst [vmem:[#allocation141_spill] sm:$0xff] %v4127_v56 }
 0x136   : > { %v3973_v25 = vpop.permute.xlu0 %432 }
 0x137   : > { %9934 = vst [vmem:[#allocation96_spill] sm:$0xff] %v3973_v25  ;;  %564 = vrot.lane.b32.xlu1 %v3983_v18, %s3379_s19  ;;  %566 = vrot.lane.b32.xlu2 %v3986_v2, %s3379_s19  ;;  %v4151_v25 = vld [vmem:[%s3520_s25 + $0x128] sm:$0xff] }
 0x138   : > { %9986 = vst [vmem:[#allocation148_spill] sm:$0xff] %v4151_v25 }
 0x139   : > { %v3996_v20 = vpop.permute.xlu1 %440  ;;  %v3998_v53 = vpop.permute.xlu2 %460 }
 0x13a   : > { %9941 = vst [vmem:[#allocation103_spill] sm:$0xff] %v3996_v20  ;;  %v4064_v20 = vld [vmem:[%s3520_s25 + $0xc0] sm:$0xff] }
 0x13b   : > { %9942 = vst [vmem:[#allocation104_spill] sm:$0xff] %v3998_v53 }
 0x13c   : > { %562 = vrot.lane.b32.xlu0 %v3980_v22, %s3379_s19  ;;  %9961 = vst [vmem:[#allocation123_spill] sm:$0xff] %v4064_v20 }
 0x13e   : > { %v3994_v59 = vpop.permute.xlu0 %438 }
 0x13f   : > { %9940 = vst [vmem:[#allocation102_spill] sm:$0xff] %v3994_v59  ;;  %570 = vrot.lane.b32.xlu1 %v4004_v19, %s3379_s19  ;;  %572 = vrot.lane.b32.xlu2 %v4007_v15, %s3379_s19  ;;  %v4088_v59 = vld [vmem:[%s3520_s25 + $0xe0] sm:$0xff] }
 0x140   : > { %9968 = vst [vmem:[#allocation130_spill] sm:$0xff] %v4088_v59 }
 0x141   : > { %v4017_v53 = vpop.permute.xlu1 %446  ;;  %v4019_v63 = vpop.permute.xlu2 %466 }
 0x142   : > { %9947 = vst [vmem:[#allocation109_spill] sm:$0xff] %v4017_v53 }
 0x143   : > { %9948 = vst [vmem:[#allocation110_spill] sm:$0xff] %v4019_v63 }
 0x144   : > { %568 = vrot.lane.b32.xlu0 %v4001_v17, %s3379_s19 }
 0x146   : > { %v4015_v61 = vpop.permute.xlu0 %444 }
 0x147   : > { %9946 = vst [vmem:[#allocation108_spill] sm:$0xff] %v4015_v61  ;;  %576 = vrot.lane.b32.xlu1 %v4025_v50, %s3379_s19  ;;  %578 = vrot.lane.b32.xlu2 %v4028_v14, %s3379_s19 }
 0x149   : > { %v4038_v63 = vpop.permute.xlu1 %452  ;;  %v4040_v61 = vpop.permute.xlu2 %472 }
 0x14a   : > { %9953 = vst [vmem:[#allocation115_spill] sm:$0xff] %v4038_v63 }
 0x14b   : > { %9954 = vst [vmem:[#allocation116_spill] sm:$0xff] %v4040_v61 }
 0x14c   : > { %574 = vrot.lane.b32.xlu0 %v4022_v0, %s3379_s19 }
 0x14e   : > { %v4036_v53 = vpop.permute.xlu0 %450 }
 0x14f   : > { %9952 = vst [vmem:[#allocation114_spill] sm:$0xff] %v4036_v53  ;;  %582 = vrot.lane.b32.xlu1 %v4046_v12, %s3379_s19  ;;  %584 = vrot.lane.b32.xlu2 %v4049_v58, %s3379_s19 }
 0x151   : > { %v4059_v61 = vpop.permute.xlu1 %458  ;;  %v4061_v53 = vpop.permute.xlu2 %478 }
 0x152   : > { %9959 = vst [vmem:[#allocation121_spill] sm:$0xff] %v4059_v61 }
 0x153   : > { %9960 = vst [vmem:[#allocation122_spill] sm:$0xff] %v4061_v53 }
 0x154   : > { %580 = vrot.lane.b32.xlu0 %v4043_v16, %s3379_s19 }
 0x156   : > { %v4057_v63 = vpop.permute.xlu0 %456 }
 0x157   : > { %9958 = vst [vmem:[#allocation120_spill] sm:$0xff] %v4057_v63  ;;  %588 = vrot.lane.b32.xlu1 %v4067_v60, %s3379_s19  ;;  %590 = vrot.lane.b32.xlu2 %v4070_v26, %s3379_s19 }
 0x159   : > { %v4080_v53 = vpop.permute.xlu1 %464  ;;  %v4082_v63 = vpop.permute.xlu2 %484 }
 0x15a   : > { %9965 = vst [vmem:[#allocation127_spill] sm:$0xff] %v4080_v53 }
 0x15b   : > { %9966 = vst [vmem:[#allocation128_spill] sm:$0xff] %v4082_v63 }
 0x15c   : > { %586 = vrot.lane.b32.xlu0 %v4064_v20, %s3379_s19 }
 0x15e   : > { %v4078_v61 = vpop.permute.xlu0 %462 }
 0x15f   : > { %9964 = vst [vmem:[#allocation126_spill] sm:$0xff] %v4078_v61  ;;  %594 = vrot.lane.b32.xlu1 %v4088_v59, %s3379_s19  ;;  %596 = vrot.lane.b32.xlu2 %v4091_v11, %s3379_s19 }
 0x161   : > { %v4101_v63 = vpop.permute.xlu1 %470  ;;  %v4103_v61 = vpop.permute.xlu2 %490 }
 0x162   : > { %9971 = vst [vmem:[#allocation133_spill] sm:$0xff] %v4101_v63 }
 0x163   : > { %9972 = vst [vmem:[#allocation134_spill] sm:$0xff] %v4103_v61 }
 0x164   : > { %592 = vrot.lane.b32.xlu0 %v4085_v47, %s3379_s19 }
 0x166   : > { %v4099_v53 = vpop.permute.xlu0 %468 }
 0x167   : > { %9970 = vst [vmem:[#allocation132_spill] sm:$0xff] %v4099_v53  ;;  %600 = vrot.lane.b32.xlu1 %v4109_v9, %s3379_s19  ;;  %602 = vrot.lane.b32.xlu2 %v4112_v55, %s3379_s19 }
 0x169   : > { %v4122_v61 = vpop.permute.xlu1 %476  ;;  %v4124_v53 = vpop.permute.xlu2 %496 }
 0x16a   : > { %9977 = vst [vmem:[#allocation139_spill] sm:$0xff] %v4122_v61 }
 0x16b   : > { %9978 = vst [vmem:[#allocation140_spill] sm:$0xff] %v4124_v53 }
 0x16c   : > { %598 = vrot.lane.b32.xlu0 %v4106_v13, %s3379_s19 }
 0x16e   : > { %v4120_v63 = vpop.permute.xlu0 %474 }
 0x16f   : > { %9976 = vst [vmem:[#allocation138_spill] sm:$0xff] %v4120_v63  ;;  %606 = vrot.lane.b32.xlu1 %v4130_v57, %s3379_s19  ;;  %608 = vrot.lane.b32.xlu2 %v4133_v40, %s3379_s19 }
 0x171   : > { %v4143_v61 = vpop.permute.xlu1 %482  ;;  %v4145_v53 = vpop.permute.xlu2 %542 }
 0x172   : > { %9983 = vst [vmem:[#allocation145_spill] sm:$0xff] %v4143_v61 }
 0x173   : > { %9984 = vst [vmem:[#allocation146_spill] sm:$0xff] %v4145_v53 }
 0x174   : > { %604 = vrot.lane.b32.xlu0 %v4127_v56, %s3379_s19 }
 0x176   : > { %v4141_v63 = vpop.permute.xlu0 %480 }
 0x177   : > { %9982 = vst [vmem:[#allocation144_spill] sm:$0xff] %v4141_v63  ;;  %612 = vrot.lane.b32.xlu1 %v4151_v25, %s3379_s19  ;;  %614 = vrot.lane.b32.xlu2 %v4154_v8, %s3379_s19 }
 0x179   : > { %v4164_v61 = vpop.permute.xlu1 %488  ;;  %v4166_v53 = vpop.permute.xlu2 %548 }
 0x17a   : > { %9989 = vst [vmem:[#allocation151_spill] sm:$0xff] %v4166_v53 }
 0x17c   : > { %610 = vrot.lane.b32.xlu0 %v4148_v45, %s3379_s19 }
 0x17e   : > { %v4162_v63 = vpop.permute.xlu0 %486 }
 0x17f   : > { %9988 = vst [vmem:[#allocation150_spill] sm:$0xff] %v4162_v63  ;;  %618 = vrot.lane.b32.xlu1 %v3896_v33, %s3380_s27  ;;  %620 = vrot.lane.b32.xlu2 %v3899_v29, %s3380_s27 }
 0x181   : > { %v4179_v52 = vpop.permute.xlu1 %494  ;;  %v4181_v63 = vpop.permute.xlu2 %554 }
 0x182   : > { %9991 = vst [vmem:[#allocation153_spill] sm:$0xff] %v4181_v63 }
 0x184   : > { %616 = vrot.lane.b32.xlu0 %v4169_v10, %s3379_s19 }
 0x186   : > { %v4177_v6 = vpop.permute.xlu0 %492 }
 0x187   : > { %624 = vrot.lane.b32.xlu1 %v3917_v39, %s3380_s27  ;;  %626 = vrot.lane.b32.xlu2 %v3920_v41, %s3380_s27 }
 0x189   : > { %v4191_v33 = vpop.permute.xlu1 %540  ;;  %v4193_v29 = vpop.permute.xlu2 %560 }
 0x18a   : > { %9992 = vst [vmem:[#allocation154_spill] sm:$0xff] %v4193_v29 }
 0x18c   : > { %622 = vrot.lane.b32.xlu0 %v3902_v35, %s3380_s27 }
 0x18e   : > { %v4189_v53 = vpop.permute.xlu0 %538 }
 0x18f   : > { %630 = vrot.lane.b32.xlu1 %v3938_v32, %s3380_s27  ;;  %632 = vrot.lane.b32.xlu2 %v3941_v27, %s3380_s27 }
 0x191   : > { %v4203_v39 = vpop.permute.xlu1 %546  ;;  %v4205_v41 = vpop.permute.xlu2 %566 }
 0x192   : > { %9993 = vst [vmem:[#allocation155_spill] sm:$0xff] %v4205_v41 }
 0x194   : > { %628 = vrot.lane.b32.xlu0 %v3923_v30, %s3380_s27  ;;  %v10216_v30 = vld [vmem:[#allocation41_spill] sm:$0xff] }
 0x196   : > { %v4201_v63 = vpop.permute.xlu0 %544 }
 0x197   : > { %636 = vrot.lane.b32.xlu1 %v3959_v28, %s3380_s27  ;;  %638 = vrot.lane.b32.xlu2 %v3962_v21, %s3380_s27 }
 0x199   : > { %v4215_v32 = vpop.permute.xlu1 %552  ;;  %v4217_v27 = vpop.permute.xlu2 %572 }
 0x19a   : > { %9995 = vst [vmem:[#allocation157_spill] sm:$0xff] %v4217_v27 }
 0x19c   : > { %634 = vrot.lane.b32.xlu0 %v3944_v23, %s3380_s27  ;;  %v10179_v23 = vld [vmem:[#allocation74_spill] sm:$0xff] }
 0x19e   : > { %v4213_v29 = vpop.permute.xlu0 %550 }
 0x19f   : > { %9994 = vst [vmem:[#allocation156_spill] sm:$0xff] %v4213_v29  ;;  %642 = vrot.lane.b32.xlu1 %v3980_v22, %s3380_s27  ;;  %644 = vrot.lane.b32.xlu2 %v3983_v18, %s3380_s27 }
 0x1a1   : > { %v4227_v28 = vpop.permute.xlu1 %558  ;;  %v4229_v21 = vpop.permute.xlu2 %578 }
 0x1a2   : > { %9997 = vst [vmem:[#allocation159_spill] sm:$0xff] %v4227_v28  ;;  %v10197_v28 = vld [vmem:[#allocation76_spill] sm:$0xff] }
 0x1a3   : > { %9998 = vst [vmem:[#allocation160_spill] sm:$0xff] %v4229_v21 }
 0x1a4   : > { %640 = vrot.lane.b32.xlu0 %v3965_v62, %s3380_s27  ;;  %v10143_v62 = vld [vmem:[#allocation68_spill] sm:$0xff] }
 0x1a6   : > { %v4225_v41 = vpop.permute.xlu0 %556 }
 0x1a7   : > { %9996 = vst [vmem:[#allocation158_spill] sm:$0xff] %v4225_v41  ;;  %648 = vrot.lane.b32.xlu1 %v4001_v17, %s3380_s27  ;;  %650 = vrot.lane.b32.xlu2 %v4004_v19, %s3380_s27  ;;  %v10181_v41 = vld [vmem:[#allocation35_spill] sm:$0xff] }
 0x1a9   : > { %v4239_v22 = vpop.permute.xlu1 %564  ;;  %v4241_v18 = vpop.permute.xlu2 %584 }
 0x1aa   : > { %10000 = vst [vmem:[#allocation162_spill] sm:$0xff] %v4239_v22  ;;  %v10161_v22 = vld [vmem:[#allocation71_spill] sm:$0xff] }
 0x1ab   : > { %10001 = vst [vmem:[#allocation163_spill] sm:$0xff] %v4241_v18 }
 0x1ac   : > { %646 = vrot.lane.b32.xlu0 %v3986_v2, %s3380_s27 }
 0x1ae   : > { %v4237_v27 = vpop.permute.xlu0 %562 }
 0x1af   : > { %9999 = vst [vmem:[#allocation161_spill] sm:$0xff] %v4237_v27  ;;  %654 = vrot.lane.b32.xlu1 %v4022_v0, %s3380_s27  ;;  %656 = vrot.lane.b32.xlu2 %v4025_v50, %s3380_s27  ;;  %v10145_v27 = vld [vmem:[#allocation29_spill] sm:$0xff] }
 0x1b1   : > { %v4251_v17 = vpop.permute.xlu1 %570  ;;  %v4253_v19 = vpop.permute.xlu2 %590 }
 0x1b2   : > { %10003 = vst [vmem:[#allocation165_spill] sm:$0xff] %v4251_v17 }
 0x1b3   : > { %10004 = vst [vmem:[#allocation166_spill] sm:$0xff] %v4253_v19 }
 0x1b4   : > { %652 = vrot.lane.b32.xlu0 %v4007_v15, %s3380_s27  ;;  %v10107_v15 = vld [vmem:[#allocation62_spill] sm:$0xff] }
 0x1b6   : > { %v4249_v21 = vpop.permute.xlu0 %568 }
 0x1b7   : > { %10002 = vst [vmem:[#allocation164_spill] sm:$0xff] %v4249_v21  ;;  %660 = vrot.lane.b32.xlu1 %v4043_v16, %s3380_s27  ;;  %662 = vrot.lane.b32.xlu2 %v4046_v12, %s3380_s27  ;;  %v10125_v21 = vld [vmem:[#allocation65_spill] sm:$0xff] }
 0x1b9   : > { %v4263_v0 = vpop.permute.xlu1 %576  ;;  %v4265_v50 = vpop.permute.xlu2 %596 }
 0x1ba   : > { %10006 = vst [vmem:[#allocation168_spill] sm:$0xff] %v4263_v0  ;;  %v10109_v0 = vld [vmem:[#allocation23_spill] sm:$0xff] }
 0x1bb   : > { %10007 = vst [vmem:[#allocation169_spill] sm:$0xff] %v4265_v50 }
 0x1bc   : > { %658 = vrot.lane.b32.xlu0 %v4028_v14, %s3380_s27 }
 0x1be   : > { %v4261_v18 = vpop.permute.xlu0 %574 }
 0x1bf   : > { %10005 = vst [vmem:[#allocation167_spill] sm:$0xff] %v4261_v18  ;;  %666 = vrot.lane.b32.xlu1 %v4064_v20, %s3380_s27  ;;  %668 = vrot.lane.b32.xlu2 %v4067_v60, %s3380_s27 }
 0x1c1   : > { %v4275_v16 = vpop.permute.xlu1 %582  ;;  %v4277_v12 = vpop.permute.xlu2 %602 }
 0x1c2   : > { %10009 = vst [vmem:[#allocation171_spill] sm:$0xff] %v4275_v16 }
 0x1c3   : > { %10010 = vst [vmem:[#allocation172_spill] sm:$0xff] %v4277_v12 }
 0x1c4   : > { %664 = vrot.lane.b32.xlu0 %v4049_v58, %s3380_s27  ;;  %v10089_v58 = vld [vmem:[#allocation59_spill] sm:$0xff] }
 0x1c6   : > { %v4273_v19 = vpop.permute.xlu0 %580 }
 0x1c7   : > { %10008 = vst [vmem:[#allocation170_spill] sm:$0xff] %v4273_v19  ;;  %672 = vrot.lane.b32.xlu1 %v4085_v47, %s3380_s27  ;;  %674 = vrot.lane.b32.xlu2 %v4088_v59, %s3380_s27  ;;  %v10095_v19 = vld [vmem:[#allocation22_spill] sm:$0xff] }
 0x1c9   : > { %v4287_v20 = vpop.permute.xlu1 %588  ;;  %v4289_v60 = vpop.permute.xlu2 %608 }
 0x1ca   : > { %10012 = vst [vmem:[#allocation174_spill] sm:$0xff] %v4287_v20  ;;  %v10091_v20 = vld [vmem:[#allocation20_spill] sm:$0xff] }
 0x1cb   : > { %10013 = vst [vmem:[#allocation175_spill] sm:$0xff] %v4289_v60 }
 0x1cc   : > { %670 = vrot.lane.b32.xlu0 %v4070_v26, %s3380_s27  ;;  %v332_v26 = vadd.s32 127, %v3527_v1 }
 0x1ce   : > { %v4285_v50 = vpop.permute.xlu0 %586 }
 0x1cf   : > { %10011 = vst [vmem:[#allocation173_spill] sm:$0xff] %v4285_v50  ;;  %678 = vrot.lane.b32.xlu1 %v4106_v13, %s3380_s27  ;;  %680 = vrot.lane.b32.xlu2 %v4109_v9, %s3380_s27  ;;  %v333_v13 = vand.u32 127, %v332_v26 }
 0x1d1   : > { %v4299_v47 = vpop.permute.xlu1 %594  ;;  %v4301_v59 = vpop.permute.xlu2 %614 }
 0x1d2   : > { %10015 = vst [vmem:[#allocation177_spill] sm:$0xff] %v4299_v47 }
 0x1d3   : > { %10016 = vst [vmem:[#allocation178_spill] sm:$0xff] %v4301_v59  ;;  %v10020_v59 = vmov 0 }
 0x1d4   : > { %676 = vrot.lane.b32.xlu0 %v4091_v11, %s3380_s27 }
 0x1d6   : > { %v4297_v12 = vpop.permute.xlu0 %592 }
 0x1d7   : > { %10014 = vst [vmem:[#allocation176_spill] sm:$0xff] %v4297_v12  ;;  %684 = vrot.lane.b32.xlu1 %v4127_v56, %s3380_s27  ;;  %686 = vrot.lane.b32.xlu2 %v4130_v57, %s3380_s27  ;;  %v334_v12 = vcvt.s32.f32 %v333_v13 }
 0x1d9   : > { %v4312_v9 = vpop.permute.xlu1 %600  ;;  %v4314_v11 = vpop.permute.xlu2 %620  ;;  %vm4325_vm0 = vcmp.eq.f32.partialorder %v3741_v46, %v334_v12 }
 0x1da   : > { %10018 = vst [vmem:[#allocation180_spill] sm:$0xff] %v4312_v9  ;;  %v10021_v59 = vsel %vm4325_vm0, 4294967295, %v10020_v59  ;;  %v4337_v13 = vsel %vm4325_vm0, %v3757_v49, %v3869_v34  ;;  %v4355_v34 = vsel %vm4325_vm0, %v3749_v48, %v3931_v43  ;;  %v4365_v49 = vsel %vm4325_vm0, %v3706_v38, %v3881_v37  ;;  %v10077_v9 = vld [vmem:[#allocation19_spill] sm:$0xff] }
 0x1db   : > { %10022 = vst [vmem:[#allocation182_spill] sm:$0xff] %v10021_v59  ;;  %v4375_v43 = vsub.f32 %v4355_v34, %v3535_v4  ;;  %v4379_v48 = vsub.f32 %v4365_v49, %v3532_v3  ;;  %v4397_v3 = vsel %vm4325_vm0, %v3723_v42, %v3952_v31  ;;  %v4407_v38 = vsel %vm4325_vm0, %v3773_v54, %v3893_v36  ;;  %v10042_v42 = vld [vmem:[#allocation15_spill] sm:$0xff]  ;;  %v10046_v36 = vld [vmem:[#allocation96_spill] sm:$0xff] }
 0x1dc   : > { %682 = vrot.lane.b32.xlu0 %v4112_v55, %s3380_s27  ;;  %10024 = vst [vmem:[#allocation184_spill] sm:$0xff] %v4337_v13  ;;  %v10047_v54 = vld [vmem:[#allocation48_spill] sm:$0xff]  ;;  %v5920_v59 = vld [vmem:[%s3513_s8 + $0x50] sm:$0xff] }
 0x1dd   : > { %10027 = vst [vmem:[#allocation187_spill] sm:$0xff] %v4355_v34  ;;  %v10044_v34 = vld [vmem:[#allocation13_spill] sm:$0xff]  ;;  %v10071_v55 = vld [vmem:[#allocation56_spill] sm:$0xff] }
 0x1de   : > { %v4310_v60 = vpop.permute.xlu0 %598  ;;  %10029 = vst [vmem:[#allocation189_spill] sm:$0xff] %v4365_v49  ;;  %v10040_v49 = vld [vmem:[#allocation12_spill] sm:$0xff] }
 0x1df   : > { %10017 = vst [vmem:[#allocation179_spill] sm:$0xff] %v4310_v60  ;;  %690 = vrot.lane.b32.xlu1 %v4148_v45, %s3380_s27  ;;  %692 = vrot.lane.b32.xlu2 %v4151_v25, %s3380_s27  ;;  %v4341_v45 = vsub.f32 %v4337_v13, %v3542_v5  ;;  %v4371_v13 = vsel %vm4325_vm0, %v3761_v51, %v3933_v44  ;;  %v10038_v44 = vld [vmem:[#allocation51_spill] sm:$0xff] }
 0x1e0   : > { %10030 = vst [vmem:[#allocation190_spill] sm:$0xff] %v4371_v13  ;;  %v4413_v51 = vsel %vm4325_vm0, %v10038_v44, %v3954_v24  ;;  %v4417_v31 = vsub.f32 %v4397_v3, %v10040_v49  ;;  %v4439_v49 = vsel %vm4325_vm0, %v10047_v54, %v10046_v36  ;;  %v10058_v54 = vld [vmem:[#allocation18_spill] sm:$0xff] }
 0x1e1   : > { %v4329_v26 = vpop.permute.xlu1 %606  ;;  %v4331_v56 = vpop.permute.xlu2 %626  ;;  %10025 = vst [vmem:[#allocation185_spill] sm:$0xff] %v4341_v45 }
 0x1e2   : > { %10023 = vst [vmem:[#allocation183_spill] sm:$0xff] %v4329_v26  ;;  %v10073_v26 = vld [vmem:[#allocation17_spill] sm:$0xff] }
 0x1e3   : > { %10031 = vst [vmem:[#allocation191_spill] sm:$0xff] %v4375_v43 }
 0x1e4   : > { %688 = vrot.lane.b32.xlu0 %v4133_v40, %s3380_s27  ;;  %10032 = vst [vmem:[#allocation192_spill] sm:$0xff] %v4379_v48  ;;  %v10056_v40 = vld [vmem:[#allocation14_spill] sm:$0xff] }
 0x1e5   : > { %10035 = vst [vmem:[#allocation195_spill] sm:$0xff] %v4397_v3  ;;  %v10053_v3 = vld [vmem:[#allocation97_spill] sm:$0xff]  ;;  %v4459_v36 = vsub.f32 %v4439_v49, %v10056_v40  ;;  %v10062_v40 = vld [vmem:[#allocation102_spill] sm:$0xff] }
 0x1e6   : > { %v4322_v1 = vpop.permute.xlu0 %604  ;;  %10037 = vst [vmem:[#allocation197_spill] sm:$0xff] %v4407_v38 }
 0x1e7   : > { %10019 = vst [vmem:[#allocation181_spill] sm:$0xff] %v4322_v1  ;;  %696 = vrot.lane.b32.xlu1 %v4169_v10, %s3380_s27  ;;  %1138 = vrot.lane.b32.xlu2 %v4341_v45, %s3381_s7  ;;  %v4383_v10 = vsub.f32 %v4371_v13, %v3548_v7  ;;  %v4421_v13 = vsub.f32 %v4407_v38, %v10042_v42  ;;  %v10050_v42 = vld [vmem:[#allocation84_spill] sm:$0xff]  ;;  %v10051_v38 = vld [vmem:[#allocation55_spill] sm:$0xff] }
 0x1e8   : > { %10039 = vst [vmem:[#allocation51_spill] sm:$0xff] %v4413_v51 }
 0x1e9   : > { %v4357_v5 = vpop.permute.xlu1 %612  ;;  %v4359_v46 = vpop.permute.xlu2 %632  ;;  %10033 = vst [vmem:[#allocation193_spill] sm:$0xff] %v4383_v10 }
 0x1ea   : > { %10028 = vst [vmem:[#allocation188_spill] sm:$0xff] %v4357_v5  ;;  %v10060_v5 = vld [vmem:[#allocation16_spill] sm:$0xff] }
 0x1eb   : > { %10041 = vst [vmem:[#allocation12_spill] sm:$0xff] %v4417_v31 }
 0x1ec   : > { %694 = vrot.lane.b32.xlu0 %v4154_v8, %s3380_s27  ;;  %10043 = vst [vmem:[#allocation15_spill] sm:$0xff] %v4421_v13  ;;  %v4425_v8 = vsub.f32 %v4413_v51, %v10044_v34  ;;  %v4449_v51 = vsel %vm4325_vm0, %v10051_v38, %v10050_v42 }
 0x1ed   : > { %10048 = vst [vmem:[#allocation96_spill] sm:$0xff] %v4439_v49  ;;  %v10070_v49 = vld [vmem:[#allocation103_spill] sm:$0xff] }
 0x1ee   : > { %v4349_v12 = vpop.permute.xlu0 %610  ;;  %10045 = vst [vmem:[#allocation13_spill] sm:$0xff] %v4425_v8  ;;  %v4497_v1 = vsel %vm4325_vm0, %v10071_v55, %v10070_v49 }
 0x1ef   : > { %10026 = vst [vmem:[#allocation186_spill] sm:$0xff] %v4349_v12  ;;  %1142 = vrot.lane.b32.xlu1 %v4383_v10, %s3381_s7  ;;  %1144 = vrot.lane.b32.xlu2 %v4379_v48, %s3381_s7  ;;  %v4463_v12 = vsub.f32 %v4449_v51, %v10058_v54  ;;  %v10067_v54 = vld [vmem:[#allocation88_spill] sm:$0xff]  ;;  %v4509_v47 = vsub.f32 %v4497_v1, %v10077_v9 }
 0x1f0   : > { %10052 = vst [vmem:[#allocation84_spill] sm:$0xff] %v4449_v51  ;;  %v10068_v51 = vld [vmem:[#allocation58_spill] sm:$0xff] }
 0x1f1   : > { %v4399_v4 = vpop.permute.xlu1 %618  ;;  %v4401_v7 = vpop.permute.xlu2 %638  ;;  %10057 = vst [vmem:[#allocation97_spill] sm:$0xff] %v4459_v36 }
 0x1f2   : > { %10036 = vst [vmem:[#allocation196_spill] sm:$0xff] %v4401_v7  ;;  %v10199_v7 = vld [vmem:[#allocation38_spill] sm:$0xff] }
 0x1f3   : > { %10072 = vst [vmem:[#allocation88_spill] sm:$0xff] %v4497_v1 }
 0x1f4   : > { %1140 = vrot.lane.b32.xlu0 %v4375_v43, %s3381_s7  ;;  %10078 = vst [vmem:[#allocation56_spill] sm:$0xff] %v4509_v47 }
 0x1f5   : > { %10574 = vst [vmem:[#allocation316_spill] sm:$0xff] %v5920_v59 }
 0x1f6   : > { %v4391_v37 = vpop.permute.xlu0 %616 }
 0x1f7   : > { %10034 = vst [vmem:[#allocation194_spill] sm:$0xff] %v4391_v37  ;;  %1150 = vrot.lane.b32.xlu2 %v4421_v13, %s3381_s7  ;;  %1148 = vrot.lane.b32.xlu1 %v4425_v8, %s3381_s7  ;;  %v10054_v37 = vld [vmem:[#allocation53_spill] sm:$0xff] }
 0x1f8   : > { %v4455_v25 = vsel %vm4325_vm0, %v10054_v37, %v10053_v3  ;;  %10059 = vst [vmem:[#allocation53_spill] sm:$0xff] %v4463_v12  ;;  %v10063_v3 = vld [vmem:[#allocation49_spill] sm:$0xff] }
 0x1f9   : > { %v4441_v44 = vpop.permute.xlu1 %624  ;;  %v4443_v34 = vpop.permute.xlu2 %644  ;;  %10055 = vst [vmem:[#allocation55_spill] sm:$0xff] %v4455_v25  ;;  %v4467_v57 = vsub.f32 %v4455_v25, %v10060_v5  ;;  %v4481_v38 = vsel %vm4325_vm0, %v10063_v3, %v10062_v40  ;;  %v4491_v25 = vsel %vm4325_vm0, %v10068_v51, %v10067_v54  ;;  %v10075_v3 = vld [vmem:[#allocation21_spill] sm:$0xff]  ;;  %v10081_v51 = vld [vmem:[#allocation50_spill] sm:$0xff] }
 0x1fa   : > { %10049 = vst [vmem:[#allocation48_spill] sm:$0xff] %v4443_v34  ;;  %v4501_v40 = vsub.f32 %v4481_v38, %v10073_v26  ;;  %v4505_v60 = vsub.f32 %v4491_v25, %v10075_v3  ;;  %v10080_v26 = vld [vmem:[#allocation108_spill] sm:$0xff] }
 0x1fb   : > { %10061 = vst [vmem:[#allocation14_spill] sm:$0xff] %v4467_v57  ;;  %v4523_v49 = vsel %vm4325_vm0, %v10081_v51, %v10080_v26  ;;  %v10085_v3 = vld [vmem:[#allocation92_spill] sm:$0xff] }
 0x1fc   : > { %1146 = vrot.lane.b32.xlu0 %v4417_v31, %s3381_s7  ;;  %10064 = vst [vmem:[#allocation18_spill] sm:$0xff] %v4481_v38  ;;  %v10088_v38 = vld [vmem:[#allocation109_spill] sm:$0xff]  ;;  %v4543_v26 = vsub.f32 %v4523_v49, %v10091_v20  ;;  %v10093_v51 = vld [vmem:[#allocation24_spill] sm:$0xff]  ;;  %v10098_v20 = vld [vmem:[#allocation114_spill] sm:$0xff] }
 0x1fd   : > { %10069 = vst [vmem:[#allocation49_spill] sm:$0xff] %v4491_v25  ;;  %v10086_v25 = vld [vmem:[#allocation61_spill] sm:$0xff]  ;;  %v4539_v50 = vsel %vm4325_vm0, %v10089_v58, %v10088_v38  ;;  %v10099_v58 = vld [vmem:[#allocation52_spill] sm:$0xff] }
 0x1fe   : > { %v4433_v24 = vpop.permute.xlu0 %622  ;;  %10074 = vst [vmem:[#allocation58_spill] sm:$0xff] %v4501_v40  ;;  %v4533_v1 = vsel %vm4325_vm0, %v10086_v25, %v10085_v3  ;;  %v4551_v16 = vsub.f32 %v4539_v50, %v10095_v19  ;;  %v4565_v38 = vsel %vm4325_vm0, %v10099_v58, %v10098_v20  ;;  %v10111_v58 = vld [vmem:[#allocation27_spill] sm:$0xff]  ;;  %v10163_v34 = vld [vmem:[#allocation32_spill] sm:$0xff] }
 0x1ff   : > { %1156 = vrot.lane.b32.xlu2 %v4463_v12, %s3381_s7  ;;  %1154 = vrot.lane.b32.xlu1 %v4467_v57, %s3381_s7  ;;  %10076 = vst [vmem:[#allocation103_spill] sm:$0xff] %v4505_v60  ;;  %v4547_v14 = vsub.f32 %v4533_v1, %v10093_v51  ;;  %v10103_v51 = vld [vmem:[#allocation98_spill] sm:$0xff]  ;;  %v4585_v20 = vsub.f32 %v4565_v38, %v10109_v0  ;;  %v10116_v0 = vld [vmem:[#allocation120_spill] sm:$0xff] }
 0x200   : > { %10082 = vst [vmem:[#allocation21_spill] sm:$0xff] %v4523_v49  ;;  %v10106_v49 = vld [vmem:[#allocation115_spill] sm:$0xff] }
 0x201   : > { %v4483_v42 = vpop.permute.xlu1 %630  ;;  %v4485_v5 = vpop.permute.xlu2 %650  ;;  %10087 = vst [vmem:[#allocation50_spill] sm:$0xff] %v4533_v1  ;;  %v10104_v1 = vld [vmem:[#allocation64_spill] sm:$0xff]  ;;  %v4581_v18 = vsel %vm4325_vm0, %v10107_v15, %v10106_v49  ;;  %v10117_v15 = vld [vmem:[#allocation54_spill] sm:$0xff] }
 0x202   : > { %10065 = vst [vmem:[#allocation16_spill] sm:$0xff] %v4483_v42  ;;  %v4607_v49 = vsel %vm4325_vm0, %v10117_v15, %v10116_v0  ;;  %v10129_v15 = vld [vmem:[#allocation30_spill] sm:$0xff] }
 0x203   : > { %10066 = vst [vmem:[#allocation102_spill] sm:$0xff] %v4485_v5  ;;  %v10127_v5 = vld [vmem:[#allocation26_spill] sm:$0xff] }
 0x204   : > { %1152 = vrot.lane.b32.xlu0 %v4459_v36, %s3381_s7  ;;  %10090 = vst [vmem:[#allocation92_spill] sm:$0xff] %v4539_v50  ;;  %v4575_v50 = vsel %vm4325_vm0, %v10104_v1, %v10103_v51  ;;  %v4627_v0 = vsub.f32 %v4607_v49, %v10127_v5  ;;  %v10135_v5 = vld [vmem:[#allocation57_spill] sm:$0xff] }
 0x205   : > { %10092 = vst [vmem:[#allocation61_spill] sm:$0xff] %v4543_v26 }
 0x206   : > { %v4475_v37 = vpop.permute.xlu0 %628  ;;  %10094 = vst [vmem:[#allocation109_spill] sm:$0xff] %v4547_v14 }
 0x207   : > { %1162 = vrot.lane.b32.xlu2 %v4505_v60, %s3381_s7  ;;  %1160 = vrot.lane.b32.xlu1 %v4509_v47, %s3381_s7  ;;  %10096 = vst [vmem:[#allocation59_spill] sm:$0xff] %v4551_v16 }
 0x208   : > { %10100 = vst [vmem:[#allocation24_spill] sm:$0xff] %v4565_v38  ;;  %v10124_v38 = vld [vmem:[#allocation121_spill] sm:$0xff] }
 0x209   : > { %v4525_v54 = vpop.permute.xlu1 %636  ;;  %v4527_v9 = vpop.permute.xlu2 %656  ;;  %10105 = vst [vmem:[#allocation52_spill] sm:$0xff] %v4575_v50  ;;  %v4623_v17 = vsel %vm4325_vm0, %v10125_v21, %v10124_v38 }
 0x20a   : > { %10083 = vst [vmem:[#allocation19_spill] sm:$0xff] %v4525_v54 }
 0x20b   : > { %10084 = vst [vmem:[#allocation108_spill] sm:$0xff] %v4527_v9  ;;  %v4589_v9 = vsub.f32 %v4575_v50, %v10111_v58  ;;  %v10121_v58 = vld [vmem:[#allocation104_spill] sm:$0xff]  ;;  %v10122_v50 = vld [vmem:[#allocation67_spill] sm:$0xff] }
 0x20c   : > { %1158 = vrot.lane.b32.xlu0 %v4501_v40, %s3381_s7  ;;  %10108 = vst [vmem:[#allocation98_spill] sm:$0xff] %v4581_v18 }
 0x20d   : > { %10110 = vst [vmem:[#allocation64_spill] sm:$0xff] %v4585_v20 }
 0x20e   : > { %v4517_v55 = vpop.permute.xlu0 %634  ;;  %10112 = vst [vmem:[#allocation115_spill] sm:$0xff] %v4589_v9 }
 0x20f   : > { %10079 = vst [vmem:[#allocation17_spill] sm:$0xff] %v4517_v55  ;;  %1168 = vrot.lane.b32.xlu2 %v4547_v14, %s3381_s7  ;;  %1166 = vrot.lane.b32.xlu1 %v4551_v16, %s3381_s7 }
 0x210   : > { %10118 = vst [vmem:[#allocation27_spill] sm:$0xff] %v4607_v49  ;;  %v10142_v49 = vld [vmem:[#allocation127_spill] sm:$0xff] }
 0x211   : > { %v4567_v3 = vpop.permute.xlu1 %642  ;;  %v4569_v19 = vpop.permute.xlu2 %662  ;;  %10126 = vst [vmem:[#allocation104_spill] sm:$0xff] %v4623_v17 }
 0x212   : > { %10101 = vst [vmem:[#allocation22_spill] sm:$0xff] %v4567_v3 }
 0x213   : > { %10102 = vst [vmem:[#allocation114_spill] sm:$0xff] %v4569_v19  ;;  %v10113_v19 = vld [vmem:[#allocation25_spill] sm:$0xff] }
 0x214   : > { %1164 = vrot.lane.b32.xlu0 %v4543_v26, %s3381_s7  ;;  %v4593_v2 = vsub.f32 %v4581_v18, %v10113_v19  ;;  %v4617_v18 = vsel %vm4325_vm0, %v10122_v50, %v10121_v58  ;;  %10128 = vst [vmem:[#allocation67_spill] sm:$0xff] %v4627_v0  ;;  %v10134_v50 = vld [vmem:[#allocation126_spill] sm:$0xff] }
 0x215   : > { %10123 = vst [vmem:[#allocation54_spill] sm:$0xff] %v4617_v18  ;;  %v4649_v38 = vsel %vm4325_vm0, %v10135_v5, %v10134_v50  ;;  %v10147_v5 = vld [vmem:[#allocation33_spill] sm:$0xff] }
 0x216   : > { %v4559_v25 = vpop.permute.xlu0 %640  ;;  %10114 = vst [vmem:[#allocation62_spill] sm:$0xff] %v4593_v2  ;;  %v4669_v50 = vsub.f32 %v4649_v38, %v10145_v27  ;;  %v10152_v27 = vld [vmem:[#allocation132_spill] sm:$0xff] }
 0x217   : > { %10097 = vst [vmem:[#allocation20_spill] sm:$0xff] %v4559_v25  ;;  %1174 = vrot.lane.b32.xlu2 %v4589_v9, %s3381_s7  ;;  %1172 = vrot.lane.b32.xlu1 %v4593_v2, %s3381_s7 }
 0x218   : > { %10136 = vst [vmem:[#allocation30_spill] sm:$0xff] %v4649_v38  ;;  %v10160_v38 = vld [vmem:[#allocation133_spill] sm:$0xff] }
 0x219   : > { %v4609_v51 = vpop.permute.xlu1 %648  ;;  %v4611_v19 = vpop.permute.xlu2 %668 }
 0x21a   : > { %10119 = vst [vmem:[#allocation25_spill] sm:$0xff] %v4609_v51  ;;  %v4631_v51 = vsub.f32 %v4617_v18, %v10129_v15  ;;  %v10139_v15 = vld [vmem:[#allocation110_spill] sm:$0xff] }
 0x21b   : > { %10120 = vst [vmem:[#allocation120_spill] sm:$0xff] %v4611_v19  ;;  %v10131_v19 = vld [vmem:[#allocation28_spill] sm:$0xff]  ;;  %v10140_v18 = vld [vmem:[#allocation70_spill] sm:$0xff] }
 0x21c   : > { %1170 = vrot.lane.b32.xlu0 %v4585_v20, %s3381_s7  ;;  %10130 = vst [vmem:[#allocation121_spill] sm:$0xff] %v4631_v51 }
 0x21d   : > { %10146 = vst [vmem:[#allocation70_spill] sm:$0xff] %v4669_v50 }
 0x21e   : > { %v4601_v1 = vpop.permute.xlu0 %646 }
 0x21f   : > { %10115 = vst [vmem:[#allocation23_spill] sm:$0xff] %v4601_v1  ;;  %v4635_v1 = vsub.f32 %v4623_v17, %v10131_v19  ;;  %1180 = vrot.lane.b32.xlu2 %v4631_v51, %s3381_s7  ;;  %v4659_v17 = vsel %vm4325_vm0, %v10140_v18, %v10139_v15 }
 0x220   : > { %10141 = vst [vmem:[#allocation57_spill] sm:$0xff] %v4659_v17 }
 0x221   : > { %10132 = vst [vmem:[#allocation65_spill] sm:$0xff] %v4635_v1  ;;  %1178 = vrot.lane.b32.xlu1 %v4635_v1, %s3381_s7  ;;  %v4651_v58 = vpop.permute.xlu1 %654  ;;  %v4653_v19 = vpop.permute.xlu2 %674 }
 0x222   : > { %10137 = vst [vmem:[#allocation28_spill] sm:$0xff] %v4651_v58  ;;  %v4673_v58 = vsub.f32 %v4659_v17, %v10147_v5  ;;  %v10157_v5 = vld [vmem:[#allocation116_spill] sm:$0xff]  ;;  %v10158_v17 = vld [vmem:[#allocation73_spill] sm:$0xff] }
 0x223   : > { %10138 = vst [vmem:[#allocation126_spill] sm:$0xff] %v4653_v19  ;;  %v10149_v19 = vld [vmem:[#allocation31_spill] sm:$0xff] }
 0x224   : > { %1176 = vrot.lane.b32.xlu0 %v4627_v0, %s3381_s7  ;;  %10148 = vst [vmem:[#allocation127_spill] sm:$0xff] %v4673_v58 }
 0x226   : > { %v4643_v21 = vpop.permute.xlu0 %652 }
 0x227   : > { %10133 = vst [vmem:[#allocation26_spill] sm:$0xff] %v4643_v21  ;;  %v4665_v21 = vsel %vm4325_vm0, %v10143_v62, %v10142_v49  ;;  %1186 = vrot.lane.b32.xlu2 %v4673_v58, %s3381_s7  ;;  %v10153_v62 = vld [vmem:[#allocation60_spill] sm:$0xff] }
 0x228   : > { %10144 = vst [vmem:[#allocation110_spill] sm:$0xff] %v4665_v21  ;;  %v4677_v3 = vsub.f32 %v4665_v21, %v10149_v19  ;;  %v4691_v49 = vsel %vm4325_vm0, %v10153_v62, %v10152_v27  ;;  %v4701_v21 = vsel %vm4325_vm0, %v10158_v17, %v10157_v5  ;;  %v10165_v62 = vld [vmem:[#allocation36_spill] sm:$0xff] }
 0x229   : > { %10154 = vst [vmem:[#allocation33_spill] sm:$0xff] %v4691_v49  ;;  %v4693_v15 = vpop.permute.xlu1 %660  ;;  %v4695_v19 = vpop.permute.xlu2 %680  ;;  %v4711_v27 = vsub.f32 %v4691_v49, %v10163_v34  ;;  %v10171_v34 = vld [vmem:[#allocation63_spill] sm:$0xff] }
 0x22a   : > { %10150 = vst [vmem:[#allocation68_spill] sm:$0xff] %v4677_v3  ;;  %1184 = vrot.lane.b32.xlu1 %v4677_v3, %s3381_s7  ;;  %v10178_v49 = vld [vmem:[#allocation139_spill] sm:$0xff] }
 0x22b   : > { %10155 = vst [vmem:[#allocation31_spill] sm:$0xff] %v4693_v15  ;;  %v4715_v15 = vsub.f32 %v4701_v21, %v10165_v62  ;;  %v10175_v62 = vld [vmem:[#allocation122_spill] sm:$0xff] }
 0x22c   : > { %1182 = vrot.lane.b32.xlu0 %v4669_v50, %s3381_s7  ;;  %10156 = vst [vmem:[#allocation132_spill] sm:$0xff] %v4695_v19  ;;  %v10167_v19 = vld [vmem:[#allocation34_spill] sm:$0xff] }
 0x22d   : > { %10159 = vst [vmem:[#allocation60_spill] sm:$0xff] %v4701_v21  ;;  %v10176_v21 = vld [vmem:[#allocation75_spill] sm:$0xff] }
 0x22e   : > { %v4685_v18 = vpop.permute.xlu0 %658  ;;  %10164 = vst [vmem:[#allocation73_spill] sm:$0xff] %v4711_v27 }
 0x22f   : > { %10151 = vst [vmem:[#allocation29_spill] sm:$0xff] %v4685_v18  ;;  %v4707_v18 = vsel %vm4325_vm0, %v10161_v22, %v10160_v38  ;;  %1192 = vrot.lane.b32.xlu2 %v4715_v15, %s3381_s7  ;;  %v10170_v22 = vld [vmem:[#allocation138_spill] sm:$0xff] }
 0x230   : > { %10162 = vst [vmem:[#allocation116_spill] sm:$0xff] %v4707_v18  ;;  %v4719_v25 = vsub.f32 %v4707_v18, %v10167_v19  ;;  %v4733_v38 = vsel %vm4325_vm0, %v10171_v34, %v10170_v22  ;;  %v4743_v18 = vsel %vm4325_vm0, %v10176_v21, %v10175_v62  ;;  %v10183_v34 = vld [vmem:[#allocation39_spill] sm:$0xff]  ;;  %v10189_v21 = vld [vmem:[#allocation66_spill] sm:$0xff] }
 0x231   : > { %10166 = vst [vmem:[#allocation133_spill] sm:$0xff] %v4715_v15  ;;  %v4735_v5 = vpop.permute.xlu1 %666  ;;  %v4737_v19 = vpop.permute.xlu2 %686  ;;  %v4753_v22 = vsub.f32 %v4733_v38, %v10181_v41  ;;  %v10188_v41 = vld [vmem:[#allocation144_spill] sm:$0xff] }
 0x232   : > { %10168 = vst [vmem:[#allocation71_spill] sm:$0xff] %v4719_v25  ;;  %1190 = vrot.lane.b32.xlu1 %v4719_v25, %s3381_s7 }
 0x233   : > { %10172 = vst [vmem:[#allocation36_spill] sm:$0xff] %v4733_v38  ;;  %v10196_v38 = vld [vmem:[#allocation145_spill] sm:$0xff] }
 0x234   : > { %1188 = vrot.lane.b32.xlu0 %v4711_v27, %s3381_s7  ;;  %10173 = vst [vmem:[#allocation34_spill] sm:$0xff] %v4735_v5  ;;  %v4757_v5 = vsub.f32 %v4743_v18, %v10183_v34  ;;  %v10193_v34 = vld [vmem:[#allocation128_spill] sm:$0xff] }
 0x235   : > { %10174 = vst [vmem:[#allocation138_spill] sm:$0xff] %v4737_v19  ;;  %v10185_v19 = vld [vmem:[#allocation37_spill] sm:$0xff] }
 0x236   : > { %v4727_v17 = vpop.permute.xlu0 %664  ;;  %10177 = vst [vmem:[#allocation63_spill] sm:$0xff] %v4743_v18  ;;  %v10194_v18 = vld [vmem:[#allocation77_spill] sm:$0xff] }
 0x237   : > { %10169 = vst [vmem:[#allocation32_spill] sm:$0xff] %v4727_v17  ;;  %v4749_v17 = vsel %vm4325_vm0, %v10179_v23, %v10178_v49  ;;  %1198 = vrot.lane.b32.xlu2 %v4757_v5, %s3381_s7  ;;  %v4775_v49 = vsel %vm4325_vm0, %v10189_v21, %v10188_v41  ;;  %v10201_v21 = vld [vmem:[#allocation42_spill] sm:$0xff] }
 0x238   : > { %10180 = vst [vmem:[#allocation122_spill] sm:$0xff] %v4749_v17  ;;  %v4761_v54 = vsub.f32 %v4749_v17, %v10185_v19  ;;  %v4785_v17 = vsel %vm4325_vm0, %v10194_v18, %v10193_v34  ;;  %v4795_v41 = vsub.f32 %v4775_v49, %v10199_v7  ;;  %v10206_v7 = vld [vmem:[#allocation150_spill] sm:$0xff]  ;;  %v10207_v18 = vld [vmem:[#allocation69_spill] sm:$0xff] }
 0x239   : > { %10182 = vst [vmem:[#allocation75_spill] sm:$0xff] %v4753_v22  ;;  %v4777_v62 = vpop.permute.xlu1 %672  ;;  %v4779_v19 = vpop.permute.xlu2 %692 }
 0x23a   : > { %10184 = vst [vmem:[#allocation139_spill] sm:$0xff] %v4757_v5  ;;  %1196 = vrot.lane.b32.xlu1 %v4761_v54, %s3381_s7 }
 0x23b   : > { %10186 = vst [vmem:[#allocation74_spill] sm:$0xff] %v4761_v54 }
 0x23c   : > { %1194 = vrot.lane.b32.xlu0 %v4753_v22, %s3381_s7  ;;  %10190 = vst [vmem:[#allocation39_spill] sm:$0xff] %v4775_v49  ;;  %v10214_v49 = vld [vmem:[#allocation78_spill] sm:$0xff] }
 0x23d   : > { %10191 = vst [vmem:[#allocation37_spill] sm:$0xff] %v4777_v62  ;;  %v4799_v62 = vsub.f32 %v4785_v17, %v10201_v21  ;;  %v10211_v21 = vld [vmem:[#allocation134_spill] sm:$0xff] }
 0x23e   : > { %v4769_v23 = vpop.permute.xlu0 %670  ;;  %10192 = vst [vmem:[#allocation144_spill] sm:$0xff] %v4779_v19  ;;  %v10203_v19 = vld [vmem:[#allocation40_spill] sm:$0xff] }
 0x23f   : > { %10187 = vst [vmem:[#allocation35_spill] sm:$0xff] %v4769_v23  ;;  %v4791_v23 = vsel %vm4325_vm0, %v10197_v28, %v10196_v38  ;;  %1204 = vrot.lane.b32.xlu2 %v4799_v62, %s3381_s7  ;;  %v4817_v38 = vsel %vm4325_vm0, %v10207_v18, %v10206_v7  ;;  %v10218_v18 = vld [vmem:[#allocation45_spill] sm:$0xff] }
 0x240   : > { %10195 = vst [vmem:[#allocation66_spill] sm:$0xff] %v4785_v17  ;;  %v4803_v55 = vsub.f32 %v4791_v23, %v10203_v19  ;;  %v10212_v17 = vld [vmem:[#allocation79_spill] sm:$0xff]  ;;  %v4837_v7 = vsub.f32 %v4817_v38, %v10216_v30  ;;  %v10223_v30 = vld [vmem:[#allocation72_spill] sm:$0xff] }
 0x241   : > { %10198 = vst [vmem:[#allocation128_spill] sm:$0xff] %v4791_v23  ;;  %v4819_v34 = vpop.permute.xlu1 %678  ;;  %v4821_v19 = vpop.permute.xlu2 %1138  ;;  %v4827_v23 = vsel %vm4325_vm0, %v10212_v17, %v10211_v21  ;;  %v4859_v17 = vsel %vm4325_vm0, %v10223_v30, %v4177_v6  ;;  %v10227_v21 = vld [vmem:[#allocation140_spill] sm:$0xff]  ;;  %v10234_v30 = vld [vmem:[#allocation47_spill] sm:$0xff] }
 0x242   : > { %10200 = vst [vmem:[#allocation77_spill] sm:$0xff] %v4795_v41  ;;  %1202 = vrot.lane.b32.xlu1 %v4803_v55, %s3381_s7 }
 0x243   : > { %10202 = vst [vmem:[#allocation145_spill] sm:$0xff] %v4799_v62 }
 0x244   : > { %10204 = vst [vmem:[#allocation76_spill] sm:$0xff] %v4803_v55  ;;  %1200 = vrot.lane.b32.xlu0 %v4795_v41, %s3381_s7 }
 0x245   : > { %10208 = vst [vmem:[#allocation42_spill] sm:$0xff] %v4817_v38 }
 0x246   : > { %v4811_v28 = vpop.permute.xlu0 %676  ;;  %10209 = vst [vmem:[#allocation40_spill] sm:$0xff] %v4819_v34  ;;  %v4841_v34 = vsub.f32 %v4827_v23, %v10218_v18  ;;  %v10228_v18 = vld [vmem:[#allocation83_spill] sm:$0xff] }
 0x247   : > { %10205 = vst [vmem:[#allocation38_spill] sm:$0xff] %v4811_v28  ;;  %v4833_v28 = vsel %vm4325_vm0, %v10214_v49, %v4164_v61 }
 0x248   : > { %10210 = vst [vmem:[#allocation150_spill] sm:$0xff] %v4821_v19  ;;  %v10220_v19 = vld [vmem:[#allocation43_spill] sm:$0xff]  ;;  %1210 = vrot.lane.b32.xlu2 %v4841_v34, %s3381_s7 }
 0x249   : > { %10213 = vst [vmem:[#allocation69_spill] sm:$0xff] %v4827_v23  ;;  %v4845_v29 = vsub.f32 %v4833_v28, %v10220_v19  ;;  %v4861_v49 = vpop.permute.xlu1 %684  ;;  %v4863_v19 = vpop.permute.xlu2 %1144  ;;  %v4869_v23 = vsel %vm4325_vm0, %v10228_v18, %v10227_v21 }
 0x24a   : > { %10215 = vst [vmem:[#allocation134_spill] sm:$0xff] %v4833_v28  ;;  %v10230_v28 = vld [vmem:[#allocation82_spill] sm:$0xff] }
 0x24b   : > { %10217 = vst [vmem:[#allocation79_spill] sm:$0xff] %v4837_v7  ;;  %1208 = vrot.lane.b32.xlu1 %v4845_v29, %s3381_s7  ;;  %v4875_v38 = vsel %vm4325_vm0, %v10230_v28, %v4179_v52 }
 0x24c   : > { %10219 = vst [vmem:[#allocation78_spill] sm:$0xff] %v4841_v34  ;;  %1206 = vrot.lane.b32.xlu0 %v4837_v7, %s3381_s7 }
 0x24d   : > { %10221 = vst [vmem:[#allocation41_spill] sm:$0xff] %v4845_v29 }
 0x24e   : > { %v4853_v61 = vpop.permute.xlu0 %682  ;;  %10224 = vst [vmem:[#allocation43_spill] sm:$0xff] %v4859_v17 }
 0x24f   : > { %10222 = vst [vmem:[#allocation45_spill] sm:$0xff] %v4853_v61  ;;  %v10232_v61 = vld [vmem:[#allocation44_spill] sm:$0xff] }
 0x250   : > { %10225 = vst [vmem:[#allocation72_spill] sm:$0xff] %v4861_v49  ;;  %v4879_v6 = vsub.f32 %v4859_v17, %v10232_v61  ;;  %v4883_v49 = vsub.f32 %v4869_v23, %v10234_v30 }
 0x251   : > { %10226 = vst [vmem:[#allocation198_spill] sm:$0xff] %v4863_v19  ;;  %v10236_v19 = vld [vmem:[#allocation46_spill] sm:$0xff]  ;;  %v4897_v28 = vpop.permute.xlu1 %690  ;;  %v4899_v61 = vpop.permute.xlu2 %1150 }
 0x252   : > { %10229 = vst [vmem:[#allocation140_spill] sm:$0xff] %v4869_v23  ;;  %v4887_v42 = vsub.f32 %v4875_v38, %v10236_v19  ;;  %1216 = vrot.lane.b32.xlu2 %v4883_v49, %s3381_s7  ;;  %v10407_v23 = vld [vmem:[#allocation173_spill] sm:$0xff] }
 0x253   : > { %10231 = vst [vmem:[#allocation83_spill] sm:$0xff] %v4875_v38  ;;  %v10409_v38 = vld [vmem:[#allocation119_spill] sm:$0xff] }
 0x254   : > { %10233 = vst [vmem:[#allocation82_spill] sm:$0xff] %v4879_v6  ;;  %1212 = vrot.lane.b32.xlu0 %v4879_v6, %s3381_s7  ;;  %1214 = vrot.lane.b32.xlu1 %v4887_v42, %s3381_s7 }
 0x255   : > { %10235 = vst [vmem:[#allocation44_spill] sm:$0xff] %v4883_v49 }
 0x256   : > { %10237 = vst [vmem:[#allocation47_spill] sm:$0xff] %v4887_v42  ;;  %v4895_v52 = vpop.permute.xlu0 %688 }
 0x257   : > { %10238 = vst [vmem:[#allocation46_spill] sm:$0xff] %v4899_v61 }
 0x259   : > { %v4909_v21 = vpop.permute.xlu1 %696  ;;  %v4911_v18 = vpop.permute.xlu2 %1156 }
 0x25a   : > { %1222 = vrot.lane.b32.xlu2 %v4383_v10, %s3378_s26  ;;  %10239 = vst [vmem:[#allocation199_spill] sm:$0xff] %v4911_v18  ;;  %v10368_v10 = vld [vmem:[#allocation168_spill] sm:$0xff] }
 0x25c   : > { %1218 = vrot.lane.b32.xlu0 %v4341_v45, %s3378_s26  ;;  %1220 = vrot.lane.b32.xlu1 %v4375_v43, %s3378_s26  ;;  %v10353_v45 = vld [vmem:[#allocation164_spill] sm:$0xff] }
 0x25e   : > { %v4907_v19 = vpop.permute.xlu0 %694 }
 0x261   : > { %v4921_v61 = vpop.permute.xlu1 %1142  ;;  %v4923_v43 = vpop.permute.xlu2 %1162 }
 0x262   : > { %1228 = vrot.lane.b32.xlu2 %v4425_v8, %s3378_s26  ;;  %10241 = vst [vmem:[#allocation201_spill] sm:$0xff] %v4921_v61 }
 0x263   : > { %10242 = vst [vmem:[#allocation202_spill] sm:$0xff] %v4923_v43 }
 0x264   : > { %1224 = vrot.lane.b32.xlu0 %v4379_v48, %s3378_s26  ;;  %1226 = vrot.lane.b32.xlu1 %v4417_v31, %s3378_s26 }
 0x266   : > { %v4919_v30 = vpop.permute.xlu0 %1140 }
 0x267   : > { %10240 = vst [vmem:[#allocation200_spill] sm:$0xff] %v4919_v30  ;;  %v10373_v30 = vld [vmem:[#allocation107_spill] sm:$0xff] }
 0x269   : > { %v4933_v48 = vpop.permute.xlu2 %1168  ;;  %v4935_v31 = vpop.permute.xlu1 %1148 }
 0x26a   : > { %1234 = vrot.lane.b32.xlu2 %v4467_v57, %s3378_s26  ;;  %10244 = vst [vmem:[#allocation204_spill] sm:$0xff] %v4933_v48  ;;  %v10355_v57 = vld [vmem:[#allocation101_spill] sm:$0xff] }
 0x26b   : > { %10245 = vst [vmem:[#allocation205_spill] sm:$0xff] %v4935_v31 }
 0x26c   : > { %1230 = vrot.lane.b32.xlu0 %v4421_v13, %s3378_s26  ;;  %1232 = vrot.lane.b32.xlu1 %v4459_v36, %s3378_s26 }
 0x26e   : > { %v4931_v18 = vpop.permute.xlu0 %1146 }
 0x26f   : > { %10243 = vst [vmem:[#allocation203_spill] sm:$0xff] %v4931_v18  ;;  %v10350_v18 = vld [vmem:[#allocation165_spill] sm:$0xff] }
 0x271   : > { %v4945_v43 = vpop.permute.xlu2 %1174  ;;  %v4947_v36 = vpop.permute.xlu1 %1154 }
 0x272   : > { %1240 = vrot.lane.b32.xlu2 %v4509_v47, %s3378_s26  ;;  %10247 = vst [vmem:[#allocation207_spill] sm:$0xff] %v4945_v43  ;;  %v10352_v47 = vld [vmem:[#allocation25_spill] sm:$0xff] }
 0x273   : > { %10248 = vst [vmem:[#allocation208_spill] sm:$0xff] %v4947_v36  ;;  %v10389_v36 = vld [vmem:[#allocation170_spill] sm:$0xff] }
 0x274   : > { %1236 = vrot.lane.b32.xlu0 %v4463_v12, %s3378_s26  ;;  %1238 = vrot.lane.b32.xlu1 %v4501_v40, %s3378_s26 }
 0x276   : > { %v4943_v13 = vpop.permute.xlu0 %1152 }
 0x277   : > { %10246 = vst [vmem:[#allocation206_spill] sm:$0xff] %v4943_v13  ;;  %v10335_v13 = vld [vmem:[#allocation161_spill] sm:$0xff] }
 0x279   : > { %v4957_v48 = vpop.permute.xlu2 %1180  ;;  %v4959_v40 = vpop.permute.xlu1 %1160 }
 0x27a   : > { %1246 = vrot.lane.b32.xlu2 %v4551_v16, %s3378_s26  ;;  %10250 = vst [vmem:[#allocation210_spill] sm:$0xff] %v4957_v48 }
 0x27b   : > { %10251 = vst [vmem:[#allocation211_spill] sm:$0xff] %v4959_v40  ;;  %v10386_v40 = vld [vmem:[#allocation171_spill] sm:$0xff] }
 0x27c   : > { %1242 = vrot.lane.b32.xlu0 %v4505_v60, %s3378_s26  ;;  %1244 = vrot.lane.b32.xlu1 %v4543_v26, %s3378_s26 }
 0x27e   : > { %v4955_v12 = vpop.permute.xlu0 %1158 }
 0x27f   : > { %10249 = vst [vmem:[#allocation209_spill] sm:$0xff] %v4955_v12 }
 0x281   : > { %v4969_v60 = vpop.permute.xlu2 %1186  ;;  %v4971_v26 = vpop.permute.xlu1 %1166 }
 0x282   : > { %1252 = vrot.lane.b32.xlu2 %v4593_v2, %s3378_s26  ;;  %10253 = vst [vmem:[#allocation213_spill] sm:$0xff] %v4969_v60  ;;  %v10332_v2 = vld [vmem:[#allocation162_spill] sm:$0xff] }
 0x283   : > { %10254 = vst [vmem:[#allocation214_spill] sm:$0xff] %v4971_v26 }
 0x284   : > { %1248 = vrot.lane.b32.xlu0 %v4547_v14, %s3378_s26  ;;  %1250 = vrot.lane.b32.xlu1 %v4585_v20, %s3378_s26 }
 0x286   : > { %v4967_v43 = vpop.permute.xlu0 %1164 }
 0x287   : > { %10252 = vst [vmem:[#allocation212_spill] sm:$0xff] %v4967_v43  ;;  %v10323_v43 = vld [vmem:[#allocation93_spill] sm:$0xff] }
 0x289   : > { %v4981_v14 = vpop.permute.xlu2 %1192  ;;  %v4983_v20 = vpop.permute.xlu1 %1172 }
 0x28a   : > { %1258 = vrot.lane.b32.xlu2 %v4635_v1, %s3378_s26  ;;  %10256 = vst [vmem:[#allocation216_spill] sm:$0xff] %v4981_v14  ;;  %v10319_v1 = vld [vmem:[#allocation91_spill] sm:$0xff] }
 0x28b   : > { %10257 = vst [vmem:[#allocation217_spill] sm:$0xff] %v4983_v20  ;;  %v10337_v20 = vld [vmem:[#allocation95_spill] sm:$0xff] }
 0x28c   : > { %1254 = vrot.lane.b32.xlu0 %v4589_v9, %s3378_s26  ;;  %1256 = vrot.lane.b32.xlu1 %v4627_v0, %s3378_s26 }
 0x28e   : > { %v4979_v48 = vpop.permute.xlu0 %1170 }
 0x28f   : > { %10255 = vst [vmem:[#allocation215_spill] sm:$0xff] %v4979_v48  ;;  %v10317_v48 = vld [vmem:[#allocation158_spill] sm:$0xff] }
 0x291   : > { %v4993_v9 = vpop.permute.xlu2 %1198 }
 0x292   : > { %1264 = vrot.lane.b32.xlu2 %v4677_v3, %s3378_s26  ;;  %10259 = vst [vmem:[#allocation219_spill] sm:$0xff] %v4993_v9 }
 0x293   : > { %v4995_v0 = vpop.permute.xlu1 %1178 }
 0x294   : > { %1260 = vrot.lane.b32.xlu0 %v4631_v51, %s3378_s26  ;;  %1262 = vrot.lane.b32.xlu1 %v4669_v50, %s3378_s26  ;;  %10260 = vst [vmem:[#allocation220_spill] sm:$0xff] %v4995_v0  ;;  %v10334_v0 = vld [vmem:[#allocation22_spill] sm:$0xff] }
 0x295   : > { %v5231_v16 = vsel %vm4325_vm0, %v10335_v13, %v10334_v0  ;;  %v10344_v13 = vld [vmem:[#allocation23_spill] sm:$0xff] }
 0x296   : > { %v4991_v60 = vpop.permute.xlu0 %1176  ;;  %10336 = vst [vmem:[#allocation162_spill] sm:$0xff] %v5231_v16 }
 0x297   : > { %10258 = vst [vmem:[#allocation218_spill] sm:$0xff] %v4991_v60  ;;  %v10314_v60 = vld [vmem:[#allocation159_spill] sm:$0xff] }
 0x299   : > { %v5005_v14 = vpop.permute.xlu2 %1204 }
 0x29a   : > { %1270 = vrot.lane.b32.xlu2 %v4719_v25, %s3378_s26  ;;  %10262 = vst [vmem:[#allocation222_spill] sm:$0xff] %v5005_v14  ;;  %v10316_v25 = vld [vmem:[#allocation19_spill] sm:$0xff] }
 0x29b   : > { %v5189_v3 = vsel %vm4325_vm0, %v10317_v48, %v10316_v25  ;;  %v10326_v48 = vld [vmem:[#allocation20_spill] sm:$0xff]  ;;  %v10327_v25 = vld [vmem:[#allocation154_spill] sm:$0xff] }
 0x29c   : > { %1266 = vrot.lane.b32.xlu0 %v4673_v58, %s3378_s26  ;;  %1268 = vrot.lane.b32.xlu1 %v4711_v27, %s3378_s26  ;;  %v5007_v50 = vpop.permute.xlu1 %1184  ;;  %10318 = vst [vmem:[#allocation159_spill] sm:$0xff] %v5189_v3 }
 0x29d   : > { %10263 = vst [vmem:[#allocation223_spill] sm:$0xff] %v5007_v50  ;;  %v5201_v50 = vsub.f32 %v5189_v3, %v10323_v43 }
 0x29e   : > { %v5003_v51 = vpop.permute.xlu0 %1182 }
 0x29f   : > { %10261 = vst [vmem:[#allocation221_spill] sm:$0xff] %v5003_v51  ;;  %v10305_v51 = vld [vmem:[#allocation89_spill] sm:$0xff] }
 0x2a0   : > { %10324 = vst [vmem:[#allocation91_spill] sm:$0xff] %v5201_v50 }
 0x2a2   : > { %1276 = vrot.lane.b32.xlu2 %v4761_v54, %s3378_s26  ;;  %v5017_v58 = vpop.permute.xlu2 %1210  ;;  %v10301_v54 = vld [vmem:[#allocation87_spill] sm:$0xff] }
 0x2a3   : > { %10265 = vst [vmem:[#allocation225_spill] sm:$0xff] %v5017_v58 }
 0x2a4   : > { %1272 = vrot.lane.b32.xlu0 %v4715_v15, %s3378_s26  ;;  %1274 = vrot.lane.b32.xlu1 %v4753_v22, %s3378_s26  ;;  %v5019_v27 = vpop.permute.xlu1 %1190 }
 0x2a5   : > { %10266 = vst [vmem:[#allocation226_spill] sm:$0xff] %v5019_v27 }
 0x2a6   : > { %v5015_v9 = vpop.permute.xlu0 %1188 }
 0x2a7   : > { %10264 = vst [vmem:[#allocation224_spill] sm:$0xff] %v5015_v9 }
 0x2aa   : > { %1282 = vrot.lane.b32.xlu2 %v4803_v55, %s3378_s26 }
 0x2ac   : > { %1278 = vrot.lane.b32.xlu0 %v4757_v5, %s3378_s26  ;;  %1280 = vrot.lane.b32.xlu1 %v4795_v41, %s3378_s26  ;;  %v5029_v15 = vpop.permute.xlu2 %1216  ;;  %v5031_v22 = vpop.permute.xlu1 %1196 }
 0x2ad   : > { %10268 = vst [vmem:[#allocation228_spill] sm:$0xff] %v5029_v15 }
 0x2ae   : > { %v5027_v14 = vpop.permute.xlu0 %1194  ;;  %10269 = vst [vmem:[#allocation229_spill] sm:$0xff] %v5031_v22 }
 0x2af   : > { %10267 = vst [vmem:[#allocation227_spill] sm:$0xff] %v5027_v14 }
 0x2b2   : > { %1288 = vrot.lane.b32.xlu2 %v4845_v29, %s3378_s26  ;;  %v10290_v29 = vld [vmem:[#allocation85_spill] sm:$0xff] }
 0x2b4   : > { %1284 = vrot.lane.b32.xlu0 %v4799_v62, %s3378_s26  ;;  %1286 = vrot.lane.b32.xlu1 %v4837_v7, %s3378_s26  ;;  %v5041_v5 = vpop.permute.xlu2 %1222  ;;  %v5043_v41 = vpop.permute.xlu1 %1202 }
 0x2b5   : > { %10271 = vst [vmem:[#allocation231_spill] sm:$0xff] %v5041_v5  ;;  %v10406_v5 = vld [vmem:[#allocation34_spill] sm:$0xff] }
 0x2b6   : > { %v5039_v58 = vpop.permute.xlu0 %1200  ;;  %10272 = vst [vmem:[#allocation232_spill] sm:$0xff] %v5043_v41 }
 0x2b7   : > { %10270 = vst [vmem:[#allocation230_spill] sm:$0xff] %v5039_v58  ;;  %v5061_v58 = vsel %vm4325_vm0, %v4191_v33, %v4314_v11  ;;  %v10281_v33 = vld [vmem:[#allocation146_spill] sm:$0xff] }
 0x2ba   : > { %1294 = vrot.lane.b32.xlu2 %v4887_v42, %s3378_s26  ;;  %v10276_v42 = vld [vmem:[#allocation81_spill] sm:$0xff] }
 0x2bc   : > { %1290 = vrot.lane.b32.xlu0 %v4841_v34, %s3378_s26  ;;  %1292 = vrot.lane.b32.xlu1 %v4879_v6, %s3378_s26  ;;  %v5053_v15 = vpop.permute.xlu2 %1228  ;;  %v5067_v34 = vsel %vm4325_vm0, %v4189_v53, %v4399_v4  ;;  %v5071_v6 = vsub.f32 %v5061_v58, %v10276_v42  ;;  %v5089_v53 = vsel %vm4325_vm0, %v10281_v33, %v4433_v24  ;;  %v10288_v33 = vld [vmem:[#allocation86_spill] sm:$0xff] }
 0x2bd   : > { %10274 = vst [vmem:[#allocation234_spill] sm:$0xff] %v5053_v15  ;;  %v5055_v7 = vpop.permute.xlu1 %1208  ;;  %v5109_v24 = vsub.f32 %v5089_v53, %v3902_v35  ;;  %v10293_v35 = vld [vmem:[#allocation151_spill] sm:$0xff]  ;;  %v10404_v15 = vld [vmem:[#allocation174_spill] sm:$0xff] }
 0x2be   : > { %v5051_v62 = vpop.permute.xlu0 %1206  ;;  %10275 = vst [vmem:[#allocation235_spill] sm:$0xff] %v5055_v7 }
 0x2bf   : > { %10273 = vst [vmem:[#allocation233_spill] sm:$0xff] %v5051_v62  ;;  %v10278_v62 = vld [vmem:[#allocation80_spill] sm:$0xff] }
 0x2c0   : > { %10277 = vst [vmem:[#allocation81_spill] sm:$0xff] %v5071_v6  ;;  %v5075_v14 = vsub.f32 %v5067_v34, %v10278_v62  ;;  %v5099_v62 = vsel %vm4325_vm0, %v4203_v39, %v4331_v56  ;;  %v5131_v56 = vsel %vm4325_vm0, %v10293_v35, %v4475_v37  ;;  %v10303_v35 = vld [vmem:[#allocation90_spill] sm:$0xff] }
 0x2c1   : > { %10282 = vst [vmem:[#allocation146_spill] sm:$0xff] %v5089_v53  ;;  %v5151_v37 = vsub.f32 %v5131_v56, %v10301_v54  ;;  %v10309_v54 = vld [vmem:[#allocation153_spill] sm:$0xff] }
 0x2c2   : > { %10279 = vst [vmem:[#allocation80_spill] sm:$0xff] %v5075_v14  ;;  %1380 = vrot.lane.b32.xlu2 %v5071_v6, %s3381_s7 }
 0x2c3   : > { %10285 = vst [vmem:[#allocation239_spill] sm:$0xff] %v5099_v62 }
 0x2c4   : > { %1296 = vrot.lane.b32.xlu0 %v4883_v49, %s3378_s26  ;;  %1378 = vrot.lane.b32.xlu1 %v5075_v14, %s3381_s7  ;;  %v5091_v4 = vpop.permute.xlu2 %1234  ;;  %v5105_v49 = vsel %vm4325_vm0, %v4201_v63, %v4441_v44  ;;  %10287 = vst [vmem:[#allocation241_spill] sm:$0xff] %v5109_v24  ;;  %v5141_v44 = vsel %vm4325_vm0, %v4215_v32, %v4359_v46  ;;  %v10308_v46 = vld [vmem:[#allocation17_spill] sm:$0xff] }
 0x2c5   : > { %10283 = vst [vmem:[#allocation237_spill] sm:$0xff] %v5091_v4  ;;  %v5117_v55 = vsub.f32 %v5105_v49, %v10290_v29  ;;  %v5155_v7 = vsub.f32 %v5141_v44, %v10303_v35  ;;  %v10313_v35 = vld [vmem:[#allocation196_spill] sm:$0xff]  ;;  %v10391_v4 = vld [vmem:[#allocation113_spill] sm:$0xff] }
 0x2c6   : > { %v5083_v11 = vpop.permute.xlu0 %1212  ;;  %v5093_v42 = vpop.permute.xlu1 %1214  ;;  %10286 = vst [vmem:[#allocation240_spill] sm:$0xff] %v5105_v49  ;;  %v5183_v22 = vsel %vm4325_vm0, %v10314_v60, %v10313_v35 }
 0x2c7   : > { %10280 = vst [vmem:[#allocation236_spill] sm:$0xff] %v5083_v11  ;;  %v5113_v11 = vsub.f32 %v5099_v62, %v10288_v33  ;;  %v10298_v33 = vld [vmem:[#allocation16_spill] sm:$0xff] }
 0x2c8   : > { %10284 = vst [vmem:[#allocation238_spill] sm:$0xff] %v5093_v42  ;;  %v10299_v42 = vld [vmem:[#allocation156_spill] sm:$0xff] }
 0x2c9   : > { %10289 = vst [vmem:[#allocation86_spill] sm:$0xff] %v5113_v11  ;;  %v5147_v9 = vsel %vm4325_vm0, %v10299_v42, %v10298_v33  ;;  %v5173_v42 = vsel %vm4325_vm0, %v10309_v54, %v10308_v46  ;;  %v10321_v54 = vld [vmem:[#allocation94_spill] sm:$0xff] }
 0x2ca   : > { %10291 = vst [vmem:[#allocation85_spill] sm:$0xff] %v5117_v55  ;;  %1386 = vrot.lane.b32.xlu2 %v5113_v11, %s3381_s7  ;;  %v5159_v41 = vsub.f32 %v5147_v9, %v10305_v51  ;;  %v5193_v46 = vsub.f32 %v5173_v42, %v10319_v1  ;;  %v5197_v27 = vsub.f32 %v5183_v22, %v10321_v54  ;;  %v10331_v54 = vld [vmem:[#allocation48_spill] sm:$0xff] }
 0x2cb   : > { %10294 = vst [vmem:[#allocation151_spill] sm:$0xff] %v5131_v56  ;;  %v5215_v1 = vsel %vm4325_vm0, %v10327_v25, %v10326_v48  ;;  %v5225_v12 = vsel %vm4325_vm0, %v10332_v2, %v10331_v54  ;;  %v10339_v25 = vld [vmem:[#allocation100_spill] sm:$0xff] }
 0x2cc   : > { %1382 = vrot.lane.b32.xlu0 %v5109_v24, %s3381_s7  ;;  %1384 = vrot.lane.b32.xlu1 %v5117_v55, %s3381_s7  ;;  %v5133_v63 = vpop.permute.xlu2 %1240  ;;  %10297 = vst [vmem:[#allocation245_spill] sm:$0xff] %v5141_v44  ;;  %v5235_v48 = vsub.f32 %v5215_v1, %v10337_v20  ;;  %v10345_v20 = vld [vmem:[#allocation155_spill] sm:$0xff] }
 0x2cd   : > { %10295 = vst [vmem:[#allocation243_spill] sm:$0xff] %v5133_v63  ;;  %v5257_v0 = vsel %vm4325_vm0, %v10345_v20, %v10344_v13  ;;  %v10357_v20 = vld [vmem:[#allocation106_spill] sm:$0xff] }
 0x2ce   : > { %v5125_v39 = vpop.permute.xlu0 %1218  ;;  %v5135_v29 = vpop.permute.xlu1 %1220  ;;  %10300 = vst [vmem:[#allocation16_spill] sm:$0xff] %v5147_v9  ;;  %v5277_v13 = vsub.f32 %v5257_v0, %v10355_v57  ;;  %v10363_v57 = vld [vmem:[#allocation157_spill] sm:$0xff] }
 0x2cf   : > { %10292 = vst [vmem:[#allocation242_spill] sm:$0xff] %v5125_v39  ;;  %v10388_v39 = vld [vmem:[#allocation31_spill] sm:$0xff] }
 0x2d0   : > { %10296 = vst [vmem:[#allocation244_spill] sm:$0xff] %v5135_v29 }
 0x2d1   : > { %10302 = vst [vmem:[#allocation156_spill] sm:$0xff] %v5151_v37 }
 0x2d2   : > { %10304 = vst [vmem:[#allocation87_spill] sm:$0xff] %v5155_v7  ;;  %1392 = vrot.lane.b32.xlu2 %v5155_v7, %s3381_s7 }
 0x2d3   : > { %10306 = vst [vmem:[#allocation90_spill] sm:$0xff] %v5159_v41 }
 0x2d4   : > { %1388 = vrot.lane.b32.xlu0 %v5151_v37, %s3381_s7  ;;  %1390 = vrot.lane.b32.xlu1 %v5159_v41, %s3381_s7  ;;  %10310 = vst [vmem:[#allocation17_spill] sm:$0xff] %v5173_v42  ;;  %v5175_v33 = vpop.permute.xlu2 %1246 }
 0x2d5   : > { %10311 = vst [vmem:[#allocation153_spill] sm:$0xff] %v5175_v33  ;;  %v10370_v33 = vld [vmem:[#allocation28_spill] sm:$0xff] }
 0x2d6   : > { %v5167_v32 = vpop.permute.xlu0 %1224  ;;  %v5177_v51 = vpop.permute.xlu1 %1226  ;;  %10315 = vst [vmem:[#allocation196_spill] sm:$0xff] %v5183_v22 }
 0x2d7   : > { %10307 = vst [vmem:[#allocation89_spill] sm:$0xff] %v5167_v32  ;;  %v10371_v32 = vld [vmem:[#allocation167_spill] sm:$0xff] }
 0x2d8   : > { %10312 = vst [vmem:[#allocation246_spill] sm:$0xff] %v5177_v51 }
 0x2d9   : > { %10320 = vst [vmem:[#allocation19_spill] sm:$0xff] %v5193_v46 }
 0x2da   : > { %10322 = vst [vmem:[#allocation158_spill] sm:$0xff] %v5197_v27  ;;  %1398 = vrot.lane.b32.xlu2 %v5197_v27, %s3381_s7 }
 0x2db   : > { %10328 = vst [vmem:[#allocation93_spill] sm:$0xff] %v5215_v1 }
 0x2dc   : > { %1394 = vrot.lane.b32.xlu0 %v5193_v46, %s3381_s7  ;;  %1396 = vrot.lane.b32.xlu1 %v5201_v50, %s3381_s7  ;;  %v5217_v35 = vpop.permute.xlu2 %1252  ;;  %10333 = vst [vmem:[#allocation48_spill] sm:$0xff] %v5225_v12 }
 0x2dd   : > { %10329 = vst [vmem:[#allocation20_spill] sm:$0xff] %v5217_v35  ;;  %v5239_v35 = vsub.f32 %v5225_v12, %v10339_v25  ;;  %v10349_v25 = vld [vmem:[#allocation102_spill] sm:$0xff] }
 0x2de   : > { %v5209_v60 = vpop.permute.xlu0 %1230  ;;  %v5219_v43 = vpop.permute.xlu1 %1232  ;;  %10338 = vst [vmem:[#allocation22_spill] sm:$0xff] %v5235_v48  ;;  %v5267_v51 = vsel %vm4325_vm0, %v10350_v18, %v10349_v25 }
 0x2df   : > { %10325 = vst [vmem:[#allocation94_spill] sm:$0xff] %v5209_v60 }
 0x2e0   : > { %10330 = vst [vmem:[#allocation154_spill] sm:$0xff] %v5219_v43  ;;  %v10341_v43 = vld [vmem:[#allocation99_spill] sm:$0xff] }
 0x2e1   : > { %10340 = vst [vmem:[#allocation161_spill] sm:$0xff] %v5239_v35  ;;  %v5243_v60 = vsub.f32 %v5231_v16, %v10341_v43 }
 0x2e2   : > { %1404 = vrot.lane.b32.xlu2 %v5239_v35, %s3381_s7  ;;  %10346 = vst [vmem:[#allocation99_spill] sm:$0xff] %v5257_v0 }
 0x2e3   : > { %10342 = vst [vmem:[#allocation95_spill] sm:$0xff] %v5243_v60 }
 0x2e4   : > { %1400 = vrot.lane.b32.xlu0 %v5235_v48, %s3381_s7  ;;  %1402 = vrot.lane.b32.xlu1 %v5243_v60, %s3381_s7  ;;  %v5259_v54 = vpop.permute.xlu2 %1258  ;;  %10351 = vst [vmem:[#allocation102_spill] sm:$0xff] %v5267_v51 }
 0x2e5   : > { %10347 = vst [vmem:[#allocation23_spill] sm:$0xff] %v5259_v54  ;;  %v5281_v54 = vsub.f32 %v5267_v51, %v10357_v20  ;;  %v10367_v20 = vld [vmem:[#allocation108_spill] sm:$0xff]  ;;  %v10461_v51 = vld [vmem:[#allocation181_spill] sm:$0xff] }
 0x2e6   : > { %v5251_v2 = vpop.permute.xlu0 %1236  ;;  %v5261_v43 = vpop.permute.xlu1 %1238  ;;  %10356 = vst [vmem:[#allocation25_spill] sm:$0xff] %v5277_v13  ;;  %v5309_v26 = vsel %vm4325_vm0, %v10368_v10, %v10367_v20 }
 0x2e7   : > { %10343 = vst [vmem:[#allocation100_spill] sm:$0xff] %v5251_v2  ;;  %v5273_v2 = vsel %vm4325_vm0, %v10353_v45, %v10352_v47  ;;  %v10362_v47 = vld [vmem:[#allocation26_spill] sm:$0xff] }
 0x2e8   : > { %10348 = vst [vmem:[#allocation155_spill] sm:$0xff] %v5261_v43  ;;  %v10359_v43 = vld [vmem:[#allocation105_spill] sm:$0xff]  ;;  %v5299_v18 = vsel %vm4325_vm0, %v10363_v57, %v10362_v47  ;;  %v10375_v57 = vld [vmem:[#allocation112_spill] sm:$0xff] }
 0x2e9   : > { %10354 = vst [vmem:[#allocation165_spill] sm:$0xff] %v5273_v2  ;;  %v5285_v8 = vsub.f32 %v5273_v2, %v10359_v43  ;;  %v5319_v47 = vsub.f32 %v5299_v18, %v10373_v30  ;;  %v10380_v30 = vld [vmem:[#allocation29_spill] sm:$0xff] }
 0x2ea   : > { %10358 = vst [vmem:[#allocation164_spill] sm:$0xff] %v5281_v54  ;;  %1410 = vrot.lane.b32.xlu2 %v5281_v54, %s3381_s7  ;;  %v10463_v2 = vld [vmem:[#allocation137_spill] sm:$0xff] }
 0x2eb   : > { %10360 = vst [vmem:[#allocation101_spill] sm:$0xff] %v5285_v8 }
 0x2ec   : > { %1406 = vrot.lane.b32.xlu0 %v5277_v13, %s3381_s7  ;;  %1408 = vrot.lane.b32.xlu1 %v5285_v8, %s3381_s7  ;;  %10364 = vst [vmem:[#allocation105_spill] sm:$0xff] %v5299_v18  ;;  %v5301_v25 = vpop.permute.xlu2 %1264 }
 0x2ed   : > { %10365 = vst [vmem:[#allocation26_spill] sm:$0xff] %v5301_v25  ;;  %v5323_v25 = vsub.f32 %v5309_v26, %v10375_v57  ;;  %v10385_v57 = vld [vmem:[#allocation114_spill] sm:$0xff] }
 0x2ee   : > { %v5293_v45 = vpop.permute.xlu0 %1242  ;;  %v5303_v43 = vpop.permute.xlu1 %1244  ;;  %10369 = vst [vmem:[#allocation108_spill] sm:$0xff] %v5309_v26  ;;  %v5351_v63 = vsel %vm4325_vm0, %v10386_v40, %v10385_v57  ;;  %v10398_v40 = vld [vmem:[#allocation32_spill] sm:$0xff]  ;;  %v10443_v26 = vld [vmem:[#allocation179_spill] sm:$0xff] }
 0x2ef   : > { %10361 = vst [vmem:[#allocation106_spill] sm:$0xff] %v5293_v45  ;;  %v5315_v45 = vsel %vm4325_vm0, %v10371_v32, %v10370_v33  ;;  %v10381_v32 = vld [vmem:[#allocation160_spill] sm:$0xff] }
 0x2f0   : > { %10366 = vst [vmem:[#allocation157_spill] sm:$0xff] %v5303_v43  ;;  %v10377_v43 = vld [vmem:[#allocation111_spill] sm:$0xff]  ;;  %v5341_v33 = vsel %vm4325_vm0, %v10381_v32, %v10380_v30  ;;  %v10393_v32 = vld [vmem:[#allocation118_spill] sm:$0xff] }
 0x2f1   : > { %10372 = vst [vmem:[#allocation168_spill] sm:$0xff] %v5315_v45  ;;  %v5327_v29 = vsub.f32 %v5315_v45, %v10377_v43  ;;  %v5361_v30 = vsub.f32 %v5341_v33, %v10391_v4  ;;  %v10399_v4 = vld [vmem:[#allocation163_spill] sm:$0xff] }
 0x2f2   : > { %10374 = vst [vmem:[#allocation28_spill] sm:$0xff] %v5319_v47  ;;  %1416 = vrot.lane.b32.xlu2 %v5323_v25, %s3381_s7  ;;  %v10445_v45 = vld [vmem:[#allocation131_spill] sm:$0xff] }
 0x2f3   : > { %10376 = vst [vmem:[#allocation167_spill] sm:$0xff] %v5323_v25 }
 0x2f4   : > { %10378 = vst [vmem:[#allocation107_spill] sm:$0xff] %v5327_v29  ;;  %1412 = vrot.lane.b32.xlu0 %v5319_v47, %s3381_s7  ;;  %1414 = vrot.lane.b32.xlu1 %v5327_v29, %s3381_s7  ;;  %v5343_v20 = vpop.permute.xlu2 %1270 }
 0x2f5   : > { %10382 = vst [vmem:[#allocation111_spill] sm:$0xff] %v5341_v33 }
 0x2f6   : > { %v5335_v10 = vpop.permute.xlu0 %1248  ;;  %10383 = vst [vmem:[#allocation29_spill] sm:$0xff] %v5343_v20  ;;  %v5345_v43 = vpop.permute.xlu1 %1250  ;;  %v5365_v20 = vsub.f32 %v5351_v63, %v10393_v32  ;;  %v10403_v32 = vld [vmem:[#allocation120_spill] sm:$0xff] }
 0x2f7   : > { %10379 = vst [vmem:[#allocation112_spill] sm:$0xff] %v5335_v10  ;;  %v5357_v10 = vsel %vm4325_vm0, %v10389_v36, %v10388_v39  ;;  %v5383_v39 = vsel %vm4325_vm0, %v10399_v4, %v10398_v40  ;;  %v5393_v61 = vsel %vm4325_vm0, %v10404_v15, %v10403_v32  ;;  %v10411_v4 = vld [vmem:[#allocation124_spill] sm:$0xff] }
 0x2f8   : > { %10384 = vst [vmem:[#allocation160_spill] sm:$0xff] %v5345_v43  ;;  %v10395_v43 = vld [vmem:[#allocation117_spill] sm:$0xff]  ;;  %v5403_v40 = vsub.f32 %v5383_v39, %v10409_v38 }
 0x2f9   : > { %10387 = vst [vmem:[#allocation114_spill] sm:$0xff] %v5351_v63  ;;  %v5369_v31 = vsub.f32 %v5357_v10, %v10395_v43  ;;  %v10425_v63 = vld [vmem:[#allocation176_spill] sm:$0xff] }
 0x2fa   : > { %10390 = vst [vmem:[#allocation171_spill] sm:$0xff] %v5357_v10  ;;  %1422 = vrot.lane.b32.xlu2 %v5365_v20, %s3381_s7  ;;  %v10427_v10 = vld [vmem:[#allocation125_spill] sm:$0xff] }
 0x2fb   : > { %10392 = vst [vmem:[#allocation31_spill] sm:$0xff] %v5361_v30 }
 0x2fc   : > { %10394 = vst [vmem:[#allocation170_spill] sm:$0xff] %v5365_v20  ;;  %1418 = vrot.lane.b32.xlu0 %v5361_v30, %s3381_s7  ;;  %1420 = vrot.lane.b32.xlu1 %v5369_v31, %s3381_s7  ;;  %v5385_v57 = vpop.permute.xlu2 %1276 }
 0x2fd   : > { %10396 = vst [vmem:[#allocation113_spill] sm:$0xff] %v5369_v31 }
 0x2fe   : > { %v5377_v36 = vpop.permute.xlu0 %1254  ;;  %10400 = vst [vmem:[#allocation117_spill] sm:$0xff] %v5383_v39  ;;  %v5387_v43 = vpop.permute.xlu1 %1256  ;;  %v10424_v39 = vld [vmem:[#allocation37_spill] sm:$0xff] }
 0x2ff   : > { %10397 = vst [vmem:[#allocation118_spill] sm:$0xff] %v5377_v36  ;;  %v5399_v36 = vsel %vm4325_vm0, %v10407_v23, %v10406_v5  ;;  %v10416_v5 = vld [vmem:[#allocation35_spill] sm:$0xff]  ;;  %v10417_v23 = vld [vmem:[#allocation166_spill] sm:$0xff] }
 0x300   : > { %10401 = vst [vmem:[#allocation32_spill] sm:$0xff] %v5385_v57  ;;  %v5407_v57 = vsub.f32 %v5393_v61, %v10411_v4  ;;  %v5425_v38 = vsel %vm4325_vm0, %v10417_v23, %v10416_v5  ;;  %v10421_v4 = vld [vmem:[#allocation126_spill] sm:$0xff] }
 0x301   : > { %10402 = vst [vmem:[#allocation163_spill] sm:$0xff] %v5387_v43  ;;  %v10413_v43 = vld [vmem:[#allocation123_spill] sm:$0xff]  ;;  %v5445_v5 = vsub.f32 %v5425_v38, %v10427_v10  ;;  %v10429_v23 = vld [vmem:[#allocation130_spill] sm:$0xff]  ;;  %v10435_v10 = vld [vmem:[#allocation169_spill] sm:$0xff] }
 0x302   : > { %10405 = vst [vmem:[#allocation120_spill] sm:$0xff] %v5393_v61  ;;  %v5411_v17 = vsub.f32 %v5399_v36, %v10413_v43  ;;  %1428 = vrot.lane.b32.xlu2 %v5407_v57, %s3381_s7  ;;  %v10422_v61 = vld [vmem:[#allocation177_spill] sm:$0xff] }
 0x303   : > { %10408 = vst [vmem:[#allocation174_spill] sm:$0xff] %v5399_v36  ;;  %v5435_v36 = vsel %vm4325_vm0, %v10422_v61, %v10421_v4 }
 0x304   : > { %10410 = vst [vmem:[#allocation34_spill] sm:$0xff] %v5403_v40  ;;  %1424 = vrot.lane.b32.xlu0 %v5403_v40, %s3381_s7  ;;  %1426 = vrot.lane.b32.xlu1 %v5411_v17, %s3381_s7  ;;  %v5427_v32 = vpop.permute.xlu2 %1282 }
 0x305   : > { %10412 = vst [vmem:[#allocation173_spill] sm:$0xff] %v5407_v57 }
 0x306   : > { %10414 = vst [vmem:[#allocation119_spill] sm:$0xff] %v5411_v17  ;;  %v5419_v15 = vpop.permute.xlu0 %1260  ;;  %v5429_v43 = vpop.permute.xlu1 %1262 }
 0x307   : > { %10415 = vst [vmem:[#allocation124_spill] sm:$0xff] %v5419_v15  ;;  %v5441_v15 = vsel %vm4325_vm0, %v10425_v63, %v10424_v39  ;;  %v10434_v63 = vld [vmem:[#allocation38_spill] sm:$0xff] }
 0x308   : > { %10418 = vst [vmem:[#allocation123_spill] sm:$0xff] %v5425_v38  ;;  %v5467_v39 = vsel %vm4325_vm0, %v10435_v10, %v10434_v63  ;;  %v10442_v38 = vld [vmem:[#allocation40_spill] sm:$0xff] }
 0x309   : > { %10419 = vst [vmem:[#allocation35_spill] sm:$0xff] %v5427_v32  ;;  %v5449_v32 = vsub.f32 %v5435_v36, %v10429_v23  ;;  %v10439_v23 = vld [vmem:[#allocation132_spill] sm:$0xff]  ;;  %v5487_v63 = vsub.f32 %v5467_v39, %v10445_v45  ;;  %v10452_v45 = vld [vmem:[#allocation45_spill] sm:$0xff] }
 0x30a   : > { %10420 = vst [vmem:[#allocation166_spill] sm:$0xff] %v5429_v43  ;;  %v10431_v43 = vld [vmem:[#allocation129_spill] sm:$0xff]  ;;  %v10447_v10 = vld [vmem:[#allocation136_spill] sm:$0xff] }
 0x30b   : > { %10423 = vst [vmem:[#allocation126_spill] sm:$0xff] %v5435_v36  ;;  %v5453_v33 = vsub.f32 %v5441_v15, %v10431_v43  ;;  %1434 = vrot.lane.b32.xlu2 %v5449_v32, %s3381_s7  ;;  %v10440_v36 = vld [vmem:[#allocation180_spill] sm:$0xff] }
 0x30c   : > { %10426 = vst [vmem:[#allocation177_spill] sm:$0xff] %v5441_v15  ;;  %1430 = vrot.lane.b32.xlu0 %v5445_v5, %s3381_s7  ;;  %v5469_v4 = vpop.permute.xlu2 %1288  ;;  %v5477_v15 = vsel %vm4325_vm0, %v10440_v36, %v10439_v23  ;;  %v10453_v36 = vld [vmem:[#allocation172_spill] sm:$0xff] }
 0x30d   : > { %10428 = vst [vmem:[#allocation37_spill] sm:$0xff] %v5445_v5  ;;  %1432 = vrot.lane.b32.xlu1 %v5453_v33, %s3381_s7 }
 0x30e   : > { %10430 = vst [vmem:[#allocation176_spill] sm:$0xff] %v5449_v32  ;;  %v5461_v61 = vpop.permute.xlu0 %1266  ;;  %v5471_v43 = vpop.permute.xlu1 %1268 }
 0x30f   : > { %10432 = vst [vmem:[#allocation125_spill] sm:$0xff] %v5453_v33 }
 0x310   : > { %10433 = vst [vmem:[#allocation130_spill] sm:$0xff] %v5461_v61  ;;  %v5483_v61 = vsel %vm4325_vm0, %v10443_v26, %v10442_v38  ;;  %v5509_v38 = vsel %vm4325_vm0, %v10453_v36, %v10452_v45  ;;  %v10465_v36 = vld [vmem:[#allocation142_spill] sm:$0xff] }
 0x311   : > { %10436 = vst [vmem:[#allocation129_spill] sm:$0xff] %v5467_v39  ;;  %v10460_v39 = vld [vmem:[#allocation72_spill] sm:$0xff]  ;;  %v5529_v45 = vsub.f32 %v5509_v38, %v10463_v2  ;;  %v10470_v2 = vld [vmem:[#allocation175_spill] sm:$0xff] }
 0x312   : > { %10437 = vst [vmem:[#allocation38_spill] sm:$0xff] %v5469_v4  ;;  %v5491_v4 = vsub.f32 %v5477_v15, %v10447_v10  ;;  %v10457_v10 = vld [vmem:[#allocation138_spill] sm:$0xff] }
 0x313   : > { %10438 = vst [vmem:[#allocation169_spill] sm:$0xff] %v5471_v43  ;;  %v10449_v43 = vld [vmem:[#allocation135_spill] sm:$0xff] }
 0x314   : > { %10441 = vst [vmem:[#allocation132_spill] sm:$0xff] %v5477_v15  ;;  %v5495_v18 = vsub.f32 %v5483_v61, %v10449_v43  ;;  %1436 = vrot.lane.b32.xlu0 %v5487_v63, %s3381_s7  ;;  %1440 = vrot.lane.b32.xlu2 %v5491_v4, %s3381_s7  ;;  %v5511_v23 = vpop.permute.xlu2 %1294  ;;  %v10458_v15 = vld [vmem:[#allocation183_spill] sm:$0xff] }
 0x315   : > { %10444 = vst [vmem:[#allocation180_spill] sm:$0xff] %v5483_v61  ;;  %v5519_v61 = vsel %vm4325_vm0, %v10458_v15, %v10457_v10  ;;  %v5551_v15 = vsel %vm4325_vm0, %v10470_v2, %v4895_v52  ;;  %v10474_v10 = vld [vmem:[#allocation144_spill] sm:$0xff] }
 0x316   : > { %10446 = vst [vmem:[#allocation40_spill] sm:$0xff] %v5487_v63  ;;  %1438 = vrot.lane.b32.xlu1 %v5495_v18, %s3381_s7  ;;  %v5503_v26 = vpop.permute.xlu0 %1272  ;;  %v5513_v43 = vpop.permute.xlu1 %1274  ;;  %v10481_v2 = vld [vmem:[#allocation148_spill] sm:$0xff] }
 0x317   : > { %10448 = vst [vmem:[#allocation179_spill] sm:$0xff] %v5491_v4 }
 0x318   : > { %10450 = vst [vmem:[#allocation131_spill] sm:$0xff] %v5495_v18 }
 0x319   : > { %10451 = vst [vmem:[#allocation136_spill] sm:$0xff] %v5503_v26  ;;  %v5525_v26 = vsel %vm4325_vm0, %v10461_v51, %v10460_v39 }
 0x31a   : > { %10454 = vst [vmem:[#allocation135_spill] sm:$0xff] %v5509_v38  ;;  %v10479_v38 = vld [vmem:[#allocation143_spill] sm:$0xff] }
 0x31b   : > { %10455 = vst [vmem:[#allocation45_spill] sm:$0xff] %v5511_v23  ;;  %v5533_v23 = vsub.f32 %v5519_v61, %v10465_v36  ;;  %v10475_v36 = vld [vmem:[#allocation188_spill] sm:$0xff]  ;;  %v5571_v52 = vsub.f32 %v5551_v15, %v10479_v38 }
 0x31c   : > { %10456 = vst [vmem:[#allocation172_spill] sm:$0xff] %v5513_v43  ;;  %v10467_v43 = vld [vmem:[#allocation141_spill] sm:$0xff]  ;;  %1442 = vrot.lane.b32.xlu0 %v5529_v45, %s3381_s7  ;;  %v5553_v39 = vpop.permute.xlu2 %1380 }
 0x31d   : > { %10459 = vst [vmem:[#allocation138_spill] sm:$0xff] %v5519_v61  ;;  %v5537_v0 = vsub.f32 %v5525_v26, %v10467_v43  ;;  %1446 = vrot.lane.b32.xlu2 %v5533_v23, %s3381_s7  ;;  %v5561_v61 = vsel %vm4325_vm0, %v10475_v36, %v10474_v10  ;;  %v10490_v36 = vld [vmem:[#allocation194_spill] sm:$0xff] }
 0x31e   : > { %10462 = vst [vmem:[#allocation183_spill] sm:$0xff] %v5525_v26  ;;  %v5545_v51 = vpop.permute.xlu0 %1278  ;;  %v5555_v43 = vpop.permute.xlu1 %1280  ;;  %v10477_v26 = vld [vmem:[#allocation186_spill] sm:$0xff] }
 0x31f   : > { %10464 = vst [vmem:[#allocation72_spill] sm:$0xff] %v5529_v45  ;;  %1444 = vrot.lane.b32.xlu1 %v5537_v0, %s3381_s7 }
 0x320   : > { %10466 = vst [vmem:[#allocation181_spill] sm:$0xff] %v5533_v23 }
 0x321   : > { %10468 = vst [vmem:[#allocation137_spill] sm:$0xff] %v5537_v0 }
 0x322   : > { %10469 = vst [vmem:[#allocation142_spill] sm:$0xff] %v5545_v51  ;;  %v5567_v51 = vsel %vm4325_vm0, %v10477_v26, %v4897_v28  ;;  %v10486_v26 = vld [vmem:[#allocation178_spill] sm:$0xff] }
 0x323   : > { %10471 = vst [vmem:[#allocation141_spill] sm:$0xff] %v5551_v15  ;;  %v5593_v38 = vsel %vm4325_vm0, %v10486_v26, %v4907_v19 }
 0x324   : > { %10472 = vst [vmem:[#allocation175_spill] sm:$0xff] %v5553_v39  ;;  %v5575_v39 = vsub.f32 %v5561_v61, %v10481_v2  ;;  %1448 = vrot.lane.b32.xlu0 %v5571_v52, %s3381_s7  ;;  %v5595_v10 = vpop.permute.xlu2 %1386  ;;  %v5603_v2 = vsel %vm4325_vm0, %v10490_v36, %v4909_v21 }
 0x325   : > { %10473 = vst [vmem:[#allocation247_spill] sm:$0xff] %v5555_v43  ;;  %v10483_v43 = vld [vmem:[#allocation147_spill] sm:$0xff] }
 0x326   : > { %10476 = vst [vmem:[#allocation144_spill] sm:$0xff] %v5561_v61  ;;  %v5579_v12 = vsub.f32 %v5567_v51, %v10483_v43  ;;  %1452 = vrot.lane.b32.xlu2 %v5575_v39, %s3381_s7  ;;  %v5587_v28 = vpop.permute.xlu0 %1284  ;;  %v5597_v43 = vpop.permute.xlu1 %1286  ;;  %v10491_v61 = vld [vmem:[#allocation149_spill] sm:$0xff] }
 0x327   : > { %10478 = vst [vmem:[#allocation188_spill] sm:$0xff] %v5567_v51  ;;  %v5607_v51 = vsub.f32 %v5593_v38, %v10491_v61 }
 0x328   : > { %10480 = vst [vmem:[#allocation186_spill] sm:$0xff] %v5571_v52  ;;  %1450 = vrot.lane.b32.xlu1 %v5579_v12, %s3381_s7 }
 0x329   : > { %10482 = vst [vmem:[#allocation143_spill] sm:$0xff] %v5575_v39 }
 0x32a   : > { %10484 = vst [vmem:[#allocation148_spill] sm:$0xff] %v5579_v12 }
 0x32b   : > { %10485 = vst [vmem:[#allocation147_spill] sm:$0xff] %v5587_v28  ;;  %v10493_v28 = vld [vmem:[#allocation152_spill] sm:$0xff] }
 0x32c   : > { %10487 = vst [vmem:[#allocation178_spill] sm:$0xff] %v5593_v38  ;;  %v5611_v15 = vsub.f32 %v5603_v2, %v10493_v28  ;;  %1454 = vrot.lane.b32.xlu0 %v5607_v51, %s3381_s7  ;;  %v5621_v21 = vpop.permute.xlu2 %1392 }
 0x32d   : > { %10488 = vst [vmem:[#allocation248_spill] sm:$0xff] %v5595_v10 }
 0x32e   : > { %10489 = vst [vmem:[#allocation249_spill] sm:$0xff] %v5597_v43  ;;  %1458 = vrot.lane.b32.xlu2 %v5075_v14, %s3378_s26  ;;  %v5619_v19 = vpop.permute.xlu0 %1290  ;;  %v5623_v26 = vpop.permute.xlu1 %1292  ;;  %v5886_v14 = vld [vmem:[%s3513_s8 + $0x40] sm:$0xff] }
 0x32f   : > { %10492 = vst [vmem:[#allocation194_spill] sm:$0xff] %v5607_v51 }
 0x330   : > { %10494 = vst [vmem:[#allocation149_spill] sm:$0xff] %v5611_v15  ;;  %1456 = vrot.lane.b32.xlu1 %v5611_v15, %s3381_s7 }
 0x331   : > { %10495 = vst [vmem:[#allocation152_spill] sm:$0xff] %v5619_v19  ;;  %v10566_v19 = vld [vmem:[#allocation55_spill] sm:$0xff] }
 0x332   : > { %10496 = vst [vmem:[#allocation250_spill] sm:$0xff] %v5621_v21  ;;  %v826_v43 = vmin.f32 %v10566_v19, %v5173_v42  ;;  %v5937_v19 = vld [vmem:[%s3520_s25 + $0x58] sm:$0xff] }
 0x333   : > { %10497 = vst [vmem:[#allocation251_spill] sm:$0xff] %v5623_v26  ;;  %v5889_v26 = vld [vmem:[%s3520_s25 + $0x40] sm:$0xff] }
 0x334   : > { %1460 = vrot.lane.b32.xlu0 %v5071_v6, %s3378_s26  ;;  %v5633_v28 = vpop.permute.xlu2 %1398  ;;  %10564 = vst [vmem:[#allocation308_spill] sm:$0xff] %v5886_v14 }
 0x335   : > { %10499 = vst [vmem:[#allocation253_spill] sm:$0xff] %v5633_v28 }
 0x336   : > { %1464 = vrot.lane.b32.xlu2 %v5117_v55, %s3378_s26  ;;  %v5631_v61 = vpop.permute.xlu0 %1296  ;;  %v5635_v36 = vpop.permute.xlu1 %1378  ;;  %v10558_v55 = vld [vmem:[#allocation197_spill] sm:$0xff]  ;;  %10565 = vst [vmem:[#allocation309_spill] sm:$0xff] %v5889_v26 }
 0x337   : > { %10498 = vst [vmem:[#allocation252_spill] sm:$0xff] %v5631_v61 }
 0x338   : > { %1462 = vrot.lane.b32.xlu1 %v5109_v24, %s3378_s26  ;;  %10500 = vst [vmem:[#allocation254_spill] sm:$0xff] %v5635_v36  ;;  %v5910_v36 = vld [vmem:[%s3513_s8 + $0x48] sm:$0xff] }
 0x339   : > { %10571 = vst [vmem:[#allocation314_spill] sm:$0xff] %v5910_v36 }
 0x33a   : > { %10580 = vst [vmem:[#allocation321_spill] sm:$0xff] %v5937_v19 }
 0x33c   : > { %1466 = vrot.lane.b32.xlu0 %v5113_v11, %s3378_s26  ;;  %v5645_v6 = vpop.permute.xlu2 %1404 }
 0x33d   : > { %10502 = vst [vmem:[#allocation256_spill] sm:$0xff] %v5645_v6 }
 0x33e   : > { %1470 = vrot.lane.b32.xlu2 %v5159_v41, %s3378_s26  ;;  %v5643_v21 = vpop.permute.xlu0 %1382  ;;  %v5647_v24 = vpop.permute.xlu1 %1384  ;;  %v5862_v41 = vld [vmem:[%s3513_s8 + $0x30] sm:$0xff] }
 0x33f   : > { %10501 = vst [vmem:[#allocation255_spill] sm:$0xff] %v5643_v21 }
 0x340   : > { %1468 = vrot.lane.b32.xlu1 %v5151_v37, %s3378_s26  ;;  %10503 = vst [vmem:[#allocation257_spill] sm:$0xff] %v5647_v24 }
 0x341   : > { %10556 = vst [vmem:[#allocation302_spill] sm:$0xff] %v5862_v41 }
 0x344   : > { %1472 = vrot.lane.b32.xlu0 %v5155_v7, %s3378_s26  ;;  %v5657_v11 = vpop.permute.xlu2 %1410 }
 0x345   : > { %10505 = vst [vmem:[#allocation259_spill] sm:$0xff] %v5657_v11 }
 0x346   : > { %1476 = vrot.lane.b32.xlu2 %v5201_v50, %s3378_s26  ;;  %v5655_v28 = vpop.permute.xlu0 %1388  ;;  %v5659_v37 = vpop.permute.xlu1 %1390 }
 0x347   : > { %10504 = vst [vmem:[#allocation258_spill] sm:$0xff] %v5655_v28  ;;  %v10551_v28 = vld [vmem:[#allocation51_spill] sm:$0xff] }
 0x348   : > { %1474 = vrot.lane.b32.xlu1 %v5193_v46, %s3378_s26  ;;  %10506 = vst [vmem:[#allocation260_spill] sm:$0xff] %v5659_v37 }
 0x34c   : > { %1478 = vrot.lane.b32.xlu0 %v5197_v27, %s3378_s26  ;;  %v5669_v7 = vpop.permute.xlu2 %1416 }
 0x34d   : > { %10508 = vst [vmem:[#allocation262_spill] sm:$0xff] %v5669_v7 }
 0x34e   : > { %1482 = vrot.lane.b32.xlu2 %v5243_v60, %s3378_s26  ;;  %v5667_v6 = vpop.permute.xlu0 %1394  ;;  %v5671_v46 = vpop.permute.xlu1 %1396  ;;  %v823_v60 = vmin.f32 %v10551_v28, %v5131_v56 }
 0x34f   : > { %10507 = vst [vmem:[#allocation261_spill] sm:$0xff] %v5667_v6  ;;  %v5838_v6 = vld [vmem:[%s3513_s8 + $0x28] sm:$0xff] }
 0x350   : > { %1480 = vrot.lane.b32.xlu1 %v5235_v48, %s3378_s26  ;;  %10509 = vst [vmem:[#allocation263_spill] sm:$0xff] %v5671_v46 }
 0x351   : > { %10549 = vst [vmem:[#allocation296_spill] sm:$0xff] %v5838_v6 }
 0x354   : > { %1484 = vrot.lane.b32.xlu0 %v5239_v35, %s3378_s26  ;;  %v5681_v27 = vpop.permute.xlu2 %1422 }
 0x355   : > { %10511 = vst [vmem:[#allocation265_spill] sm:$0xff] %v5681_v27 }
 0x356   : > { %1488 = vrot.lane.b32.xlu2 %v5285_v8, %s3378_s26  ;;  %v5679_v11 = vpop.permute.xlu0 %1400  ;;  %v5683_v48 = vpop.permute.xlu1 %1402 }
 0x357   : > { %10510 = vst [vmem:[#allocation264_spill] sm:$0xff] %v5679_v11 }
 0x358   : > { %1486 = vrot.lane.b32.xlu1 %v5277_v13, %s3378_s26  ;;  %10512 = vst [vmem:[#allocation266_spill] sm:$0xff] %v5683_v48 }
 0x35c   : > { %1490 = vrot.lane.b32.xlu0 %v5281_v54, %s3378_s26  ;;  %v5693_v35 = vpop.permute.xlu2 %1428 }
 0x35d   : > { %10514 = vst [vmem:[#allocation268_spill] sm:$0xff] %v5693_v35 }
 0x35e   : > { %1494 = vrot.lane.b32.xlu2 %v5327_v29, %s3378_s26  ;;  %v5691_v7 = vpop.permute.xlu0 %1406  ;;  %v5695_v13 = vpop.permute.xlu1 %1408 }
 0x35f   : > { %10513 = vst [vmem:[#allocation267_spill] sm:$0xff] %v5691_v7 }
 0x360   : > { %1492 = vrot.lane.b32.xlu1 %v5319_v47, %s3378_s26  ;;  %10515 = vst [vmem:[#allocation269_spill] sm:$0xff] %v5695_v13 }
 0x364   : > { %1496 = vrot.lane.b32.xlu0 %v5323_v25, %s3378_s26 }
 0x365   : > { %v5705_v54 = vpop.permute.xlu2 %1434 }
 0x366   : > { %1500 = vrot.lane.b32.xlu2 %v5369_v31, %s3378_s26  ;;  %v5703_v27 = vpop.permute.xlu0 %1412  ;;  %10517 = vst [vmem:[#allocation271_spill] sm:$0xff] %v5705_v54  ;;  %v5707_v47 = vpop.permute.xlu1 %1414 }
 0x367   : > { %10516 = vst [vmem:[#allocation270_spill] sm:$0xff] %v5703_v27  ;;  %v10536_v27 = vld [vmem:[#allocation190_spill] sm:$0xff] }
 0x368   : > { %1498 = vrot.lane.b32.xlu1 %v5361_v30, %s3378_s26  ;;  %10518 = vst [vmem:[#allocation272_spill] sm:$0xff] %v5707_v47  ;;  %v5841_v47 = vld [vmem:[%s3520_s25 + $0x28] sm:$0xff] }
 0x369   : > { %10550 = vst [vmem:[#allocation297_spill] sm:$0xff] %v5841_v47  ;;  %v863_v8 = vmax.f32 %v5838_v6, %v5841_v47  ;;  %v6208_v6 = vld [vmem:[%s3513_s8 + $0xe0] sm:$0xff]  ;;  %v10688_v47 = vld [vmem:[#allocation122_spill] sm:$0xff] }
 0x36a   : > { %10679 = vst [vmem:[#allocation388_spill] sm:$0xff] %v6208_v6 }
 0x36b   : > { %v903_v10 = vsub.f32 %v823_v60, %v863_v8  ;;  %v5877_v8 = vld [vmem:[%s3520_s25 + $0x38] sm:$0xff] }
 0x36c   : > { %1502 = vrot.lane.b32.xlu0 %v5365_v20, %s3378_s26  ;;  %10561 = vst [vmem:[#allocation306_spill] sm:$0xff] %v5877_v8 }
 0x36e   : > { %1506 = vrot.lane.b32.xlu2 %v5411_v17, %s3378_s26  ;;  %v5715_v35 = vpop.permute.xlu0 %1418  ;;  %v5717_v25 = vpop.permute.xlu2 %1440 }
 0x36f   : > { %10519 = vst [vmem:[#allocation273_spill] sm:$0xff] %v5715_v35  ;;  %v5719_v30 = vpop.permute.xlu1 %1420  ;;  %v5790_v35 = vld [vmem:[%s3513_s8 + $0x10] sm:$0xff] }
 0x370   : > { %1504 = vrot.lane.b32.xlu1 %v5403_v40, %s3378_s26  ;;  %10520 = vst [vmem:[#allocation274_spill] sm:$0xff] %v5717_v25 }
 0x371   : > { %10521 = vst [vmem:[#allocation275_spill] sm:$0xff] %v5719_v30 }
 0x374   : > { %1508 = vrot.lane.b32.xlu0 %v5407_v57, %s3378_s26 }
 0x376   : > { %1512 = vrot.lane.b32.xlu2 %v5453_v33, %s3378_s26  ;;  %v5727_v54 = vpop.permute.xlu0 %1424 }
 0x377   : > { %10522 = vst [vmem:[#allocation276_spill] sm:$0xff] %v5727_v54  ;;  %v5729_v20 = vpop.permute.xlu2 %1446  ;;  %v5731_v40 = vpop.permute.xlu1 %1426  ;;  %v5775_v54 = vld [vmem:[%s3520_s25] sm:$0xff] }
 0x378   : > { %1510 = vrot.lane.b32.xlu1 %v5445_v5, %s3378_s26  ;;  %10523 = vst [vmem:[#allocation277_spill] sm:$0xff] %v5729_v20 }
 0x379   : > { %10524 = vst [vmem:[#allocation278_spill] sm:$0xff] %v5731_v40 }
 0x37c   : > { %1514 = vrot.lane.b32.xlu0 %v5449_v32, %s3378_s26  ;;  %v10534_v32 = vld [vmem:[#allocation184_spill] sm:$0xff] }
 0x37e   : > { %1518 = vrot.lane.b32.xlu2 %v5495_v18, %s3378_s26  ;;  %v5739_v25 = vpop.permute.xlu0 %1430  ;;  %v5783_v18 = vld [vmem:[%s3520_s25 + $0x8] sm:$0xff] }
 0x37f   : > { %10525 = vst [vmem:[#allocation279_spill] sm:$0xff] %v5739_v25  ;;  %v5743_v5 = vpop.permute.xlu1 %1432  ;;  %v818_v25 = vmin.f32 %v10534_v32, %v5067_v34 }
 0x380   : > { %1516 = vrot.lane.b32.xlu1 %v5487_v63, %s3378_s26  ;;  %v5741_v57 = vpop.permute.xlu2 %1452  ;;  %10527 = vst [vmem:[#allocation281_spill] sm:$0xff] %v5743_v5  ;;  %v820_v5 = vmin.f32 %v10536_v27, %v5089_v53 }
 0x381   : > { %10526 = vst [vmem:[#allocation280_spill] sm:$0xff] %v5741_v57 }
 0x384   : > { %1520 = vrot.lane.b32.xlu0 %v5491_v4, %s3378_s26 }
 0x386   : > { %1524 = vrot.lane.b32.xlu2 %v5537_v0, %s3378_s26  ;;  %v5751_v20 = vpop.permute.xlu0 %1436  ;;  %v5772_v0 = vld [vmem:[%s3513_s8] sm:$0xff] }
 0x387   : > { %10528 = vst [vmem:[#allocation282_spill] sm:$0xff] %v5751_v20 }
 0x388   : > { %1522 = vrot.lane.b32.xlu1 %v5529_v45, %s3378_s26  ;;  %v5753_v63 = vpop.permute.xlu2 %1458  ;;  %v5755_v57 = vpop.permute.xlu1 %1438 }
 0x389   : > { %10529 = vst [vmem:[#allocation283_spill] sm:$0xff] %v5753_v63  ;;  %v10573_v63 = vld [vmem:[#allocation84_spill] sm:$0xff] }
 0x38a   : > { %10530 = vst [vmem:[#allocation284_spill] sm:$0xff] %v5755_v57  ;;  %v5793_v57 = vld [vmem:[%s3520_s25 + $0x10] sm:$0xff] }
 0x38b   : > { %v860_v33 = vmax.f32 %v5790_v35, %v5793_v57 }
 0x38c   : > { %1526 = vrot.lane.b32.xlu0 %v5533_v23, %s3378_s26  ;;  %v858_v23 = vmax.f32 %v5772_v0, %v5775_v54 }
 0x38d   : > { %v900_v40 = vsub.f32 %v820_v5, %v860_v33 }
 0x38e   : > { %1530 = vrot.lane.b32.xlu2 %v5579_v12, %s3378_s26  ;;  %v5763_v4 = vpop.permute.xlu0 %1442  ;;  %v5780_v12 = vld [vmem:[%s3513_s8 + $0x8] sm:$0xff]  ;;  %v898_v17 = vsub.f32 %v818_v25, %v858_v23  ;;  %v5817_v25 = vld [vmem:[%s3520_s25 + $0x18] sm:$0xff] }
 0x38f   : > { %10531 = vst [vmem:[#allocation285_spill] sm:$0xff] %v5763_v4  ;;  %v10535_v4 = vld [vmem:[#allocation187_spill] sm:$0xff] }
 0x390   : > { %1528 = vrot.lane.b32.xlu1 %v5571_v52, %s3378_s26  ;;  %v5765_v45 = vpop.permute.xlu2 %1464  ;;  %v859_v52 = vmax.f32 %v5780_v12, %v5783_v18  ;;  %v5811_v30 = vmax.f32 %v898_v17, 0.0  ;;  %10542 = vst [vmem:[#allocation291_spill] sm:$0xff] %v5817_v25  ;;  %v10546_v17 = vld [vmem:[#allocation195_spill] sm:$0xff] }
 0x391   : > { %10532 = vst [vmem:[#allocation286_spill] sm:$0xff] %v5765_v45  ;;  %v5767_v20 = vpop.permute.xlu1 %1444  ;;  %v822_v5 = vmin.f32 %v10546_v17, %v5099_v62 }
 0x392   : > { %10533 = vst [vmem:[#allocation287_spill] sm:$0xff] %v5767_v20  ;;  %v819_v20 = vmin.f32 %v10535_v4, %v5061_v58 }
 0x393   : > { %10540 = vst [vmem:[#allocation289_spill] sm:$0xff] %v5811_v30 }
 0x394   : > { %1532 = vrot.lane.b32.xlu0 %v5575_v39, %s3378_s26  ;;  %v899_v31 = vsub.f32 %v819_v20, %v859_v52  ;;  %v5814_v39 = vld [vmem:[%s3513_s8 + $0x18] sm:$0xff]  ;;  %v5827_v20 = vld [vmem:[%s3520_s25 + $0x20] sm:$0xff] }
 0x395   : > { %10541 = vst [vmem:[#allocation290_spill] sm:$0xff] %v5814_v39  ;;  %v861_v23 = vmax.f32 %v5814_v39, %v5817_v25 }
 0x396   : > { %1536 = vrot.lane.b32.xlu2 %v5611_v15, %s3378_s26  ;;  %v5805_v7 = vpop.permute.xlu0 %1448  ;;  %v5824_v15 = vld [vmem:[%s3513_s8 + $0x20] sm:$0xff]  ;;  %10545 = vst [vmem:[#allocation293_spill] sm:$0xff] %v5827_v20  ;;  %v5833_v52 = vmax.f32 %v899_v31, 0.0 }
 0x397   : > { %10537 = vst [vmem:[#allocation184_spill] sm:$0xff] %v5805_v7  ;;  %v862_v33 = vmax.f32 %v5824_v15, %v5827_v20  ;;  %v10714_v20 = vld [vmem:[#allocation66_spill] sm:$0xff] }
 0x398   : > { %1534 = vrot.lane.b32.xlu1 %v5607_v51, %s3378_s26  ;;  %v5807_v29 = vpop.permute.xlu2 %1470  ;;  %v10543_v51 = vld [vmem:[#allocation189_spill] sm:$0xff]  ;;  %10544 = vst [vmem:[#allocation292_spill] sm:$0xff] %v5824_v15 }
 0x399   : > { %10538 = vst [vmem:[#allocation187_spill] sm:$0xff] %v5807_v29  ;;  %v821_v7 = vmin.f32 %v10543_v51, %v5105_v49  ;;  %v902_v13 = vsub.f32 %v822_v5, %v862_v33  ;;  %v5874_v33 = vld [vmem:[%s3513_s8 + $0x38] sm:$0xff]  ;;  %v6304_v51 = vld [vmem:[%s3513_s8 + $0x110] sm:$0xff]  ;;  %v10724_v49 = vld [vmem:[#allocation134_spill] sm:$0xff] }
 0x39a   : > { %v5809_v11 = vpop.permute.xlu1 %1450  ;;  %10547 = vst [vmem:[#allocation294_spill] sm:$0xff] %v5833_v52  ;;  %v865_v60 = vmax.f32 %v5874_v33, %v5877_v8  ;;  %v10562_v5 = vld [vmem:[#allocation96_spill] sm:$0xff]  ;;  %v10642_v8 = vld [vmem:[#allocation54_spill] sm:$0xff] }
 0x39b   : > { %10539 = vst [vmem:[#allocation288_spill] sm:$0xff] %v5809_v11  ;;  %v5835_v11 = vmax.f32 %v900_v40, 0.0  ;;  %v901_v31 = vsub.f32 %v821_v7, %v861_v23  ;;  %v5865_v7 = vld [vmem:[%s3520_s25 + $0x30] sm:$0xff]  ;;  %v5871_v61 = vmax.f32 %v902_v13, 0.0  ;;  %v866_v13 = vmax.f32 %v5886_v14, %v5889_v26  ;;  %v6016_v14 = vld [vmem:[%s3513_s8 + $0x80] sm:$0xff]  ;;  %v10616_v26 = vld [vmem:[#allocation98_spill] sm:$0xff] }
 0x39c   : > { %1618 = vrot.lane.b32.xlu0 %v5811_v30, %s3381_s7  ;;  %10557 = vst [vmem:[#allocation303_spill] sm:$0xff] %v5865_v7  ;;  %v864_v23 = vmax.f32 %v5862_v41, %v5865_v7  ;;  %v10678_v7 = vld [vmem:[#allocation60_spill] sm:$0xff] }
 0x39d   : > { %10548 = vst [vmem:[#allocation295_spill] sm:$0xff] %v5835_v11  ;;  %v5859_v50 = vmax.f32 %v901_v31, 0.0  ;;  %v825_v31 = vmin.f32 %v10562_v5, %v5141_v44  ;;  %v906_v37 = vsub.f32 %v826_v43, %v866_v13 }
 0x39e   : > { %1622 = vrot.lane.b32.xlu2 %v5835_v11, %s3381_s7  ;;  %v5853_v40 = vpop.permute.xlu0 %1454  ;;  %10559 = vst [vmem:[#allocation304_spill] sm:$0xff] %v5871_v61 }
 0x39f   : > { %10552 = vst [vmem:[#allocation298_spill] sm:$0xff] %v5853_v40  ;;  %v824_v40 = vmin.f32 %v10558_v55, %v5147_v9  ;;  %v6112_v55 = vld [vmem:[%s3513_s8 + $0xb0] sm:$0xff]  ;;  %v10652_v9 = vld [vmem:[#allocation110_spill] sm:$0xff] }
 0x3a0   : > { %1620 = vrot.lane.b32.xlu1 %v5833_v52, %s3381_s7  ;;  %v5855_v21 = vpop.permute.xlu2 %1476  ;;  %10555 = vst [vmem:[#allocation301_spill] sm:$0xff] %v5859_v50 }
 0x3a1   : > { %10553 = vst [vmem:[#allocation299_spill] sm:$0xff] %v5855_v21  ;;  %v904_v46 = vsub.f32 %v824_v40, %v864_v23  ;;  %v905_v21 = vsub.f32 %v825_v31, %v865_v60  ;;  %v5913_v40 = vld [vmem:[%s3520_s25 + $0x48] sm:$0xff]  ;;  %v5923_v60 = vld [vmem:[%s3520_s25 + $0x50] sm:$0xff] }
 0x3a2   : > { %v5857_v48 = vpop.permute.xlu1 %1456  ;;  %10560 = vst [vmem:[#allocation305_spill] sm:$0xff] %v5874_v33  ;;  %v867_v23 = vmax.f32 %v5910_v36, %v5913_v40  ;;  %v868_v43 = vmax.f32 %v5920_v59, %v5923_v60  ;;  %v10588_v59 = vld [vmem:[#allocation49_spill] sm:$0xff] }
 0x3a3   : > { %10554 = vst [vmem:[#allocation300_spill] sm:$0xff] %v5857_v48  ;;  %v5883_v48 = vmax.f32 %v903_v10, 0.0  ;;  %v5907_v45 = vmax.f32 %v904_v46, 0.0  ;;  %v10576_v46 = vld [vmem:[#allocation18_spill] sm:$0xff]  ;;  %v5929_v13 = vmax.f32 %v905_v21, 0.0 }
 0x3a4   : > { %1624 = vrot.lane.b32.xlu0 %v5859_v50, %s3381_s7  ;;  %10572 = vst [vmem:[#allocation315_spill] sm:$0xff] %v5913_v40  ;;  %v828_v31 = vmin.f32 %v10576_v46, %v5183_v22  ;;  %v5958_v22 = vld [vmem:[%s3513_s8 + $0x60] sm:$0xff]  ;;  %v10606_v40 = vld [vmem:[#allocation50_spill] sm:$0xff] }
 0x3a5   : > { %10563 = vst [vmem:[#allocation307_spill] sm:$0xff] %v5883_v48 }
 0x3a6   : > { %1628 = vrot.lane.b32.xlu2 %v5883_v48, %s3381_s7  ;;  %v5901_v10 = vpop.permute.xlu0 %1460  ;;  %10570 = vst [vmem:[#allocation313_spill] sm:$0xff] %v5907_v45  ;;  %v908_v46 = vsub.f32 %v828_v31, %v868_v43  ;;  %v5970_v43 = vld [vmem:[%s3513_s8 + $0x68] sm:$0xff]  ;;  %v10592_v31 = vld [vmem:[#allocation48_spill] sm:$0xff] }
 0x3a7   : > { %10567 = vst [vmem:[#allocation310_spill] sm:$0xff] %v5901_v10  ;;  %v827_v10 = vmin.f32 %v10573_v63, %v5189_v3  ;;  %v10581_v3 = vld [vmem:[#allocation88_spill] sm:$0xff] }
 0x3a8   : > { %1626 = vrot.lane.b32.xlu1 %v5871_v61, %s3381_s7  ;;  %v5903_v29 = vpop.permute.xlu2 %1482  ;;  %10575 = vst [vmem:[#allocation317_spill] sm:$0xff] %v5923_v60  ;;  %v829_v42 = vmin.f32 %v10581_v3, %v5215_v1  ;;  %v5967_v60 = vmax.f32 %v908_v46, 0.0 }
 0x3a9   : > { %10568 = vst [vmem:[#allocation311_spill] sm:$0xff] %v5903_v29  ;;  %v5934_v29 = vld [vmem:[%s3513_s8 + $0x58] sm:$0xff]  ;;  %v907_v21 = vsub.f32 %v827_v10, %v867_v23  ;;  %v5961_v10 = vld [vmem:[%s3520_s25 + $0x60] sm:$0xff] }
 0x3aa   : > { %v5905_v24 = vpop.permute.xlu1 %1462  ;;  %10577 = vst [vmem:[#allocation318_spill] sm:$0xff] %v5929_v13  ;;  %v869_v63 = vmax.f32 %v5934_v29, %v5937_v19  ;;  %v870_v23 = vmax.f32 %v5958_v22, %v5961_v10 }
 0x3ab   : > { %10569 = vst [vmem:[#allocation312_spill] sm:$0xff] %v5905_v24  ;;  %v5931_v24 = vmax.f32 %v906_v37, 0.0  ;;  %v5955_v1 = vmax.f32 %v907_v21, 0.0  ;;  %v10593_v21 = vld [vmem:[#allocation21_spill] sm:$0xff] }
 0x3ac   : > { %10579 = vst [vmem:[#allocation320_spill] sm:$0xff] %v5934_v29  ;;  %1630 = vrot.lane.b32.xlu0 %v5907_v45, %s3381_s7  ;;  %v909_v29 = vsub.f32 %v829_v42, %v869_v63  ;;  %v5973_v42 = vld [vmem:[%s3520_s25 + $0x68] sm:$0xff] }
 0x3ad   : > { %10578 = vst [vmem:[#allocation319_spill] sm:$0xff] %v5931_v24  ;;  %v871_v63 = vmax.f32 %v5970_v43, %v5973_v42 }
 0x3ae   : > { %1634 = vrot.lane.b32.xlu2 %v5931_v24, %s3381_s7  ;;  %v5949_v37 = vpop.permute.xlu0 %1466  ;;  %10585 = vst [vmem:[#allocation325_spill] sm:$0xff] %v5955_v1 }
 0x3af   : > { %10582 = vst [vmem:[#allocation322_spill] sm:$0xff] %v5949_v37  ;;  %v830_v37 = vmin.f32 %v10588_v59, %v5231_v16  ;;  %v10597_v59 = vld [vmem:[#allocation99_spill] sm:$0xff]  ;;  %v10598_v16 = vld [vmem:[#allocation92_spill] sm:$0xff] }
 0x3b0   : > { %1632 = vrot.lane.b32.xlu1 %v5929_v13, %s3381_s7  ;;  %v5951_v19 = vpop.permute.xlu2 %1488  ;;  %10586 = vst [vmem:[#allocation326_spill] sm:$0xff] %v5958_v22  ;;  %v5982_v22 = vld [vmem:[%s3513_s8 + $0x70] sm:$0xff]  ;;  %v832_v36 = vmin.f32 %v10598_v16, %v10597_v59 }
 0x3b1   : > { %10583 = vst [vmem:[#allocation323_spill] sm:$0xff] %v5951_v19  ;;  %v5979_v19 = vmax.f32 %v909_v29, 0.0 }
 0x3b2   : > { %v5953_v3 = vpop.permute.xlu1 %1468  ;;  %10587 = vst [vmem:[#allocation327_spill] sm:$0xff] %v5961_v10  ;;  %v5985_v10 = vld [vmem:[%s3520_s25 + $0x70] sm:$0xff] }
 0x3b3   : > { %10584 = vst [vmem:[#allocation324_spill] sm:$0xff] %v5953_v3  ;;  %v831_v3 = vmin.f32 %v10593_v21, %v10592_v31  ;;  %v872_v46 = vmax.f32 %v5982_v22, %v5985_v10  ;;  %v910_v21 = vsub.f32 %v830_v37, %v870_v23  ;;  %v6009_v37 = vld [vmem:[%s3520_s25 + $0x78] sm:$0xff] }
 0x3b4   : > { %10589 = vst [vmem:[#allocation328_spill] sm:$0xff] %v5967_v60  ;;  %1636 = vrot.lane.b32.xlu0 %v5955_v1, %s3381_s7 }
 0x3b5   : > { %10590 = vst [vmem:[#allocation329_spill] sm:$0xff] %v5970_v43  ;;  %v911_v31 = vsub.f32 %v831_v3, %v871_v63  ;;  %v6003_v59 = vmax.f32 %v910_v21, 0.0  ;;  %v6006_v43 = vld [vmem:[%s3513_s8 + $0x78] sm:$0xff]  ;;  %v6019_v3 = vld [vmem:[%s3520_s25 + $0x80] sm:$0xff]  ;;  %v10609_v63 = vld [vmem:[#allocation102_spill] sm:$0xff] }
 0x3b6   : > { %10591 = vst [vmem:[#allocation330_spill] sm:$0xff] %v5973_v42  ;;  %1640 = vrot.lane.b32.xlu2 %v5979_v19, %s3381_s7  ;;  %v5997_v29 = vpop.permute.xlu0 %1472  ;;  %v873_v23 = vmax.f32 %v6006_v43, %v6009_v37  ;;  %v10605_v42 = vld [vmem:[#allocation165_spill] sm:$0xff]  ;;  %v10610_v21 = vld [vmem:[#allocation24_spill] sm:$0xff] }
 0x3b7   : > { %10594 = vst [vmem:[#allocation331_spill] sm:$0xff] %v5979_v19 }
 0x3b8   : > { %10595 = vst [vmem:[#allocation332_spill] sm:$0xff] %v5982_v22  ;;  %1638 = vrot.lane.b32.xlu1 %v5967_v60, %s3381_s7  ;;  %v912_v22 = vsub.f32 %v832_v36, %v872_v46  ;;  %v874_v36 = vmax.f32 %v6016_v14, %v6019_v3  ;;  %v834_v46 = vmin.f32 %v10610_v21, %v10609_v63  ;;  %v6054_v63 = vld [vmem:[%s3513_s8 + $0x90] sm:$0xff] }
 0x3b9   : > { %10596 = vst [vmem:[#allocation333_spill] sm:$0xff] %v5985_v10  ;;  %v5999_v10 = vpop.permute.xlu2 %1494 }
 0x3ba   : > { %10599 = vst [vmem:[#allocation334_spill] sm:$0xff] %v5997_v29  ;;  %v6001_v16 = vpop.permute.xlu1 %1474  ;;  %v833_v29 = vmin.f32 %v10606_v40, %v10605_v42  ;;  %v10615_v42 = vld [vmem:[#allocation105_spill] sm:$0xff]  ;;  %v914_v21 = vsub.f32 %v834_v46, %v874_v36  ;;  %v6066_v36 = vld [vmem:[%s3513_s8 + $0x98] sm:$0xff] }
 0x3bb   : > { %10600 = vst [vmem:[#allocation335_spill] sm:$0xff] %v5999_v10  ;;  %v6027_v10 = vmax.f32 %v912_v22, 0.0  ;;  %v835_v5 = vmin.f32 %v10616_v26, %v10615_v42  ;;  %v10628_v46 = vld [vmem:[#allocation108_spill] sm:$0xff] }
 0x3bc   : > { %10601 = vst [vmem:[#allocation336_spill] sm:$0xff] %v6001_v16  ;;  %v6025_v16 = vmax.f32 %v911_v31, 0.0  ;;  %1642 = vrot.lane.b32.xlu0 %v6003_v59, %s3381_s7  ;;  %v913_v31 = vsub.f32 %v833_v29, %v873_v23  ;;  %v6057_v29 = vld [vmem:[%s3520_s25 + $0x90] sm:$0xff]  ;;  %v6063_v44 = vmax.f32 %v914_v21, 0.0 }
 0x3bd   : > { %10602 = vst [vmem:[#allocation337_spill] sm:$0xff] %v6003_v59  ;;  %v876_v23 = vmax.f32 %v6054_v63, %v6057_v29 }
 0x3be   : > { %10603 = vst [vmem:[#allocation338_spill] sm:$0xff] %v6006_v43  ;;  %v6030_v43 = vld [vmem:[%s3513_s8 + $0x88] sm:$0xff]  ;;  %1646 = vrot.lane.b32.xlu2 %v6027_v10, %s3381_s7  ;;  %v6045_v22 = vpop.permute.xlu0 %1478  ;;  %v6051_v42 = vmax.f32 %v913_v31, 0.0  ;;  %v10629_v31 = vld [vmem:[#allocation27_spill] sm:$0xff] }
 0x3bf   : > { %10604 = vst [vmem:[#allocation339_spill] sm:$0xff] %v6009_v37  ;;  %v6033_v37 = vld [vmem:[%s3520_s25 + $0x88] sm:$0xff] }
 0x3c0   : > { %10607 = vst [vmem:[#allocation340_spill] sm:$0xff] %v6016_v14  ;;  %v875_v40 = vmax.f32 %v6030_v43, %v6033_v37  ;;  %1644 = vrot.lane.b32.xlu1 %v6025_v16, %s3381_s7  ;;  %v10623_v14 = vld [vmem:[#allocation168_spill] sm:$0xff] }
 0x3c1   : > { %10608 = vst [vmem:[#allocation341_spill] sm:$0xff] %v6019_v3  ;;  %v10624_v3 = vld [vmem:[#allocation52_spill] sm:$0xff] }
 0x3c2   : > { %10611 = vst [vmem:[#allocation342_spill] sm:$0xff] %v6025_v16  ;;  %v6049_v26 = vpop.permute.xlu1 %1480 }
 0x3c3   : > { %10612 = vst [vmem:[#allocation343_spill] sm:$0xff] %v6027_v10 }
 0x3c4   : > { %10613 = vst [vmem:[#allocation344_spill] sm:$0xff] %v6030_v43  ;;  %v915_v43 = vsub.f32 %v835_v5, %v875_v40  ;;  %v6069_v5 = vld [vmem:[%s3520_s25 + $0x98] sm:$0xff]  ;;  %1648 = vrot.lane.b32.xlu0 %v6051_v42, %s3381_s7 }
 0x3c5   : > { %10614 = vst [vmem:[#allocation345_spill] sm:$0xff] %v6033_v37  ;;  %v6047_v37 = vpop.permute.xlu2 %1500  ;;  %v877_v40 = vmax.f32 %v6066_v36, %v6069_v5 }
 0x3c6   : > { %10617 = vst [vmem:[#allocation346_spill] sm:$0xff] %v6045_v22  ;;  %v836_v22 = vmin.f32 %v10624_v3, %v10623_v14  ;;  %v10633_v3 = vld [vmem:[#allocation111_spill] sm:$0xff]  ;;  %v10634_v14 = vld [vmem:[#allocation104_spill] sm:$0xff] }
 0x3c7   : > { %10618 = vst [vmem:[#allocation347_spill] sm:$0xff] %v6047_v37  ;;  %v6075_v37 = vmax.f32 %v915_v43, 0.0  ;;  %v838_v33 = vmin.f32 %v10634_v14, %v10633_v3  ;;  %v6093_v43 = vpop.permute.xlu0 %1484 }
 0x3c8   : > { %10619 = vst [vmem:[#allocation348_spill] sm:$0xff] %v6049_v26  ;;  %v837_v26 = vmin.f32 %v10629_v31, %v10628_v46  ;;  %v916_v31 = vsub.f32 %v836_v22, %v876_v23  ;;  %1650 = vrot.lane.b32.xlu1 %v6063_v44, %s3381_s7  ;;  %v6105_v22 = vld [vmem:[%s3520_s25 + $0xa8] sm:$0xff] }
 0x3c9   : > { %10620 = vst [vmem:[#allocation349_spill] sm:$0xff] %v6051_v42  ;;  %1652 = vrot.lane.b32.xlu2 %v6075_v37, %s3381_s7 }
 0x3ca   : > { %10621 = vst [vmem:[#allocation350_spill] sm:$0xff] %v6054_v63  ;;  %v6078_v63 = vld [vmem:[%s3513_s8 + $0xa0] sm:$0xff]  ;;  %v917_v46 = vsub.f32 %v837_v26, %v877_v40  ;;  %v6097_v14 = vpop.permute.xlu1 %1486  ;;  %v6099_v3 = vmax.f32 %v916_v31, 0.0  ;;  %v6115_v26 = vld [vmem:[%s3520_s25 + $0xb0] sm:$0xff]  ;;  %v10645_v40 = vld [vmem:[#allocation114_spill] sm:$0xff] }
 0x3cb   : > { %10622 = vst [vmem:[#allocation351_spill] sm:$0xff] %v6057_v29  ;;  %v6081_v29 = vld [vmem:[%s3520_s25 + $0xa0] sm:$0xff]  ;;  %v10646_v31 = vld [vmem:[#allocation30_spill] sm:$0xff] }
 0x3cc   : > { %10625 = vst [vmem:[#allocation352_spill] sm:$0xff] %v6063_v44  ;;  %v878_v21 = vmax.f32 %v6078_v63, %v6081_v29  ;;  %1654 = vrot.lane.b32.xlu0 %v6099_v3, %s3381_s7 }
 0x3cd   : > { %10626 = vst [vmem:[#allocation353_spill] sm:$0xff] %v6066_v36  ;;  %v6102_v36 = vld [vmem:[%s3513_s8 + $0xa8] sm:$0xff] }
 0x3ce   : > { %10627 = vst [vmem:[#allocation354_spill] sm:$0xff] %v6069_v5  ;;  %v879_v23 = vmax.f32 %v6102_v36, %v6105_v22  ;;  %v10641_v5 = vld [vmem:[#allocation171_spill] sm:$0xff] }
 0x3cf   : > { %10630 = vst [vmem:[#allocation355_spill] sm:$0xff] %v6075_v37 }
 0x3d0   : > { %10631 = vst [vmem:[#allocation356_spill] sm:$0xff] %v6078_v63  ;;  %v918_v63 = vsub.f32 %v838_v33, %v878_v21  ;;  %v880_v33 = vmax.f32 %v6112_v55, %v6115_v26  ;;  %v840_v21 = vmin.f32 %v10646_v31, %v10645_v40  ;;  %v6150_v40 = vld [vmem:[%s3513_s8 + $0xc0] sm:$0xff] }
 0x3d1   : > { %10632 = vst [vmem:[#allocation357_spill] sm:$0xff] %v6081_v29  ;;  %v6095_v29 = vpop.permute.xlu2 %1506 }
 0x3d2   : > { %10635 = vst [vmem:[#allocation358_spill] sm:$0xff] %v6093_v43  ;;  %v839_v43 = vmin.f32 %v10642_v8, %v10641_v5  ;;  %v10651_v5 = vld [vmem:[#allocation117_spill] sm:$0xff]  ;;  %v920_v31 = vsub.f32 %v840_v21, %v880_v33  ;;  %v6162_v33 = vld [vmem:[%s3513_s8 + $0xc8] sm:$0xff]  ;;  %v10664_v21 = vld [vmem:[#allocation120_spill] sm:$0xff] }
 0x3d3   : > { %10636 = vst [vmem:[#allocation359_spill] sm:$0xff] %v6095_v29  ;;  %v6123_v29 = vmax.f32 %v918_v63, 0.0  ;;  %v841_v28 = vmin.f32 %v10652_v9, %v10651_v5  ;;  %v6141_v63 = vpop.permute.xlu0 %1490  ;;  %v6145_v9 = vpop.permute.xlu1 %1492 }
 0x3d4   : > { %10637 = vst [vmem:[#allocation360_spill] sm:$0xff] %v6097_v14  ;;  %v6121_v14 = vmax.f32 %v917_v46, 0.0  ;;  %v919_v46 = vsub.f32 %v839_v43, %v879_v23  ;;  %v6153_v43 = vld [vmem:[%s3520_s25 + $0xc0] sm:$0xff]  ;;  %v6159_v56 = vmax.f32 %v920_v31, 0.0 }
 0x3d5   : > { %10638 = vst [vmem:[#allocation361_spill] sm:$0xff] %v6099_v3  ;;  %1658 = vrot.lane.b32.xlu2 %v6123_v29, %s3381_s7  ;;  %v882_v23 = vmax.f32 %v6150_v40, %v6153_v43 }
 0x3d6   : > { %10639 = vst [vmem:[#allocation362_spill] sm:$0xff] %v6102_v36  ;;  %v6126_v36 = vld [vmem:[%s3513_s8 + $0xb8] sm:$0xff]  ;;  %1656 = vrot.lane.b32.xlu1 %v6121_v14, %s3381_s7  ;;  %v6147_v5 = vmax.f32 %v919_v46, 0.0  ;;  %v10665_v46 = vld [vmem:[#allocation33_spill] sm:$0xff] }
 0x3d7   : > { %10640 = vst [vmem:[#allocation363_spill] sm:$0xff] %v6105_v22  ;;  %v6129_v22 = vld [vmem:[%s3520_s25 + $0xb8] sm:$0xff] }
 0x3d8   : > { %10643 = vst [vmem:[#allocation364_spill] sm:$0xff] %v6112_v55  ;;  %v881_v8 = vmax.f32 %v6126_v36, %v6129_v22  ;;  %v10659_v55 = vld [vmem:[#allocation174_spill] sm:$0xff]  ;;  %1660 = vrot.lane.b32.xlu0 %v6147_v5, %s3381_s7 }
 0x3d9   : > { %10644 = vst [vmem:[#allocation365_spill] sm:$0xff] %v6115_v26  ;;  %v10660_v26 = vld [vmem:[#allocation57_spill] sm:$0xff] }
 0x3da   : > { %10647 = vst [vmem:[#allocation366_spill] sm:$0xff] %v6121_v14 }
 0x3db   : > { %10648 = vst [vmem:[#allocation367_spill] sm:$0xff] %v6123_v29 }
 0x3dc   : > { %10649 = vst [vmem:[#allocation368_spill] sm:$0xff] %v6126_v36  ;;  %v921_v36 = vsub.f32 %v841_v28, %v881_v8  ;;  %v6165_v28 = vld [vmem:[%s3520_s25 + $0xc8] sm:$0xff] }
 0x3dd   : > { %10650 = vst [vmem:[#allocation369_spill] sm:$0xff] %v6129_v22  ;;  %v6143_v22 = vpop.permute.xlu2 %1512  ;;  %v883_v8 = vmax.f32 %v6162_v33, %v6165_v28 }
 0x3de   : > { %10653 = vst [vmem:[#allocation370_spill] sm:$0xff] %v6141_v63  ;;  %v842_v63 = vmin.f32 %v10660_v26, %v10659_v55  ;;  %v10669_v26 = vld [vmem:[#allocation123_spill] sm:$0xff]  ;;  %v10670_v55 = vld [vmem:[#allocation116_spill] sm:$0xff]  ;;  %1662 = vrot.lane.b32.xlu1 %v6159_v56, %s3381_s7 }
 0x3df   : > { %10654 = vst [vmem:[#allocation371_spill] sm:$0xff] %v6143_v22  ;;  %v6171_v22 = vmax.f32 %v921_v36, 0.0  ;;  %v844_v41 = vmin.f32 %v10670_v55, %v10669_v26  ;;  %v6189_v36 = vpop.permute.xlu0 %1496  ;;  %v6193_v55 = vpop.permute.xlu1 %1498 }
 0x3e0   : > { %10655 = vst [vmem:[#allocation372_spill] sm:$0xff] %v6145_v9  ;;  %v843_v9 = vmin.f32 %v10665_v46, %v10664_v21  ;;  %v922_v46 = vsub.f32 %v842_v63, %v882_v23  ;;  %v6201_v63 = vld [vmem:[%s3520_s25 + $0xd8] sm:$0xff] }
 0x3e1   : > { %10656 = vst [vmem:[#allocation373_spill] sm:$0xff] %v6147_v5  ;;  %1664 = vrot.lane.b32.xlu2 %v6171_v22, %s3381_s7 }
 0x3e2   : > { %10657 = vst [vmem:[#allocation374_spill] sm:$0xff] %v6150_v40  ;;  %v6174_v40 = vld [vmem:[%s3513_s8 + $0xd0] sm:$0xff]  ;;  %v923_v21 = vsub.f32 %v843_v9, %v883_v8  ;;  %v6195_v26 = vmax.f32 %v922_v46, 0.0  ;;  %v6211_v9 = vld [vmem:[%s3520_s25 + $0xe0] sm:$0xff]  ;;  %v10681_v8 = vld [vmem:[#allocation126_spill] sm:$0xff] }
 0x3e3   : > { %10658 = vst [vmem:[#allocation375_spill] sm:$0xff] %v6153_v43  ;;  %v6177_v43 = vld [vmem:[%s3520_s25 + $0xd0] sm:$0xff]  ;;  %v10682_v46 = vld [vmem:[#allocation36_spill] sm:$0xff] }
 0x3e4   : > { %10661 = vst [vmem:[#allocation376_spill] sm:$0xff] %v6159_v56  ;;  %v884_v31 = vmax.f32 %v6174_v40, %v6177_v43  ;;  %1666 = vrot.lane.b32.xlu0 %v6195_v26, %s3381_s7 }
 0x3e5   : > { %10662 = vst [vmem:[#allocation377_spill] sm:$0xff] %v6162_v33  ;;  %v6198_v33 = vld [vmem:[%s3513_s8 + $0xd8] sm:$0xff] }
 0x3e6   : > { %10663 = vst [vmem:[#allocation378_spill] sm:$0xff] %v6165_v28  ;;  %v885_v23 = vmax.f32 %v6198_v33, %v6201_v63  ;;  %v10677_v28 = vld [vmem:[#allocation177_spill] sm:$0xff] }
 0x3e7   : > { %10666 = vst [vmem:[#allocation379_spill] sm:$0xff] %v6171_v22 }
 0x3e8   : > { %10667 = vst [vmem:[#allocation380_spill] sm:$0xff] %v6174_v40  ;;  %v924_v40 = vsub.f32 %v844_v41, %v884_v31  ;;  %v886_v41 = vmax.f32 %v6208_v6, %v6211_v9  ;;  %v846_v31 = vmin.f32 %v10682_v46, %v10681_v8  ;;  %v6246_v8 = vld [vmem:[%s3513_s8 + $0xf0] sm:$0xff]  ;;  %v10695_v6 = vld [vmem:[#allocation180_spill] sm:$0xff] }
 0x3e9   : > { %10668 = vst [vmem:[#allocation381_spill] sm:$0xff] %v6177_v43  ;;  %v6191_v43 = vpop.permute.xlu2 %1518 }
 0x3ea   : > { %10671 = vst [vmem:[#allocation382_spill] sm:$0xff] %v6189_v36  ;;  %v845_v36 = vmin.f32 %v10678_v7, %v10677_v28  ;;  %v10687_v28 = vld [vmem:[#allocation129_spill] sm:$0xff]  ;;  %v926_v46 = vsub.f32 %v846_v31, %v886_v41  ;;  %v6258_v41 = vld [vmem:[%s3513_s8 + $0xf8] sm:$0xff] }
 0x3eb   : > { %10672 = vst [vmem:[#allocation383_spill] sm:$0xff] %v6191_v43  ;;  %v6219_v43 = vmax.f32 %v924_v40, 0.0  ;;  %v847_v17 = vmin.f32 %v10688_v47, %v10687_v28  ;;  %v6237_v40 = vpop.permute.xlu0 %1502  ;;  %v6241_v47 = vpop.permute.xlu1 %1504  ;;  %v10700_v31 = vld [vmem:[#allocation132_spill] sm:$0xff] }
 0x3ec   : > { %10673 = vst [vmem:[#allocation384_spill] sm:$0xff] %v6193_v55  ;;  %v6217_v55 = vmax.f32 %v923_v21, 0.0  ;;  %v925_v21 = vsub.f32 %v845_v36, %v885_v23  ;;  %v6249_v36 = vld [vmem:[%s3520_s25 + $0xf0] sm:$0xff]  ;;  %v6255_v62 = vmax.f32 %v926_v46, 0.0 }
 0x3ed   : > { %10674 = vst [vmem:[#allocation385_spill] sm:$0xff] %v6195_v26  ;;  %1670 = vrot.lane.b32.xlu2 %v6219_v43, %s3381_s7  ;;  %v888_v23 = vmax.f32 %v6246_v8, %v6249_v36 }
 0x3ee   : > { %10675 = vst [vmem:[#allocation386_spill] sm:$0xff] %v6198_v33  ;;  %v6222_v33 = vld [vmem:[%s3513_s8 + $0xe8] sm:$0xff]  ;;  %1668 = vrot.lane.b32.xlu1 %v6217_v55, %s3381_s7  ;;  %v6243_v28 = vmax.f32 %v925_v21, 0.0  ;;  %v10701_v21 = vld [vmem:[#allocation39_spill] sm:$0xff] }
 0x3ef   : > { %10676 = vst [vmem:[#allocation387_spill] sm:$0xff] %v6201_v63  ;;  %v6225_v63 = vld [vmem:[%s3520_s25 + $0xe8] sm:$0xff] }
 0x3f0   : > { %10680 = vst [vmem:[#allocation389_spill] sm:$0xff] %v6211_v9  ;;  %v887_v7 = vmax.f32 %v6222_v33, %v6225_v63  ;;  %v10696_v9 = vld [vmem:[#allocation63_spill] sm:$0xff]  ;;  %1672 = vrot.lane.b32.xlu0 %v6243_v28, %s3381_s7 }
 0x3f1   : > { %10683 = vst [vmem:[#allocation390_spill] sm:$0xff] %v6217_v55 }
 0x3f2   : > { %10684 = vst [vmem:[#allocation391_spill] sm:$0xff] %v6219_v43 }
 0x3f3   : > { %10685 = vst [vmem:[#allocation392_spill] sm:$0xff] %v6222_v33  ;;  %v927_v33 = vsub.f32 %v847_v17, %v887_v7  ;;  %v6261_v17 = vld [vmem:[%s3520_s25 + $0xf8] sm:$0xff] }
 0x3f4   : > { %10686 = vst [vmem:[#allocation393_spill] sm:$0xff] %v6225_v63  ;;  %v6239_v63 = vpop.permute.xlu2 %1524  ;;  %v889_v7 = vmax.f32 %v6258_v41, %v6261_v17 }
 0x3f5   : > { %10689 = vst [vmem:[#allocation394_spill] sm:$0xff] %v6237_v40  ;;  %v848_v40 = vmin.f32 %v10696_v9, %v10695_v6  ;;  %v10705_v9 = vld [vmem:[#allocation135_spill] sm:$0xff]  ;;  %v10706_v6 = vld [vmem:[#allocation128_spill] sm:$0xff] }
 0x3f6   : > { %10690 = vst [vmem:[#allocation395_spill] sm:$0xff] %v6239_v63  ;;  %v6267_v63 = vmax.f32 %v927_v33, 0.0  ;;  %v850_v15 = vmin.f32 %v10706_v6, %v10705_v9  ;;  %1674 = vrot.lane.b32.xlu1 %v6255_v62, %s3381_s7  ;;  %v6285_v33 = vpop.permute.xlu0 %1508  ;;  %v6289_v6 = vpop.permute.xlu1 %1510 }
 0x3f7   : > { %10691 = vst [vmem:[#allocation396_spill] sm:$0xff] %v6241_v47  ;;  %v849_v47 = vmin.f32 %v10701_v21, %v10700_v31  ;;  %v928_v21 = vsub.f32 %v848_v40, %v888_v23  ;;  %v6297_v40 = vld [vmem:[%s3520_s25 + $0x108] sm:$0xff] }
 0x3f8   : > { %10692 = vst [vmem:[#allocation397_spill] sm:$0xff] %v6243_v28  ;;  %1676 = vrot.lane.b32.xlu2 %v6267_v63, %s3381_s7 }
 0x3f9   : > { %10693 = vst [vmem:[#allocation398_spill] sm:$0xff] %v6246_v8  ;;  %v6270_v8 = vld [vmem:[%s3513_s8 + $0x100] sm:$0xff]  ;;  %v929_v31 = vsub.f32 %v849_v47, %v889_v7  ;;  %v6291_v9 = vmax.f32 %v928_v21, 0.0  ;;  %v6307_v47 = vld [vmem:[%s3520_s25 + $0x110] sm:$0xff]  ;;  %v10717_v7 = vld [vmem:[#allocation138_spill] sm:$0xff] }
 0x3fa   : > { %10694 = vst [vmem:[#allocation399_spill] sm:$0xff] %v6249_v36  ;;  %v6273_v36 = vld [vmem:[%s3520_s25 + $0x100] sm:$0xff]  ;;  %v10718_v21 = vld [vmem:[#allocation42_spill] sm:$0xff] }
 0x3fb   : > { %10697 = vst [vmem:[#allocation400_spill] sm:$0xff] %v6255_v62  ;;  %v890_v46 = vmax.f32 %v6270_v8, %v6273_v36  ;;  %1678 = vrot.lane.b32.xlu0 %v6291_v9, %s3381_s7 }
 0x3fc   : > { %10698 = vst [vmem:[#allocation401_spill] sm:$0xff] %v6258_v41  ;;  %v6294_v41 = vld [vmem:[%s3513_s8 + $0x108] sm:$0xff] }
 0x3fd   : > { %10699 = vst [vmem:[#allocation402_spill] sm:$0xff] %v6261_v17  ;;  %v891_v23 = vmax.f32 %v6294_v41, %v6297_v40  ;;  %v10713_v17 = vld [vmem:[#allocation183_spill] sm:$0xff] }
 0x3fe   : > { %10702 = vst [vmem:[#allocation403_spill] sm:$0xff] %v6267_v63 }
 0x3ff   : > { %10703 = vst [vmem:[#allocation404_spill] sm:$0xff] %v6270_v8  ;;  %v930_v8 = vsub.f32 %v850_v15, %v890_v46  ;;  %v892_v15 = vmax.f32 %v6304_v51, %v6307_v47  ;;  %v852_v46 = vmin.f32 %v10718_v21, %v10717_v7  ;;  %v6342_v7 = vld [vmem:[%s3513_s8 + $0x120] sm:$0xff] }
 0x400   : > { %10704 = vst [vmem:[#allocation405_spill] sm:$0xff] %v6273_v36  ;;  %v6287_v36 = vpop.permute.xlu2 %1530 }
 0x401   : > { %10707 = vst [vmem:[#allocation406_spill] sm:$0xff] %v6285_v33  ;;  %v851_v33 = vmin.f32 %v10714_v20, %v10713_v17  ;;  %v10723_v17 = vld [vmem:[#allocation141_spill] sm:$0xff]  ;;  %v932_v21 = vsub.f32 %v852_v46, %v892_v15  ;;  %v6354_v15 = vld [vmem:[%s3513_s8 + $0x128] sm:$0xff]  ;;  %v10736_v46 = vld [vmem:[#allocation144_spill] sm:$0xff] }
 0x402   : > { %10708 = vst [vmem:[#allocation407_spill] sm:$0xff] %v6287_v36  ;;  %v6315_v36 = vmax.f32 %v930_v8, 0.0  ;;  %v853_v39 = vmin.f32 %v10724_v49, %v10723_v17  ;;  %v6333_v8 = vpop.permute.xlu0 %1514  ;;  %v6337_v49 = vpop.permute.xlu1 %1516 }
 0x403   : > { %10709 = vst [vmem:[#allocation408_spill] sm:$0xff] %v6289_v6  ;;  %v6313_v6 = vmax.f32 %v929_v31, 0.0  ;;  %v931_v31 = vsub.f32 %v851_v33, %v891_v23  ;;  %v6345_v33 = vld [vmem:[%s3520_s25 + $0x120] sm:$0xff]  ;;  %v6351_v25 = vmax.f32 %v932_v21, 0.0 }
 0x404   : > { %10710 = vst [vmem:[#allocation409_spill] sm:$0xff] %v6291_v9  ;;  %1682 = vrot.lane.b32.xlu2 %v6315_v36, %s3381_s7  ;;  %v894_v23 = vmax.f32 %v6342_v7, %v6345_v33 }
 0x405   : > { %10711 = vst [vmem:[#allocation410_spill] sm:$0xff] %v6294_v41  ;;  %v6318_v41 = vld [vmem:[%s3513_s8 + $0x118] sm:$0xff]  ;;  %1680 = vrot.lane.b32.xlu1 %v6313_v6, %s3381_s7  ;;  %v6339_v17 = vmax.f32 %v931_v31, 0.0  ;;  %v10737_v31 = vld [vmem:[#allocation43_spill] sm:$0xff] }
 0x406   : > { %10712 = vst [vmem:[#allocation411_spill] sm:$0xff] %v6297_v40  ;;  %v6321_v40 = vld [vmem:[%s3520_s25 + $0x118] sm:$0xff] }
 0x407   : > { %10715 = vst [vmem:[#allocation412_spill] sm:$0xff] %v6304_v51  ;;  %v893_v20 = vmax.f32 %v6318_v41, %v6321_v40  ;;  %v10731_v51 = vld [vmem:[#allocation188_spill] sm:$0xff]  ;;  %1684 = vrot.lane.b32.xlu0 %v6339_v17, %s3381_s7 }
 0x408   : > { %10716 = vst [vmem:[#allocation413_spill] sm:$0xff] %v6307_v47  ;;  %v10732_v47 = vld [vmem:[#allocation69_spill] sm:$0xff] }
 0x409   : > { %10719 = vst [vmem:[#allocation414_spill] sm:$0xff] %v6313_v6 }
 0x40a   : > { %10720 = vst [vmem:[#allocation415_spill] sm:$0xff] %v6315_v36 }
 0x40b   : > { %10721 = vst [vmem:[#allocation416_spill] sm:$0xff] %v6318_v41  ;;  %v933_v41 = vsub.f32 %v853_v39, %v893_v20  ;;  %v6357_v39 = vld [vmem:[%s3520_s25 + $0x128] sm:$0xff] }
 0x40c   : > { %10722 = vst [vmem:[#allocation417_spill] sm:$0xff] %v6321_v40  ;;  %v6335_v40 = vpop.permute.xlu2 %1536  ;;  %v895_v20 = vmax.f32 %v6354_v15, %v6357_v39 }
 0x40d   : > { %10725 = vst [vmem:[#allocation418_spill] sm:$0xff] %v6333_v8  ;;  %v854_v8 = vmin.f32 %v10732_v47, %v10731_v51  ;;  %v10741_v47 = vld [vmem:[#allocation83_spill] sm:$0xff]  ;;  %1686 = vrot.lane.b32.xlu1 %v6351_v25, %s3381_s7 }
 0x40e   : > { %10726 = vst [vmem:[#allocation419_spill] sm:$0xff] %v6335_v40  ;;  %v6363_v40 = vmax.f32 %v933_v41, 0.0  ;;  %v856_v51 = vmin.f32 %v10741_v47, %v5593_v38  ;;  %v6381_v41 = vpop.permute.xlu0 %1520  ;;  %v6390_v47 = vld [vmem:[%s3513_s8 + $0x138] sm:$0xff] }
 0x40f   : > { %10727 = vst [vmem:[#allocation420_spill] sm:$0xff] %v6337_v49  ;;  %v855_v49 = vmin.f32 %v10737_v31, %v10736_v46  ;;  %v6393_v38 = vld [vmem:[%s3520_s25 + $0x138] sm:$0xff] }
 0x410   : > { %10728 = vst [vmem:[#allocation421_spill] sm:$0xff] %v6339_v17  ;;  %1688 = vrot.lane.b32.xlu2 %v6363_v40, %s3381_s7 }
 0x411   : > { %10729 = vst [vmem:[#allocation422_spill] sm:$0xff] %v6342_v7  ;;  %v6366_v7 = vld [vmem:[%s3513_s8 + $0x130] sm:$0xff]  ;;  %v935_v31 = vsub.f32 %v855_v49, %v895_v20 }
 0x412   : > { %10730 = vst [vmem:[#allocation423_spill] sm:$0xff] %v6345_v33  ;;  %v6369_v33 = vld [vmem:[%s3520_s25 + $0x130] sm:$0xff]  ;;  %s3324_s25 = scalar_lea.hbm %s9320_s2, 16 }
 0x413   : > { %10733 = vst [vmem:[#allocation424_spill] sm:$0xff] %v6351_v25  ;;  %v896_v21 = vmax.f32 %v6366_v7, %v6369_v33  ;;  %v6399_v53 = vmax.f32 %v935_v31, 0.0  ;;  %p3326_p3 = scmp.lt.s32.totalorder %s3324_s25, %s3320_s6 }
 0x414   : > { %10734 = vst [vmem:[#allocation425_spill] sm:$0xff] %v6354_v15  ;;  %v934_v15 = vsub.f32 %v854_v8, %v894_v23  ;;  %v897_v8 = vmax.f32 %v6390_v47, %v6393_v38  ;;  %v10746_v23 = vld [vmem:[#allocation140_spill] sm:$0xff] }
 0x415   : > { %10735 = vst [vmem:[#allocation426_spill] sm:$0xff] %v6357_v39  ;;  %v936_v46 = vsub.f32 %v856_v51, %v896_v21  ;;  %v6383_v39 = vpop.permute.xlu2 %1622  ;;  %v857_v27 = vmin.f32 %v10746_v23, %v5603_v2  ;;  %1692 = vrot.lane.b32.xlu1 %v6399_v53, %s3381_s7  ;;  %p3327_p4 = por %p3326_p3, %p3325_p2 }
 0x416   : > { %10738 = vst [vmem:[#allocation427_spill] sm:$0xff] %v6363_v40 }
 0x417   : > { %10739 = vst [vmem:[#allocation428_spill] sm:$0xff] %v6366_v7  ;;  %v6385_v7 = vpop.permute.xlu1 %1522  ;;  %v6401_v49 = vmax.f32 %v936_v46, 0.0  ;;  %v937_v51 = vsub.f32 %v857_v27, %v897_v8  ;;  %p3328_p5 = pnand %p3327_p4, %p3323_p1 }
 0x418   : > { %10740 = vst [vmem:[#allocation429_spill] sm:$0xff] %v6369_v33  ;;  %v6387_v33 = vmax.f32 %v934_v15, 0.0  ;;  %v6409_v15 = vpop.permute.xlu0 %1526 }
 0x419   : > { %10742 = vst [vmem:[#allocation430_spill] sm:$0xff] %v6381_v41  ;;  %1694 = vrot.lane.b32.xlu2 %v6401_v49, %s3381_s7  ;;  %v6415_v31 = vmax.f32 %v937_v51, 0.0 }
 0x41a   : > { %10743 = vst [vmem:[#allocation431_spill] sm:$0xff] %v6383_v39  ;;  %1690 = vrot.lane.b32.xlu0 %v6387_v33, %s3381_s7  ;;  %v10999_v39 = vld [vmem:[#allocation178_spill] sm:$0xff] }
 0x41b   : > { %10744 = vst [vmem:[#allocation432_spill] sm:$0xff] %v6385_v7  ;;  %v11058_v7 = vld [vmem:[#allocation212_spill] sm:$0xff] }
 0x41c   : > { %10745 = vst [vmem:[#allocation433_spill] sm:$0xff] %v6387_v33 }
 0x41d   : > { %10747 = vst [vmem:[#allocation140_spill] sm:$0xff] %v6399_v53  ;;  %v6411_v20 = vpop.permute.xlu2 %1628  ;;  %1698 = vrot.lane.b32.xlu1 %v5811_v30, %s3378_s26 }
 0x41e   : > { %10748 = vst [vmem:[#allocation434_spill] sm:$0xff] %v6401_v49 }
 0x41f   : > { %10749 = vst [vmem:[#allocation435_spill] sm:$0xff] %v6409_v15  ;;  %v6413_v21 = vpop.permute.xlu1 %1528 }
 0x420   : > { %10750 = vst [vmem:[#allocation436_spill] sm:$0xff] %v6411_v20  ;;  %v6421_v27 = vpop.permute.xlu0 %1532  ;;  %v10881_v20 = vld [vmem:[#allocation350_spill] sm:$0xff] }
 0x421   : > { %10751 = vst [vmem:[#allocation437_spill] sm:$0xff] %v6413_v21  ;;  %1700 = vrot.lane.b32.xlu2 %v5833_v52, %s3378_s26 }
 0x422   : > { %10752 = vst [vmem:[#allocation438_spill] sm:$0xff] %v6415_v31  ;;  %1696 = vrot.lane.b32.xlu0 %v6415_v31, %s3381_s7 }
 0x423   : > { %10753 = vst [vmem:[#allocation439_spill] sm:$0xff] %v6421_v27 }
 0x425   : > { %v6425_v46 = vpop.permute.xlu2 %1634  ;;  %1704 = vrot.lane.b32.xlu1 %v5859_v50, %s3378_s26 }
 0x426   : > { %10754 = vst [vmem:[#allocation440_spill] sm:$0xff] %v6425_v46 }
 0x427   : > { %v6427_v8 = vpop.permute.xlu1 %1534 }
 0x428   : > { %10755 = vst [vmem:[#allocation441_spill] sm:$0xff] %v6427_v8  ;;  %v6435_v51 = vpop.permute.xlu0 %1618 }
 0x429   : > { %1706 = vrot.lane.b32.xlu2 %v5871_v61, %s3378_s26  ;;  %10756 = vst [vmem:[#allocation442_spill] sm:$0xff] %v6435_v51  ;;  %v11103_v61 = vld [vmem:[#allocation45_spill] sm:$0xff] }
 0x42a   : > { %1702 = vrot.lane.b32.xlu0 %v5835_v11, %s3378_s26  ;;  %v10898_v11 = vld [vmem:[#allocation363_spill] sm:$0xff] }
 0x42d   : > { %v6437_v21 = vpop.permute.xlu2 %1640  ;;  %1710 = vrot.lane.b32.xlu1 %v5907_v45, %s3378_s26 }
 0x42e   : > { %10757 = vst [vmem:[#allocation443_spill] sm:$0xff] %v6437_v21 }
 0x42f   : > { %v6439_v27 = vpop.permute.xlu1 %1620 }
 0x430   : > { %10758 = vst [vmem:[#allocation444_spill] sm:$0xff] %v6439_v27  ;;  %v6447_v8 = vpop.permute.xlu0 %1624 }
 0x431   : > { %1712 = vrot.lane.b32.xlu2 %v5929_v13, %s3378_s26  ;;  %10759 = vst [vmem:[#allocation445_spill] sm:$0xff] %v6447_v8  ;;  %v10899_v8 = vld [vmem:[#allocation362_spill] sm:$0xff]  ;;  %v11057_v13 = vld [vmem:[#allocation157_spill] sm:$0xff] }
 0x432   : > { %1708 = vrot.lane.b32.xlu0 %v5883_v48, %s3378_s26 }
 0x435   : > { %v6449_v15 = vpop.permute.xlu2 %1646  ;;  %1716 = vrot.lane.b32.xlu1 %v5955_v1, %s3378_s26 }
 0x436   : > { %10760 = vst [vmem:[#allocation446_spill] sm:$0xff] %v6449_v15 }
 0x437   : > { %v6451_v46 = vpop.permute.xlu1 %1626 }
 0x438   : > { %10761 = vst [vmem:[#allocation447_spill] sm:$0xff] %v6451_v46  ;;  %v6459_v21 = vpop.permute.xlu0 %1630 }
 0x439   : > { %1718 = vrot.lane.b32.xlu2 %v5967_v60, %s3378_s26  ;;  %10762 = vst [vmem:[#allocation448_spill] sm:$0xff] %v6459_v21  ;;  %v10863_v21 = vld [vmem:[#allocation338_spill] sm:$0xff] }
 0x43a   : > { %1714 = vrot.lane.b32.xlu0 %v5931_v24, %s3378_s26 }
 0x43d   : > { %v6461_v48 = vpop.permute.xlu2 %1652  ;;  %1722 = vrot.lane.b32.xlu1 %v6003_v59, %s3378_s26 }
 0x43e   : > { %10763 = vst [vmem:[#allocation449_spill] sm:$0xff] %v6461_v48 }
 0x43f   : > { %v6463_v45 = vpop.permute.xlu1 %1632 }
 0x440   : > { %10764 = vst [vmem:[#allocation450_spill] sm:$0xff] %v6463_v45  ;;  %v6471_v15 = vpop.permute.xlu0 %1636  ;;  %v11105_v45 = vld [vmem:[#allocation67_spill] sm:$0xff] }
 0x441   : > { %1724 = vrot.lane.b32.xlu2 %v6025_v16, %s3378_s26  ;;  %10765 = vst [vmem:[#allocation451_spill] sm:$0xff] %v6471_v15  ;;  %v10851_v15 = vld [vmem:[#allocation49_spill] sm:$0xff]  ;;  %v10880_v16 = vld [vmem:[#allocation351_spill] sm:$0xff] }
 0x442   : > { %1720 = vrot.lane.b32.xlu0 %v5979_v19, %s3378_s26 }
 0x445   : > { %v6473_v24 = vpop.permute.xlu2 %1658  ;;  %1728 = vrot.lane.b32.xlu1 %v6051_v42, %s3378_s26 }
 0x446   : > { %10766 = vst [vmem:[#allocation452_spill] sm:$0xff] %v6473_v24 }
 0x447   : > { %v6475_v1 = vpop.permute.xlu1 %1638 }
 0x448   : > { %10767 = vst [vmem:[#allocation453_spill] sm:$0xff] %v6475_v1  ;;  %v6483_v48 = vpop.permute.xlu0 %1642  ;;  %v11096_v1 = vld [vmem:[#allocation235_spill] sm:$0xff] }
 0x449   : > { %1730 = vrot.lane.b32.xlu2 %v6063_v44, %s3378_s26  ;;  %10768 = vst [vmem:[#allocation454_spill] sm:$0xff] %v6483_v48  ;;  %v10845_v48 = vld [vmem:[#allocation326_spill] sm:$0xff]  ;;  %v10862_v44 = vld [vmem:[#allocation339_spill] sm:$0xff] }
 0x44a   : > { %1726 = vrot.lane.b32.xlu0 %v6027_v10, %s3378_s26  ;;  %v1033_v50 = vmin.f32 %v10863_v21, %v10862_v44 }
 0x44d   : > { %v6485_v19 = vpop.permute.xlu2 %1664  ;;  %1734 = vrot.lane.b32.xlu1 %v6099_v3, %s3378_s26 }
 0x44e   : > { %10769 = vst [vmem:[#allocation455_spill] sm:$0xff] %v6485_v19 }
 0x44f   : > { %v6487_v59 = vpop.permute.xlu1 %1644 }
 0x450   : > { %10770 = vst [vmem:[#allocation456_spill] sm:$0xff] %v6487_v59  ;;  %v6495_v24 = vpop.permute.xlu0 %1648 }
 0x451   : > { %1736 = vrot.lane.b32.xlu2 %v6121_v14, %s3378_s26  ;;  %10771 = vst [vmem:[#allocation457_spill] sm:$0xff] %v6495_v24  ;;  %v10833_v24 = vld [vmem:[#allocation84_spill] sm:$0xff]  ;;  %v10850_v14 = vld [vmem:[#allocation162_spill] sm:$0xff] }
 0x452   : > { %1732 = vrot.lane.b32.xlu0 %v6075_v37, %s3378_s26 }
 0x455   : > { %v6497_v10 = vpop.permute.xlu2 %1670  ;;  %1740 = vrot.lane.b32.xlu1 %v6147_v5, %s3378_s26 }
 0x456   : > { %10772 = vst [vmem:[#allocation458_spill] sm:$0xff] %v6497_v10 }
 0x457   : > { %v6499_v42 = vpop.permute.xlu1 %1650 }
 0x458   : > { %10773 = vst [vmem:[#allocation459_spill] sm:$0xff] %v6499_v42  ;;  %v6507_v19 = vpop.permute.xlu0 %1654  ;;  %v10869_v42 = vld [vmem:[#allocation50_spill] sm:$0xff] }
 0x459   : > { %1742 = vrot.lane.b32.xlu2 %v6159_v56, %s3378_s26  ;;  %10774 = vst [vmem:[#allocation460_spill] sm:$0xff] %v6507_v19  ;;  %v10826_v19 = vld [vmem:[#allocation315_spill] sm:$0xff] }
 0x45a   : > { %1738 = vrot.lane.b32.xlu0 %v6123_v29, %s3378_s26  ;;  %v10844_v56 = vld [vmem:[#allocation327_spill] sm:$0xff] }
 0x45d   : > { %v6509_v37 = vpop.permute.xlu2 %1676  ;;  %1746 = vrot.lane.b32.xlu1 %v6195_v26, %s3378_s26 }
 0x45e   : > { %10775 = vst [vmem:[#allocation461_spill] sm:$0xff] %v6509_v37 }
 0x45f   : > { %v6511_v3 = vpop.permute.xlu1 %1656 }
 0x460   : > { %10776 = vst [vmem:[#allocation462_spill] sm:$0xff] %v6511_v3  ;;  %v6519_v10 = vpop.permute.xlu0 %1660  ;;  %v990_v3 = vmax.f32 %v10851_v15, %v10850_v14  ;;  %v10856_v14 = vld [vmem:[#allocation330_spill] sm:$0xff]  ;;  %v10857_v15 = vld [vmem:[#allocation329_spill] sm:$0xff] }
 0x461   : > { %1748 = vrot.lane.b32.xlu2 %v6217_v55, %s3378_s26  ;;  %10777 = vst [vmem:[#allocation463_spill] sm:$0xff] %v6519_v10  ;;  %v10809_v10 = vld [vmem:[#allocation302_spill] sm:$0xff]  ;;  %v10832_v55 = vld [vmem:[#allocation159_spill] sm:$0xff] }
 0x462   : > { %1744 = vrot.lane.b32.xlu0 %v6171_v22, %s3378_s26 }
 0x465   : > { %v6521_v29 = vpop.permute.xlu2 %1682  ;;  %1752 = vrot.lane.b32.xlu1 %v6243_v28, %s3378_s26 }
 0x466   : > { %10778 = vst [vmem:[#allocation464_spill] sm:$0xff] %v6521_v29 }
 0x467   : > { %v6523_v5 = vpop.permute.xlu1 %1662 }
 0x468   : > { %10779 = vst [vmem:[#allocation465_spill] sm:$0xff] %v6523_v5  ;;  %v6531_v37 = vpop.permute.xlu0 %1666  ;;  %v1030_v5 = vmin.f32 %v10845_v48, %v10844_v56 }
 0x469   : > { %1754 = vrot.lane.b32.xlu2 %v6255_v62, %s3378_s26  ;;  %10780 = vst [vmem:[#allocation466_spill] sm:$0xff] %v6531_v37  ;;  %v10796_v37 = vld [vmem:[#allocation240_spill] sm:$0xff] }
 0x46a   : > { %1750 = vrot.lane.b32.xlu0 %v6219_v43, %s3378_s26 }
 0x46d   : > { %v6533_v22 = vpop.permute.xlu2 %1688  ;;  %1758 = vrot.lane.b32.xlu1 %v6291_v9, %s3378_s26 }
 0x46e   : > { %10781 = vst [vmem:[#allocation467_spill] sm:$0xff] %v6533_v22 }
 0x46f   : > { %v6535_v26 = vpop.permute.xlu1 %1668 }
 0x470   : > { %10782 = vst [vmem:[#allocation468_spill] sm:$0xff] %v6535_v26  ;;  %v6543_v29 = vpop.permute.xlu0 %1672  ;;  %v987_v26 = vmax.f32 %v10833_v24, %v10832_v55  ;;  %v10838_v55 = vld [vmem:[#allocation317_spill] sm:$0xff]  ;;  %v10839_v24 = vld [vmem:[#allocation316_spill] sm:$0xff] }
 0x471   : > { %1760 = vrot.lane.b32.xlu2 %v6313_v6, %s3378_s26  ;;  %10783 = vst [vmem:[#allocation469_spill] sm:$0xff] %v6543_v29  ;;  %v1018_v29 = vmin.f32 %v5772_v0, %v5775_v54  ;;  %v979_v0 = vmax.f32 %v10535_v4, %v5061_v58  ;;  %v1020_v54 = vmin.f32 %v5790_v35, %v5793_v57  ;;  %v10797_v6 = vld [vmem:[#allocation189_spill] sm:$0xff] }
 0x472   : > { %1756 = vrot.lane.b32.xlu0 %v6267_v63, %s3378_s26 }
 0x475   : > { %v6545_v43 = vpop.permute.xlu2 %1694  ;;  %1764 = vrot.lane.b32.xlu1 %v6339_v17, %s3378_s26 }
 0x476   : > { %10784 = vst [vmem:[#allocation470_spill] sm:$0xff] %v6545_v43  ;;  %v978_v43 = vmax.f32 %v10534_v32, %v5067_v34  ;;  %v1019_v34 = vmin.f32 %v5780_v12, %v5783_v18 }
 0x477   : > { %v6547_v28 = vpop.permute.xlu1 %1674 }
 0x478   : > { %10785 = vst [vmem:[#allocation471_spill] sm:$0xff] %v6547_v28  ;;  %v6555_v22 = vpop.permute.xlu0 %1678  ;;  %v1059_v12 = vsub.f32 %v979_v0, %v1019_v34  ;;  %v10806_v0 = vld [vmem:[#allocation297_spill] sm:$0xff]  ;;  %v10827_v28 = vld [vmem:[#allocation314_spill] sm:$0xff] }
 0x479   : > { %1766 = vrot.lane.b32.xlu2 %v6351_v25, %s3378_s26  ;;  %10786 = vst [vmem:[#allocation472_spill] sm:$0xff] %v6555_v22 }
 0x47a   : > { %1762 = vrot.lane.b32.xlu0 %v6315_v36, %s3378_s26  ;;  %v1058_v36 = vsub.f32 %v978_v43, %v1018_v29  ;;  %v10795_v29 = vld [vmem:[#allocation290_spill] sm:$0xff]  ;;  %v6603_v4 = vmax.f32 %v1059_v12, 0.0 }
 0x47c   : > { %v6583_v32 = vmax.f32 %v1058_v36, 0.0  ;;  %10801 = vst [vmem:[#allocation290_spill] sm:$0xff] %v6603_v4 }
 0x47d   : > { %v6557_v63 = vpop.permute.xlu2 %1700  ;;  %1770 = vrot.lane.b32.xlu1 %v6387_v33, %s3378_s26  ;;  %v10793_v33 = vld [vmem:[#allocation190_spill] sm:$0xff] }
 0x47e   : > { %10791 = vst [vmem:[#allocation477_spill] sm:$0xff] %v6583_v32 }
 0x47f   : > { %v6559_v9 = vpop.permute.xlu1 %1680 }
 0x480   : > { %10787 = vst [vmem:[#allocation473_spill] sm:$0xff] %v6559_v9  ;;  %v6571_v17 = vpop.permute.xlu0 %1684  ;;  %v10815_v9 = vld [vmem:[#allocation197_spill] sm:$0xff] }
 0x481   : > { %1772 = vrot.lane.b32.xlu2 %v6399_v53, %s3378_s26  ;;  %10788 = vst [vmem:[#allocation474_spill] sm:$0xff] %v6571_v17  ;;  %v10792_v53 = vld [vmem:[#allocation146_spill] sm:$0xff]  ;;  %v10794_v17 = vld [vmem:[#allocation291_spill] sm:$0xff] }
 0x482   : > { %1768 = vrot.lane.b32.xlu0 %v6363_v40, %s3378_s26  ;;  %v980_v40 = vmax.f32 %v10793_v33, %v10792_v53  ;;  %v1021_v43 = vmin.f32 %v10795_v29, %v10794_v17  ;;  %v10804_v17 = vld [vmem:[#allocation239_spill] sm:$0xff]  ;;  %v10807_v29 = vld [vmem:[#allocation296_spill] sm:$0xff] }
 0x483   : > { %v10805_v33 = vld [vmem:[#allocation195_spill] sm:$0xff] }
 0x484   : > { %v1060_v35 = vsub.f32 %v980_v40, %v1020_v54  ;;  %v982_v34 = vmax.f32 %v10805_v33, %v10804_v17  ;;  %v10812_v54 = vld [vmem:[#allocation151_spill] sm:$0xff] }
 0x485   : > { %v6573_v22 = vpop.permute.xlu2 %1706  ;;  %1776 = vrot.lane.b32.xlu1 %v6415_v31, %s3378_s26  ;;  %v10808_v31 = vld [vmem:[#allocation303_spill] sm:$0xff] }
 0x486   : > { %10789 = vst [vmem:[#allocation475_spill] sm:$0xff] %v6573_v22  ;;  %v6613_v40 = vmax.f32 %v1060_v35, 0.0  ;;  %v11154_v22 = vld [vmem:[#allocation91_spill] sm:$0xff] }
 0x487   : > { %v6575_v25 = vpop.permute.xlu1 %1686 }
 0x488   : > { %10790 = vst [vmem:[#allocation476_spill] sm:$0xff] %v6575_v25  ;;  %v981_v25 = vmax.f32 %v10797_v6, %v10796_v37  ;;  %v10802_v6 = vld [vmem:[#allocation293_spill] sm:$0xff]  ;;  %v10803_v37 = vld [vmem:[#allocation292_spill] sm:$0xff] }
 0x489   : > { %1858 = vrot.lane.b32.xlu2 %v6583_v32, %s3381_s7  ;;  %v1022_v36 = vmin.f32 %v10803_v37, %v10802_v6  ;;  %10810 = vst [vmem:[#allocation240_spill] sm:$0xff] %v6613_v40 }
 0x48a   : > { %1774 = vrot.lane.b32.xlu0 %v6401_v49, %s3378_s26  ;;  %v1061_v53 = vsub.f32 %v981_v25, %v1021_v43  ;;  %v1023_v49 = vmin.f32 %v10807_v29, %v10806_v0  ;;  %v10813_v43 = vld [vmem:[#allocation51_spill] sm:$0xff]  ;;  %v10824_v29 = vld [vmem:[#allocation309_spill] sm:$0xff] }
 0x48b   : > { %v983_v12 = vmax.f32 %v10813_v43, %v10812_v54  ;;  %v1062_v6 = vsub.f32 %v982_v34, %v1022_v36  ;;  %v10822_v36 = vld [vmem:[#allocation245_spill] sm:$0xff]  ;;  %v10823_v34 = vld [vmem:[#allocation96_spill] sm:$0xff] }
 0x48c   : > { %v6597_v58 = vpop.permute.xlu0 %1690  ;;  %v6615_v25 = vmax.f32 %v1061_v53, 0.0  ;;  %v985_v0 = vmax.f32 %v10823_v34, %v10822_v36  ;;  %v10825_v54 = vld [vmem:[#allocation308_spill] sm:$0xff]  ;;  %v1028_v34 = vmin.f32 %v10839_v24, %v10838_v55 }
 0x48d   : > { %10798 = vst [vmem:[#allocation146_spill] sm:$0xff] %v6597_v58  ;;  %v6599_v18 = vpop.permute.xlu2 %1712  ;;  %v1024_v58 = vmin.f32 %v10809_v10, %v10808_v31  ;;  %1862 = vrot.lane.b32.xlu1 %v6613_v40, %s3381_s7  ;;  %v1063_v31 = vsub.f32 %v983_v12, %v1023_v49  ;;  %v6633_v17 = vmax.f32 %v1062_v6, 0.0  ;;  %v1026_v43 = vmin.f32 %v10825_v54, %v10824_v29  ;;  %v10831_v12 = vld [vmem:[#allocation55_spill] sm:$0xff]  ;;  %v10842_v54 = vld [vmem:[#allocation321_spill] sm:$0xff] }
 0x48e   : > { %10799 = vst [vmem:[#allocation190_spill] sm:$0xff] %v6599_v18  ;;  %v11111_v18 = vld [vmem:[#allocation127_spill] sm:$0xff] }
 0x48f   : > { %v6601_v57 = vpop.permute.xlu1 %1692  ;;  %10811 = vst [vmem:[#allocation189_spill] sm:$0xff] %v6615_v25  ;;  %v6643_v49 = vmax.f32 %v1063_v31, 0.0 }
 0x490   : > { %10800 = vst [vmem:[#allocation291_spill] sm:$0xff] %v6601_v57  ;;  %v10814_v57 = vld [vmem:[#allocation16_spill] sm:$0xff] }
 0x491   : > { %v984_v62 = vmax.f32 %v10815_v9, %v10814_v57  ;;  %1864 = vrot.lane.b32.xlu2 %v6615_v25, %s3381_s7  ;;  %10819 = vst [vmem:[#allocation195_spill] sm:$0xff] %v6633_v17  ;;  %v10820_v9 = vld [vmem:[#allocation306_spill] sm:$0xff]  ;;  %v10821_v57 = vld [vmem:[#allocation305_spill] sm:$0xff] }
 0x492   : > { %1860 = vrot.lane.b32.xlu0 %v6603_v4, %s3381_s7  ;;  %v1025_v33 = vmin.f32 %v10821_v57, %v10820_v9  ;;  %10828 = vst [vmem:[#allocation297_spill] sm:$0xff] %v6643_v49 }
 0x493   : > { %v1064_v35 = vsub.f32 %v984_v62, %v1024_v58  ;;  %v10830_v58 = vld [vmem:[#allocation17_spill] sm:$0xff] }
 0x494   : > { %v6627_v10 = vpop.permute.xlu0 %1696  ;;  %v986_v6 = vmax.f32 %v10831_v12, %v10830_v58  ;;  %v1065_v9 = vsub.f32 %v985_v0, %v1025_v33  ;;  %v10840_v33 = vld [vmem:[#allocation196_spill] sm:$0xff]  ;;  %v10841_v0 = vld [vmem:[#allocation18_spill] sm:$0xff] }
 0x495   : > { %10816 = vst [vmem:[#allocation293_spill] sm:$0xff] %v6627_v10  ;;  %v6629_v53 = vpop.permute.xlu2 %1718  ;;  %v1027_v10 = vmin.f32 %v10827_v28, %v10826_v19  ;;  %v6645_v62 = vmax.f32 %v1064_v35, 0.0  ;;  %1868 = vrot.lane.b32.xlu1 %v6643_v49, %s3381_s7  ;;  %v988_v29 = vmax.f32 %v10841_v0, %v10840_v33  ;;  %v10843_v58 = vld [vmem:[#allocation320_spill] sm:$0xff]  ;;  %v1031_v0 = vmin.f32 %v10857_v15, %v10856_v14 }
 0x496   : > { %10817 = vst [vmem:[#allocation292_spill] sm:$0xff] %v6629_v53  ;;  %v1066_v28 = vsub.f32 %v986_v6, %v1026_v43  ;;  %v6663_v36 = vmax.f32 %v1065_v9, 0.0  ;;  %v1029_v12 = vmin.f32 %v10843_v58, %v10842_v54  ;;  %v10849_v6 = vld [vmem:[#allocation88_spill] sm:$0xff]  ;;  %v10860_v58 = vld [vmem:[#allocation333_spill] sm:$0xff] }
 0x497   : > { %v6631_v37 = vpop.permute.xlu1 %1698  ;;  %10829 = vst [vmem:[#allocation296_spill] sm:$0xff] %v6645_v62  ;;  %v1067_v31 = vsub.f32 %v987_v26, %v1027_v10  ;;  %v10848_v10 = vld [vmem:[#allocation93_spill] sm:$0xff]  ;;  %v1068_v55 = vsub.f32 %v988_v29, %v1028_v34  ;;  %v10858_v34 = vld [vmem:[#allocation48_spill] sm:$0xff] }
 0x498   : > { %10818 = vst [vmem:[#allocation239_spill] sm:$0xff] %v6631_v37  ;;  %v6673_v43 = vmax.f32 %v1066_v28, 0.0  ;;  %v989_v9 = vmax.f32 %v10849_v6, %v10848_v10  ;;  %v1070_v28 = vsub.f32 %v990_v3, %v1030_v5  ;;  %v10859_v29 = vld [vmem:[#allocation21_spill] sm:$0xff]  ;;  %v10861_v10 = vld [vmem:[#allocation332_spill] sm:$0xff]  ;;  %v10866_v5 = vld [vmem:[#allocation99_spill] sm:$0xff] }
 0x499   : > { %1870 = vrot.lane.b32.xlu2 %v6645_v62, %s3381_s7  ;;  %10837 = vst [vmem:[#allocation51_spill] sm:$0xff] %v6663_v36  ;;  %v6675_v26 = vmax.f32 %v1067_v31, 0.0  ;;  %v6693_v33 = vmax.f32 %v1068_v55, 0.0  ;;  %v991_v54 = vmax.f32 %v10859_v29, %v10858_v34  ;;  %v1032_v6 = vmin.f32 %v10861_v10, %v10860_v58  ;;  %v10878_v10 = vld [vmem:[#allocation345_spill] sm:$0xff]  ;;  %v11092_v37 = vld [vmem:[#allocation115_spill] sm:$0xff]  ;;  %v11100_v53 = vld [vmem:[#allocation224_spill] sm:$0xff] }
 0x49a   : > { %1866 = vrot.lane.b32.xlu0 %v6633_v17, %s3381_s7  ;;  %10846 = vst [vmem:[#allocation16_spill] sm:$0xff] %v6673_v43  ;;  %v1069_v48 = vsub.f32 %v989_v9, %v1029_v12  ;;  %v6705_v3 = vmax.f32 %v1070_v28, 0.0  ;;  %v10867_v9 = vld [vmem:[#allocation92_spill] sm:$0xff] }
 0x49b   : > { %10847 = vst [vmem:[#allocation197_spill] sm:$0xff] %v6675_v26  ;;  %v992_v55 = vmax.f32 %v10867_v9, %v10866_v5  ;;  %v1071_v14 = vsub.f32 %v991_v54, %v1031_v0  ;;  %v10876_v0 = vld [vmem:[#allocation102_spill] sm:$0xff]  ;;  %v10877_v54 = vld [vmem:[#allocation24_spill] sm:$0xff] }
 0x49c   : > { %v6657_v19 = vpop.permute.xlu0 %1702  ;;  %10855 = vst [vmem:[#allocation96_spill] sm:$0xff] %v6693_v33  ;;  %v6703_v12 = vmax.f32 %v1069_v48, 0.0  ;;  %v994_v58 = vmax.f32 %v10877_v54, %v10876_v0  ;;  %v10879_v5 = vld [vmem:[#allocation344_spill] sm:$0xff] }
 0x49d   : > { %10834 = vst [vmem:[#allocation303_spill] sm:$0xff] %v6657_v19  ;;  %v6659_v35 = vpop.permute.xlu2 %1724  ;;  %1874 = vrot.lane.b32.xlu1 %v6673_v43, %s3381_s7  ;;  %v1072_v21 = vsub.f32 %v992_v55, %v1032_v6  ;;  %v6723_v34 = vmax.f32 %v1071_v14, 0.0  ;;  %v1035_v9 = vmin.f32 %v10879_v5, %v10878_v10  ;;  %v10885_v55 = vld [vmem:[#allocation98_spill] sm:$0xff]  ;;  %v10896_v5 = vld [vmem:[#allocation357_spill] sm:$0xff] }
 0x49e   : > { %10835 = vst [vmem:[#allocation302_spill] sm:$0xff] %v6659_v35 }
 0x49f   : > { %v6661_v57 = vpop.permute.xlu1 %1704  ;;  %10864 = vst [vmem:[#allocation309_spill] sm:$0xff] %v6703_v12  ;;  %v6733_v6 = vmax.f32 %v1072_v21, 0.0 }
 0x4a0   : > { %10836 = vst [vmem:[#allocation151_spill] sm:$0xff] %v6661_v57 }
 0x4a1   : > { %1876 = vrot.lane.b32.xlu2 %v6675_v26, %s3381_s7  ;;  %10865 = vst [vmem:[#allocation308_spill] sm:$0xff] %v6705_v3 }
 0x4a2   : > { %1872 = vrot.lane.b32.xlu0 %v6663_v36, %s3381_s7  ;;  %10873 = vst [vmem:[#allocation55_spill] sm:$0xff] %v6723_v34 }
 0x4a3   : > { %10882 = vst [vmem:[#allocation159_spill] sm:$0xff] %v6733_v6 }
 0x4a4   : > { %v6687_v56 = vpop.permute.xlu0 %1708 }
 0x4a5   : > { %10852 = vst [vmem:[#allocation306_spill] sm:$0xff] %v6687_v56  ;;  %v6689_v31 = vpop.permute.xlu2 %1730  ;;  %1880 = vrot.lane.b32.xlu1 %v6703_v12, %s3381_s7 }
 0x4a6   : > { %10853 = vst [vmem:[#allocation305_spill] sm:$0xff] %v6689_v31 }
 0x4a7   : > { %v6691_v24 = vpop.permute.xlu1 %1710 }
 0x4a8   : > { %10854 = vst [vmem:[#allocation245_spill] sm:$0xff] %v6691_v24  ;;  %v10868_v24 = vld [vmem:[#allocation165_spill] sm:$0xff] }
 0x4a9   : > { %v993_v31 = vmax.f32 %v10869_v42, %v10868_v24  ;;  %1882 = vrot.lane.b32.xlu2 %v6705_v3, %s3381_s7  ;;  %v10874_v42 = vld [vmem:[#allocation341_spill] sm:$0xff]  ;;  %v10875_v24 = vld [vmem:[#allocation340_spill] sm:$0xff] }
 0x4aa   : > { %1878 = vrot.lane.b32.xlu0 %v6693_v33, %s3381_s7  ;;  %v1034_v29 = vmin.f32 %v10875_v24, %v10874_v42 }
 0x4ab   : > { %v1073_v48 = vsub.f32 %v993_v31, %v1033_v50  ;;  %v10884_v31 = vld [vmem:[#allocation105_spill] sm:$0xff] }
 0x4ac   : > { %v6717_v44 = vpop.permute.xlu0 %1714  ;;  %v995_v14 = vmax.f32 %v10885_v55, %v10884_v31  ;;  %v1074_v42 = vsub.f32 %v994_v58, %v1034_v29  ;;  %v10894_v29 = vld [vmem:[#allocation108_spill] sm:$0xff]  ;;  %v10895_v58 = vld [vmem:[#allocation27_spill] sm:$0xff] }
 0x4ad   : > { %10870 = vst [vmem:[#allocation315_spill] sm:$0xff] %v6717_v44  ;;  %v6719_v28 = vpop.permute.xlu2 %1736  ;;  %v1036_v44 = vmin.f32 %v10881_v20, %v10880_v16  ;;  %v6735_v50 = vmax.f32 %v1073_v48, 0.0  ;;  %1886 = vrot.lane.b32.xlu1 %v6733_v6, %s3381_s7  ;;  %v997_v10 = vmax.f32 %v10895_v58, %v10894_v29  ;;  %v10897_v31 = vld [vmem:[#allocation356_spill] sm:$0xff] }
 0x4ae   : > { %10871 = vst [vmem:[#allocation314_spill] sm:$0xff] %v6719_v28  ;;  %v10887_v28 = vld [vmem:[#allocation52_spill] sm:$0xff]  ;;  %v1075_v20 = vsub.f32 %v995_v14, %v1035_v9  ;;  %v6753_v0 = vmax.f32 %v1074_v42, 0.0  ;;  %v1038_v55 = vmin.f32 %v10897_v31, %v10896_v5  ;;  %v10914_v31 = vld [vmem:[#allocation369_spill] sm:$0xff] }
 0x4af   : > { %v6721_v15 = vpop.permute.xlu1 %1716  ;;  %10883 = vst [vmem:[#allocation84_spill] sm:$0xff] %v6735_v50  ;;  %v10903_v14 = vld [vmem:[#allocation104_spill] sm:$0xff] }
 0x4b0   : > { %10872 = vst [vmem:[#allocation17_spill] sm:$0xff] %v6721_v15  ;;  %v10886_v15 = vld [vmem:[#allocation168_spill] sm:$0xff]  ;;  %v6763_v9 = vmax.f32 %v1075_v20, 0.0 }
 0x4b1   : > { %v996_v56 = vmax.f32 %v10887_v28, %v10886_v15  ;;  %1888 = vrot.lane.b32.xlu2 %v6735_v50, %s3381_s7  ;;  %10891 = vst [vmem:[#allocation18_spill] sm:$0xff] %v6753_v0  ;;  %v10892_v28 = vld [vmem:[#allocation354_spill] sm:$0xff]  ;;  %v10893_v15 = vld [vmem:[#allocation353_spill] sm:$0xff]  ;;  %v11070_v6 = vld [vmem:[#allocation160_spill] sm:$0xff] }
 0x4b2   : > { %1884 = vrot.lane.b32.xlu0 %v6723_v34, %s3381_s7  ;;  %v1037_v54 = vmin.f32 %v10893_v15, %v10892_v28  ;;  %10900 = vst [vmem:[#allocation321_spill] sm:$0xff] %v6763_v9  ;;  %v10983_v50 = vld [vmem:[#allocation42_spill] sm:$0xff] }
 0x4b3   : > { %v1076_v21 = vsub.f32 %v996_v56, %v1036_v44  ;;  %v10902_v44 = vld [vmem:[#allocation111_spill] sm:$0xff] }
 0x4b4   : > { %v6747_v16 = vpop.permute.xlu0 %1720  ;;  %v998_v42 = vmax.f32 %v10903_v14, %v10902_v44  ;;  %v1077_v28 = vsub.f32 %v997_v10, %v1037_v54  ;;  %v10912_v54 = vld [vmem:[#allocation114_spill] sm:$0xff]  ;;  %v10915_v44 = vld [vmem:[#allocation368_spill] sm:$0xff] }
 0x4b5   : > { %10888 = vst [vmem:[#allocation317_spill] sm:$0xff] %v6747_v16  ;;  %v6749_v48 = vpop.permute.xlu2 %1742  ;;  %v1039_v16 = vmin.f32 %v10899_v8, %v10898_v11  ;;  %v6765_v56 = vmax.f32 %v1076_v21, 0.0  ;;  %1892 = vrot.lane.b32.xlu1 %v6763_v9, %s3381_s7  ;;  %v10913_v10 = vld [vmem:[#allocation30_spill] sm:$0xff]  ;;  %v1041_v14 = vmin.f32 %v10915_v44, %v10914_v31  ;;  %v10932_v44 = vld [vmem:[#allocation381_spill] sm:$0xff] }
 0x4b6   : > { %10889 = vst [vmem:[#allocation316_spill] sm:$0xff] %v6749_v48  ;;  %v10905_v48 = vld [vmem:[#allocation54_spill] sm:$0xff]  ;;  %v1078_v8 = vsub.f32 %v998_v42, %v1038_v55  ;;  %v6783_v29 = vmax.f32 %v1077_v28, 0.0  ;;  %v1000_v5 = vmax.f32 %v10913_v10, %v10912_v54 }
 0x4b7   : > { %v6751_v24 = vpop.permute.xlu1 %1722  ;;  %10901 = vst [vmem:[#allocation320_spill] sm:$0xff] %v6765_v56  ;;  %v10917_v9 = vld [vmem:[#allocation374_spill] sm:$0xff] }
 0x4b8   : > { %10890 = vst [vmem:[#allocation196_spill] sm:$0xff] %v6751_v24  ;;  %v10904_v24 = vld [vmem:[#allocation171_spill] sm:$0xff]  ;;  %v6793_v55 = vmax.f32 %v1078_v8, 0.0  ;;  %v10921_v42 = vld [vmem:[#allocation110_spill] sm:$0xff] }
 0x4b9   : > { %v999_v57 = vmax.f32 %v10905_v48, %v10904_v24  ;;  %1894 = vrot.lane.b32.xlu2 %v6765_v56, %s3381_s7  ;;  %10909 = vst [vmem:[#allocation88_spill] sm:$0xff] %v6783_v29  ;;  %v10910_v48 = vld [vmem:[#allocation365_spill] sm:$0xff]  ;;  %v10911_v24 = vld [vmem:[#allocation364_spill] sm:$0xff]  ;;  %v10916_v56 = vld [vmem:[#allocation375_spill] sm:$0xff] }
 0x4ba   : > { %1890 = vrot.lane.b32.xlu0 %v6753_v0, %s3381_s7  ;;  %v1040_v58 = vmin.f32 %v10911_v24, %v10910_v48  ;;  %10918 = vst [vmem:[#allocation162_spill] sm:$0xff] %v6793_v55  ;;  %v10985_v0 = vld [vmem:[#allocation416_spill] sm:$0xff] }
 0x4bb   : > { %v1079_v20 = vsub.f32 %v999_v57, %v1039_v16  ;;  %v10920_v16 = vld [vmem:[#allocation117_spill] sm:$0xff] }
 0x4bc   : > { %v6777_v11 = vpop.permute.xlu0 %1726  ;;  %v1001_v28 = vmax.f32 %v10921_v42, %v10920_v16  ;;  %v1080_v48 = vsub.f32 %v1000_v5, %v1040_v58  ;;  %v10930_v58 = vld [vmem:[#allocation120_spill] sm:$0xff]  ;;  %v10931_v5 = vld [vmem:[#allocation33_spill] sm:$0xff] }
 0x4bd   : > { %10906 = vst [vmem:[#allocation327_spill] sm:$0xff] %v6777_v11  ;;  %v6779_v21 = vpop.permute.xlu2 %1748  ;;  %v1042_v11 = vmin.f32 %v10917_v9, %v10916_v56  ;;  %v6795_v57 = vmax.f32 %v1079_v20, 0.0  ;;  %1898 = vrot.lane.b32.xlu1 %v6793_v55, %s3381_s7  ;;  %v1003_v31 = vmax.f32 %v10931_v5, %v10930_v58  ;;  %v10933_v16 = vld [vmem:[#allocation380_spill] sm:$0xff]  ;;  %v10935_v55 = vld [vmem:[#allocation386_spill] sm:$0xff] }
 0x4be   : > { %10907 = vst [vmem:[#allocation326_spill] sm:$0xff] %v6779_v21  ;;  %v10923_v21 = vld [vmem:[#allocation57_spill] sm:$0xff]  ;;  %v1081_v56 = vsub.f32 %v1001_v28, %v1041_v14  ;;  %v6813_v54 = vmax.f32 %v1080_v48, 0.0  ;;  %v1044_v42 = vmin.f32 %v10933_v16, %v10932_v44  ;;  %v10939_v28 = vld [vmem:[#allocation116_spill] sm:$0xff] }
 0x4bf   : > { %v6781_v15 = vpop.permute.xlu1 %1728  ;;  %10919 = vst [vmem:[#allocation49_spill] sm:$0xff] %v6795_v57  ;;  %v10950_v16 = vld [vmem:[#allocation393_spill] sm:$0xff] }
 0x4c0   : > { %10908 = vst [vmem:[#allocation93_spill] sm:$0xff] %v6781_v15  ;;  %v10922_v15 = vld [vmem:[#allocation174_spill] sm:$0xff]  ;;  %v6823_v14 = vmax.f32 %v1081_v56, 0.0 }
 0x4c1   : > { %v1002_v30 = vmax.f32 %v10923_v21, %v10922_v15  ;;  %1900 = vrot.lane.b32.xlu2 %v6795_v57, %s3381_s7  ;;  %10927 = vst [vmem:[#allocation21_spill] sm:$0xff] %v6813_v54  ;;  %v10928_v21 = vld [vmem:[#allocation378_spill] sm:$0xff]  ;;  %v10929_v15 = vld [vmem:[#allocation377_spill] sm:$0xff]  ;;  %v10934_v57 = vld [vmem:[#allocation387_spill] sm:$0xff] }
 0x4c2   : > { %1896 = vrot.lane.b32.xlu0 %v6783_v29, %s3381_s7  ;;  %v1043_v10 = vmin.f32 %v10929_v15, %v10928_v21  ;;  %10936 = vst [vmem:[#allocation333_spill] sm:$0xff] %v6823_v14 }
 0x4c3   : > { %v1082_v8 = vsub.f32 %v1002_v30, %v1042_v11  ;;  %v10938_v11 = vld [vmem:[#allocation123_spill] sm:$0xff] }
 0x4c4   : > { %v6807_v9 = vpop.permute.xlu0 %1732  ;;  %v1004_v48 = vmax.f32 %v10939_v28, %v10938_v11  ;;  %v1083_v21 = vsub.f32 %v1003_v31, %v1043_v10  ;;  %v10948_v10 = vld [vmem:[#allocation126_spill] sm:$0xff]  ;;  %v10949_v31 = vld [vmem:[#allocation36_spill] sm:$0xff] }
 0x4c5   : > { %10924 = vst [vmem:[#allocation330_spill] sm:$0xff] %v6807_v9  ;;  %v6809_v20 = vpop.permute.xlu2 %1754  ;;  %v1045_v9 = vmin.f32 %v10935_v55, %v10934_v57  ;;  %v6825_v30 = vmax.f32 %v1082_v8, 0.0  ;;  %1904 = vrot.lane.b32.xlu1 %v6823_v14, %s3381_s7  ;;  %v1006_v44 = vmax.f32 %v10949_v31, %v10948_v10  ;;  %v10951_v11 = vld [vmem:[#allocation392_spill] sm:$0xff]  ;;  %v10953_v14 = vld [vmem:[#allocation398_spill] sm:$0xff] }
 0x4c6   : > { %10925 = vst [vmem:[#allocation329_spill] sm:$0xff] %v6809_v20  ;;  %v10941_v20 = vld [vmem:[#allocation60_spill] sm:$0xff]  ;;  %v1084_v57 = vsub.f32 %v1004_v48, %v1044_v42  ;;  %v6843_v58 = vmax.f32 %v1083_v21, 0.0  ;;  %v1047_v28 = vmin.f32 %v10951_v11, %v10950_v16  ;;  %v10957_v48 = vld [vmem:[#allocation122_spill] sm:$0xff]  ;;  %v10968_v11 = vld [vmem:[#allocation405_spill] sm:$0xff] }
 0x4c7   : > { %v6811_v24 = vpop.permute.xlu1 %1734  ;;  %10937 = vst [vmem:[#allocation332_spill] sm:$0xff] %v6825_v30 }
 0x4c8   : > { %10926 = vst [vmem:[#allocation48_spill] sm:$0xff] %v6811_v24  ;;  %v10940_v24 = vld [vmem:[#allocation177_spill] sm:$0xff]  ;;  %v6853_v42 = vmax.f32 %v1084_v57, 0.0 }
 0x4c9   : > { %v1005_v29 = vmax.f32 %v10941_v20, %v10940_v24  ;;  %1906 = vrot.lane.b32.xlu2 %v6825_v30, %s3381_s7  ;;  %10945 = vst [vmem:[#allocation92_spill] sm:$0xff] %v6843_v58  ;;  %v10946_v20 = vld [vmem:[#allocation389_spill] sm:$0xff]  ;;  %v10947_v24 = vld [vmem:[#allocation388_spill] sm:$0xff]  ;;  %v10952_v30 = vld [vmem:[#allocation399_spill] sm:$0xff] }
 0x4ca   : > { %1902 = vrot.lane.b32.xlu0 %v6813_v54, %s3381_s7  ;;  %v1046_v5 = vmin.f32 %v10947_v24, %v10946_v20  ;;  %10954 = vst [vmem:[#allocation165_spill] sm:$0xff] %v6853_v42 }
 0x4cb   : > { %v1085_v56 = vsub.f32 %v1005_v29, %v1045_v9  ;;  %v10956_v9 = vld [vmem:[#allocation129_spill] sm:$0xff] }
 0x4cc   : > { %v6837_v55 = vpop.permute.xlu0 %1738  ;;  %v1007_v21 = vmax.f32 %v10957_v48, %v10956_v9  ;;  %v1086_v20 = vsub.f32 %v1006_v44, %v1046_v5  ;;  %v10966_v5 = vld [vmem:[#allocation132_spill] sm:$0xff]  ;;  %v10967_v44 = vld [vmem:[#allocation39_spill] sm:$0xff] }
 0x4cd   : > { %10942 = vst [vmem:[#allocation339_spill] sm:$0xff] %v6837_v55  ;;  %v6839_v8 = vpop.permute.xlu2 %1760  ;;  %v1048_v55 = vmin.f32 %v10953_v14, %v10952_v30  ;;  %v6855_v29 = vmax.f32 %v1085_v56, 0.0  ;;  %1910 = vrot.lane.b32.xlu1 %v6853_v42, %s3381_s7  ;;  %v1009_v16 = vmax.f32 %v10967_v44, %v10966_v5  ;;  %v10969_v9 = vld [vmem:[#allocation404_spill] sm:$0xff]  ;;  %v10980_v44 = vld [vmem:[#allocation426_spill] sm:$0xff] }
 0x4ce   : > { %10943 = vst [vmem:[#allocation338_spill] sm:$0xff] %v6839_v8  ;;  %v10959_v8 = vld [vmem:[#allocation63_spill] sm:$0xff]  ;;  %v1087_v30 = vsub.f32 %v1007_v21, %v1047_v28  ;;  %v6873_v10 = vmax.f32 %v1086_v20, 0.0  ;;  %v1050_v48 = vmin.f32 %v10969_v9, %v10968_v11  ;;  %v10971_v42 = vld [vmem:[#allocation128_spill] sm:$0xff]  ;;  %v10981_v11 = vld [vmem:[#allocation425_spill] sm:$0xff] }
 0x4cf   : > { %v6841_v15 = vpop.permute.xlu1 %1740  ;;  %10955 = vst [vmem:[#allocation50_spill] sm:$0xff] %v6855_v29  ;;  %v10972_v28 = vld [vmem:[#allocation411_spill] sm:$0xff]  ;;  %v1055_v9 = vmin.f32 %v10981_v11, %v10980_v44 }
 0x4d0   : > { %10944 = vst [vmem:[#allocation99_spill] sm:$0xff] %v6841_v15  ;;  %v10958_v15 = vld [vmem:[#allocation180_spill] sm:$0xff]  ;;  %v10974_v21 = vld [vmem:[#allocation183_spill] sm:$0xff]  ;;  %v6887_v20 = vmax.f32 %v1087_v30, 0.0 }
 0x4d1   : > { %v1008_v54 = vmax.f32 %v10959_v8, %v10958_v15  ;;  %1912 = vrot.lane.b32.xlu2 %v6855_v29, %s3381_s7  ;;  %10963 = vst [vmem:[#allocation24_spill] sm:$0xff] %v6873_v10  ;;  %v10964_v8 = vld [vmem:[#allocation402_spill] sm:$0xff]  ;;  %v10965_v15 = vld [vmem:[#allocation401_spill] sm:$0xff]  ;;  %v10970_v29 = vld [vmem:[#allocation135_spill] sm:$0xff] }
 0x4d2   : > { %1908 = vrot.lane.b32.xlu0 %v6843_v58, %s3381_s7  ;;  %v1049_v31 = vmin.f32 %v10965_v15, %v10964_v8  ;;  %10976 = vst [vmem:[#allocation345_spill] sm:$0xff] %v6887_v20  ;;  %v10978_v8 = vld [vmem:[#allocation413_spill] sm:$0xff]  ;;  %v10979_v15 = vld [vmem:[#allocation412_spill] sm:$0xff] }
 0x4d3   : > { %v1088_v57 = vsub.f32 %v1008_v54, %v1048_v55  ;;  %v10973_v54 = vld [vmem:[#allocation410_spill] sm:$0xff]  ;;  %v1052_v5 = vmin.f32 %v10979_v15, %v10978_v8 }
 0x4d4   : > { %v6867_v14 = vpop.permute.xlu0 %1744  ;;  %v1051_v55 = vmin.f32 %v10973_v54, %v10972_v28  ;;  %v10984_v54 = vld [vmem:[#allocation417_spill] sm:$0xff] }
 0x4d5   : > { %10960 = vst [vmem:[#allocation341_spill] sm:$0xff] %v6867_v14  ;;  %v6869_v56 = vpop.permute.xlu2 %1766  ;;  %v1010_v14 = vmax.f32 %v10971_v42, %v10970_v29  ;;  %v6889_v58 = vmax.f32 %v1088_v57, 0.0  ;;  %v1089_v42 = vsub.f32 %v1009_v16, %v1049_v31  ;;  %v10982_v29 = vld [vmem:[#allocation138_spill] sm:$0xff]  ;;  %1916 = vrot.lane.b32.xlu1 %v6887_v20, %s3381_s7  ;;  %v10987_v57 = vld [vmem:[#allocation144_spill] sm:$0xff]  ;;  %v10989_v31 = vld [vmem:[#allocation141_spill] sm:$0xff] }
 0x4d6   : > { %10961 = vst [vmem:[#allocation340_spill] sm:$0xff] %v6869_v56  ;;  %v10975_v56 = vld [vmem:[#allocation66_spill] sm:$0xff]  ;;  %v1012_v28 = vmax.f32 %v10983_v50, %v10982_v29  ;;  %v10991_v50 = vld [vmem:[#allocation423_spill] sm:$0xff]  ;;  %v10997_v20 = vld [vmem:[#allocation188_spill] sm:$0xff] }
 0x4d7   : > { %v6871_v24 = vpop.permute.xlu1 %1746  ;;  %10977 = vst [vmem:[#allocation344_spill] sm:$0xff] %v6889_v58  ;;  %v1090_v15 = vsub.f32 %v1010_v14, %v1050_v48  ;;  %v10990_v16 = vld [vmem:[#allocation134_spill] sm:$0xff]  ;;  %v1017_v48 = vmax.f32 %v10746_v23, %v5603_v2  ;;  %v11009_v23 = vld [vmem:[#allocation237_spill] sm:$0xff] }
 0x4d8   : > { %10962 = vst [vmem:[#allocation102_spill] sm:$0xff] %v6871_v24  ;;  %v1011_v24 = vmax.f32 %v10975_v56, %v10974_v21  ;;  %v1053_v56 = vmin.f32 %v10985_v0, %v10984_v54  ;;  %v10988_v21 = vld [vmem:[#allocation43_spill] sm:$0xff]  ;;  %v1013_v11 = vmax.f32 %v10990_v16, %v10989_v31  ;;  %v10992_v29 = vld [vmem:[#allocation422_spill] sm:$0xff]  ;;  %v10993_v0 = vld [vmem:[#allocation429_spill] sm:$0xff] }
 0x4d9   : > { %1918 = vrot.lane.b32.xlu2 %v6889_v58, %s3381_s7  ;;  %v1015_v8 = vmax.f32 %v10988_v21, %v10987_v57  ;;  %v10994_v54 = vld [vmem:[#allocation428_spill] sm:$0xff]  ;;  %v11000_v57 = vld [vmem:[#allocation83_spill] sm:$0xff]  ;;  %v1092_v21 = vsub.f32 %v1012_v28, %v1052_v5  ;;  %v6931_v16 = vmax.f32 %v1090_v15, 0.0  ;;  %v11012_v28 = vld [vmem:[#allocation150_spill] sm:$0xff] }
 0x4da   : > { %1914 = vrot.lane.b32.xlu0 %v6873_v10, %s3381_s7  ;;  %v1091_v44 = vsub.f32 %v1011_v24, %v1051_v55  ;;  %v1054_v10 = vmin.f32 %v10992_v29, %v10991_v50  ;;  %v1056_v59 = vmin.f32 %v10994_v54, %v10993_v0  ;;  %v1016_v14 = vmax.f32 %v11000_v57, %v10999_v39  ;;  %v11010_v5 = vld [vmem:[#allocation208_spill] sm:$0xff]  ;;  %v11016_v54 = vld [vmem:[#allocation211_spill] sm:$0xff] }
 0x4db   : > { %v1057_v24 = vmin.f32 %v6390_v47, %v6393_v38  ;;  %v6927_v55 = vmax.f32 %v1089_v42, 0.0  ;;  %v6929_v31 = vsub.f32 %v1015_v8, %v1055_v9  ;;  %11002 = vst [vmem:[#allocation168_spill] sm:$0xff] %v6931_v16  ;;  %v6935_v29 = vsub.f32 %v1013_v11, %v1053_v56  ;;  %v11007_v38 = vld [vmem:[#allocation234_spill] sm:$0xff]  ;;  %v11008_v47 = vld [vmem:[#allocation205_spill] sm:$0xff]  ;;  %v11015_v11 = vld [vmem:[#allocation243_spill] sm:$0xff] }
 0x4dc   : > { %v6905_v30 = vpop.permute.xlu0 %1750  ;;  %v6933_v50 = vmax.f32 %v1091_v44, 0.0  ;;  %v1303_v2 = vsel %vm4325_vm0, %v11008_v47, %v11007_v38  ;;  %v1306_v9 = vsel %vm4325_vm0, %v11010_v5, %v11009_v23  ;;  %v11011_v42 = vld [vmem:[#allocation242_spill] sm:$0xff]  ;;  %v6957_v15 = vsub.f32 %v1016_v14, %v1056_v59  ;;  %v11019_v38 = vld [vmem:[#allocation200_spill] sm:$0xff]  ;;  %v11020_v23 = vld [vmem:[#allocation89_spill] sm:$0xff] }
 0x4dd   : > { %10986 = vst [vmem:[#allocation351_spill] sm:$0xff] %v6905_v30  ;;  %v6915_v58 = vpop.permute.xlu2 %1772  ;;  %v10998_v30 = vld [vmem:[#allocation69_spill] sm:$0xff]  ;;  %v1298_v56 = vsel %vm4325_vm0, %v11012_v28, %v11011_v42  ;;  %v6959_v44 = vsub.f32 %v1017_v48, %v1057_v24  ;;  %v1309_v57 = vsel %vm4325_vm0, %v11016_v54, %v11015_v11  ;;  %v11021_v5 = vld [vmem:[#allocation198_spill] sm:$0xff]  ;;  %1922 = vrot.lane.b32.xlu1 %v6931_v16, %s3381_s7 }
 0x4de   : > { %10995 = vst [vmem:[#allocation350_spill] sm:$0xff] %v6915_v58  ;;  %v1014_v60 = vmax.f32 %v10998_v30, %v10997_v20  ;;  %v11004_v20 = vld [vmem:[#allocation231_spill] sm:$0xff]  ;;  %v11005_v30 = vld [vmem:[#allocation201_spill] sm:$0xff]  ;;  %v1301_v59 = vsel %vm4325_vm0, %v11021_v5, %v11020_v23  ;;  %v11027_v11 = vld [vmem:[#allocation14_spill] sm:$0xff] }
 0x4df   : > { %v6917_v35 = vpop.permute.xlu1 %1752  ;;  %11001 = vst [vmem:[#allocation98_spill] sm:$0xff] %v6927_v55  ;;  %v1300_v0 = vsel %vm4325_vm0, %v11005_v30, %v11004_v20  ;;  %v6965_v20 = vmax.f32 %v1092_v21, 0.0  ;;  %v11018_v30 = vld [vmem:[#allocation244_spill] sm:$0xff]  ;;  %v11025_v48 = vld [vmem:[#allocation193_spill] sm:$0xff]  ;;  %v6992_v54 = vmul.f32 %v1306_v9, %v11027_v11  ;;  %v11032_v16 = vld [vmem:[#allocation94_spill] sm:$0xff] }
 0x4e0   : > { %10996 = vst [vmem:[#allocation105_spill] sm:$0xff] %v6917_v35  ;;  %v6955_v8 = vsub.f32 %v1014_v60, %v1054_v10  ;;  %v1299_v47 = vsel %vm4325_vm0, %v11019_v38, %v11018_v30  ;;  %v11022_v60 = vld [vmem:[#allocation153_spill] sm:$0xff]  ;;  %v11023_v10 = vld [vmem:[#allocation214_spill] sm:$0xff]  ;;  %v6986_v21 = vmul.f32 %v1300_v0, %v11025_v48  ;;  %v11029_v23 = vld [vmem:[#allocation56_spill] sm:$0xff] }
 0x4e1   : > { %11003 = vst [vmem:[#allocation52_spill] sm:$0xff] %v6933_v50  ;;  %v1312_v14 = vsel %vm4325_vm0, %v11023_v10, %v11022_v60  ;;  %1924 = vrot.lane.b32.xlu2 %v6933_v50, %s3381_s7  ;;  %v11026_v42 = vld [vmem:[#allocation13_spill] sm:$0xff]  ;;  %v6998_v5 = vmul.f32 %v1309_v57, %v11029_v23  ;;  %v11030_v60 = vld [vmem:[#allocation246_spill] sm:$0xff]  ;;  %v11031_v10 = vld [vmem:[#allocation203_spill] sm:$0xff] }
 0x4e2   : > { %1920 = vrot.lane.b32.xlu0 %v6927_v55, %s3381_s7  ;;  %11013 = vst [vmem:[#allocation354_spill] sm:$0xff] %v6957_v15  ;;  %v6989_v28 = vmul.f32 %v1303_v2, %v11026_v42  ;;  %v11028_v30 = vld [vmem:[#allocation185_spill] sm:$0xff]  ;;  %v1302_v50 = vsel %vm4325_vm0, %v11031_v10, %v11030_v60  ;;  %v11033_v0 = vld [vmem:[#allocation46_spill] sm:$0xff]  ;;  %v11034_v48 = vld [vmem:[#allocation20_spill] sm:$0xff] }
 0x4e3   : > { %11014 = vst [vmem:[#allocation353_spill] sm:$0xff] %v6959_v44  ;;  %v6995_v38 = vmul.f32 %v1298_v56, %v11028_v30  ;;  %v1304_v2 = vsel %vm4325_vm0, %v11033_v0, %v11032_v16  ;;  %v11035_v42 = vld [vmem:[#allocation217_spill] sm:$0xff]  ;;  %v11038_v57 = vld [vmem:[#allocation191_spill] sm:$0xff]  ;;  %v11039_v23 = vld [vmem:[#allocation192_spill] sm:$0xff] }
 0x4e4   : > { %11017 = vst [vmem:[#allocation108_spill] sm:$0xff] %v6965_v20  ;;  %v6983_v24 = vpop.permute.xlu0 %1756  ;;  %v1315_v9 = vsel %vm4325_vm0, %v11035_v42, %v11034_v48  ;;  %v7017_v30 = vmul.f32 %v1299_v47, %v11038_v57  ;;  %v7020_v58 = vmul.f32 %v1301_v59, %v11039_v23  ;;  %v11040_v60 = vld [vmem:[#allocation59_spill] sm:$0xff]  ;;  %v11041_v55 = vld [vmem:[#allocation154_spill] sm:$0xff]  ;;  %v11048_v57 = vld [vmem:[#allocation209_spill] sm:$0xff] }
 0x4e5   : > { %11024 = vst [vmem:[#allocation27_spill] sm:$0xff] %v6983_v24  ;;  %v7012_v56 = vpop.permute.xlu2 %1858  ;;  %v7023_v10 = vmul.f32 %v1312_v14, %v11040_v60  ;;  %v11042_v16 = vld [vmem:[#allocation206_spill] sm:$0xff]  ;;  %v11043_v24 = vld [vmem:[#allocation100_spill] sm:$0xff]  ;;  %v11044_v48 = vld [vmem:[#allocation199_spill] sm:$0xff]  ;;  %1938 = vrot.lane.b32.xlu1 %v6583_v32, %s3378_s26 }
 0x4e6   : > { %11036 = vst [vmem:[#allocation357_spill] sm:$0xff] %v7012_v56  ;;  %v1305_v0 = vsel %vm4325_vm0, %v11042_v16, %v11041_v55  ;;  %v1307_v42 = vsel %vm4325_vm0, %v11044_v48, %v11043_v24  ;;  %v11045_v56 = vld [vmem:[#allocation23_spill] sm:$0xff]  ;;  %v11049_v23 = vld [vmem:[#allocation106_spill] sm:$0xff]  ;;  %v11051_v16 = vld [vmem:[#allocation12_spill] sm:$0xff] }
 0x4e7   : > { %v7014_v11 = vpop.permute.xlu1 %1758  ;;  %v11047_v59 = vld [vmem:[#allocation155_spill] sm:$0xff]  ;;  %v11050_v60 = vld [vmem:[#allocation202_spill] sm:$0xff]  ;;  %v7046_v35 = vmul.f32 %v1302_v50, %v11051_v16  ;;  %v1311_v50 = vsel %vm4325_vm0, %v11058_v7, %v11057_v13 }
 0x4e8   : > { %11037 = vst [vmem:[#allocation356_spill] sm:$0xff] %v7014_v11  ;;  %v11046_v11 = vld [vmem:[#allocation220_spill] sm:$0xff]  ;;  %v1308_v14 = vsel %vm4325_vm0, %v11048_v57, %v11047_v59  ;;  %v1310_v55 = vsel %vm4325_vm0, %v11050_v60, %v11049_v23  ;;  %v11052_v44 = vld [vmem:[#allocation15_spill] sm:$0xff]  ;;  %v11053_v48 = vld [vmem:[#allocation62_spill] sm:$0xff] }
 0x4e9   : > { %v1318_v47 = vsel %vm4325_vm0, %v11046_v11, %v11045_v56  ;;  %v7049_v24 = vmul.f32 %v1304_v2, %v11052_v44  ;;  %v7052_v15 = vmul.f32 %v1315_v9, %v11053_v48  ;;  %v11054_v56 = vld [vmem:[#allocation26_spill] sm:$0xff]  ;;  %v11055_v11 = vld [vmem:[#allocation223_spill] sm:$0xff]  ;;  %v11056_v59 = vld [vmem:[#allocation97_spill] sm:$0xff]  ;;  %1940 = vrot.lane.b32.xlu2 %v6603_v4, %s3378_s26 }
 0x4ea   : > { %v1321_v19 = vsel %vm4325_vm0, %v11055_v11, %v11054_v56  ;;  %v7059_v57 = vmul.f32 %v1305_v0, %v11056_v59  ;;  %v11059_v23 = vld [vmem:[#allocation112_spill] sm:$0xff]  ;;  %v11061_v2 = vld [vmem:[#allocation29_spill] sm:$0xff]  ;;  %v11062_v9 = vld [vmem:[#allocation226_spill] sm:$0xff]  ;;  %1926 = vrot.lane.b32.xlu0 %v6965_v20, %s3381_s7 }
 0x4eb   : > { %v11060_v60 = vld [vmem:[#allocation204_spill] sm:$0xff]  ;;  %v1324_v16 = vsel %vm4325_vm0, %v11062_v9, %v11061_v2  ;;  %v11063_v0 = vld [vmem:[#allocation53_spill] sm:$0xff]  ;;  %v11066_v13 = vld [vmem:[#allocation58_spill] sm:$0xff] }
 0x4ec   : > { %v1313_v44 = vsel %vm4325_vm0, %v11060_v60, %v11059_v23  ;;  %v7076_v48 = vmul.f32 %v1307_v42, %v11063_v0  ;;  %v11064_v56 = vld [vmem:[#allocation65_spill] sm:$0xff]  ;;  %v7082_v7 = vmul.f32 %v1308_v14, %v11066_v13  ;;  %v11067_v59 = vld [vmem:[#allocation103_spill] sm:$0xff]  ;;  %v11068_v23 = vld [vmem:[#allocation68_spill] sm:$0xff]  ;;  %v7102_v14 = vpop.permute.xlu0 %1762 }
 0x4ed   : > { %v7079_v11 = vmul.f32 %v1318_v47, %v11064_v56  ;;  %v7085_v41 = vmul.f32 %v1310_v55, %v11067_v59  ;;  %v7088_v60 = vmul.f32 %v1321_v19, %v11068_v23  ;;  %v11071_v2 = vld [vmem:[#allocation215_spill] sm:$0xff]  ;;  %v11072_v20 = vld [vmem:[#allocation118_spill] sm:$0xff]  ;;  %11074 = vst [vmem:[#allocation111_spill] sm:$0xff] %v7102_v14  ;;  %v11075_v19 = vld [vmem:[#allocation61_spill] sm:$0xff]  ;;  %1944 = vrot.lane.b32.xlu1 %v6615_v25, %s3378_s26 }
 0x4ee   : > { %v1314_v9 = vsel %vm4325_vm0, %v11071_v2, %v11070_v6  ;;  %v11073_v42 = vld [vmem:[#allocation207_spill] sm:$0xff]  ;;  %v7105_v55 = vmul.f32 %v1311_v50, %v11075_v19  ;;  %v11076_v0 = vld [vmem:[#allocation109_spill] sm:$0xff]  ;;  %v11079_v59 = vld [vmem:[#allocation32_spill] sm:$0xff] }
 0x4ef   : > { %11065 = vst [vmem:[#allocation363_spill] sm:$0xff] %v7079_v11  ;;  %v1316_v47 = vsel %vm4325_vm0, %v11073_v42, %v11072_v20  ;;  %v7108_v56 = vmul.f32 %v1313_v44, %v11076_v0  ;;  %v11077_v6 = vld [vmem:[#allocation71_spill] sm:$0xff]  ;;  %v11080_v23 = vld [vmem:[#allocation229_spill] sm:$0xff]  ;;  %v11082_v42 = vld [vmem:[#allocation218_spill] sm:$0xff]  ;;  %v7135_v51 = vpop.permute.xlu1 %1764 }
 0x4f0   : > { %11069 = vst [vmem:[#allocation362_spill] sm:$0xff] %v7088_v60  ;;  %v7111_v13 = vmul.f32 %v1324_v16, %v11077_v6  ;;  %v1327_v20 = vsel %vm4325_vm0, %v11080_v23, %v11079_v59  ;;  %v11081_v2 = vld [vmem:[#allocation163_spill] sm:$0xff]  ;;  %v11083_v4 = vld [vmem:[#allocation124_spill] sm:$0xff]  ;;  %v11084_v14 = vld [vmem:[#allocation210_spill] sm:$0xff]  ;;  %v7133_v23 = vpop.permute.xlu2 %1864 }
 0x4f1   : > { %v1317_v32 = vsel %vm4325_vm0, %v11082_v42, %v11081_v2  ;;  %v1319_v50 = vsel %vm4325_vm0, %v11084_v14, %v11083_v4  ;;  %v11085_v44 = vld [vmem:[#allocation35_spill] sm:$0xff]  ;;  %v11086_v19 = vld [vmem:[#allocation232_spill] sm:$0xff]  ;;  %v11087_v0 = vld [vmem:[#allocation166_spill] sm:$0xff]  ;;  %11089 = vst [vmem:[#allocation171_spill] sm:$0xff] %v7133_v23  ;;  %1946 = vrot.lane.b32.xlu2 %v6633_v17, %s3378_s26 }
 0x4f2   : > { %11078 = vst [vmem:[#allocation104_spill] sm:$0xff] %v7111_v13  ;;  %v1330_v16 = vsel %vm4325_vm0, %v11086_v19, %v11085_v44  ;;  %v11088_v6 = vld [vmem:[#allocation221_spill] sm:$0xff]  ;;  %v11091_v2 = vld [vmem:[#allocation64_spill] sm:$0xff]  ;;  %v7141_v13 = vmul.f32 %v1316_v47, %v11092_v37  ;;  %v11093_v4 = vld [vmem:[#allocation130_spill] sm:$0xff]  ;;  %1942 = vrot.lane.b32.xlu0 %v6613_v40, %s3378_s26 }
 0x4f3   : > { %v1320_v59 = vsel %vm4325_vm0, %v11088_v6, %v11087_v0  ;;  %11090 = vst [vmem:[#allocation54_spill] sm:$0xff] %v7135_v51  ;;  %v7138_v42 = vmul.f32 %v1314_v9, %v11091_v2  ;;  %v11094_v14 = vld [vmem:[#allocation213_spill] sm:$0xff]  ;;  %v11095_v19 = vld [vmem:[#allocation38_spill] sm:$0xff]  ;;  %v11101_v37 = vld [vmem:[#allocation136_spill] sm:$0xff] }
 0x4f4   : > { %v1322_v44 = vsel %vm4325_vm0, %v11094_v14, %v11093_v4  ;;  %v1333_v0 = vsel %vm4325_vm0, %v11096_v1, %v11095_v19  ;;  %v11097_v6 = vld [vmem:[#allocation74_spill] sm:$0xff]  ;;  %v11099_v51 = vld [vmem:[#allocation169_spill] sm:$0xff]  ;;  %v11102_v47 = vld [vmem:[#allocation216_spill] sm:$0xff]  ;;  %v7167_v1 = vmul.f32 %v1317_v32, %v11105_v45 }
 0x4f5   : > { %v7152_v23 = vmul.f32 %v1327_v20, %v11097_v6  ;;  %v1323_v9 = vsel %vm4325_vm0, %v11100_v53, %v11099_v51  ;;  %v1325_v2 = vsel %vm4325_vm0, %v11102_v47, %v11101_v37  ;;  %v11104_v4 = vld [vmem:[#allocation238_spill] sm:$0xff]  ;;  %v11106_v20 = vld [vmem:[#allocation121_spill] sm:$0xff]  ;;  %v11107_v6 = vld [vmem:[#allocation76_spill] sm:$0xff]  ;;  %v7179_v52 = vmul.f32 %v1322_v44, %v11111_v18  ;;  %1950 = vrot.lane.b32.xlu1 %v6645_v62, %s3378_s26 }
 0x4f6   : > { %v1336_v14 = vsel %vm4325_vm0, %v11104_v4, %v11103_v61  ;;  %v7170_v19 = vmul.f32 %v1319_v50, %v11106_v20  ;;  %v11109_v51 = vld [vmem:[#allocation70_spill] sm:$0xff]  ;;  %v11112_v37 = vld [vmem:[#allocation41_spill] sm:$0xff]  ;;  %v11114_v60 = vld [vmem:[#allocation172_spill] sm:$0xff] }
 0x4f7   : > { %11098 = vst [vmem:[#allocation365_spill] sm:$0xff] %v7152_v23  ;;  %v7173_v23 = vmul.f32 %v1330_v16, %v11107_v6  ;;  %v7176_v53 = vmul.f32 %v1320_v59, %v11109_v51  ;;  %v7182_v47 = vmul.f32 %v1333_v0, %v11112_v37  ;;  %v11115_v61 = vld [vmem:[#allocation227_spill] sm:$0xff]  ;;  %v11116_v32 = vld [vmem:[#allocation142_spill] sm:$0xff]  ;;  %v11118_v59 = vld [vmem:[#allocation73_spill] sm:$0xff] }
 0x4f8   : > { %v1326_v45 = vsel %vm4325_vm0, %v11115_v61, %v11114_v60  ;;  %v11117_v50 = vld [vmem:[#allocation219_spill] sm:$0xff]  ;;  %v7195_v4 = vmul.f32 %v1323_v9, %v11118_v59  ;;  %v11120_v18 = vld [vmem:[#allocation133_spill] sm:$0xff]  ;;  %v11124_v51 = vld [vmem:[#allocation254_spill] sm:$0xff] }
 0x4f9   : > { %11108 = vst [vmem:[#allocation364_spill] sm:$0xff] %v7173_v23  ;;  %v1328_v16 = vsel %vm4325_vm0, %v11117_v50, %v11116_v32  ;;  %v7198_v44 = vmul.f32 %v1325_v2, %v11120_v18  ;;  %v11121_v0 = vld [vmem:[#allocation47_spill] sm:$0xff]  ;;  %v11126_v61 = vld [vmem:[#allocation230_spill] sm:$0xff]  ;;  %v11128_v40 = vld [vmem:[#allocation257_spill] sm:$0xff]  ;;  %v7223_v18 = vpop.permute.xlu0 %1768  ;;  %1952 = vrot.lane.b32.xlu2 %v6663_v36, %s3378_s26 }
 0x4fa   : > { %11110 = vst [vmem:[#allocation114_spill] sm:$0xff] %v7176_v53  ;;  %v7201_v20 = vmul.f32 %v1336_v14, %v11121_v0  ;;  %v11123_v6 = vld [vmem:[#allocation283_spill] sm:$0xff]  ;;  %v11127_v50 = vld [vmem:[#allocation286_spill] sm:$0xff]  ;;  %v11130_v59 = vld [vmem:[#allocation260_spill] sm:$0xff]  ;;  %1948 = vrot.lane.b32.xlu0 %v6643_v49, %s3378_s26 }
 0x4fb   : > { %11113 = vst [vmem:[#allocation30_spill] sm:$0xff] %v7182_v47  ;;  %v1538_v60 = vsel %vm4325_vm0, %v11124_v51, %v11123_v6  ;;  %v11125_v37 = vld [vmem:[#allocation247_spill] sm:$0xff]  ;;  %v1541_v9 = vsel %vm4325_vm0, %v11128_v40, %v11127_v50  ;;  %v11140_v25 = vld [vmem:[#allocation233_spill] sm:$0xff]  ;;  %v11144_v47 = vld [vmem:[#allocation236_spill] sm:$0xff] }
 0x4fc   : > { %11119 = vst [vmem:[#allocation369_spill] sm:$0xff] %v7195_v4  ;;  %v1329_v32 = vsel %vm4325_vm0, %v11126_v61, %v11125_v37  ;;  %v11129_v2 = vld [vmem:[#allocation187_spill] sm:$0xff]  ;;  %v11136_v61 = vld [vmem:[#allocation222_spill] sm:$0xff] }
 0x4fd   : > { %11122 = vst [vmem:[#allocation368_spill] sm:$0xff] %v7201_v20  ;;  %v1544_v14 = vsel %vm4325_vm0, %v11130_v59, %v11129_v2  ;;  %v11132_v0 = vld [vmem:[#allocation75_spill] sm:$0xff]  ;;  %v11139_v20 = vld [vmem:[#allocation249_spill] sm:$0xff]  ;;  %v11153_v11 = vld [vmem:[#allocation90_spill] sm:$0xff]  ;;  %1956 = vrot.lane.b32.xlu1 %v6675_v26, %s3378_s26 }
 0x4fe   : > { %11131 = vst [vmem:[#allocation375_spill] sm:$0xff] %v7223_v18  ;;  %v7226_v6 = vmul.f32 %v1326_v45, %v11132_v0  ;;  %v11134_v51 = vld [vmem:[#allocation139_spill] sm:$0xff]  ;;  %v1332_v18 = vsel %vm4325_vm0, %v11140_v25, %v11139_v20  ;;  %v11141_v45 = vld [vmem:[#allocation152_spill] sm:$0xff]  ;;  %v11142_v0 = vld [vmem:[#allocation225_spill] sm:$0xff]  ;;  %v1584_v46 = vmul.f32 %v1544_v14, %v11153_v11 }
 0x4ff   : > { %v7229_v37 = vmul.f32 %v1328_v16, %v11134_v51  ;;  %v11135_v40 = vld [vmem:[#allocation147_spill] sm:$0xff]  ;;  %v1334_v16 = vsel %vm4325_vm0, %v11142_v0, %v11141_v45  ;;  %v11150_v25 = vld [vmem:[#allocation252_spill] sm:$0xff]  ;;  %v11152_v45 = vld [vmem:[#allocation85_spill] sm:$0xff] }
 0x500   : > { %11133 = vst [vmem:[#allocation374_spill] sm:$0xff] %v7226_v6  ;;  %v1331_v50 = vsel %vm4325_vm0, %v11136_v61, %v11135_v40  ;;  %v11137_v2 = vld [vmem:[#allocation299_spill] sm:$0xff]  ;;  %v11145_v61 = vld [vmem:[#allocation80_spill] sm:$0xff]  ;;  %v7252_v6 = vpop.permute.xlu2 %1870  ;;  %v1581_v0 = vmul.f32 %v1541_v9, %v11152_v45  ;;  %v11161_v9 = vld [vmem:[#allocation145_spill] sm:$0xff] }
 0x501   : > { %v11138_v59 = vld [vmem:[#allocation263_spill] sm:$0xff]  ;;  %v1578_v23 = vmul.f32 %v1538_v60, %v11145_v61  ;;  %11146 = vst [vmem:[#allocation117_spill] sm:$0xff] %v7252_v6  ;;  %v11151_v20 = vld [vmem:[#allocation228_spill] sm:$0xff]  ;;  %v11164_v45 = vld [vmem:[#allocation82_spill] sm:$0xff]  ;;  %1958 = vrot.lane.b32.xlu2 %v6693_v33, %s3378_s26 }
 0x502   : > { %v1547_v17 = vsel %vm4325_vm0, %v11138_v59, %v11137_v2  ;;  %v11143_v51 = vld [vmem:[#allocation251_spill] sm:$0xff]  ;;  %v7254_v2 = vpop.permute.xlu1 %1770  ;;  %v11148_v59 = vld [vmem:[#allocation77_spill] sm:$0xff]  ;;  %v1337_v53 = vsel %vm4325_vm0, %v11151_v20, %v11150_v25  ;;  %v7279_v20 = vmul.f32 %v1331_v50, %v11161_v9  ;;  %v11197_v36 = vld [vmem:[#allocation358_spill] sm:$0xff]  ;;  %1954 = vrot.lane.b32.xlu0 %v6673_v43, %s3378_s26 }
 0x503   : > { %v1335_v40 = vsel %vm4325_vm0, %v11144_v47, %v11143_v51  ;;  %11147 = vst [vmem:[#allocation110_spill] sm:$0xff] %v7254_v2  ;;  %v7257_v4 = vmul.f32 %v1329_v32, %v11148_v59  ;;  %v1587_v47 = vmul.f32 %v1547_v17, %v11154_v22  ;;  %v11155_v51 = vld [vmem:[#allocation310_spill] sm:$0xff]  ;;  %v11156_v60 = vld [vmem:[#allocation175_spill] sm:$0xff]  ;;  %v11159_v59 = vld [vmem:[#allocation312_spill] sm:$0xff] }
 0x504   : > { %v1539_v61 = vsel %vm4325_vm0, %v11156_v60, %v11155_v51  ;;  %v11157_v6 = vld [vmem:[#allocation311_spill] sm:$0xff]  ;;  %v11158_v2 = vld [vmem:[#allocation266_spill] sm:$0xff]  ;;  %v7288_v51 = vmul.f32 %v1335_v40, %v11164_v45  ;;  %v11165_v60 = vld [vmem:[#allocation44_spill] sm:$0xff] }
 0x505   : > { %11149 = vst [vmem:[#allocation174_spill] sm:$0xff] %v7257_v4  ;;  %v1550_v32 = vsel %vm4325_vm0, %v11158_v2, %v11157_v6  ;;  %v11160_v4 = vld [vmem:[#allocation255_spill] sm:$0xff]  ;;  %v11163_v17 = vld [vmem:[#allocation78_spill] sm:$0xff]  ;;  %v7291_v27 = vmul.f32 %v1337_v53, %v11165_v60  ;;  %v7294_v6 = vadd.f32 %v1578_v23, %v6995_v38  ;;  %v11170_v40 = vld [vmem:[#allocation81_spill] sm:$0xff]  ;;  %1962 = vrot.lane.b32.xlu1 %v6705_v3, %s3378_s26 }
 0x506   : > { %v1540_v25 = vsel %vm4325_vm0, %v11160_v4, %v11159_v59  ;;  %v11162_v11 = vld [vmem:[#allocation79_spill] sm:$0xff]  ;;  %v7285_v14 = vmul.f32 %v1334_v16, %v11163_v17  ;;  %v11166_v2 = vld [vmem:[#allocation322_spill] sm:$0xff]  ;;  %v11167_v4 = vld [vmem:[#allocation248_spill] sm:$0xff]  ;;  %v1579_v9 = vmul.f32 %v1539_v61, %v11170_v40  ;;  %v7323_v61 = vadd.f32 %v1587_v47, %v7076_v48 }
 0x507   : > { %v7282_v22 = vmul.f32 %v1332_v18, %v11162_v11  ;;  %v1542_v50 = vsel %vm4325_vm0, %v11167_v4, %v11166_v2  ;;  %v11168_v59 = vld [vmem:[#allocation323_spill] sm:$0xff]  ;;  %v11169_v18 = vld [vmem:[#allocation269_spill] sm:$0xff]  ;;  %v11173_v23 = vld [vmem:[#allocation324_spill] sm:$0xff]  ;;  %v7314_v2 = vmax.f32 %v6929_v31, 0.0  ;;  %v7317_v4 = vadd.f32 %v1581_v0, %v7020_v58 }
 0x508   : > { %v1553_v16 = vsel %vm4325_vm0, %v11169_v18, %v11168_v59  ;;  %v11171_v53 = vld [vmem:[#allocation95_spill] sm:$0xff]  ;;  %v11172_v17 = vld [vmem:[#allocation241_spill] sm:$0xff]  ;;  %v11174_v45 = vld [vmem:[#allocation258_spill] sm:$0xff]  ;;  %v7320_v59 = vadd.f32 %v1584_v46, %v7049_v24 }
 0x509   : > { %v1590_v11 = vmul.f32 %v1550_v32, %v11171_v53  ;;  %v1580_v38 = vmul.f32 %v1540_v25, %v11172_v17  ;;  %v1543_v60 = vsel %vm4325_vm0, %v11174_v45, %v11173_v23  ;;  %11175 = vst [vmem:[#allocation57_spill] sm:$0xff] %v7314_v2  ;;  %v7329_v32 = vpop.permute.xlu0 %1774  ;;  %v11177_v25 = vld [vmem:[#allocation86_spill] sm:$0xff]  ;;  %v11178_v18 = vld [vmem:[#allocation101_spill] sm:$0xff]  ;;  %v11181_v24 = vld [vmem:[#allocation335_spill] sm:$0xff]  ;;  %1964 = vrot.lane.b32.xlu2 %v6723_v34, %s3378_s26 }
 0x50a   : > { %11176 = vst [vmem:[#allocation378_spill] sm:$0xff] %v7329_v32  ;;  %v1582_v31 = vmul.f32 %v1542_v50, %v11177_v25  ;;  %v1593_v40 = vmul.f32 %v1553_v16, %v11178_v18  ;;  %v11179_v58 = vld [vmem:[#allocation334_spill] sm:$0xff]  ;;  %v11182_v48 = vld [vmem:[#allocation272_spill] sm:$0xff]  ;;  %v11185_v45 = vld [vmem:[#allocation261_spill] sm:$0xff]  ;;  %1960 = vrot.lane.b32.xlu0 %v6703_v12, %s3378_s26 }
 0x50b   : > { %v11180_v0 = vld [vmem:[#allocation250_spill] sm:$0xff]  ;;  %v1556_v47 = vsel %vm4325_vm0, %v11182_v48, %v11181_v24  ;;  %v11183_v53 = vld [vmem:[#allocation156_spill] sm:$0xff]  ;;  %v11187_v25 = vld [vmem:[#allocation253_spill] sm:$0xff]  ;;  %v7356_v24 = vpop.permute.xlu1 %1776  ;;  %v7362_v48 = vadd.f32 %v1590_v11, %v7085_v41 }
 0x50c   : > { %v1545_v46 = vsel %vm4325_vm0, %v11180_v0, %v11179_v58  ;;  %v1583_v17 = vmul.f32 %v1543_v60, %v11183_v53  ;;  %v11184_v23 = vld [vmem:[#allocation336_spill] sm:$0xff]  ;;  %v11186_v50 = vld [vmem:[#allocation346_spill] sm:$0xff]  ;;  %v11188_v18 = vld [vmem:[#allocation347_spill] sm:$0xff]  ;;  %v7354_v0 = vpop.permute.xlu2 %1876  ;;  %11191 = vst [vmem:[#allocation120_spill] sm:$0xff] %v7356_v24  ;;  %v7359_v60 = vadd.f32 %v1579_v9, %v7017_v30  ;;  %v7365_v53 = vadd.f32 %v1580_v38, %v6986_v21 }
 0x50d   : > { %v1546_v62 = vsel %vm4325_vm0, %v11185_v45, %v11184_v23  ;;  %v1548_v16 = vsel %vm4325_vm0, %v11187_v25, %v11186_v50  ;;  %v11189_v49 = vld [vmem:[#allocation275_spill] sm:$0xff]  ;;  %11190 = vst [vmem:[#allocation377_spill] sm:$0xff] %v7354_v0  ;;  %v11193_v23 = vld [vmem:[#allocation348_spill] sm:$0xff]  ;;  %v11200_v41 = vld [vmem:[#allocation278_spill] sm:$0xff] }
 0x50e   : > { %v1559_v58 = vsel %vm4325_vm0, %v11189_v49, %v11188_v18  ;;  %11192 = vst [vmem:[#allocation33_spill] sm:$0xff] %v7362_v48  ;;  %v11194_v45 = vld [vmem:[#allocation264_spill] sm:$0xff]  ;;  %v11195_v25 = vld [vmem:[#allocation87_spill] sm:$0xff]  ;;  %v11202_v24 = vld [vmem:[#allocation158_spill] sm:$0xff] }
 0x50f   : > { %v1549_v50 = vsel %vm4325_vm0, %v11194_v45, %v11193_v23  ;;  %v1585_v49 = vmul.f32 %v1545_v46, %v11195_v25  ;;  %v11196_v18 = vld [vmem:[#allocation107_spill] sm:$0xff]  ;;  %v11198_v2 = vld [vmem:[#allocation256_spill] sm:$0xff]  ;;  %v1588_v32 = vmul.f32 %v1548_v16, %v11202_v24  ;;  %v11203_v48 = vld [vmem:[#allocation113_spill] sm:$0xff]  ;;  %v7389_v25 = vadd.f32 %v1582_v31, %v7046_v35 }
 0x510   : > { %v1596_v0 = vmul.f32 %v1556_v47, %v11196_v18  ;;  %v1551_v30 = vsel %vm4325_vm0, %v11198_v2, %v11197_v36  ;;  %v11199_v9 = vld [vmem:[#allocation359_spill] sm:$0xff]  ;;  %v1599_v23 = vmul.f32 %v1559_v58, %v11203_v48  ;;  %v11204_v45 = vld [vmem:[#allocation360_spill] sm:$0xff]  ;;  %v7392_v36 = vadd.f32 %v1593_v40, %v7108_v56  ;;  %v11206_v18 = vld [vmem:[#allocation22_spill] sm:$0xff] }
 0x511   : > { %v1562_v21 = vsel %vm4325_vm0, %v11200_v41, %v11199_v9  ;;  %v11201_v11 = vld [vmem:[#allocation19_spill] sm:$0xff]  ;;  %v7395_v2 = vadd.f32 %v1583_v17, %v6989_v28  ;;  %v11207_v16 = vld [vmem:[#allocation161_spill] sm:$0xff]  ;;  %v11209_v9 = vld [vmem:[#allocation370_spill] sm:$0xff]  ;;  %v7411_v40 = vmax.f32 %v6935_v29, 0.0  ;;  %v7414_v17 = vadd.f32 %v1585_v49, %v7059_v57 }
 0x512   : > { %v1586_v38 = vmul.f32 %v1546_v62, %v11201_v11  ;;  %v11205_v46 = vld [vmem:[#allocation267_spill] sm:$0xff]  ;;  %v1589_v62 = vmul.f32 %v1549_v50, %v11206_v18  ;;  %v1591_v58 = vmul.f32 %v1551_v30, %v11207_v16  ;;  %v11212_v56 = vld [vmem:[#allocation281_spill] sm:$0xff]  ;;  %v7417_v50 = vadd.f32 %v1596_v0, %v7141_v13  ;;  %v7424_v11 = vpop.permute.xlu0 %1860  ;;  %v11216_v13 = vld [vmem:[#allocation372_spill] sm:$0xff] }
 0x513   : > { %v1552_v47 = vsel %vm4325_vm0, %v11205_v46, %v11204_v45  ;;  %v11208_v24 = vld [vmem:[#allocation119_spill] sm:$0xff]  ;;  %11213 = vst [vmem:[#allocation381_spill] sm:$0xff] %v7411_v40  ;;  %v11214_v30 = vld [vmem:[#allocation25_spill] sm:$0xff]  ;;  %v7430_v29 = vadd.f32 %v1588_v32, %v7082_v7  ;;  %v7433_v57 = vadd.f32 %v1599_v23, %v7170_v19  ;;  %v11217_v0 = vld [vmem:[#allocation270_spill] sm:$0xff]  ;;  %v7451_v23 = vpop.permute.xlu1 %1862 }
 0x514   : > { %v1602_v48 = vmul.f32 %v1562_v21, %v11208_v24  ;;  %v11210_v41 = vld [vmem:[#allocation259_spill] sm:$0xff]  ;;  %v1592_v21 = vmul.f32 %v1552_v47, %v11214_v30  ;;  %11215 = vst [vmem:[#allocation380_spill] sm:$0xff] %v7424_v11  ;;  %v7427_v45 = vadd.f32 %v1586_v38, %v6992_v54  ;;  %v1555_v49 = vsel %vm4325_vm0, %v11217_v0, %v11216_v13  ;;  %v11218_v46 = vld [vmem:[#allocation164_spill] sm:$0xff]  ;;  %v11219_v18 = vld [vmem:[#allocation125_spill] sm:$0xff]  ;;  %v7449_v32 = vpop.permute.xlu2 %1882 }
 0x515   : > { %v1554_v35 = vsel %vm4325_vm0, %v11210_v41, %v11209_v9  ;;  %v11211_v31 = vld [vmem:[#allocation371_spill] sm:$0xff]  ;;  %v11220_v24 = vld [vmem:[#allocation382_spill] sm:$0xff]  ;;  %v11223_v7 = vld [vmem:[#allocation284_spill] sm:$0xff]  ;;  %11224 = vst [vmem:[#allocation387_spill] sm:$0xff] %v7449_v32  ;;  %v7454_v41 = vadd.f32 %v1589_v62, %v6998_v5 }
 0x516   : > { %v1565_v28 = vsel %vm4325_vm0, %v11212_v56, %v11211_v31  ;;  %v1594_v47 = vmul.f32 %v1554_v35, %v11218_v46  ;;  %v11221_v9 = vld [vmem:[#allocation262_spill] sm:$0xff]  ;;  %v11222_v38 = vld [vmem:[#allocation383_spill] sm:$0xff]  ;;  %11225 = vst [vmem:[#allocation386_spill] sm:$0xff] %v7451_v23  ;;  %v7457_v35 = vadd.f32 %v1591_v58, %v7105_v55  ;;  %v7460_v31 = vadd.f32 %v1602_v48, %v7179_v52  ;;  %v11226_v56 = vld [vmem:[#allocation384_spill] sm:$0xff] }
 0x517   : > { %v1605_v16 = vmul.f32 %v1565_v28, %v11219_v18  ;;  %v1557_v54 = vsel %vm4325_vm0, %v11221_v9, %v11220_v24  ;;  %v1568_v19 = vsel %vm4325_vm0, %v11223_v7, %v11222_v38  ;;  %v11227_v28 = vld [vmem:[#allocation273_spill] sm:$0xff]  ;;  %v7467_v13 = vadd.f32 %v1592_v21, %v7023_v10  ;;  %v11228_v0 = vld [vmem:[#allocation28_spill] sm:$0xff]  ;;  %v11229_v18 = vld [vmem:[#allocation394_spill] sm:$0xff] }
 0x518   : > { %v1558_v30 = vsel %vm4325_vm0, %v11227_v28, %v11226_v56  ;;  %v1595_v46 = vmul.f32 %v1555_v49, %v11228_v0  ;;  %v11230_v24 = vld [vmem:[#allocation265_spill] sm:$0xff]  ;;  %v11231_v55 = vld [vmem:[#allocation395_spill] sm:$0xff]  ;;  %v11235_v7 = vld [vmem:[#allocation396_spill] sm:$0xff]  ;;  %v7489_v0 = vadd.f32 %v1594_v47, %v7138_v42 }
 0x519   : > { %v1560_v5 = vsel %vm4325_vm0, %v11230_v24, %v11229_v18  ;;  %v11232_v62 = vld [vmem:[#allocation287_spill] sm:$0xff]  ;;  %v11236_v56 = vld [vmem:[#allocation276_spill] sm:$0xff]  ;;  %v11237_v21 = vld [vmem:[#allocation406_spill] sm:$0xff]  ;;  %v7492_v18 = vadd.f32 %v1605_v16, %v7198_v44 }
 0x51a   : > { %v1571_v52 = vsel %vm4325_vm0, %v11232_v62, %v11231_v55  ;;  %v11233_v58 = vld [vmem:[#allocation167_spill] sm:$0xff]  ;;  %v1561_v10 = vsel %vm4325_vm0, %v11236_v56, %v11235_v7  ;;  %v11238_v49 = vld [vmem:[#allocation268_spill] sm:$0xff]  ;;  %v11243_v7 = vld [vmem:[#allocation137_spill] sm:$0xff] }
 0x51b   : > { %v1597_v48 = vmul.f32 %v1557_v54, %v11233_v58  ;;  %v11234_v9 = vld [vmem:[#allocation131_spill] sm:$0xff]  ;;  %v1563_v28 = vsel %vm4325_vm0, %v11238_v49, %v11237_v21  ;;  %v11242_v58 = vld [vmem:[#allocation170_spill] sm:$0xff]  ;;  %v1611_v56 = vmul.f32 %v1571_v52, %v11243_v7  ;;  %v11244_v21 = vld [vmem:[#allocation408_spill] sm:$0xff]  ;;  %v7512_v49 = vmax.f32 %v6955_v8, 0.0 }
 0x51c   : > { %v1608_v38 = vmul.f32 %v1568_v19, %v11234_v9  ;;  %v11239_v24 = vld [vmem:[#allocation31_spill] sm:$0xff]  ;;  %v11241_v19 = vld [vmem:[#allocation288_spill] sm:$0xff]  ;;  %v1600_v9 = vmul.f32 %v1560_v5, %v11242_v58  ;;  %v11246_v47 = vld [vmem:[#allocation418_spill] sm:$0xff]  ;;  %v7523_v58 = vpop.permute.xlu0 %1866 }
 0x51d   : > { %v1598_v54 = vmul.f32 %v1558_v30, %v11239_v24  ;;  %v11240_v55 = vld [vmem:[#allocation407_spill] sm:$0xff]  ;;  %11248 = vst [vmem:[#allocation123_spill] sm:$0xff] %v7512_v49  ;;  %v7515_v24 = vadd.f32 %v1595_v46, %v7052_v15  ;;  %v7526_v7 = vadd.f32 %v1597_v48, %v7167_v1  ;;  %v11252_v15 = vld [vmem:[#allocation148_spill] sm:$0xff]  ;;  %v11268_v32 = vld [vmem:[#allocation294_spill] sm:$0xff] }
 0x51e   : > { %v1574_v62 = vsel %vm4325_vm0, %v11241_v19, %v11240_v55  ;;  %v11245_v42 = vld [vmem:[#allocation279_spill] sm:$0xff]  ;;  %v11249_v55 = vld [vmem:[#allocation34_spill] sm:$0xff]  ;;  %v11250_v19 = vld [vmem:[#allocation173_spill] sm:$0xff]  ;;  %11251 = vst [vmem:[#allocation116_spill] sm:$0xff] %v7523_v58  ;;  %v7529_v8 = vadd.f32 %v1608_v38, %v7229_v37  ;;  %v7546_v38 = vpop.permute.xlu2 %1888 }
 0x51f   : > { %v1564_v44 = vsel %vm4325_vm0, %v11245_v42, %v11244_v21  ;;  %v11247_v16 = vld [vmem:[#allocation271_spill] sm:$0xff]  ;;  %v1601_v5 = vmul.f32 %v1561_v10, %v11249_v55  ;;  %v1603_v52 = vmul.f32 %v1563_v28, %v11250_v19  ;;  %v1614_v46 = vmul.f32 %v1574_v62, %v11252_v15  ;;  %v11253_v10 = vld [vmem:[#allocation444_spill] sm:$0xff]  ;;  %v11254_v21 = vld [vmem:[#allocation37_spill] sm:$0xff]  ;;  %11260 = vst [vmem:[#allocation177_spill] sm:$0xff] %v7546_v38  ;;  %v7548_v62 = vpop.permute.xlu1 %1868 }
 0x520   : > { %v1566_v30 = vsel %vm4325_vm0, %v11247_v16, %v11246_v47  ;;  %v1779_v28 = vsel %vm4325_vm0, %v11253_v10, %v6557_v63  ;;  %v1604_v42 = vmul.f32 %v1564_v44, %v11254_v21  ;;  %v11255_v47 = vld [vmem:[#allocation176_spill] sm:$0xff]  ;;  %v11256_v55 = vld [vmem:[#allocation419_spill] sm:$0xff]  ;;  %11261 = vst [vmem:[#allocation60_spill] sm:$0xff] %v7548_v62  ;;  %v11263_v44 = vld [vmem:[#allocation114_spill] sm:$0xff] }
 0x521   : > { %v1606_v16 = vmul.f32 %v1566_v30, %v11255_v47  ;;  %v11257_v19 = vld [vmem:[#allocation300_spill] sm:$0xff]  ;;  %v11258_v48 = vld [vmem:[#allocation475_spill] sm:$0xff]  ;;  %v7554_v10 = vadd.f32 %v1600_v9, %v11263_v44  ;;  %v7557_v30 = vadd.f32 %v1611_v56, %v7279_v20  ;;  %v11265_v47 = vld [vmem:[#allocation282_spill] sm:$0xff]  ;;  %v7577_v56 = vadd.f32 %v1614_v46, %v7285_v14 }
 0x522   : > { %v1577_v1 = vsel %vm4325_vm0, %v11257_v19, %v11256_v55  ;;  %v11259_v3 = vld [vmem:[#allocation447_spill] sm:$0xff]  ;;  %v11264_v21 = vld [vmem:[#allocation420_spill] sm:$0xff]  ;;  %v11266_v19 = vld [vmem:[#allocation362_spill] sm:$0xff] }
 0x523   : > { %v1782_v37 = vsel %vm4325_vm0, %v11259_v3, %v11258_v48  ;;  %v11262_v15 = vld [vmem:[#allocation363_spill] sm:$0xff]  ;;  %v1567_v55 = vsel %vm4325_vm0, %v11265_v47, %v11264_v21  ;;  %v7564_v3 = vadd.f32 %v1601_v5, %v11266_v19  ;;  %v11267_v48 = vld [vmem:[#allocation369_spill] sm:$0xff]  ;;  %v11270_v9 = vld [vmem:[#allocation450_spill] sm:$0xff] }
 0x524   : > { %v7551_v63 = vadd.f32 %v1598_v54, %v11262_v15  ;;  %v7567_v38 = vadd.f32 %v1603_v52, %v11267_v48  ;;  %v7570_v54 = vmul.f32 %v1779_v28, %v11268_v32  ;;  %v11269_v15 = vld [vmem:[#allocation190_spill] sm:$0xff]  ;;  %v11271_v44 = vld [vmem:[#allocation149_spill] sm:$0xff]  ;;  %v11272_v21 = vld [vmem:[#allocation304_spill] sm:$0xff] }
 0x525   : > { %v1785_v20 = vsel %vm4325_vm0, %v11270_v9, %v11269_v15  ;;  %v1617_v12 = vmul.f32 %v1577_v1, %v11271_v44  ;;  %v7581_v47 = vmul.f32 %v1782_v37, %v11272_v21  ;;  %v11273_v5 = vld [vmem:[#allocation292_spill] sm:$0xff]  ;;  %v11274_v19 = vld [vmem:[#allocation453_spill] sm:$0xff]  ;;  %v11276_v48 = vld [vmem:[#allocation374_spill] sm:$0xff] }
 0x526   : > { %v1788_v52 = vsel %vm4325_vm0, %v11274_v19, %v11273_v5  ;;  %v11275_v32 = vld [vmem:[#allocation104_spill] sm:$0xff]  ;;  %v7591_v26 = vadd.f32 %v1606_v16, %v11276_v48  ;;  %v11278_v14 = vld [vmem:[#allocation239_spill] sm:$0xff]  ;;  %v11279_v46 = vld [vmem:[#allocation442_spill] sm:$0xff]  ;;  %v2179_v43 = vsub.f32 %v7359_v60, %v7570_v54 }
 0x527   : > { %v7588_v28 = vadd.f32 %v1604_v42, %v11275_v32  ;;  %v11277_v15 = vld [vmem:[#allocation40_spill] sm:$0xff]  ;;  %v1778_v1 = vsel %vm4325_vm0, %v11279_v46, %v11278_v14  ;;  %v11280_v37 = vld [vmem:[#allocation159_spill] sm:$0xff]  ;;  %v11281_v44 = vld [vmem:[#allocation430_spill] sm:$0xff]  ;;  %v2182_v60 = vsub.f32 %v7389_v25, %v7581_v47 }
 0x528   : > { %v1607_v9 = vmul.f32 %v1567_v55, %v11277_v15  ;;  %1966 = vrot.lane.b32.xlu0 %v11280_v37, %s3378_s26  ;;  %v11282_v21 = vld [vmem:[#allocation274_spill] sm:$0xff]  ;;  %v11283_v42 = vld [vmem:[#allocation432_spill] sm:$0xff]  ;;  %v11284_v19 = vld [vmem:[#allocation285_spill] sm:$0xff] }
 0x529   : > { %v1569_v5 = vsel %vm4325_vm0, %v11282_v21, %v11281_v44  ;;  %v1570_v16 = vsel %vm4325_vm0, %v11284_v19, %v11283_v42  ;;  %v11285_v32 = vld [vmem:[#allocation318_spill] sm:$0xff]  ;;  %v11286_v48 = vld [vmem:[#allocation303_spill] sm:$0xff]  ;;  %v11290_v44 = vld [vmem:[#allocation328_spill] sm:$0xff] }
 0x52a   : > { %v7609_v55 = vmul.f32 %v1785_v20, %v11285_v32  ;;  %v11287_v15 = vld [vmem:[#allocation431_spill] sm:$0xff]  ;;  %v11288_v46 = vld [vmem:[#allocation354_spill] sm:$0xff]  ;;  %v7621_v21 = vmul.f32 %v1788_v52, %v11290_v44  ;;  %v11292_v34 = vld [vmem:[#allocation456_spill] sm:$0xff]  ;;  %v7631_v32 = vpop.permute.xlu0 %1872 }
 0x52b   : > { %v1780_v14 = vsel %vm4325_vm0, %v11287_v15, %v11286_v48  ;;  %v7616_v37 = vmax.f32 %v11288_v46, 0.0  ;;  %v11291_v62 = vld [vmem:[#allocation302_spill] sm:$0xff]  ;;  %v11294_v19 = vld [vmem:[#allocation84_spill] sm:$0xff]  ;;  %11295 = vst [vmem:[#allocation388_spill] sm:$0xff] %v7631_v32  ;;  %v7634_v48 = vadd.f32 %v1617_v12, %v7291_v27  ;;  %v11297_v52 = vld [vmem:[#allocation289_spill] sm:$0xff] }
 0x52c   : > { %v1791_v20 = vsel %vm4325_vm0, %v11292_v34, %v11291_v62  ;;  %v11293_v42 = vld [vmem:[#allocation18_spill] sm:$0xff]  ;;  %1968 = vrot.lane.b32.xlu1 %v11294_v19, %s3378_s26  ;;  %v7639_v15 = vmul.f32 %v1778_v1, %v11297_v52  ;;  %v11298_v46 = vld [vmem:[#allocation151_spill] sm:$0xff]  ;;  %v11299_v44 = vld [vmem:[#allocation445_spill] sm:$0xff]  ;;  %v7658_v1 = vpop.permute.xlu2 %1894  ;;  %v7660_v52 = vpop.permute.xlu1 %1874 }
 0x52d   : > { %11289 = vst [vmem:[#allocation389_spill] sm:$0xff] %v7616_v37  ;;  %1970 = vrot.lane.b32.xlu2 %v11293_v42, %s3378_s26  ;;  %v1781_v34 = vsel %vm4325_vm0, %v11299_v44, %v11298_v46  ;;  %v11300_v62 = vld [vmem:[#allocation365_spill] sm:$0xff]  ;;  %v11301_v19 = vld [vmem:[#allocation179_spill] sm:$0xff]  ;;  %v11303_v12 = vld [vmem:[#allocation306_spill] sm:$0xff] }
 0x52e   : > { %11296 = vst [vmem:[#allocation126_spill] sm:$0xff] %v7634_v48  ;;  %v7646_v42 = vadd.f32 %v1607_v9, %v11300_v62  ;;  %v7649_v23 = vmul.f32 %v1569_v5, %v11301_v19  ;;  %v11302_v33 = vld [vmem:[#allocation295_spill] sm:$0xff]  ;;  %v11304_v37 = vld [vmem:[#allocation436_spill] sm:$0xff]  ;;  %v2185_v9 = vsub.f32 %v7414_v17, %v7609_v55  ;;  %v11308_v5 = vld [vmem:[#allocation342_spill] sm:$0xff]  ;;  %v7674_v62 = vmax.f32 %v2179_v43, 1e-06 }
 0x52f   : > { %v7652_v27 = vmul.f32 %v1780_v14, %v11302_v33  ;;  %v1783_v25 = vsel %vm4325_vm0, %v11304_v37, %v11303_v12  ;;  %11305 = vst [vmem:[#allocation36_spill] sm:$0xff] %v7658_v1  ;;  %v11307_v32 = vld [vmem:[#allocation72_spill] sm:$0xff]  ;;  %v7668_v19 = vmul.f32 %v1791_v20, %v11308_v5  ;;  %v11309_v33 = vld [vmem:[#allocation305_spill] sm:$0xff]  ;;  %v11310_v14 = vld [vmem:[#allocation459_spill] sm:$0xff]  ;;  %v2188_v37 = vsub.f32 %v7430_v29, %v7621_v21 }
 0x530   : > { %11306 = vst [vmem:[#allocation393_spill] sm:$0xff] %v7660_v52  ;;  %v7663_v46 = vmul.f32 %v1570_v16, %v11307_v32  ;;  %v1794_v44 = vsel %vm4325_vm0, %v11310_v14, %v11309_v33  ;;  %v11312_v12 = vld [vmem:[#allocation301_spill] sm:$0xff]  ;;  %v11314_v32 = vld [vmem:[#allocation448_spill] sm:$0xff]  ;;  %v7685_v20 = vmax.f32 %v2182_v60, 1e-06  ;;  %v2178_v5 = vsub.f32 %v7294_v6, %v7639_v15  ;;  %v11316_v52 = vld [vmem:[#allocation307_spill] sm:$0xff] }
 0x531   : > { %11311 = vst [vmem:[#allocation392_spill] sm:$0xff] %v7674_v62  ;;  %v7679_v1 = vmul.f32 %v1781_v34, %v11312_v12  ;;  %v11313_v16 = vld [vmem:[#allocation245_spill] sm:$0xff]  ;;  %v7690_v33 = vmul.f32 %v1783_v25, %v11316_v52  ;;  %v11317_v43 = vld [vmem:[#allocation315_spill] sm:$0xff]  ;;  %v11318_v14 = vld [vmem:[#allocation440_spill] sm:$0xff]  ;;  %v2180_v60 = vsub.f32 %v7365_v53, %v7652_v27  ;;  %3004 = vrcp.f32 %v7674_v62 }
 0x532   : > { %v1784_v17 = vsel %vm4325_vm0, %v11314_v32, %v11313_v16  ;;  %11315 = vst [vmem:[#allocation399_spill] sm:$0xff] %v7685_v20  ;;  %v1786_v29 = vsel %vm4325_vm0, %v11318_v14, %v11317_v43  ;;  %v11319_v34 = vld [vmem:[#allocation435_spill] sm:$0xff]  ;;  %v11320_v12 = vld [vmem:[#allocation277_spill] sm:$0xff]  ;;  %v11321_v16 = vld [vmem:[#allocation352_spill] sm:$0xff]  ;;  %v7711_v43 = vmax.f32 %v2185_v9, 1e-06  ;;  %v2191_v14 = vsub.f32 %v7457_v35, %v7668_v19 }
 0x533   : > { %v1572_v48 = vsel %vm4325_vm0, %v11320_v12, %v11319_v34  ;;  %v7703_v32 = vmul.f32 %v1794_v44, %v11321_v16  ;;  %v11322_v6 = vld [vmem:[#allocation314_spill] sm:$0xff]  ;;  %v11324_v52 = vld [vmem:[#allocation321_spill] sm:$0xff]  ;;  %v11328_v49 = vld [vmem:[#allocation451_spill] sm:$0xff]  ;;  %v7723_v16 = vmax.f32 %v2188_v37, 1e-06  ;;  %3006 = vrcp.f32 %v7685_v20 }
 0x534   : > { %v11323_v58 = vld [vmem:[#allocation462_spill] sm:$0xff]  ;;  %1972 = vrot.lane.b32.xlu0 %v11324_v52, %s3378_s26  ;;  %11325 = vst [vmem:[#allocation398_spill] sm:$0xff] %v7711_v43  ;;  %v11326_v34 = vld [vmem:[#allocation313_spill] sm:$0xff]  ;;  %v11330_v9 = vld [vmem:[#allocation319_spill] sm:$0xff]  ;;  %v2183_v37 = vsub.f32 %v7395_v2, %v7690_v33  ;;  %v7755_v20 = vpop.permute.xlu2 %1900  ;;  %v7757_v62 = vpop.permute.xlu1 %1880  ;;  %3008 = vrcp.f32 %v7711_v43 }
 0x535   : > { %v1797_v25 = vsel %vm4325_vm0, %v11323_v58, %v11322_v6  ;;  %v7716_v12 = vmul.f32 %v1784_v17, %v11326_v34  ;;  %v11327_v53 = vld [vmem:[#allocation17_spill] sm:$0xff]  ;;  %11329 = vst [vmem:[#allocation129_spill] sm:$0xff] %v7723_v16  ;;  %v2181_v58 = vsub.f32 %v7317_v4, %v7679_v1  ;;  %v7728_v6 = vmul.f32 %v1786_v29, %v11330_v9  ;;  %v11331_v35 = vld [vmem:[#allocation88_spill] sm:$0xff]  ;;  %v7734_v34 = vpop.permute.xlu0 %1878  ;;  %v11355_v40 = vld [vmem:[#allocation298_spill] sm:$0xff] }
 0x536   : > { %v1787_v44 = vsel %vm4325_vm0, %v11328_v49, %v11327_v53  ;;  %1976 = vrot.lane.b32.xlu2 %v11331_v35, %s3378_s26  ;;  %v11332_v17 = vld [vmem:[#allocation320_spill] sm:$0xff]  ;;  %11333 = vst [vmem:[#allocation122_spill] sm:$0xff] %v7734_v34  ;;  %v7737_v49 = vmax.f32 %v2178_v5, 1e-06  ;;  %v11335_v53 = vld [vmem:[#allocation366_spill] sm:$0xff]  ;;  %v2194_v9 = vsub.f32 %v7489_v0, %v7703_v32  ;;  %v11337_v52 = vld [vmem:[#allocation325_spill] sm:$0xff]  ;;  %3010 = vrcp.f32 %v7723_v16 }
 0x537   : > { %1974 = vrot.lane.b32.xlu1 %v11332_v17, %s3378_s26  ;;  %v7742_v4 = vmul.f32 %v1797_v25, %v11335_v53  ;;  %v7744_v29 = vmax.f32 %v2180_v60, 1e-06  ;;  %v7749_v35 = vmul.f32 %v1787_v44, %v11337_v52  ;;  %v11338_v17 = vld [vmem:[#allocation317_spill] sm:$0xff]  ;;  %v11339_v34 = vld [vmem:[#allocation443_spill] sm:$0xff]  ;;  %11340 = vst [vmem:[#allocation402_spill] sm:$0xff] %v7755_v20  ;;  %v11343_v25 = vld [vmem:[#allocation184_spill] sm:$0xff]  ;;  %v2184_v52 = vsub.f32 %v7320_v59, %v7716_v12 }
 0x538   : > { %11334 = vst [vmem:[#allocation180_spill] sm:$0xff] %v7737_v49  ;;  %v1789_v5 = vsel %vm4325_vm0, %v11339_v34, %v11338_v17  ;;  %v11342_v2 = vld [vmem:[#allocation437_spill] sm:$0xff]  ;;  %v7764_v0 = vmax.f32 %v2191_v14, 1e-06  ;;  %v11345_v44 = vld [vmem:[#allocation439_spill] sm:$0xff]  ;;  %v11346_v53 = vld [vmem:[#allocation280_spill] sm:$0xff]  ;;  %v2186_v20 = vsub.f32 %v7427_v45, %v7728_v6  ;;  %3012 = vrcp.f32 %v7737_v49 }
 0x539   : > { %11336 = vst [vmem:[#allocation63_spill] sm:$0xff] %v7744_v29  ;;  %v1573_v60 = vsel %vm4325_vm0, %v11343_v25, %v11342_v2  ;;  %v1575_v17 = vsel %vm4325_vm0, %v11346_v53, %v11345_v44  ;;  %v7773_v34 = vmax.f32 %v2181_v58, 1e-06  ;;  %v7778_v2 = vmax.f32 %v2183_v37, 1e-06  ;;  %v11349_v59 = vld [vmem:[#allocation331_spill] sm:$0xff] }
 0x53a   : > { %11341 = vst [vmem:[#allocation401_spill] sm:$0xff] %v7757_v62  ;;  %v2197_v14 = vsub.f32 %v7526_v7, %v7742_v4  ;;  %v7783_v25 = vmul.f32 %v1789_v5, %v11349_v59  ;;  %v3005_v62 = vpop.eup %3004  ;;  %v11350_v43 = vld [vmem:[#allocation181_spill] sm:$0xff]  ;;  %3014 = vrcp.f32 %v7744_v29  ;;  %v7787_v58 = vmax.f32 %v2194_v9, 1e-06  ;;  %v11352_v53 = vld [vmem:[#allocation162_spill] sm:$0xff]  ;;  %v11368_v29 = vld [vmem:[#allocation196_spill] sm:$0xff] }
 0x53b   : > { %11344 = vst [vmem:[#allocation132_spill] sm:$0xff] %v7764_v0  ;;  %v1612_v44 = vmul.f32 %v1572_v48, %v11350_v43  ;;  %v2187_v45 = vsub.f32 %v7323_v61, %v7749_v35  ;;  %v3007_v37 = vpop.eup %3006  ;;  %v11353_v49 = vld [vmem:[#allocation186_spill] sm:$0xff]  ;;  %v11354_v7 = vld [vmem:[#allocation441_spill] sm:$0xff]  ;;  %3016 = vrcp.f32 %v7764_v0  ;;  %v7799_v48 = vmax.f32 %v2184_v52, 1e-06  ;;  %v11358_v61 = vld [vmem:[#allocation143_spill] sm:$0xff] }
 0x53c   : > { %11347 = vst [vmem:[#allocation39_spill] sm:$0xff] %v7773_v34  ;;  %1978 = vrot.lane.b32.xlu0 %v11352_v53, %s3378_s26  ;;  %v1613_v16 = vmul.f32 %v1573_v60, %v11353_v49  ;;  %v1576_v5 = vsel %vm4325_vm0, %v11355_v40, %v11354_v7  ;;  %v11357_v43 = vld [vmem:[#allocation174_spill] sm:$0xff]  ;;  %v1615_v59 = vmul.f32 %v1575_v17, %v11358_v61  ;;  %3018 = vrcp.f32 %v7773_v34  ;;  %v11360_v49 = vld [vmem:[#allocation21_spill] sm:$0xff]  ;;  %v3009_v52 = vpop.eup %3008  ;;  %v11364_v17 = vld [vmem:[#allocation316_spill] sm:$0xff] }
 0x53d   : > { %11348 = vst [vmem:[#allocation405_spill] sm:$0xff] %v7778_v2  ;;  %v7803_v9 = vadd.f32 %v7649_v23, %v11357_v43  ;;  %v7807_v53 = vmax.f32 %v2186_v20, 1e-06  ;;  %v11361_v60 = vld [vmem:[#allocation49_spill] sm:$0xff]  ;;  %v7813_v40 = vpop.permute.xlu0 %1884  ;;  %3020 = vrcp.f32 %v7778_v2  ;;  %v7816_v7 = vmax.f32 %v2197_v14, 1e-06  ;;  %v3011_v61 = vpop.eup %3010 }
 0x53e   : > { %11351 = vst [vmem:[#allocation404_spill] sm:$0xff] %v7787_v58  ;;  %1982 = vrot.lane.b32.xlu2 %v11360_v49, %s3378_s26  ;;  %v2189_v23 = vsub.f32 %v7454_v41, %v7783_v25  ;;  %v11365_v43 = vld [vmem:[#allocation465_spill] sm:$0xff]  ;;  %v11366_v49 = vld [vmem:[#allocation194_spill] sm:$0xff]  ;;  %3022 = vrcp.f32 %v7787_v58  ;;  %v7832_v2 = vpop.permute.xlu2 %1906  ;;  %v7834_v41 = vpop.permute.xlu1 %1886  ;;  %v11372_v11 = vld [vmem:[#allocation364_spill] sm:$0xff]  ;;  %v7872_v58 = vmul.f32 %v3005_v62, %v7570_v54 }
 0x53f   : > { %11356 = vst [vmem:[#allocation135_spill] sm:$0xff] %v7799_v48  ;;  %1980 = vrot.lane.b32.xlu1 %v11361_v60, %s3378_s26  ;;  %v1800_v20 = vsel %vm4325_vm0, %v11365_v43, %v11364_v17  ;;  %v1616_v34 = vmul.f32 %v1576_v5, %v11366_v49  ;;  %v7826_v60 = vmax.f32 %v2187_v45, 1e-06  ;;  %v11369_v0 = vld [vmem:[#allocation454_spill] sm:$0xff]  ;;  %v7838_v17 = vadd.f32 %v7663_v46, %v11372_v11 }
 0x540   : > { %11359 = vst [vmem:[#allocation128_spill] sm:$0xff] %v7807_v53  ;;  %v1790_v14 = vsel %vm4325_vm0, %v11369_v0, %v11368_v29  ;;  %v7841_v5 = vadd.f32 %v1612_v44, %v7282_v22  ;;  %v11373_v49 = vld [vmem:[#allocation30_spill] sm:$0xff]  ;;  %3024 = vrcp.f32 %v7799_v48  ;;  %v7848_v29 = vadd.f32 %v1615_v59, %v7288_v51  ;;  %v11374_v0 = vld [vmem:[#allocation376_spill] sm:$0xff]  ;;  %v11378_v44 = vld [vmem:[#allocation337_spill] sm:$0xff] }
 0x541   : > { %11362 = vst [vmem:[#allocation411_spill] sm:$0xff] %v7813_v40  ;;  %v3013_v40 = vpop.eup %3012  ;;  %v7844_v45 = vadd.f32 %v1613_v16, %v11373_v49  ;;  %3026 = vrcp.f32 %v7807_v53  ;;  %v11376_v11 = vld [vmem:[#allocation446_spill] sm:$0xff]  ;;  %v7859_v16 = vmax.f32 %v2189_v23, 1e-06  ;;  %v7862_v49 = vmul.f32 %v1790_v14, %v11378_v44  ;;  %v11380_v59 = vld [vmem:[#allocation468_spill] sm:$0xff]  ;;  %v11383_v23 = vld [vmem:[#allocation457_spill] sm:$0xff] }
 0x542   : > { %11363 = vst [vmem:[#allocation410_spill] sm:$0xff] %v7816_v7  ;;  %v3015_v43 = vpop.eup %3014  ;;  %3028 = vrcp.f32 %v7816_v7  ;;  %v11379_v51 = vld [vmem:[#allocation326_spill] sm:$0xff] }
 0x543   : > { %11367 = vst [vmem:[#allocation183_spill] sm:$0xff] %v7826_v60  ;;  %v3017_v46 = vpop.eup %3016  ;;  %v1803_v53 = vsel %vm4325_vm0, %v11380_v59, %v11379_v51  ;;  %3030 = vrcp.f32 %v7826_v60  ;;  %v7882_v51 = vmul.f32 %v3007_v37, %v7581_v47  ;;  %v11387_v59 = vld [vmem:[#allocation343_spill] sm:$0xff]  ;;  %v11388_v62 = vld [vmem:[#allocation330_spill] sm:$0xff] }
 0x544   : > { %11370 = vst [vmem:[#allocation66_spill] sm:$0xff] %v7832_v2  ;;  %v7852_v2 = vmul.f32 %v1800_v20, %v11374_v0  ;;  %v3019_v20 = vpop.eup %3018  ;;  %v11381_v0 = vld [vmem:[#allocation368_spill] sm:$0xff]  ;;  %v11392_v47 = vld [vmem:[#allocation390_spill] sm:$0xff]  ;;  %3032 = vrcp.f32 %v7859_v16 }
 0x545   : > { %11371 = vst [vmem:[#allocation413_spill] sm:$0xff] %v7834_v41  ;;  %v11375_v41 = vld [vmem:[#allocation327_spill] sm:$0xff]  ;;  %v7869_v48 = vadd.f32 %v1616_v34, %v11381_v0  ;;  %v3021_v44 = vpop.eup %3020  ;;  %v7885_v34 = vmul.f32 %v3009_v52, %v7609_v55  ;;  %v11389_v0 = vld [vmem:[#allocation449_spill] sm:$0xff]  ;;  %v7900_v37 = vmul.f32 %v1803_v53, %v11392_v47 }
 0x546   : > { %v1792_v22 = vsel %vm4325_vm0, %v11376_v11, %v11375_v41  ;;  %11377 = vst [vmem:[#allocation412_spill] sm:$0xff] %v7859_v16  ;;  %v11382_v41 = vld [vmem:[#allocation93_spill] sm:$0xff]  ;;  %v1795_v60 = vsel %vm4325_vm0, %v11389_v0, %v11388_v62  ;;  %v3023_v7 = vpop.eup %3022  ;;  %v11394_v52 = vld [vmem:[#allocation471_spill] sm:$0xff]  ;;  %v11396_v62 = vld [vmem:[#allocation332_spill] sm:$0xff]  ;;  %v7910_v0 = vpop.permute.xlu0 %1890 }
 0x547   : > { %v1793_v14 = vsel %vm4325_vm0, %v11383_v23, %v11382_v41  ;;  %v11384_v11 = vld [vmem:[#allocation333_spill] sm:$0xff]  ;;  %11385 = vst [vmem:[#allocation426_spill] sm:$0xff] %v7882_v51  ;;  %v7888_v54 = vmul.f32 %v1792_v22, %v11387_v59  ;;  %v11395_v59 = vld [vmem:[#allocation92_spill] sm:$0xff]  ;;  %1986 = vrot.lane.b32.xlu1 %v11396_v62, %s3378_s26  ;;  %v7925_v62 = vmul.f32 %v3015_v43, %v7652_v27 }
 0x548   : > { %1984 = vrot.lane.b32.xlu0 %v11384_v11, %s3378_s26  ;;  %11386 = vst [vmem:[#allocation425_spill] sm:$0xff] %v7885_v34  ;;  %v11390_v41 = vld [vmem:[#allocation353_spill] sm:$0xff]  ;;  %v2200_v11 = vsub.f32 %v7554_v10, %v7852_v2  ;;  %1988 = vrot.lane.b32.xlu2 %v11395_v59, %s3378_s26  ;;  %v7913_v34 = vmul.f32 %v3011_v61, %v7621_v21  ;;  %v11401_v59 = vld [vmem:[#allocation355_spill] sm:$0xff]  ;;  %v11402_v21 = vld [vmem:[#allocation48_spill] sm:$0xff] }
 0x549   : > { %v7895_v23 = vmax.f32 %v11390_v41, 0.0  ;;  %v11393_v55 = vld [vmem:[#allocation329_spill] sm:$0xff]  ;;  %11397 = vst [vmem:[#allocation42_spill] sm:$0xff] %v7910_v0  ;;  %v3025_v41 = vpop.eup %3024  ;;  %v7928_v0 = vmul.f32 %v1795_v60, %v11401_v59  ;;  %v11403_v61 = vld [vmem:[#allocation460_spill] sm:$0xff]  ;;  %v2192_v27 = vsub.f32 %v7467_v13, %v7888_v54  ;;  %v7950_v59 = vmul.f32 %v3021_v44, %v7690_v33 }
 0x54a   : > { %v1806_v22 = vsel %vm4325_vm0, %v11394_v52, %v11393_v55  ;;  %11398 = vst [vmem:[#allocation417_spill] sm:$0xff] %v7913_v34  ;;  %v11399_v10 = vld [vmem:[#allocation33_spill] sm:$0xff]  ;;  %v3027_v55 = vpop.eup %3026  ;;  %v7922_v52 = vmul.f32 %v3013_v40, %v7639_v15  ;;  %v1796_v16 = vsel %vm4325_vm0, %v11403_v61, %v11402_v21  ;;  %v7934_v34 = vpop.permute.xlu2 %1912  ;;  %v7942_v15 = vmul.f32 %v3019_v20, %v7679_v1  ;;  %v11406_v60 = vld [vmem:[#allocation400_spill] sm:$0xff] }
 0x54b   : > { %11391 = vst [vmem:[#allocation138_spill] sm:$0xff] %v7895_v23  ;;  %v2190_v53 = vsub.f32 %v11399_v10, %v7862_v49  ;;  %v11400_v47 = vld [vmem:[#allocation349_spill] sm:$0xff]  ;;  %v7936_v10 = vpop.permute.xlu1 %1892  ;;  %v7947_v40 = vmul.f32 %v1806_v22, %v11406_v60  ;;  %v7953_v21 = vmul.f32 %v3023_v7, %v7703_v32  ;;  %v7955_v61 = vmax.f32 %v2200_v11, 1e-06  ;;  %v11410_v22 = vld [vmem:[#allocation339_spill] sm:$0xff]  ;;  %v11411_v60 = vld [vmem:[#allocation452_spill] sm:$0xff] }
 0x54c   : > { %v7919_v51 = vmul.f32 %v1793_v14, %v11400_v47  ;;  %11404 = vst [vmem:[#allocation416_spill] sm:$0xff] %v7934_v34  ;;  %v3029_v14 = vpop.eup %3028  ;;  %v7939_v47 = vmul.f32 %v3017_v46, %v7668_v19  ;;  %v2203_v19 = vsub.f32 %v7567_v38, %v7900_v37  ;;  %v11409_v46 = vld [vmem:[#allocation361_spill] sm:$0xff]  ;;  %v1798_v33 = vsel %vm4325_vm0, %v11411_v60, %v11410_v22  ;;  %v11431_v34 = vld [vmem:[#allocation340_spill] sm:$0xff] }
 0x54d   : > { %11405 = vst [vmem:[#allocation144_spill] sm:$0xff] %v7936_v10  ;;  %v3031_v43 = vpop.eup %3030  ;;  %v7959_v1 = vmax.f32 %v2190_v53, 1e-06  ;;  %v7964_v20 = vmul.f32 %v1796_v16, %v11409_v46  ;;  %v7971_v32 = vmul.f32 %v3025_v41, %v7716_v12  ;;  %v7974_v7 = vmul.f32 %v3027_v55, %v7728_v6  ;;  %v11414_v16 = vld [vmem:[#allocation165_spill] sm:$0xff]  ;;  %v11417_v6 = vld [vmem:[#allocation338_spill] sm:$0xff]  ;;  %v11420_v55 = vld [vmem:[#allocation367_spill] sm:$0xff] }
 0x54e   : > { %11407 = vst [vmem:[#allocation43_spill] sm:$0xff] %v7955_v61  ;;  %v2193_v13 = vsub.f32 %v7392_v36, %v7919_v51  ;;  %v7977_v38 = vmul.f32 %v3029_v14, %v7742_v4  ;;  %v2195_v36 = vsub.f32 %v7515_v24, %v7928_v0  ;;  %v3033_v11 = vpop.eup %3032  ;;  %v7984_v44 = vmul.f32 %v3031_v43, %v7749_v35  ;;  %v11418_v41 = vld [vmem:[#allocation473_spill] sm:$0xff]  ;;  %v11421_v46 = vld [vmem:[#allocation99_spill] sm:$0xff]  ;;  %v11423_v43 = vld [vmem:[#allocation24_spill] sm:$0xff]  ;;  %v8008_v22 = vpop.permute.xlu0 %1896 }
 0x54f   : > { %11408 = vst [vmem:[#allocation141_spill] sm:$0xff] %v7959_v1  ;;  %v7986_v53 = vmax.f32 %v2192_v27, 1e-06  ;;  %v2206_v12 = vsub.f32 %v7591_v26, %v7947_v40  ;;  %v1809_v4 = vsel %vm4325_vm0, %v11418_v41, %v11417_v6  ;;  %3034 = vrcp.f32 %v7955_v61  ;;  %v11422_v35 = vld [vmem:[#allocation463_spill] sm:$0xff]  ;;  %v11424_v26 = vld [vmem:[#allocation50_spill] sm:$0xff] }
 0x550   : > { %11412 = vst [vmem:[#allocation134_spill] sm:$0xff] %v7974_v7  ;;  %1990 = vrot.lane.b32.xlu0 %v11414_v16, %s3378_s26  ;;  %v7995_v24 = vmax.f32 %v2203_v19, 1e-06  ;;  %v7998_v14 = vmul.f32 %v1798_v33, %v11420_v55  ;;  %v1799_v27 = vsel %vm4325_vm0, %v11422_v35, %v11421_v46  ;;  %1994 = vrot.lane.b32.xlu2 %v11423_v43, %s3378_s26  ;;  %3036 = vrcp.f32 %v7959_v1  ;;  %v11426_v33 = vld [vmem:[#allocation341_spill] sm:$0xff]  ;;  %v11427_v6 = vld [vmem:[#allocation455_spill] sm:$0xff]  ;;  %v11430_v35 = vld [vmem:[#allocation414_spill] sm:$0xff] }
 0x551   : > { %11413 = vst [vmem:[#allocation423_spill] sm:$0xff] %v7977_v38  ;;  %1992 = vrot.lane.b32.xlu1 %v11424_v26, %s3378_s26  ;;  %v8011_v19 = vmax.f32 %v2193_v13, 1e-06  ;;  %v2196_v60 = vsub.f32 %v7417_v50, %v7964_v20  ;;  %v1801_v41 = vsel %vm4325_vm0, %v11427_v6, %v11426_v33  ;;  %v8020_v55 = vmul.f32 %v3033_v11, %v7783_v25  ;;  %v11432_v16 = vld [vmem:[#allocation476_spill] sm:$0xff]  ;;  %v11436_v25 = vld [vmem:[#allocation373_spill] sm:$0xff]  ;;  %v11438_v6 = vld [vmem:[#allocation466_spill] sm:$0xff] }
 0x552   : > { %11415 = vst [vmem:[#allocation422_spill] sm:$0xff] %v7984_v44  ;;  %v8022_v46 = vmax.f32 %v2195_v36, 1e-06  ;;  %v8025_v26 = vmul.f32 %v1809_v4, %v11430_v35  ;;  %v1812_v13 = vsel %vm4325_vm0, %v11432_v16, %v11431_v34  ;;  %v8031_v43 = vpop.permute.xlu2 %1918  ;;  %3038 = vrcp.f32 %v7986_v53  ;;  %v11437_v36 = vld [vmem:[#allocation102_spill] sm:$0xff]  ;;  %v11439_v16 = vld [vmem:[#allocation379_spill] sm:$0xff] }
 0x553   : > { %11416 = vst [vmem:[#allocation429_spill] sm:$0xff] %v7986_v53  ;;  %v8033_v50 = vpop.permute.xlu1 %1898  ;;  %v8036_v33 = vmax.f32 %v2206_v12, 1e-06  ;;  %v8039_v11 = vmul.f32 %v1799_v27, %v11436_v25  ;;  %v1802_v4 = vsel %vm4325_vm0, %v11438_v6, %v11437_v36  ;;  %3040 = vrcp.f32 %v7995_v24  ;;  %v11443_v25 = vld [vmem:[#allocation424_spill] sm:$0xff]  ;;  %v11444_v36 = vld [vmem:[#allocation105_spill] sm:$0xff]  ;;  %v11463_v44 = vld [vmem:[#allocation54_spill] sm:$0xff] }
 0x554   : > { %11419 = vst [vmem:[#allocation428_spill] sm:$0xff] %v7995_v24  ;;  %v2198_v34 = vsub.f32 %v7551_v63, %v7998_v14  ;;  %v8049_v35 = vmul.f32 %v1801_v41, %v11439_v16  ;;  %3042 = vrcp.f32 %v8011_v19  ;;  %v8056_v27 = vmax.f32 %v2196_v60, 1e-06  ;;  %v11445_v6 = vld [vmem:[#allocation469_spill] sm:$0xff]  ;;  %v11476_v61 = vld [vmem:[#allocation291_spill] sm:$0xff] }
 0x555   : > { %11425 = vst [vmem:[#allocation188_spill] sm:$0xff] %v8011_v19  ;;  %v8059_v10 = vmul.f32 %v1812_v13, %v11443_v25  ;;  %v1805_v63 = vsel %vm4325_vm0, %v11445_v6, %v11444_v36  ;;  %v3035_v53 = vpop.eup %3034  ;;  %3044 = vrcp.f32 %v8022_v46  ;;  %v2209_v41 = vsub.f32 %v7803_v9, %v8025_v26  ;;  %v11446_v16 = vld [vmem:[#allocation385_spill] sm:$0xff]  ;;  %v11450_v6 = vld [vmem:[#allocation391_spill] sm:$0xff]  ;;  %v11451_v9 = vld [vmem:[#allocation356_spill] sm:$0xff] }
 0x556   : > { %11428 = vst [vmem:[#allocation69_spill] sm:$0xff] %v8020_v55  ;;  %v11448_v60 = vld [vmem:[#allocation461_spill] sm:$0xff]  ;;  %v3037_v19 = vpop.eup %3036  ;;  %3046 = vrcp.f32 %v8036_v33  ;;  %v2199_v36 = vsub.f32 %v7433_v57, %v8039_v11  ;;  %v8087_v24 = vmax.f32 %v2198_v34, 1e-06  ;;  %v11456_v55 = vld [vmem:[#allocation464_spill] sm:$0xff] }
 0x557   : > { %11429 = vst [vmem:[#allocation178_spill] sm:$0xff] %v8022_v46  ;;  %v11449_v25 = vld [vmem:[#allocation345_spill] sm:$0xff]  ;;  %3048 = vrcp.f32 %v8056_v27 }
 0x558   : > { %11433 = vst [vmem:[#allocation83_spill] sm:$0xff] %v8031_v43  ;;  %v11440_v43 = vld [vmem:[#allocation351_spill] sm:$0xff]  ;;  %1996 = vrot.lane.b32.xlu0 %v11449_v25, %s3378_s26  ;;  %v3039_v34 = vpop.eup %3038  ;;  %3050 = vrcp.f32 %v8087_v24 }
 0x559   : > { %11434 = vst [vmem:[#allocation231_spill] sm:$0xff] %v8033_v50  ;;  %v11441_v50 = vld [vmem:[#allocation458_spill] sm:$0xff] }
 0x55a   : > { %11435 = vst [vmem:[#allocation201_spill] sm:$0xff] %v8036_v33  ;;  %v1804_v12 = vsel %vm4325_vm0, %v11441_v50, %v11440_v43  ;;  %v8069_v43 = vmul.f32 %v1802_v4, %v11446_v16  ;;  %v11447_v50 = vld [vmem:[#allocation27_spill] sm:$0xff]  ;;  %v11452_v4 = vld [vmem:[#allocation472_spill] sm:$0xff] }
 0x55b   : > { %11442 = vst [vmem:[#allocation182_spill] sm:$0xff] %v8056_v27  ;;  %v1807_v13 = vsel %vm4325_vm0, %v11448_v60, %v11447_v50  ;;  %v8081_v46 = vmul.f32 %v1804_v12, %v11450_v6  ;;  %v1808_v16 = vsel %vm4325_vm0, %v11452_v4, %v11451_v9  ;;  %v2201_v50 = vsub.f32 %v7564_v3, %v8049_v35  ;;  %v11454_v60 = vld [vmem:[#allocation397_spill] sm:$0xff]  ;;  %v11455_v33 = vld [vmem:[#allocation111_spill] sm:$0xff]  ;;  %v11457_v12 = vld [vmem:[#allocation98_spill] sm:$0xff]  ;;  %v8102_v9 = vpop.permute.xlu0 %1902  ;;  %v8124_v27 = vpop.permute.xlu2 %1924 }
 0x55c   : > { %11453 = vst [vmem:[#allocation234_spill] sm:$0xff] %v8087_v24  ;;  %v8092_v25 = vmul.f32 %v1805_v63, %v11454_v60  ;;  %v1810_v57 = vsel %vm4325_vm0, %v11456_v55, %v11455_v33  ;;  %2000 = vrot.lane.b32.xlu2 %v11457_v12, %s3378_s26  ;;  %v11458_v6 = vld [vmem:[#allocation344_spill] sm:$0xff]  ;;  %v8105_v4 = vmul.f32 %v3035_v53, %v7852_v2  ;;  %v11461_v63 = vld [vmem:[#allocation403_spill] sm:$0xff]  ;;  %v3041_v55 = vpop.eup %3040  ;;  %v8113_v33 = vmax.f32 %v2209_v41, 1e-06  ;;  %v11462_v12 = vld [vmem:[#allocation409_spill] sm:$0xff] }
 0x55d   : > { %1998 = vrot.lane.b32.xlu1 %v11458_v6, %s3378_s26  ;;  %11459 = vst [vmem:[#allocation205_spill] sm:$0xff] %v8102_v9  ;;  %v2212_v3 = vsub.f32 %v7841_v5, %v8059_v10  ;;  %v8111_v60 = vmul.f32 %v1807_v13, %v11461_v63  ;;  %v2202_v6 = vsub.f32 %v7460_v31, %v8069_v43  ;;  %v11464_v2 = vld [vmem:[#allocation474_spill] sm:$0xff]  ;;  %v8126_v5 = vpop.permute.xlu1 %1904  ;;  %v3043_v13 = vpop.eup %3042  ;;  %v8128_v63 = vmax.f32 %v2199_v36, 1e-06  ;;  %v11480_v9 = vld [vmem:[#allocation168_spill] sm:$0xff] }
 0x55e   : > { %11460 = vst [vmem:[#allocation237_spill] sm:$0xff] %v8105_v4  ;;  %v8118_v1 = vmul.f32 %v1808_v16, %v11462_v12  ;;  %v1811_v53 = vsel %vm4325_vm0, %v11464_v2, %v11463_v44  ;;  %v2204_v41 = vsub.f32 %v7588_v28, %v8081_v46  ;;  %v11468_v4 = vld [vmem:[#allocation415_spill] sm:$0xff]  ;;  %v3045_v7 = vpop.eup %3044  ;;  %v8140_v44 = vmax.f32 %v2201_v50, 1e-06  ;;  %v11472_v2 = vld [vmem:[#allocation110_spill] sm:$0xff] }
 0x55f   : > { %11465 = vst [vmem:[#allocation208_spill] sm:$0xff] %v8124_v27  ;;  %v8133_v31 = vmul.f32 %v1810_v57, %v11468_v4  ;;  %v11469_v16 = vld [vmem:[#allocation375_spill] sm:$0xff]  ;;  %v2205_v36 = vsub.f32 %v7492_v18, %v8092_v25  ;;  %v11473_v27 = vld [vmem:[#allocation146_spill] sm:$0xff]  ;;  %v3047_v57 = vpop.eup %3046  ;;  %v8148_v4 = vmax.f32 %v2212_v3, 1e-06  ;;  %v2207_v50 = vsub.f32 %v7646_v42, %v8111_v60 }
 0x560   : > { %11466 = vst [vmem:[#allocation242_spill] sm:$0xff] %v8126_v5  ;;  %v11470_v12 = vld [vmem:[#allocation467_spill] sm:$0xff]  ;;  %v1814_v28 = vsel %vm4325_vm0, %v11473_v27, %v11472_v2  ;;  %v11475_v5 = vld [vmem:[#allocation350_spill] sm:$0xff]  ;;  %3052 = vrcp.f32 %v8113_v33  ;;  %v8160_v18 = vmax.f32 %v2202_v6, 1e-06  ;;  %v2208_v27 = vsub.f32 %v7529_v8, %v8118_v1  ;;  %2002 = vrot.lane.b32.xlu0 %v11480_v9, %s3378_s26  ;;  %v11483_v8 = vld [vmem:[#allocation140_spill] sm:$0xff] }
 0x561   : > { %11467 = vst [vmem:[#allocation150_spill] sm:$0xff] %v8128_v63  ;;  %v1813_v38 = vsel %vm4325_vm0, %v11470_v12, %v11469_v16  ;;  %v1815_v16 = vsel %vm4325_vm0, %v11476_v61, %v11475_v5  ;;  %v11477_v12 = vld [vmem:[#allocation421_spill] sm:$0xff]  ;;  %v11479_v3 = vld [vmem:[#allocation427_spill] sm:$0xff]  ;;  %v3049_v61 = vpop.eup %3048  ;;  %3054 = vrcp.f32 %v8128_v63  ;;  %v8170_v42 = vmax.f32 %v2204_v41, 1e-06  ;;  %v11486_v9 = vld [vmem:[#allocation108_spill] sm:$0xff] }
 0x562   : > { %11471 = vst [vmem:[#allocation243_spill] sm:$0xff] %v8140_v44  ;;  %v8157_v24 = vmul.f32 %v1811_v53, %v11477_v12  ;;  %v8165_v2 = vmul.f32 %v1813_v38, %v11479_v3  ;;  %v2210_v53 = vsub.f32 %v7838_v17, %v8133_v31  ;;  %v11482_v5 = vld [vmem:[#allocation433_spill] sm:$0xff]  ;;  %v8178_v12 = vmul.f32 %v3037_v19, %v7862_v49  ;;  %v11487_v41 = vld [vmem:[#allocation52_spill] sm:$0xff] }
 0x563   : > { %11474 = vst [vmem:[#allocation211_spill] sm:$0xff] %v8148_v4  ;;  %v8175_v6 = vmul.f32 %v1814_v28, %v11482_v5  ;;  %3056 = vrcp.f32 %v8140_v44  ;;  %v8182_v38 = vmul.f32 %v1815_v16, %v11483_v8  ;;  %v8184_v3 = vmax.f32 %v2205_v36, 1e-06  ;;  %v8190_v17 = vpop.permute.xlu0 %1908  ;;  %v3051_v36 = vpop.eup %3050  ;;  %v11497_v44 = vld [vmem:[#allocation120_spill] sm:$0xff] }
 0x564   : > { %11478 = vst [vmem:[#allocation244_spill] sm:$0xff] %v8160_v18  ;;  %2006 = vrot.lane.b32.xlu2 %v11486_v9, %s3378_s26  ;;  %v8193_v28 = vmul.f32 %v3039_v34, %v7888_v54  ;;  %3058 = vrcp.f32 %v8148_v4  ;;  %v8196_v49 = vmax.f32 %v2207_v50, 1e-06  ;;  %v2211_v19 = vsub.f32 %v7557_v30, %v8157_v24  ;;  %v1941_v54 = vpop.permute.xlu2 %1940 }
 0x565   : > { %11481 = vst [vmem:[#allocation200_spill] sm:$0xff] %v8170_v42  ;;  %2004 = vrot.lane.b32.xlu1 %v11487_v41, %s3378_s26  ;;  %v8201_v16 = vmul.f32 %v3041_v55, %v7900_v37  ;;  %3060 = vrcp.f32 %v8160_v18  ;;  %v8204_v5 = vmax.f32 %v2208_v27, 1e-06  ;;  %v2213_v8 = vsub.f32 %v7844_v45, %v8165_v2  ;;  %v8208_v34 = vpop.permute.xlu1 %1910  ;;  %v11492_v41 = vld [vmem:[#allocation380_spill] sm:$0xff]  ;;  %v11493_v45 = vld [vmem:[#allocation378_spill] sm:$0xff] }
 0x566   : > { %11484 = vst [vmem:[#allocation89_spill] sm:$0xff] %v8182_v38  ;;  %3062 = vrcp.f32 %v8170_v42  ;;  %v8211_v50 = vmax.f32 %v2210_v53, 1e-06  ;;  %v2214_v30 = vsub.f32 %v7577_v56, %v8175_v6  ;;  %v2019_v37 = vsel %vm4325_vm0, %v11492_v41, %v1941_v54  ;;  %v3053_v55 = vpop.eup %3052  ;;  %v11494_v18 = vld [vmem:[#allocation470_spill] sm:$0xff]  ;;  %v11498_v41 = vld [vmem:[#allocation293_spill] sm:$0xff] }
 0x567   : > { %11485 = vst [vmem:[#allocation198_spill] sm:$0xff] %v8184_v3  ;;  %v2215_v27 = vsub.f32 %v7848_v29, %v8182_v38  ;;  %3064 = vrcp.f32 %v8184_v3  ;;  %v1816_v53 = vsel %vm4325_vm0, %v11494_v18, %v11493_v45  ;;  %v11495_v42 = vld [vmem:[#allocation290_spill] sm:$0xff]  ;;  %v8227_v56 = vmax.f32 %v2211_v19, 1e-06  ;;  %v11501_v19 = vld [vmem:[#allocation381_spill] sm:$0xff] }
 0x568   : > { %11488 = vst [vmem:[#allocation153_spill] sm:$0xff] %v8196_v49  ;;  %v2059_v4 = vmul.f32 %v2019_v37, %v11495_v42  ;;  %3066 = vrcp.f32 %v8196_v49  ;;  %v1817_v54 = vsel %vm4325_vm0, %v11498_v41, %v11497_v44  ;;  %v11499_v29 = vlaneseq  ;;  %1928 = vrot.lane.b32.xlu0 %v11501_v19, %s3381_s7  ;;  %v11503_v41 = vld [vmem:[#allocation434_spill] sm:$0xff] }
 0x569   : > { %11489 = vst [vmem:[#allocation214_spill] sm:$0xff] %v8204_v5  ;;  %v8237_v63 = vmul.f32 %v3043_v13, %v7919_v51  ;;  %3068 = vrcp.f32 %v8204_v5  ;;  %v8240_v18 = vmax.f32 %v2213_v8, 1e-06  ;;  %v8246_v45 = vmul.f32 %v3045_v7, %v7928_v0  ;;  %v11507_v5 = vld [vmem:[#allocation392_spill] sm:$0xff]  ;;  %v11508_v0 = vld [vmem:[#allocation123_spill] sm:$0xff] }
 0x56a   : > { %11490 = vst [vmem:[#allocation193_spill] sm:$0xff] %v8208_v34  ;;  %v3055_v34 = vpop.eup %3054  ;;  %v8234_v38 = vshrl.u32 %v11499_v29, 7  ;;  %v2099_v42 = vmax.f32 %v2059_v4, 1e-06  ;;  %3070 = vrcp.f32 %v8211_v50  ;;  %v8249_v44 = vmax.f32 %v2214_v30, 1e-06 }
 0x56b   : > { %11491 = vst [vmem:[#allocation13_spill] sm:$0xff] %v8211_v50  ;;  %v3057_v3 = vpop.eup %3056  ;;  %v8252_v51 = vmul.f32 %v1816_v53, %v11503_v41  ;;  %v8255_v8 = vmul.f32 %v3047_v57, %v7947_v40  ;;  %v11505_v29 = vld [vmem:[#allocation438_spill] sm:$0xff]  ;;  %v8265_v7 = vpop.permute.xlu0 %1914  ;;  %v8268_v53 = vmul.f32 %v3049_v61, %v7964_v20  ;;  %v8270_v40 = vmax.f32 %v2215_v27, 1e-06 }
 0x56c   : > { %11496 = vst [vmem:[#allocation14_spill] sm:$0xff] %v8227_v56  ;;  %v3059_v37 = vpop.eup %3058  ;;  %v8258_v4 = vmul.f32 %v1817_v54, %v11505_v29  ;;  %v2339_v49 = vsub.f32 %v2099_v42, %v11507_v5  ;;  %3072 = vrcp.f32 %v2099_v42  ;;  %1930 = vrot.lane.b32.xlu2 %v11508_v0, %s3381_s7  ;;  %v292_v57 = vadd.s32 8, %v8234_v38  ;;  %v1947_v29 = vpop.permute.xlu2 %1946 }
 0x56d   : > { %11500 = vst [vmem:[#allocation185_spill] sm:$0xff] %v8240_v18  ;;  %v3061_v13 = vpop.eup %3060  ;;  %2008 = vrot.lane.b32.xlu1 %v11501_v19, %s3378_s26  ;;  %3074 = vrcp.f32 %v8227_v56  ;;  %v8275_v54 = vmul.f32 %v3051_v36, %v7998_v14  ;;  %v8278_v42 = vstv %s2538_s14  ;;  %v295_v41 = vadd.s32 32, %v8234_v38  ;;  %v8281_v19 = vpop.permute.xlu1 %1916  ;;  %v11513_v14 = vld [vmem:[#allocation116_spill] sm:$0xff] }
 0x56e   : > { %11502 = vst [vmem:[#allocation56_spill] sm:$0xff] %v8249_v44  ;;  %v3063_v30 = vpop.eup %3062  ;;  %3076 = vrcp.f32 %v8240_v18  ;;  %v8284_v61 = vmul.f32 %v3053_v55, %v8025_v26  ;;  %v2216_v27 = vsub.f32 %v7869_v48, %v8252_v51  ;;  %v2022_v36 = vsel %vm4325_vm0, %v11513_v14, %v1947_v29  ;;  %v11517_v55 = vld [vmem:[#allocation195_spill] sm:$0xff] }
 0x56f   : > { %11504 = vst [vmem:[#allocation246_spill] sm:$0xff] %v8252_v51  ;;  %v3065_v5 = vpop.eup %3064  ;;  %3078 = vrcp.f32 %v8249_v44  ;;  %v8293_v56 = vmul.f32 %v3055_v34, %v8039_v11  ;;  %v8296_v50 = vmul.f32 %v3057_v3, %v8049_v35  ;;  %v8302_v9 = vmul.f32 %v3059_v37, %v8059_v10 }
 0x570   : > { %11506 = vst [vmem:[#allocation203_spill] sm:$0xff] %v8258_v4  ;;  %v3067_v20 = vpop.eup %3066  ;;  %v8305_v48 = vmul.f32 %v3061_v13, %v8069_v43  ;;  %3080 = vrcp.f32 %v8270_v40  ;;  %v2541_v11 = vadd.s32 %v8278_v42, %v292_v57  ;;  %v8310_v35 = vmul.f32 %v3063_v30, %v8081_v46  ;;  %2010 = vrot.lane.b32.xlu0 %v11508_v0, %s3378_s26 }
 0x571   : > { %11509 = vst [vmem:[#allocation94_spill] sm:$0xff] %v8270_v40  ;;  %v3069_v18 = vpop.eup %3068  ;;  %v2544_v3 = vadd.s32 %v8278_v42, %v295_v41  ;;  %v298_v10 = vadd.s32 56, %v8234_v38  ;;  %v8317_v43 = vmul.f32 %v3065_v5, %v8092_v25  ;;  %v8320_v13 = vmul.f32 %v3067_v20, %v8111_v60 }
 0x572   : > { %11510 = vst [vmem:[#allocation46_spill] sm:$0xff] %v8275_v54  ;;  %v3071_v44 = vpop.eup %3070  ;;  %v8322_v57 = vmax.f32 %v2216_v27, 1e-06  ;;  %v8327_v30 = vmul.f32 %v3069_v18, %v8118_v1  ;;  %v301_v1 = vadd.s32 80, %v8234_v38  ;;  %v293_v18 = vadd.s32 16, %v8234_v38  ;;  %v11572_v54 = vld [vmem:[#allocation296_spill] sm:$0xff] }
 0x573   : > { %11511 = vst [vmem:[#allocation20_spill] sm:$0xff] %v8281_v19  ;;  %v11516_v19 = vld [vmem:[#allocation126_spill] sm:$0xff]  ;;  %v3073_v34 = vpop.eup %3072  ;;  %v8336_v25 = vpop.permute.xlu0 %1920  ;;  %v8343_v20 = vmul.f32 %v3071_v44, %v8133_v31  ;;  %v330_v39 = vadd.s32 312, %v8234_v38 }
 0x574   : > { %11512 = vst [vmem:[#allocation217_spill] sm:$0xff] %v8284_v61  ;;  %v2217_v26 = vsub.f32 %v11516_v19, %v8258_v4  ;;  %v2062_v61 = vmul.f32 %v2022_v36, %v11517_v55  ;;  %v3075_v37 = vpop.eup %3074  ;;  %v8324_v29 = vmul.f32 %v3073_v34, %v2339_v49  ;;  %v11527_v36 = vld [vmem:[#allocation57_spill] sm:$0xff]  ;;  %v2581_v49 = vmul.u32 128, %v2541_v11  ;;  %v1953_v34 = vpop.permute.xlu2 %1952  ;;  %v11533_v4 = vld [vmem:[#allocation388_spill] sm:$0xff] }
 0x575   : > { %11514 = vst [vmem:[#allocation191_spill] sm:$0xff] %v8293_v56  ;;  %v3077_v46 = vpop.eup %3076  ;;  %2012 = vrot.lane.b32.xlu2 %v11527_v36, %s3378_s26  ;;  %1932 = vrot.lane.b32.xlu1 %v11527_v36, %s3381_s7  ;;  %v8346_v27 = vmul.f32 %v3075_v37, %v8157_v24  ;;  %v2547_v55 = vadd.s32 %v8278_v42, %v298_v10  ;;  %v11536_v10 = vld [vmem:[#allocation51_spill] sm:$0xff] }
 0x576   : > { %11515 = vst [vmem:[#allocation192_spill] sm:$0xff] %v8296_v50  ;;  %v2102_v19 = vmax.f32 %v2062_v61, 1e-06  ;;  %v8329_v41 = vmax.f32 %v2217_v26, 1e-06  ;;  %v11526_v61 = vld [vmem:[#allocation399_spill] sm:$0xff]  ;;  %v3079_v60 = vpop.eup %3078  ;;  %v2025_v31 = vsel %vm4325_vm0, %v11533_v4, %v1953_v34  ;;  %v2540_v24 = vadd.s32 %v8278_v42, %v8234_v38 }
 0x577   : > { %11518 = vst [vmem:[#allocation59_spill] sm:$0xff] %v8302_v9  ;;  %v2584_v26 = vmul.u32 128, %v2544_v3  ;;  %v8351_v11 = vpop.eup %3080  ;;  %v8361_v44 = vmul.f32 %v3077_v46, %v8165_v2  ;;  %v8364_v3 = vmul.f32 %v3079_v60, %v8175_v6  ;;  %v2065_v37 = vmul.f32 %v2025_v31, %v11536_v10  ;;  %v11537_v6 = vld [vmem:[#allocation389_spill] sm:$0xff]  ;;  %v11540_v10 = vld [vmem:[#allocation398_spill] sm:$0xff] }
 0x578   : > { %11519 = vst [vmem:[#allocation154_spill] sm:$0xff] %v8305_v48  ;;  %v2342_v14 = vsub.f32 %v2102_v19, %v11526_v61  ;;  %3082 = vrcp.f32 %v2102_v19  ;;  %v8349_v19 = vpop.permute.xlu1 %1922  ;;  %v11532_v61 = vld [vmem:[#allocation11_spill] sm:$0xff]  ;;  %v304_v4 = vadd.s32 104, %v8234_v38  ;;  %v2587_v2 = vmul.u32 128, %v2547_v55  ;;  %1934 = vrot.lane.b32.xlu0 %v11537_v6, %s3381_s7  ;;  %v11562_v48 = vld [vmem:[#allocation132_spill] sm:$0xff]  ;;  %v11571_v50 = vld [vmem:[#allocation18_spill] sm:$0xff] }
 0x579   : > { %11520 = vst [vmem:[#allocation206_spill] sm:$0xff] %v8310_v35  ;;  %3084 = vrcp.f32 %v8322_v57  ;;  %v2700_v5 = vand.u32 3, %v11532_v61  ;;  %v2621_v51 = vadd.s32 %v2581_v49, %v11532_v61  ;;  %v8373_v40 = vadd.s32 %v2584_v26, %v11532_v61 }
 0x57a   : > { %11521 = vst [vmem:[#allocation100_spill] sm:$0xff] %v8317_v43  ;;  %3086 = vrcp.f32 %v8329_v41  ;;  %v2105_v46 = vmax.f32 %v2065_v37, 1e-06  ;;  %v294_v60 = vadd.s32 24, %v8234_v38  ;;  %v297_v55 = vadd.s32 48, %v8234_v38  ;;  %v11561_v43 = vld [vmem:[#allocation180_spill] sm:$0xff] }
 0x57b   : > { %11522 = vst [vmem:[#allocation199_spill] sm:$0xff] %v8320_v13  ;;  %vm8378_vm1 = vcmp.eq.s32.totalorder %v2700_v5, 0  ;;  %v8388_v26 = vpop.permute.xlu0 %1926  ;;  %v307_v5 = vadd.s32 128, %v8234_v38  ;;  %vm2661_vm2 = vcmp.lt.s32.totalorder %v2621_v51, 81920  ;;  %vm2664_vm3 = vcmp.lt.s32.totalorder %v8373_v40, 81920 }
 0x57c   : > { %11523 = vst [vmem:[#allocation23_spill] sm:$0xff] %v8322_v57  ;;  %v2550_v57 = vadd.s32 %v8278_v42, %v301_v1  ;;  %v2580_v1 = vmul.u32 128, %v2540_v24  ;;  %3088 = vrcp.f32 %v2105_v46  ;;  %vm8438_vm5 = vmand %vm2661_vm2, %vm8378_vm1 }
 0x57d   : > { %11524 = vst [vmem:[#allocation220_spill] sm:$0xff] %v8327_v30  ;;  %1936 = vrot.lane.b32.xlu2 %v7895_v23, %s3381_s7  ;;  %2014 = vrot.lane.b32.xlu1 %v11537_v6, %s3378_s26  ;;  %v1959_v6 = vpop.permute.xlu2 %1958  ;;  %v2556_v0 = vadd.s32 %v8278_v42, %v307_v5  ;;  %vm8472_vm7 = vmand %vm2664_vm3, %vm8378_vm1 }
 0x57e   : > { %11525 = vst [vmem:[#allocation155_spill] sm:$0xff] %v8329_v41  ;;  %v3083_v34 = vpop.eup %3082  ;;  %v2345_v41 = vsub.f32 %v2105_v46, %v11540_v10  ;;  %v2553_v46 = vadd.s32 %v8278_v42, %v304_v4 }
 0x57f   : > { %11528 = vst [vmem:[#allocation209_spill] sm:$0xff] %v8343_v20  ;;  %v2422_v49 = vmul.f32 %v3083_v34, %v2342_v14  ;;  %v8392_v37 = vpop.eup %3084  ;;  %v11542_v14 = vld [vmem:[#allocation426_spill] sm:$0xff]  ;;  %v2590_v34 = vmul.u32 128, %v2550_v57  ;;  %v8407_v57 = vadd.s32 %v2580_v1, %v11532_v61  ;;  %v299_v1 = vadd.s32 64, %v8234_v38 }
 0x580   : > { %11529 = vst [vmem:[#allocation106_spill] sm:$0xff] %v8346_v27  ;;  %v8396_v10 = vpop.eup %3086  ;;  %v1939_v36 = vpop.permute.xlu1 %1938  ;;  %v2543_v27 = vadd.s32 %v8278_v42, %v294_v60  ;;  %v11544_v20 = vld [vmem:[#allocation122_spill] sm:$0xff]  ;;  %v2546_v60 = vadd.s32 %v8278_v42, %v297_v55  ;;  %2016 = vrot.lane.b32.xlu0 %v7895_v23, %s3378_s26 }
 0x581   : > { %11530 = vst [vmem:[#allocation202_spill] sm:$0xff] %v8349_v19  ;;  %v2462_v24 = vsub.f32 %v11542_v14, %v2422_v49  ;;  %v2028_v49 = vsel %vm4325_vm0, %v11544_v20, %v1959_v6  ;;  %v8418_v13 = vadd.s32 %v2590_v34, %v11532_v61  ;;  %v2593_v6 = vmul.u32 128, %v2553_v46 }
 0x582   : > { %11531 = vst [vmem:[#allocation12_spill] sm:$0xff] %v8351_v11  ;;  %v2542_v11 = vadd.s32 %v8278_v42, %v293_v18  ;;  %v296_v18 = vadd.s32 40, %v8234_v38  ;;  %v2583_v5 = vmul.u32 128, %v2543_v27  ;;  %v300_v46 = vadd.s32 72, %v8234_v38 }
 0x583   : > { %11534 = vst [vmem:[#allocation15_spill] sm:$0xff] %v8361_v44  ;;  %v8400_v44 = vadd.s32 %v2587_v2, %v11532_v61  ;;  %vm2660_vm4 = vcmp.lt.s32.totalorder %v8407_v57, 81920  ;;  %v8452_v51 = vadd.s32 %v2593_v6, %v11532_v61  ;;  %vm2670_vm11 = vcmp.lt.s32.totalorder %v8418_v13, 81920 }
 0x584   : > { %11535 = vst [vmem:[#allocation62_spill] sm:$0xff] %v8364_v3  ;;  %v2582_v3 = vmul.u32 128, %v2542_v11  ;;  %v11545_v11 = vld [vmem:[#allocation357_spill] sm:$0xff]  ;;  %v2545_v14 = vadd.s32 %v8278_v42, %v296_v18  ;;  %v11548_v18 = vsub.f32 %v7872_v58, %v8324_v29  ;;  %v1943_v58 = vpop.permute.xlu0 %1942  ;;  %v2596_v29 = vmul.u32 128, %v2556_v0  ;;  %v11554_v0 = vld [vmem:[#allocation240_spill] sm:$0xff]  ;;  %vm8514_vm10 = vmand %vm2660_vm4, %vm8378_vm1 }
 0x585   : > { %11541 = vst [vmem:[#allocation26_spill] sm:$0xff] %v8392_v37  ;;  %v2018_v4 = vsel %vm4325_vm0, %v11545_v11, %v1939_v36  ;;  %v11547_v37 = vld [vmem:[#allocation477_spill] sm:$0xff]  ;;  %v3089_v36 = vpop.eup %3088  ;;  %vm2667_vm6 = vcmp.lt.s32.totalorder %v8400_v44, 81920  ;;  %v8455_v23 = vadd.s32 %v2583_v5, %v11532_v61  ;;  %v11575_v44 = vld [vmem:[#allocation39_spill] sm:$0xff]  ;;  %vm2673_vm3 = vcmp.lt.s32.totalorder %v8452_v51, 81920  ;;  %vm8610_vm4 = vmand %vm2670_vm11, %vm8378_vm1 }
 0x586   : > { %11543 = vst [vmem:[#allocation223_spill] sm:$0xff] %v8396_v10  ;;  %v11546_v10 = vld [vmem:[#allocation96_spill] sm:$0xff]  ;;  %v2058_v30 = vmul.f32 %v2018_v4, %v11547_v37  ;;  %v8421_v20 = vadd.s32 %v2582_v3, %v11532_v61  ;;  %v2425_v55 = vmul.f32 %v3089_v36, %v2345_v41  ;;  %v2585_v34 = vmul.u32 128, %v2545_v14  ;;  %v11549_v11 = vld [vmem:[#allocation129_spill] sm:$0xff]  ;;  %v11553_v14 = vld [vmem:[#allocation386_spill] sm:$0xff] }
 0x587   : > { %v2068_v2 = vmul.f32 %v2028_v49, %v11546_v10  ;;  %v8427_v10 = vsub.f32 1.0, %v11548_v18  ;;  %v310_v3 = vadd.s32 152, %v8234_v38  ;;  %v2586_v18 = vmul.u32 128, %v2546_v60  ;;  %v11552_v41 = vld [vmem:[#allocation425_spill] sm:$0xff]  ;;  %vm8535_vm12 = vmand %vm2667_vm6, %vm8378_vm1 }
 0x588   : > { %v2098_v49 = vmax.f32 %v2058_v30, 1e-06  ;;  %v2465_v27 = vsub.f32 %v11552_v41, %v2425_v55  ;;  %v2548_v36 = vadd.s32 %v8278_v42, %v299_v1  ;;  %v1945_v55 = vpop.permute.xlu1 %1944  ;;  %v11555_v41 = vld [vmem:[#allocation411_spill] sm:$0xff]  ;;  %vm2662_vm8 = vcmp.lt.s32.totalorder %v8421_v20, 81920  ;;  %v11579_v20 = vld [vmem:[#allocation393_spill] sm:$0xff] }
 0x589   : > { %v2108_v37 = vmax.f32 %v2068_v2, 1e-06  ;;  %v2020_v2 = vsel %vm4325_vm0, %v11553_v14, %v1943_v58  ;;  %v11556_v14 = vld [vmem:[#allocation171_spill] sm:$0xff]  ;;  %v2559_v1 = vadd.s32 %v8278_v42, %v310_v3  ;;  %v2743_v6 = vsel %vm8438_vm5, %v8427_v10, 0.0  ;;  %vm8560_vm14 = vmand %vm2662_vm8, %vm8378_vm1 }
 0x58a   : > { %v2060_v60 = vmul.f32 %v2020_v2, %v11554_v0  ;;  %v2549_v2 = vadd.s32 %v8278_v42, %v300_v46  ;;  %v8480_v3 = vadd.s32 %v2585_v34, %v11532_v61  ;;  %v8483_v10 = vadd.s32 %v2596_v29, %v11532_v61 }
 0x58b   : > { %v2348_v4 = vsub.f32 %v2108_v37, %v11549_v11  ;;  %3090 = vrcp.f32 %v2108_v37  ;;  %v8447_v37 = vsub.f32 1.0, %v2462_v24  ;;  %v1965_v11 = vpop.permute.xlu2 %1964  ;;  %v2021_v24 = vsel %vm4325_vm0, %v11556_v14, %v1945_v55  ;;  %v11560_v55 = vld [vmem:[#allocation189_spill] sm:$0xff] }
 0x58c   : > { %3092 = vrcp.f32 %v2098_v49  ;;  %v2031_v58 = vsel %vm4325_vm0, %v11555_v41, %v1965_v11  ;;  %v2100_v0 = vmax.f32 %v2060_v60, 1e-06  ;;  %v11559_v11 = vld [vmem:[#allocation55_spill] sm:$0xff]  ;;  %v2061_v14 = vmul.f32 %v2021_v24, %v11560_v55 }
 0x58d   : > { %v2071_v41 = vmul.f32 %v2031_v58, %v11559_v11  ;;  %v8486_v46 = vadd.s32 %v2586_v18, %v11532_v61  ;;  %v2588_v40 = vmul.u32 128, %v2548_v36  ;;  %v2338_v19 = vsub.f32 %v2098_v49, %v11561_v43  ;;  %v1949_v36 = vpop.permute.xlu0 %1948  ;;  %v11563_v49 = vld [vmem:[#allocation417_spill] sm:$0xff] }
 0x58e   : > { %3094 = vrcp.f32 %v2100_v0  ;;  %v2101_v58 = vmax.f32 %v2061_v14, 1e-06  ;;  %v2599_v55 = vmul.u32 128, %v2559_v1  ;;  %v2589_v29 = vmul.u32 128, %v2549_v2  ;;  %v11564_v14 = vld [vmem:[#allocation60_spill] sm:$0xff] }
 0x58f   : > { %v2111_v60 = vmax.f32 %v2071_v41, 1e-06  ;;  %vm2663_vm9 = vcmp.lt.s32.totalorder %v8455_v23, 81920  ;;  %v302_v43 = vadd.s32 88, %v8234_v38  ;;  %v313_v1 = vadd.s32 176, %v8234_v38 }
 0x590   : > { %v8503_v2 = vsub.f32 1.0, %v2465_v27  ;;  %v8508_v24 = vadd.s32 %v2588_v40, %v11532_v61  ;;  %v8526_v40 = vadd.s32 %v2599_v55, %v11532_v61  ;;  %vm2665_vm13 = vcmp.lt.s32.totalorder %v8480_v3, 81920  ;;  %vm8580_vm2 = vmand %vm2663_vm9, %vm8378_vm1 }
 0x591   : > { %v3091_v30 = vpop.eup %3090  ;;  %v2351_v18 = vsub.f32 %v2111_v60, %v11562_v48  ;;  %3096 = vrcp.f32 %v2111_v60  ;;  %v8541_v55 = vadd.s32 %v2589_v29, %v11532_v61  ;;  %vm2666_vm15 = vcmp.lt.s32.totalorder %v8486_v46, 81920  ;;  %vm8625_vm6 = vmand %vm2665_vm13, %vm8378_vm1 }
 0x592   : > { %v3093_v11 = vpop.eup %3092  ;;  %v8492_v34 = vmul.f32 %v3091_v30, %v2348_v4  ;;  %3098 = vrcp.f32 %v2101_v58  ;;  %v2023_v4 = vsel %vm4325_vm0, %v11564_v14, %v1949_v36  ;;  %v11568_v36 = vld [vmem:[#allocation63_spill] sm:$0xff]  ;;  %v11569_v14 = vld [vmem:[#allocation42_spill] sm:$0xff]  ;;  %vm2668_vm5 = vcmp.lt.s32.totalorder %v8508_v24, 81920 }
 0x593   : > { %v2418_v35 = vmul.f32 %v3093_v11, %v2338_v19  ;;  %v11565_v19 = vld [vmem:[#allocation297_spill] sm:$0xff]  ;;  %v1971_v60 = vpop.permute.xlu2 %1970  ;;  %v1951_v11 = vpop.permute.xlu1 %1950  ;;  %v2340_v27 = vsub.f32 %v2100_v0, %v11568_v36  ;;  %v2341_v36 = vsub.f32 %v2101_v58, %v11575_v44  ;;  %v11578_v58 = vld [vmem:[#allocation404_spill] sm:$0xff]  ;;  %v303_v44 = vadd.s32 96, %v8234_v38  ;;  %vm8699_vm13 = vmand %vm2668_vm5, %vm8378_vm1 }
 0x594   : > { %v2063_v30 = vmul.f32 %v2023_v4, %v11565_v19  ;;  %v3095_v19 = vpop.eup %3094  ;;  %vm2669_vm8 = vcmp.lt.s32.totalorder %v8541_v55, 81920  ;;  %v305_v5 = vadd.s32 112, %v8234_v38  ;;  %vm2676_vm11 = vcmp.lt.s32.totalorder %v8483_v10, 81920 }
 0x595   : > { %v2458_v48 = vsub.f32 %v7922_v52, %v2418_v35  ;;  %v2034_v52 = vsel %vm4325_vm0, %v11569_v14, %v1971_v60  ;;  %v11570_v35 = vld [vmem:[#allocation117_spill] sm:$0xff] }
 0x596   : > { %v2024_v4 = vsel %vm4325_vm0, %v11570_v35, %v1951_v11  ;;  %v2103_v9 = vmax.f32 %v2063_v30, 1e-06  ;;  %v2074_v56 = vmul.f32 %v2034_v52, %v11571_v50  ;;  %v2420_v11 = vmul.f32 %v3095_v19, %v2340_v27 }
 0x597   : > { %v2498_v57 = vsub.f32 1.0, %v2458_v48  ;;  %v2064_v0 = vmul.f32 %v2024_v4, %v11572_v54  ;;  %v2551_v48 = vadd.s32 %v8278_v42, %v302_v43  ;;  %v8545_v50 = vadd.s32 %v8278_v42, %v313_v1  ;;  %v3097_v54 = vpop.eup %3096 }
 0x598   : > { %3100 = vrcp.f32 %v2103_v9  ;;  %v2114_v14 = vmax.f32 %v2074_v56, 1e-06  ;;  %v3099_v52 = vpop.eup %3098  ;;  %v2460_v35 = vsub.f32 %v7925_v62, %v2420_v11  ;;  %v8551_v4 = vmul.f32 %v3097_v54, %v2351_v18  ;;  %v1955_v62 = vpop.permute.xlu0 %1954 }
 0x599   : > { %v2742_v30 = vsel %vm8514_vm10, %v2498_v57, 0.0  ;;  %v2104_v29 = vmax.f32 %v2064_v0, 1e-06  ;;  %v2749_v43 = vsel %vm8535_vm12, %v8503_v2, 0.0  ;;  %v2421_v56 = vmul.f32 %v3099_v52, %v2341_v36  ;;  %vm8677_vm10 = vmand %vm2673_vm3, %vm8378_vm1  ;;  %v11612_v2 = vld [vmem:[#allocation423_spill] sm:$0xff] }
 0x59a   : > { %v2782_v27 = vadd.f32 %v2743_v6, %v2742_v30  ;;  %v2354_v6 = vsub.f32 %v2114_v14, %v11578_v58  ;;  %3102 = vrcp.f32 %v2114_v14  ;;  %v2500_v18 = vsub.f32 1.0, %v2460_v35  ;;  %v11583_v14 = vld [vmem:[#allocation16_spill] sm:$0xff]  ;;  %vm8717_vm12 = vmand %vm2669_vm8, %vm8378_vm1 }
 0x59b   : > { %v2471_v1 = vsub.f32 %v7939_v47, %v8551_v4  ;;  %3104 = vrcp.f32 %v2104_v29  ;;  %v2591_v19 = vmul.u32 128, %v2551_v48  ;;  %v2461_v57 = vsub.f32 %v7942_v15, %v2421_v56  ;;  %v1977_v11 = vpop.permute.xlu2 %1976  ;;  %v1957_v54 = vpop.permute.xlu1 %1956  ;;  %v11582_v15 = vld [vmem:[#allocation405_spill] sm:$0xff]  ;;  %v11584_v58 = vld [vmem:[#allocation88_spill] sm:$0xff] }
 0x59c   : > { %v2026_v0 = vsel %vm4325_vm0, %v11579_v20, %v1955_v62  ;;  %v2744_v36 = vsel %vm8560_vm14, %v2500_v18, 0.0  ;;  %v2343_v48 = vsub.f32 %v2103_v9, %v11582_v15  ;;  %v2037_v35 = vsel %vm4325_vm0, %v8008_v22, %v1977_v11  ;;  %v11585_v18 = vld [vmem:[#allocation377_spill] sm:$0xff] }
 0x59d   : > { %v2066_v52 = vmul.f32 %v2026_v0, %v11583_v14  ;;  %v2783_v56 = vadd.f32 %v2782_v27, %v2744_v36  ;;  %v2501_v41 = vsub.f32 1.0, %v2461_v57  ;;  %v2077_v62 = vmul.f32 %v2037_v35, %v11584_v58  ;;  %v11587_v15 = vld [vmem:[#allocation197_spill] sm:$0xff]  ;;  %v11588_v57 = vld [vmem:[#allocation135_spill] sm:$0xff] }
 0x59e   : > { %v3101_v4 = vpop.eup %3100  ;;  %v2027_v23 = vsel %vm4325_vm0, %v11585_v18, %v1957_v54  ;;  %v11586_v20 = vsub.f32 %v11563_v49, %v8492_v34  ;;  %v2344_v36 = vsub.f32 %v2104_v29, %v11588_v57  ;;  %v8604_v54 = vadd.s32 %v2591_v19, %v11532_v61  ;;  %v11629_v34 = vld [vmem:[#allocation429_spill] sm:$0xff] }
 0x59f   : > { %v2423_v9 = vmul.f32 %v3101_v4, %v2343_v48  ;;  %v2106_v0 = vmax.f32 %v2066_v52, 1e-06  ;;  %v2067_v22 = vmul.f32 %v2027_v23, %v11587_v15  ;;  %v2745_v27 = vsel %vm8580_vm2, %v2501_v41, 0.0  ;;  %v11593_v52 = vld [vmem:[#allocation410_spill] sm:$0xff]  ;;  %v11598_v15 = vld [vmem:[#allocation309_spill] sm:$0xff] }
 0x5a0   : > { %v8596_v30 = vsub.f32 1.0, %v11586_v20  ;;  %v3103_v11 = vpop.eup %3102  ;;  %v2117_v14 = vmax.f32 %v2077_v62, 1e-06  ;;  %v2784_v49 = vadd.f32 %v2783_v56, %v2745_v27  ;;  %v8619_v29 = vadd.s32 %v8278_v42, %v303_v44  ;;  %v11595_v62 = vld [vmem:[#allocation401_spill] sm:$0xff] }
 0x5a1   : > { %v3105_v35 = vpop.eup %3104  ;;  %v2463_v48 = vsub.f32 %v7950_v59, %v2423_v9  ;;  %v8615_v47 = vmul.f32 %v3103_v11, %v2354_v6  ;;  %3106 = vrcp.f32 %v2106_v0  ;;  %v2107_v59 = vmax.f32 %v2067_v22, 1e-06  ;;  %v1961_v6 = vpop.permute.xlu0 %1960  ;;  %v11599_v11 = vld [vmem:[#allocation205_spill] sm:$0xff] }
 0x5a2   : > { %v2424_v19 = vmul.f32 %v3105_v35, %v2344_v36  ;;  %v2357_v4 = vsub.f32 %v2117_v14, %v11593_v52  ;;  %v11594_v56 = vsel %vm8472_vm7, %v8447_v37, 0.0  ;;  %3108 = vrcp.f32 %v2117_v14  ;;  %vm8651_vm7 = vmand %vm2666_vm15, %vm8378_vm1  ;;  %v11600_v35 = vld [vmem:[#allocation21_spill] sm:$0xff]  ;;  %v11602_v52 = vld [vmem:[#allocation387_spill] sm:$0xff] }
 0x5a3   : > { %v2785_v44 = vadd.f32 %v2784_v49, %v11594_v56  ;;  %v2503_v41 = vsub.f32 1.0, %v2463_v48  ;;  %v2474_v58 = vsub.f32 %v7953_v21, %v8615_v47  ;;  %3110 = vrcp.f32 %v2107_v59  ;;  %v1983_v23 = vpop.permute.xlu2 %1982  ;;  %v1963_v20 = vpop.permute.xlu1 %1962  ;;  %v11601_v48 = vld [vmem:[#allocation128_spill] sm:$0xff] }
 0x5a4   : > { %v2464_v3 = vsub.f32 %v7971_v32, %v2424_v19  ;;  %v2029_v18 = vsel %vm4325_vm0, %v11595_v62, %v1961_v6  ;;  %v2752_v37 = vsel %vm8610_vm4, %v8596_v30, 0.0  ;;  %v2040_v27 = vsel %vm4325_vm0, %v11599_v11, %v1983_v23  ;;  %vm8783_vm4 = vmand %vm2676_vm11, %vm8378_vm1 }
 0x5a5   : > { %v2747_v9 = vsel %vm8625_vm6, %v2503_v41, 0.0  ;;  %v2069_v22 = vmul.f32 %v2029_v18, %v11598_v15  ;;  %v8659_v57 = vsub.f32 1.0, %v2471_v1  ;;  %v2080_v49 = vmul.f32 %v2040_v27, %v11600_v35 }
 0x5a6   : > { %v2786_v36 = vadd.f32 %v2785_v44, %v2747_v9  ;;  %v2504_v14 = vsub.f32 1.0, %v2464_v3  ;;  %v2346_v13 = vsub.f32 %v2106_v0, %v11601_v48  ;;  %v2592_v46 = vmul.u32 128, %v8619_v29  ;;  %v11603_v44 = vld [vmem:[#allocation308_spill] sm:$0xff]  ;;  %v11604_v9 = vld [vmem:[#allocation183_spill] sm:$0xff]  ;;  %v11613_v48 = vld [vmem:[#allocation413_spill] sm:$0xff] }
 0x5a7   : > { %v2109_v19 = vmax.f32 %v2069_v22, 1e-06  ;;  %v2030_v6 = vsel %vm4325_vm0, %v11602_v52, %v1963_v20  ;;  %v3107_v56 = vpop.eup %3106  ;;  %vm2671_vm9 = vcmp.lt.s32.totalorder %v8604_v54, 81920  ;;  %v2120_v1 = vmax.f32 %v2080_v49, 1e-06  ;;  %v11607_v22 = vld [vmem:[#allocation43_spill] sm:$0xff] }
 0x5a8   : > { %v2748_v41 = vsel %vm8651_vm7, %v2504_v14, 0.0  ;;  %v2070_v3 = vmul.f32 %v2030_v6, %v11603_v44  ;;  %v2554_v62 = vadd.s32 %v8278_v42, %v305_v5  ;;  %v3109_v18 = vpop.eup %3108  ;;  %v2426_v23 = vmul.f32 %v3107_v56, %v2346_v13  ;;  %v11614_v56 = vld [vmem:[#allocation422_spill] sm:$0xff]  ;;  %vm8743_vm2 = vmand %vm2671_vm9, %vm8378_vm1 }
 0x5a9   : > { %v2787_v0 = vadd.f32 %v2786_v36, %v2748_v41  ;;  %v2347_v29 = vsub.f32 %v2107_v59, %v11604_v9  ;;  %3112 = vrcp.f32 %v2109_v19  ;;  %v3111_v15 = vpop.eup %3110  ;;  %v8681_v32 = vmul.f32 %v3109_v18, %v2357_v4  ;;  %v1967_v27 = vpop.permute.xlu0 %1966  ;;  %v11608_v36 = vld [vmem:[#allocation134_spill] sm:$0xff] }
 0x5aa   : > { %v2360_v11 = vsub.f32 %v2120_v1, %v11607_v22  ;;  %3114 = vrcp.f32 %v2120_v1  ;;  %v2110_v5 = vmax.f32 %v2070_v3, 1e-06  ;;  %v2466_v14 = vsub.f32 %v11608_v36, %v2426_v23  ;;  %v11615_v1 = vld [vmem:[#allocation159_spill] sm:$0xff]  ;;  %v11619_v22 = vld [vmem:[#allocation92_spill] sm:$0xff] }
 0x5ab   : > { %v2788_v59 = vadd.f32 %v2787_v0, %v2749_v43  ;;  %v2427_v35 = vmul.f32 %v3111_v15, %v2347_v29  ;;  %v11609_v51 = vmul.u32 128, %v8545_v50  ;;  %v2477_v60 = vsub.f32 %v11612_v2, %v8681_v32  ;;  %v1989_v13 = vpop.permute.xlu2 %1988  ;;  %v1969_v52 = vpop.permute.xlu1 %1968 }
 0x5ac   : > { %3116 = vrcp.f32 %v2110_v5  ;;  %v2594_v43 = vmul.u32 128, %v2554_v62  ;;  %v2032_v50 = vsel %vm4325_vm0, %v11613_v48, %v1967_v27  ;;  %v2755_v6 = vsel %vm8677_vm10, %v8659_v57, 0.0  ;;  %v11618_v62 = vld [vmem:[#allocation412_spill] sm:$0xff] }
 0x5ad   : > { %v8692_v49 = vadd.s32 %v11609_v51, %v11532_v61  ;;  %v2506_v24 = vsub.f32 1.0, %v2466_v14  ;;  %v2467_v41 = vsub.f32 %v11614_v56, %v2427_v35  ;;  %v2072_v44 = vmul.f32 %v2032_v50, %v11615_v1 }
 0x5ae   : > { %v2349_v18 = vsub.f32 %v2109_v19, %v11618_v62  ;;  %v2632_v0 = vadd.s32 %v2592_v46, %v11532_v61  ;;  %v2043_v23 = vsel %vm4325_vm0, %v8190_v17, %v1989_v13  ;;  %v306_v9 = vadd.s32 120, %v8234_v38  ;;  %v11620_v46 = vld [vmem:[#allocation141_spill] sm:$0xff] }
 0x5af   : > { %v3113_v29 = vpop.eup %3112  ;;  %v2750_v15 = vsel %vm8699_vm13, %v2506_v24, 0.0  ;;  %vm2679_vm14 = vcmp.lt.s32.totalorder %v8526_v40, 81920  ;;  %v2507_v55 = vsub.f32 1.0, %v2467_v41  ;;  %v2112_v32 = vmax.f32 %v2072_v44, 1e-06  ;;  %v11621_v13 = vld [vmem:[#allocation69_spill] sm:$0xff] }
 0x5b0   : > { %v2083_v27 = vmul.f32 %v2043_v23, %v11619_v22  ;;  %v3115_v36 = vpop.eup %3114  ;;  %v2789_v19 = vadd.f32 %v2788_v59, %v2750_v15  ;;  %v2429_v14 = vmul.f32 %v3113_v29, %v2349_v18  ;;  %v2350_v35 = vsub.f32 %v2110_v5, %v11620_v46  ;;  %v11625_v44 = vld [vmem:[#allocation177_spill] sm:$0xff]  ;;  %v11626_v23 = vld [vmem:[#allocation428_spill] sm:$0xff]  ;;  %vm8805_vm8 = vmand %vm2679_vm14, %vm8378_vm1 }
 0x5b1   : > { %v2634_v51 = vadd.s32 %v2594_v43, %v11532_v61  ;;  %v2751_v17 = vsel %vm8717_vm12, %v2507_v55, 0.0  ;;  %v8735_v2 = vmul.f32 %v3115_v36, %v2360_v11  ;;  %3118 = vrcp.f32 %v2112_v32  ;;  %v1973_v59 = vpop.permute.xlu0 %1972  ;;  %v11624_v11 = vld [vmem:[#allocation237_spill] sm:$0xff] }
 0x5b2   : > { %v316_v4 = vadd.s32 200, %v8234_v38  ;;  %v3117_v48 = vpop.eup %3116  ;;  %v2790_v50 = vadd.f32 %v2789_v19, %v2751_v17  ;;  %v2469_v24 = vsub.f32 %v11621_v13, %v2429_v14  ;;  %vm2672_vm15 = vcmp.lt.s32.totalorder %v2632_v0, 81920  ;;  %v11633_v17 = vld [vmem:[#allocation144_spill] sm:$0xff] }
 0x5b3   : > { %v2123_v56 = vmax.f32 %v2083_v27, 1e-06  ;;  %v2480_v43 = vsub.f32 %v11624_v11, %v8735_v2  ;;  %v2430_v41 = vmul.f32 %v3117_v48, %v2350_v35  ;;  %v2555_v1 = vadd.s32 %v8278_v42, %v306_v9  ;;  %v8763_v15 = vpop.permute.xlu1 %1974  ;;  %vm8772_vm5 = vmand %vm2672_vm15, %vm8378_vm1  ;;  %v1995_v14 = vpop.permute.xlu2 %1994 }
 0x5b4   : > { %v2033_v3 = vsel %vm4325_vm0, %v11625_v44, %v1969_v52  ;;  %v8756_v62 = vsub.f32 1.0, %v2474_v58  ;;  %v2791_v54 = vadd.f32 %v2790_v50, %v2752_v37  ;;  %v2509_v18 = vsub.f32 1.0, %v2469_v24  ;;  %v11630_v58 = vld [vmem:[#allocation84_spill] sm:$0xff] }
 0x5b5   : > { %v2363_v29 = vsub.f32 %v2123_v56, %v11626_v23  ;;  %v2470_v9 = vsub.f32 %v8178_v12, %v2430_v41  ;;  %vm2674_vm3 = vcmp.lt.s32.totalorder %v2634_v51, 81920  ;;  %v2565_v52 = vadd.s32 %v8278_v42, %v316_v4  ;;  %v11639_v51 = vld [vmem:[#allocation24_spill] sm:$0xff]  ;;  %v11647_v41 = vld [vmem:[#allocation162_spill] sm:$0xff] }
 0x5b6   : > { %3120 = vrcp.f32 %v2123_v56  ;;  %v2753_v21 = vsel %vm8743_vm2, %v2509_v18, 0.0  ;;  %v2352_v47 = vsub.f32 %v2112_v32, %v11629_v34  ;;  %v2073_v37 = vmul.f32 %v2033_v3, %v11630_v58  ;;  %vm8813_vm7 = vmand %vm2674_vm3, %vm8378_vm1 }
 0x5b7   : > { %v308_v12 = vadd.s32 136, %v8234_v38  ;;  %v3119_v55 = vpop.eup %3118  ;;  %v8787_v0 = vsub.f32 1.0, %v2477_v60  ;;  %v2792_v27 = vadd.f32 %v2791_v54, %v2753_v21  ;;  %v2510_v36 = vsub.f32 1.0, %v2470_v9  ;;  %v11634_v60 = vld [vmem:[#allocation321_spill] sm:$0xff] }
 0x5b8   : > { %v2595_v19 = vmul.u32 128, %v2555_v1  ;;  %vm2682_vm6 = vcmp.lt.s32.totalorder %v8692_v49, 81920  ;;  %v2432_v32 = vmul.f32 %v3119_v55, %v2352_v47  ;;  %v2113_v46 = vmax.f32 %v2073_v37, 1e-06  ;;  %v11640_v47 = vld [vmem:[#allocation188_spill] sm:$0xff] }
 0x5b9   : > { %v2557_v35 = vadd.s32 %v8278_v42, %v308_v12  ;;  %v2035_v10 = vsel %vm4325_vm0, %v11633_v17, %v1973_v59  ;;  %v2754_v2 = vsel %vm8772_vm5, %v2510_v36, 0.0  ;;  %v2605_v4 = vmul.u32 128, %v2565_v52  ;;  %v1979_v5 = vpop.permute.xlu0 %1978  ;;  %v11641_v37 = vld [vmem:[#allocation36_spill] sm:$0xff]  ;;  %vm8860_vm11 = vmand %vm2682_vm6, %vm8378_vm1 }
 0x5ba   : > { %v2075_v48 = vmul.f32 %v2035_v10, %v11634_v60  ;;  %v319_v50 = vadd.s32 224, %v8234_v38  ;;  %v2758_v13 = vsel %vm8783_vm4, %v8756_v62, 0.0  ;;  %v2793_v56 = vadd.f32 %v2792_v27, %v2754_v2 }
 0x5bb   : > { %v2472_v59 = vsub.f32 %v8193_v28, %v2432_v32  ;;  %3122 = vrcp.f32 %v2113_v46  ;;  %v2635_v1 = vadd.s32 %v2595_v19, %v11532_v61  ;;  %v2597_v40 = vmul.u32 128, %v2557_v35  ;;  %v8826_v9 = vpop.permute.xlu1 %1980  ;;  %v11642_v19 = vld [vmem:[#allocation178_spill] sm:$0xff] }
 0x5bc   : > { %v3121_v11 = vpop.eup %3120  ;;  %v2115_v44 = vmax.f32 %v2075_v48, 1e-06  ;;  %v2046_v3 = vsel %vm4325_vm0, %v8265_v7, %v1995_v14  ;;  %v2794_v28 = vadd.f32 %v2793_v56, %v2755_v6  ;;  %v2761_v52 = vsel %vm8805_vm8, %v8787_v0, 0.0  ;;  %v11671_v0 = vld [vmem:[#allocation66_spill] sm:$0xff] }
 0x5bd   : > { %v2512_v54 = vsub.f32 1.0, %v2472_v59  ;;  %v2443_v18 = vmul.f32 %v3121_v11, %v2363_v29  ;;  %v2086_v23 = vmul.f32 %v2046_v3, %v11639_v51  ;;  %v8832_v21 = vadd.s32 %v2605_v4, %v11532_v61 }
 0x5be   : > { %3124 = vrcp.f32 %v2115_v44  ;;  %v2568_v7 = vadd.s32 %v8278_v42, %v319_v50  ;;  %v309_v29 = vadd.s32 144, %v8234_v38  ;;  %v8839_v30 = vsub.f32 1.0, %v2480_v43  ;;  %v11643_v43 = vld [vmem:[#allocation320_spill] sm:$0xff] }
 0x5bf   : > { %v2756_v57 = vsel %vm8813_vm7, %v2512_v54, 0.0  ;;  %v2483_v20 = vsub.f32 %v8201_v16, %v2443_v18  ;;  %v2126_v6 = vmax.f32 %v2086_v23, 1e-06  ;;  %v2353_v58 = vsub.f32 %v2113_v46, %v11640_v47  ;;  %v2001_v46 = vpop.permute.xlu2 %2000 }
 0x5c0   : > { %v2795_v34 = vadd.f32 %v2794_v28, %v2756_v57  ;;  %v2036_v12 = vsel %vm4325_vm0, %v11641_v37, %v8763_v15  ;;  %vm2675_vm9 = vcmp.lt.s32.totalorder %v2635_v1, 81920  ;;  %v2637_v27 = vadd.s32 %v2597_v40, %v11532_v61  ;;  %v11644_v15 = vld [vmem:[#allocation231_spill] sm:$0xff]  ;;  %v11653_v37 = vld [vmem:[#allocation98_spill] sm:$0xff] }
 0x5c1   : > { %v3123_v55 = vpop.eup %3122  ;;  %3126 = vrcp.f32 %v2126_v6  ;;  %v2558_v16 = vadd.s32 %v8278_v42, %v309_v29  ;;  %v2355_v14 = vsub.f32 %v2115_v44, %v11642_v19  ;;  %v2076_v32 = vmul.f32 %v2036_v12, %v11643_v43  ;;  %v1985_v60 = vpop.permute.xlu0 %1984  ;;  %vm8870_vm13 = vmand %vm2675_vm9, %vm8378_vm1  ;;  %v11650_v44 = vld [vmem:[#allocation201_spill] sm:$0xff] }
 0x5c2   : > { %v2433_v36 = vmul.f32 %v3123_v55, %v2353_v58  ;;  %v311_v35 = vadd.s32 160, %v8234_v38  ;;  %vm2685_vm10 = vcmp.lt.s32.totalorder %v8832_v21, 81920  ;;  %v2608_v17 = vmul.u32 128, %v2568_v7 }
 0x5c3   : > { %v2598_v10 = vmul.u32 128, %v2558_v16  ;;  %v2038_v2 = vsel %vm4325_vm0, %v11644_v15, %v1979_v5  ;;  %v322_v4 = vadd.s32 248, %v8234_v38  ;;  %v2116_v59 = vmax.f32 %v2076_v32, 1e-06  ;;  %v8878_v28 = vpop.permute.xlu1 %1986  ;;  %v11656_v15 = vld [vmem:[#allocation234_spill] sm:$0xff]  ;;  %vm8926_vm2 = vmand %vm2685_vm10, %vm8378_vm1 }
 0x5c4   : > { %v3125_v48 = vpop.eup %3124  ;;  %v2473_v56 = vsub.f32 %v8237_v63, %v2433_v36  ;;  %v2560_v11 = vadd.s32 %v8278_v42, %v311_v35  ;;  %v2078_v40 = vmul.f32 %v2038_v2, %v11647_v41  ;;  %vm2677_vm12 = vcmp.lt.s32.totalorder %v2637_v27, 81920  ;;  %v11654_v36 = vld [vmem:[#allocation182_spill] sm:$0xff] }
 0x5c5   : > { %v2435_v49 = vmul.f32 %v3125_v48, %v2355_v14  ;;  %v2366_v3 = vsub.f32 %v2126_v6, %v11650_v44  ;;  %v2049_v63 = vsel %vm4325_vm0, %v8336_v25, %v2001_v46  ;;  %v2638_v18 = vadd.s32 %v2598_v10, %v11532_v61  ;;  %vm8893_vm14 = vmand %vm2677_vm12, %vm8378_vm1  ;;  %v11657_v48 = vld [vmem:[#allocation49_spill] sm:$0xff]  ;;  %v11660_v41 = vld [vmem:[#allocation242_spill] sm:$0xff] }
 0x5c6   : > { %v2513_v54 = vsub.f32 1.0, %v2473_v56  ;;  %3128 = vrcp.f32 %v2116_v59  ;;  %v2600_v51 = vmul.u32 128, %v2560_v11  ;;  %v2764_v23 = vsel %vm8860_vm11, %v8839_v30, 0.0  ;;  %v11690_v30 = vld [vmem:[#allocation345_spill] sm:$0xff] }
 0x5c7   : > { %v3127_v1 = vpop.eup %3126  ;;  %v2475_v7 = vsub.f32 %v8246_v45, %v2435_v49  ;;  %v8886_v57 = vadd.s32 %v2608_v17, %v11532_v61  ;;  %v2118_v6 = vmax.f32 %v2078_v40, 1e-06  ;;  %v2571_v58 = vadd.s32 %v8278_v42, %v322_v4 }
 0x5c8   : > { %v2757_v25 = vsel %vm8870_vm13, %v2513_v54, 0.0  ;;  %v2446_v47 = vmul.f32 %v3127_v1, %v2366_v3  ;;  %v2089_v12 = vmul.f32 %v2049_v63, %v11653_v37  ;;  %v8899_v45 = vsub.f32 1.0, %v2483_v20  ;;  %v11661_v63 = vld [vmem:[#allocation333_spill] sm:$0xff] }
 0x5c9   : > { %v2796_v55 = vadd.f32 %v2795_v34, %v2757_v25  ;;  %v2515_v16 = vsub.f32 1.0, %v2475_v7  ;;  %3130 = vrcp.f32 %v2118_v6  ;;  %vm2678_vm15 = vcmp.lt.s32.totalorder %v2638_v18, 81920  ;;  %v11655_v34 = vld [vmem:[#allocation402_spill] sm:$0xff]  ;;  %v8914_v46 = vpop.permute.xlu0 %1990 }
 0x5ca   : > { %v2356_v19 = vsub.f32 %v2116_v59, %v11654_v36  ;;  %v2640_v14 = vadd.s32 %v2600_v51, %v11532_v61  ;;  %v2129_v27 = vmax.f32 %v2089_v12, 1e-06  ;;  %v312_v20 = vadd.s32 168, %v8234_v38  ;;  %v2007_v59 = vpop.permute.xlu2 %2006  ;;  %vm8941_vm4 = vmand %vm2678_vm15, %vm8378_vm1 }
 0x5cb   : > { %v2797_v43 = vadd.f32 %v2796_v55, %v2758_v13  ;;  %v2759_v32 = vsel %vm8893_vm14, %v2515_v16, 0.0  ;;  %v2039_v35 = vsel %vm4325_vm0, %v11655_v34, %v8826_v9  ;;  %v2486_v10 = vsub.f32 %v8255_v8, %v2446_v47  ;;  %v8920_v11 = vpop.permute.xlu1 %1992  ;;  %v11664_v47 = vld [vmem:[#allocation46_spill] sm:$0xff] }
 0x5cc   : > { %v3129_v17 = vpop.eup %3128  ;;  %v2358_v22 = vsub.f32 %v2118_v6, %v11656_v15  ;;  %v2611_v2 = vmul.u32 128, %v2571_v58  ;;  %3132 = vrcp.f32 %v2129_v27  ;;  %v2561_v4 = vadd.s32 %v8278_v42, %v312_v20 }
 0x5cd   : > { %v2798_v62 = vadd.f32 %v2797_v43, %v2759_v32  ;;  %v2436_v13 = vmul.f32 %v3129_v17, %v2356_v19  ;;  %v2079_v56 = vmul.f32 %v2039_v35, %v11657_v48  ;;  %vm2680_vm3 = vcmp.lt.s32.totalorder %v2640_v14, 81920  ;;  %v11667_v19 = vld [vmem:[#allocation108_spill] sm:$0xff]  ;;  %v11668_v35 = vld [vmem:[#allocation150_spill] sm:$0xff]  ;;  %v11669_v48 = vld [vmem:[#allocation217_spill] sm:$0xff] }
 0x5ce   : > { %v314_v8 = vadd.s32 184, %v8234_v38  ;;  %v2041_v40 = vsel %vm4325_vm0, %v11660_v41, %v1985_v60  ;;  %v325_v5 = vadd.s32 272, %v8234_v38  ;;  %vm2688_vm5 = vcmp.lt.s32.totalorder %v8886_v57, 81920  ;;  %vm8965_vm6 = vmand %vm2680_vm3, %vm8378_vm1  ;;  %v11680_v57 = vld [vmem:[#allocation211_spill] sm:$0xff] }
 0x5cf   : > { %v3131_v49 = vpop.eup %3130  ;;  %v2476_v44 = vsub.f32 %v8268_v53, %v2436_v13  ;;  %v2601_v3 = vmul.u32 128, %v2561_v4  ;;  %v2119_v21 = vmax.f32 %v2079_v56, 1e-06  ;;  %v2081_v54 = vmul.f32 %v2041_v40, %v11661_v63  ;;  %vm9005_vm10 = vmand %vm2688_vm5, %vm8378_vm1 }
 0x5d0   : > { %v2438_v1 = vmul.f32 %v3131_v49, %v2358_v22  ;;  %v8946_v60 = vadd.s32 %v2611_v2, %v11532_v61  ;;  %v2563_v7 = vadd.s32 %v8278_v42, %v314_v8  ;;  %v2052_v53 = vsel %vm4325_vm0, %v8388_v26, %v2007_v59  ;;  %v11670_v59 = vld [vmem:[#allocation243_spill] sm:$0xff]  ;;  %v11681_v26 = vld [vmem:[#allocation416_spill] sm:$0xff] }
 0x5d1   : > { %v2767_v6 = vsel %vm8926_vm2, %v8899_v45, 0.0  ;;  %v2516_v25 = vsub.f32 1.0, %v2476_v44  ;;  %v2369_v18 = vsub.f32 %v2129_v27, %v8113_v33  ;;  %3134 = vrcp.f32 %v2119_v21  ;;  %v8971_v43 = vpop.permute.xlu0 %1996  ;;  %v11710_v45 = vld [vmem:[#allocation214_spill] sm:$0xff] }
 0x5d2   : > { %v3133_v29 = vpop.eup %3132  ;;  %v2478_v58 = vsub.f32 %v11664_v47, %v2438_v1  ;;  %v2603_v37 = vmul.u32 128, %v2563_v7  ;;  %v2121_v12 = vmax.f32 %v2081_v54, 1e-06  ;;  %v8958_v55 = vadd.s32 %v8278_v42, %v325_v5  ;;  %v11672_v5 = vld [vmem:[#allocation332_spill] sm:$0xff]  ;;  %v11676_v54 = vld [vmem:[#allocation191_spill] sm:$0xff]  ;;  %v11677_v1 = vld [vmem:[#allocation165_spill] sm:$0xff] }
 0x5d3   : > { %v2760_v16 = vsel %vm8941_vm4, %v2516_v25, 0.0  ;;  %v2449_v33 = vmul.f32 %v3133_v29, %v2369_v18  ;;  %v2641_v36 = vadd.s32 %v2601_v3, %v11532_v61  ;;  %v2092_v27 = vmul.f32 %v2052_v53, %v11667_v19  ;;  %v8978_v22 = vpop.permute.xlu1 %1998  ;;  %v11673_v3 = vld [vmem:[#allocation193_spill] sm:$0xff] }
 0x5d4   : > { %v8973_v32 = vsub.f32 1.0, %v2486_v10  ;;  %v2799_v20 = vadd.f32 %v2798_v62, %v2760_v16  ;;  %v2518_v34 = vsub.f32 1.0, %v2478_v58  ;;  %vm2691_vm7 = vcmp.lt.s32.totalorder %v8946_v60, 81920 }
 0x5d5   : > { %v2359_v17 = vsub.f32 %v2119_v21, %v11668_v35  ;;  %v2643_v14 = vadd.s32 %v2603_v37, %v11532_v61  ;;  %3136 = vrcp.f32 %v2121_v12  ;;  %v2132_v15 = vmax.f32 %v2092_v27, 1e-06  ;;  %vm9040_vm12 = vmand %vm2691_vm7, %vm8378_vm1 }
 0x5d6   : > { %v2800_v2 = vadd.f32 %v2799_v20, %v2761_v52  ;;  %v2762_v10 = vsel %vm8965_vm6, %v2518_v34, 0.0  ;;  %v2614_v62 = vmul.u32 128, %v8958_v55  ;;  %v315_v13 = vadd.s32 192, %v8234_v38 }
 0x5d7   : > { %v3135_v4 = vpop.eup %3134  ;;  %v2489_v56 = vsub.f32 %v11669_v48, %v2449_v33  ;;  %vm2681_vm9 = vcmp.lt.s32.totalorder %v2641_v36, 81920  ;;  %v2361_v8 = vsub.f32 %v2121_v12, %v11670_v59  ;;  %3138 = vrcp.f32 %v2132_v15 }
 0x5d8   : > { %v2801_v41 = vadd.f32 %v2800_v2, %v2762_v10  ;;  %v2439_v40 = vmul.f32 %v3135_v4, %v2359_v17  ;;  %v2564_v24 = vadd.s32 %v8278_v42, %v315_v13  ;;  %v2042_v52 = vsel %vm4325_vm0, %v11671_v0, %v8878_v28  ;;  %vm9017_vm13 = vmand %vm2681_vm9, %vm8378_vm1  ;;  %v11688_v0 = vld [vmem:[#allocation20_spill] sm:$0xff]  ;;  %v1931_v4 = vpop.permute.xlu2 %1930 }
 0x5d9   : > { %vm2683_vm8 = vcmp.lt.s32.totalorder %v2643_v14, 81920  ;;  %v2082_v49 = vmul.f32 %v2042_v52, %v11672_v5  ;;  %v317_v44 = vadd.s32 208, %v8234_v38  ;;  %v2044_v21 = vsel %vm4325_vm0, %v11673_v3, %v8914_v46  ;;  %v9023_v37 = vpop.permute.xlu0 %2002 }
 0x5da   : > { %v2479_v28 = vsub.f32 %v11676_v54, %v2439_v40  ;;  %v2604_v51 = vmul.u32 128, %v2564_v24  ;;  %v2084_v7 = vmul.f32 %v2044_v21, %v11677_v1  ;;  %v318_v53 = vadd.s32 216, %v8234_v38  ;;  %vm9051_vm14 = vmand %vm2683_vm8, %vm8378_vm1  ;;  %v11687_v40 = vld [vmem:[#allocation50_spill] sm:$0xff]  ;;  %v11691_v1 = vld [vmem:[#allocation59_spill] sm:$0xff] }
 0x5db   : > { %v3137_v25 = vpop.eup %3136  ;;  %v9012_v18 = vsub.f32 1.0, %v2489_v56  ;;  %v2372_v29 = vsub.f32 %v2132_v15, %v11680_v57  ;;  %v2122_v47 = vmax.f32 %v2082_v49, 1e-06  ;;  %v2566_v58 = vadd.s32 %v8278_v42, %v317_v44  ;;  %v9031_v34 = vpop.permute.xlu1 %2004  ;;  %v11684_v15 = vld [vmem:[#allocation192_spill] sm:$0xff] }
 0x5dc   : > { %v2519_v12 = vsub.f32 1.0, %v2479_v28  ;;  %v2441_v55 = vmul.f32 %v3137_v25, %v2361_v8  ;;  %v2124_v16 = vmax.f32 %v2084_v7, 1e-06  ;;  %v2045_v33 = vsel %vm4325_vm0, %v11681_v26, %v8920_v11  ;;  %v11689_v49 = vld [vmem:[#allocation244_spill] sm:$0xff] }
 0x5dd   : > { %v3139_v36 = vpop.eup %3138  ;;  %3140 = vrcp.f32 %v2122_v47  ;;  %v2606_v19 = vmul.u32 128, %v2566_v58  ;;  %v2567_v27 = vadd.s32 %v8278_v42, %v318_v53  ;;  %v320_v20 = vadd.s32 232, %v8234_v38  ;;  %v11692_v53 = vld [vmem:[#allocation200_spill] sm:$0xff] }
 0x5de   : > { %v2770_v35 = vsel %vm9005_vm10, %v8973_v32, 0.0  ;;  %v2763_v11 = vsel %vm9017_vm13, %v2519_v12, 0.0  ;;  %v2481_v2 = vsub.f32 %v11684_v15, %v2441_v55  ;;  %v2644_v10 = vadd.s32 %v2604_v51, %v11532_v61  ;;  %v11693_v12 = vld [vmem:[#allocation154_spill] sm:$0xff] }
 0x5df   : > { %v2802_v13 = vadd.f32 %v2801_v41, %v2763_v11  ;;  %v9056_v60 = vadd.s32 %v2614_v62, %v11532_v61  ;;  %v9058_v48 = vmul.f32 %v3139_v36, %v2372_v29  ;;  %3142 = vrcp.f32 %v2124_v16 }
 0x5e0   : > { %v2521_v56 = vsub.f32 1.0, %v2481_v2  ;;  %v2646_v59 = vadd.s32 %v2606_v19, %v11532_v61  ;;  %v2607_v8 = vmul.u32 128, %v2567_v27  ;;  %v2085_v24 = vmul.f32 %v2045_v33, %v11687_v40  ;;  %v11694_v33 = vld [vmem:[#allocation83_spill] sm:$0xff]  ;;  %v11697_v27 = vld [vmem:[#allocation198_spill] sm:$0xff] }
 0x5e1   : > { %v2773_v14 = vsel %vm9040_vm12, %v9012_v18, 0.0  ;;  %v2803_v41 = vadd.f32 %v2802_v13, %v2764_v23  ;;  %v2569_v62 = vadd.s32 %v8278_v42, %v320_v20  ;;  %v2047_v52 = vsel %vm4325_vm0, %v11688_v0, %v8971_v43  ;;  %v9080_v51 = vpop.permute.xlu0 %1928  ;;  %v11698_v2 = vld [vmem:[#allocation206_spill] sm:$0xff] }
 0x5e2   : > { %v2765_v5 = vsel %vm9051_vm14, %v2521_v56, 0.0  ;;  %vm2684_vm15 = vcmp.lt.s32.totalorder %v2644_v10, 81920  ;;  %v2362_v44 = vsub.f32 %v2122_v47, %v11689_v49  ;;  %v2125_v3 = vmax.f32 %v2085_v24, 1e-06  ;;  %v11699_v56 = vld [vmem:[#allocation344_spill] sm:$0xff]  ;;  %v11702_v24 = vld [vmem:[#allocation153_spill] sm:$0xff] }
 0x5e3   : > { %v3141_v21 = vpop.eup %3140  ;;  %v2804_v54 = vadd.f32 %v2803_v41, %v2765_v5  ;;  %v2647_v50 = vadd.s32 %v2607_v8, %v11532_v61  ;;  %v2087_v23 = vmul.f32 %v2047_v52, %v11690_v30  ;;  %v321_v28 = vadd.s32 240, %v8234_v38  ;;  %v9086_v58 = vpop.permute.xlu1 %2008  ;;  %vm9097_vm3 = vmand %vm2684_vm15, %vm8378_vm1  ;;  %v11704_v30 = vld [vmem:[#allocation168_spill] sm:$0xff] }
 0x5e4   : > { %v2492_v43 = vsub.f32 %v11691_v1, %v9058_v48  ;;  %v2442_v7 = vmul.f32 %v3141_v21, %v2362_v44  ;;  %vm2686_vm11 = vcmp.lt.s32.totalorder %v2646_v59, 81920  ;;  %v2364_v25 = vsub.f32 %v2124_v16, %v11692_v53  ;;  %v11742_v48 = vld [vmem:[#allocation12_spill] sm:$0xff] }
 0x5e5   : > { %v3143_v46 = vpop.eup %3142  ;;  %3144 = vrcp.f32 %v2125_v3  ;;  %v2609_v57 = vmul.u32 128, %v2569_v62  ;;  %v2127_v29 = vmax.f32 %v2087_v23, 1e-06  ;;  %v2570_v47 = vadd.s32 %v8278_v42, %v321_v28  ;;  %vm9108_vm4 = vmand %vm2686_vm11, %vm8378_vm1  ;;  %v11703_v62 = vld [vmem:[#allocation202_spill] sm:$0xff] }
 0x5e6   : > { %v2482_v55 = vsub.f32 %v11693_v12, %v2442_v7  ;;  %v2444_v26 = vmul.f32 %v3143_v46, %v2364_v25  ;;  %v2048_v36 = vsel %vm4325_vm0, %v11694_v33, %v8978_v22  ;;  %v323_v19 = vadd.s32 256, %v8234_v38  ;;  %v11705_v7 = vld [vmem:[#allocation208_spill] sm:$0xff] }
 0x5e7   : > { %vm2687_vm5 = vcmp.lt.s32.totalorder %v2647_v50, 81920  ;;  %v2365_v20 = vsub.f32 %v2125_v3, %v11697_v27  ;;  %3146 = vrcp.f32 %v2127_v29  ;;  %v2610_v11 = vmul.u32 128, %v2570_v47 }
 0x5e8   : > { %v2522_v15 = vsub.f32 1.0, %v2482_v55  ;;  %v2484_v13 = vsub.f32 %v11698_v2, %v2444_v26  ;;  %v2088_v22 = vmul.f32 %v2048_v36, %v11699_v56  ;;  %v2572_v8 = vadd.s32 %v8278_v42, %v323_v19  ;;  %v11706_v55 = vld [vmem:[#allocation100_spill] sm:$0xff]  ;;  %vm9142_vm7 = vmand %vm2687_vm5, %vm8378_vm1 }
 0x5e9   : > { %v2649_v40 = vadd.s32 %v2609_v57, %v11532_v61  ;;  %v2367_v41 = vsub.f32 %v2127_v29, %v11702_v24  ;;  %v2050_v0 = vsel %vm4325_vm0, %v11703_v62, %v9023_v37  ;;  %v324_v52 = vadd.s32 264, %v8234_v38  ;;  %v2011_v53 = vpop.permute.xlu0 %2010  ;;  %v2013_v62 = vpop.permute.xlu2 %2012 }
 0x5ea   : > { %v2766_v5 = vsel %vm9097_vm3, %v2522_v15, 0.0  ;;  %v2524_v49 = vsub.f32 1.0, %v2484_v13  ;;  %v2650_v59 = vadd.s32 %v2610_v11, %v11532_v61  ;;  %v2128_v44 = vmax.f32 %v2088_v22, 1e-06  ;;  %v11711_v11 = vld [vmem:[#allocation199_spill] sm:$0xff] }
 0x5eb   : > { %v3145_v3 = vpop.eup %3144  ;;  %v2805_v21 = vadd.f32 %v2804_v54, %v2766_v5  ;;  %v2090_v23 = vmul.f32 %v2050_v0, %v11704_v30  ;;  %v2573_v28 = vadd.s32 %v8278_v42, %v324_v52  ;;  %v2051_v37 = vsel %vm4325_vm0, %v11705_v7, %v9031_v34  ;;  %v11707_v34 = vld [vmem:[#allocation52_spill] sm:$0xff]  ;;  %v9137_v16 = vpop.permute.xlu1 %1932  ;;  %v11714_v0 = vld [vmem:[#allocation13_spill] sm:$0xff] }
 0x5ec   : > { %v2768_v25 = vsel %vm9108_vm4, %v2524_v49, 0.0  ;;  %v2445_v46 = vmul.f32 %v3145_v3, %v2365_v20  ;;  %3148 = vrcp.f32 %v2128_v44  ;;  %v2612_v57 = vmul.u32 128, %v2572_v8  ;;  %v11715_v3 = vld [vmem:[#allocation381_spill] sm:$0xff] }
 0x5ed   : > { %v3147_v29 = vpop.eup %3146  ;;  %v2806_v54 = vadd.f32 %v2805_v21, %v2767_v6  ;;  %vm2689_vm6 = vcmp.lt.s32.totalorder %v2649_v40, 81920  ;;  %v2130_v47 = vmax.f32 %v2090_v23, 1e-06  ;;  %v2613_v12 = vmul.u32 128, %v2573_v28  ;;  %v11716_v23 = vld [vmem:[#allocation123_spill] sm:$0xff] }
 0x5ee   : > { %v2485_v26 = vsub.f32 %v11706_v55, %v2445_v46  ;;  %v2447_v33 = vmul.f32 %v3147_v29, %v2367_v41  ;;  %v2091_v36 = vmul.f32 %v2051_v37, %v11707_v34  ;;  %v326_v19 = vadd.s32 280, %v8234_v38  ;;  %vm9152_vm9 = vmand %vm2689_vm6, %vm8378_vm1  ;;  %v11721_v34 = vld [vmem:[#allocation14_spill] sm:$0xff] }
 0x5ef   : > { %v2807_v27 = vadd.f32 %v2806_v54, %v2768_v25  ;;  %vm2690_vm2 = vcmp.lt.s32.totalorder %v2650_v59, 81920  ;;  %v2368_v6 = vsub.f32 %v2128_v44, %v11710_v45  ;;  %3150 = vrcp.f32 %v2130_v47 }
 0x5f0   : > { %v2525_v20 = vsub.f32 1.0, %v2485_v26  ;;  %v2487_v15 = vsub.f32 %v11711_v11, %v2447_v33  ;;  %v2652_v2 = vadd.s32 %v2612_v57, %v11532_v61  ;;  %v2131_v13 = vmax.f32 %v2091_v36, 1e-06  ;;  %vm9184_vm13 = vmand %vm2690_vm2, %vm8378_vm1  ;;  %v11720_v26 = vld [vmem:[#allocation209_spill] sm:$0xff] }
 0x5f1   : > { %v2575_v50 = vadd.s32 %v8278_v42, %v326_v19  ;;  %v2053_v22 = vsel %vm4325_vm0, %v9080_v51, %v9086_v58  ;;  %v327_v8 = vadd.s32 288, %v8234_v38  ;;  %v2054_v10 = vsel %vm4325_vm0, %v1931_v4, %v2011_v53  ;;  %v1935_v58 = vpop.permute.xlu0 %1934  ;;  %v11717_v53 = vld [vmem:[#allocation220_spill] sm:$0xff] }
 0x5f2   : > { %v3149_v24 = vpop.eup %3148  ;;  %v2769_v40 = vsel %vm9142_vm7, %v2525_v20, 0.0  ;;  %v2527_v41 = vsub.f32 1.0, %v2487_v15  ;;  %v2370_v52 = vsub.f32 %v2130_v47, %v11714_v0  ;;  %v2653_v5 = vadd.s32 %v2613_v12, %v11532_v61 }
 0x5f3   : > { %vm2694_vm8 = vcmp.lt.s32.totalorder %v9056_v60, 81920  ;;  %v2808_v49 = vadd.f32 %v2807_v27, %v2769_v40  ;;  %v2448_v44 = vmul.f32 %v3149_v24, %v2368_v6  ;;  %3152 = vrcp.f32 %v2131_v13  ;;  %v2015_v36 = vpop.permute.xlu1 %2014  ;;  %v11724_v6 = vld [vmem:[#allocation185_spill] sm:$0xff] }
 0x5f4   : > { %v2615_v51 = vmul.u32 128, %v2575_v50  ;;  %v2771_v4 = vsel %vm9152_vm9, %v2527_v41, 0.0  ;;  %v2093_v21 = vmul.f32 %v2053_v22, %v11715_v3  ;;  %v2576_v30 = vadd.s32 %v8278_v42, %v327_v8  ;;  %v1937_v8 = vpop.permute.xlu2 %1936  ;;  %v11726_v40 = vld [vmem:[#allocation57_spill] sm:$0xff]  ;;  %vm9235_vm12 = vmand %vm2694_vm8, %vm8378_vm1 }
 0x5f5   : > { %v2094_v28 = vmul.f32 %v2054_v10, %v11716_v23  ;;  %v3151_v7 = vpop.eup %3150  ;;  %v2809_v37 = vadd.f32 %v2808_v49, %v2770_v35  ;;  %v2488_v25 = vsub.f32 %v11717_v53, %v2448_v44  ;;  %v328_v57 = vadd.s32 296, %v8234_v38  ;;  %v11725_v10 = vld [vmem:[#allocation106_spill] sm:$0xff] }
 0x5f6   : > { %v2655_v46 = vadd.s32 %v2615_v51, %v11532_v61  ;;  %vm2692_vm14 = vcmp.lt.s32.totalorder %v2652_v2, 81920  ;;  %v2450_v54 = vmul.f32 %v3151_v7, %v2370_v52  ;;  %v2133_v47 = vmax.f32 %v2093_v21, 1e-06 }
 0x5f7   : > { %v2134_v63 = vmax.f32 %v2094_v28, 1e-06  ;;  %v2532_v32 = vsub.f32 1.0, %v2492_v43  ;;  %v2810_v35 = vadd.f32 %v2809_v37, %v2771_v4  ;;  %v2528_v12 = vsub.f32 1.0, %v2488_v25  ;;  %vm9198_vm15 = vmand %vm2692_vm14, %vm8378_vm1  ;;  %v11733_v4 = vld [vmem:[#allocation138_spill] sm:$0xff]  ;;  %v11734_v25 = vld [vmem:[#allocation15_spill] sm:$0xff] }
 0x5f8   : > { %v2616_v55 = vmul.u32 128, %v2576_v30  ;;  %v2490_v33 = vsub.f32 %v11720_v26, %v2450_v54  ;;  %vm2693_vm10 = vcmp.lt.s32.totalorder %v2653_v5, 81920  ;;  %v2371_v59 = vsub.f32 %v2131_v13, %v11721_v34 }
 0x5f9   : > { %3154 = vrcp.f32 %v2133_v47  ;;  %v3153_v19 = vpop.eup %3152  ;;  %v2772_v27 = vsel %vm9184_vm13, %v2528_v12, 0.0  ;;  %vm2695_vm11 = vcmp.lt.s32.totalorder %v2655_v46, 81920  ;;  %v2577_v1 = vadd.s32 %v8278_v42, %v328_v57  ;;  %v2017_v56 = vpop.permute.xlu0 %2016  ;;  %vm9222_vm3 = vmand %vm2693_vm10, %vm8378_vm1 }
 0x5fa   : > { %3156 = vrcp.f32 %v2134_v63  ;;  %v2811_v43 = vadd.f32 %v2810_v35, %v2772_v27  ;;  %v2530_v9 = vsub.f32 1.0, %v2490_v33  ;;  %v2451_v45 = vmul.f32 %v3153_v19, %v2371_v59  ;;  %vm9249_vm5 = vmand %vm2695_vm11, %vm8378_vm1  ;;  %v11740_v59 = vld [vmem:[#allocation94_spill] sm:$0xff]  ;;  %v11741_v27 = vld [vmem:[#allocation89_spill] sm:$0xff] }
 0x5fb   : > { %v2373_v20 = vsub.f32 %v2133_v47, %v11724_v6  ;;  %v2656_v11 = vadd.s32 %v2616_v55, %v11532_v61  ;;  %v2055_v15 = vsel %vm4325_vm0, %v9137_v16, %v2013_v62  ;;  %v329_v2 = vadd.s32 304, %v8234_v38  ;;  %v11729_v62 = vld [vmem:[#allocation56_spill] sm:$0xff]  ;;  %v11737_v38 = vld [vmem:[#allocation62_spill] sm:$0xff]  ;;  %v11743_v6 = vld [vmem:[#allocation23_spill] sm:$0xff] }
 0x5fc   : > { %v2056_v13 = vsel %vm4325_vm0, %v1935_v58, %v2015_v36  ;;  %v2812_v50 = vadd.f32 %v2811_v43, %v2773_v14  ;;  %v2774_v22 = vsel %vm9198_vm15, %v2530_v9, 0.0  ;;  %v2491_v24 = vsub.f32 %v11725_v10, %v2451_v45  ;;  %v11730_v14 = vld [vmem:[#allocation389_spill] sm:$0xff]  ;;  %v11746_v10 = vld [vmem:[#allocation155_spill] sm:$0xff] }
 0x5fd   : > { %v2095_v41 = vmul.f32 %v2055_v15, %v11726_v40  ;;  %v2374_v17 = vsub.f32 %v2134_v63, %v11729_v62  ;;  %v2578_v18 = vadd.s32 %v8278_v42, %v329_v2  ;;  %v2096_v0 = vmul.f32 %v2056_v13, %v11730_v14  ;;  %v11744_v2 = vld [vmem:[#allocation246_spill] sm:$0xff]  ;;  %v11748_v16 = vld [vmem:[#allocation223_spill] sm:$0xff] }
 0x5fe   : > { %v2057_v52 = vsel %vm4325_vm0, %v1937_v8, %v2017_v56  ;;  %v2813_v44 = vadd.f32 %v2812_v50, %v2774_v22  ;;  %v2531_v51 = vsub.f32 1.0, %v2491_v24  ;;  %v2617_v23 = vmul.u32 128, %v2577_v1  ;;  %v11745_v13 = vld [vmem:[#allocation26_spill] sm:$0xff] }
 0x5ff   : > { %v3155_v49 = vpop.eup %3154  ;;  %v2135_v58 = vmax.f32 %v2095_v41, 1e-06  ;;  %v2097_v3 = vmul.f32 %v2057_v52, %v11733_v4  ;;  %v2136_v28 = vmax.f32 %v2096_v0, 1e-06  ;;  %vm2696_vm0 = vcmp.lt.s32.totalorder %v2656_v11, 81920  ;;  %v11747_v41 = vld [vmem:[#allocation203_spill] sm:$0xff] }
 0x600   : > { %v3157_v21 = vpop.eup %3156  ;;  %v2453_v30 = vmul.f32 %v3155_v49, %v2373_v20  ;;  %v2775_v7 = vsel %vm9222_vm3, %v2531_v51, 0.0  ;;  %v2776_v37 = vsel %vm9235_vm12, %v2532_v32, 0.0  ;;  %v2618_v29 = vmul.u32 128, %v2578_v18  ;;  %vm9257_vm4 = vmand %vm2696_vm0, %vm8378_vm1 }
 0x601   : > { %v2454_v60 = vmul.f32 %v3157_v21, %v2374_v17  ;;  %3158 = vrcp.f32 %v2135_v58  ;;  %v2814_v53 = vadd.f32 %v2813_v44, %v2775_v7  ;;  %v2137_v63 = vmax.f32 %v2097_v3, 1e-06 }
 0x602   : > { %v2493_v57 = vsub.f32 %v11734_v25, %v2453_v30  ;;  %3160 = vrcp.f32 %v2136_v28  ;;  %v2579_v35 = vadd.s32 %v8278_v42, %v330_v39  ;;  %v2657_v46 = vadd.s32 %v2617_v23, %v11532_v61 }
 0x603   : > { %v2494_v47 = vsub.f32 %v11737_v38, %v2454_v60  ;;  %v2815_v55 = vadd.f32 %v2814_v53, %v2776_v37  ;;  %3162 = vrcp.f32 %v2137_v63  ;;  %v2375_v36 = vsub.f32 %v2135_v58, %v11740_v59 }
 0x604   : > { %v2533_v12 = vsub.f32 1.0, %v2493_v57  ;;  %v2619_v33 = vmul.u32 128, %v2579_v35  ;;  %v2658_v42 = vadd.s32 %v2618_v29, %v11532_v61  ;;  %v2335_v1 = vmul.f32 %v11742_v48, %v11741_v27 }
 0x605   : > { %v2534_v26 = vsub.f32 1.0, %v2494_v47  ;;  %vm2697_vm6 = vcmp.lt.s32.totalorder %v2657_v46, 81920  ;;  %v2376_v20 = vsub.f32 %v2136_v28, %v11743_v6  ;;  %v2336_v56 = vmul.f32 %v11745_v13, %v11744_v2 }
 0x606   : > { %v2777_v34 = vsel %vm9249_vm5, %v2533_v12, 0.0  ;;  %v2659_v11 = vadd.s32 %v2619_v33, %v11532_v61  ;;  %vm2698_vm7 = vcmp.lt.s32.totalorder %v2658_v42, 81920  ;;  %v2377_v24 = vsub.f32 %v2137_v63, %v11746_v10  ;;  %vm2739_vm2 = vmand %vm2697_vm6, %vm8378_vm1 }
 0x607   : > { %v3159_v19 = vpop.eup %3158  ;;  %v2816_v43 = vadd.f32 %v2815_v55, %v2777_v34  ;;  %v2778_v9 = vsel %vm9257_vm4, %v2534_v26, 0.0  ;;  %v2337_v62 = vmul.f32 %v11748_v16, %v11747_v41  ;;  %vm2740_vm8 = vmand %vm2698_vm7, %vm8378_vm1 }
 0x608   : > { %v2455_v45 = vmul.f32 %v3159_v19, %v2375_v36  ;;  %v3161_v15 = vpop.eup %3160  ;;  %vm2699_vm9 = vcmp.lt.s32.totalorder %v2659_v11, 81920 }
 0x609   : > { %v2817_v50 = vadd.f32 %v2816_v43, %v2778_v9  ;;  %v2456_v8 = vmul.f32 %v3161_v15, %v2376_v20  ;;  %v3163_v40 = vpop.eup %3162  ;;  %vm2741_vm13 = vmand %vm2699_vm9, %vm8378_vm1 }
 0x60a   : > { %v2495_v22 = vsub.f32 %v2335_v1, %v2455_v45  ;;  %v2457_v18 = vmul.f32 %v3163_v40, %v2377_v24 }
 0x60b   : > { %v2496_v17 = vsub.f32 %v2336_v56, %v2456_v8 }
 0x60c   : > { %v2535_v61 = vsub.f32 1.0, %v2495_v22  ;;  %v2497_v52 = vsub.f32 %v2337_v62, %v2457_v18 }
 0x60d   : > { %v2536_v0 = vsub.f32 1.0, %v2496_v17 }
 0x60e   : > { %v2779_v14 = vsel %vm2739_vm2, %v2535_v61, 0.0  ;;  %v2537_v44 = vsub.f32 1.0, %v2497_v52 }
 0x60f   : > { %v2818_v49 = vadd.f32 %v2817_v50, %v2779_v14  ;;  %v2780_v5 = vsel %vm2740_vm8, %v2536_v0, 0.0 }
 0x610   : > { %v2781_v58 = vsel %vm2741_vm13, %v2537_v44, 0.0 }
 0x611   : > { %v2819_v51 = vadd.f32 %v2818_v49, %v2780_v5 }
 0x613   : > { %v2820_v4 = vadd.f32 %v2819_v51, %v2781_v58 }
 0x615   : > { %2821 = vst [vmem:[%s205_s13] sm:$0xff] %v2820_v4 }
 0x616   : > { %3331 = shalt.err (!%p3328_p5)
}
 0x617   : > { %2951 = dma.vmem_to_hbm [thread:$0]  (%p3443_p11), %s2836_s30, 128, %s2838_s23, %s2823_s5  }
 0x618 PF: > { %s2849_s22 = sand.u32 1, %s3362_s9   ;;  %p2961_p7 = pnand %p2933_p9, %p3447_p12 }
 0x619   : > { %s2850_s27 = scalar_lea.sflag [#allocation4], %s2849_s22 }
 0x61a   : > { %p2962_p8 = pneg %p2961_p7 }
 0x61c   : > { %3357 = dma.done.wait (%p2962_p8), %s2850_s27, 128  }
 0x61d   : > { %3359 = vsyncadd (%p2962_p8), %s2850_s27, 4294967168  ;;  %p18_p10 = scmp.ge.s32.totalorder %s3422_s15, 4   ;;  %s11749_s9 = smov %s3366_s10 }
 0x61e   : > { %s11750_s10 = smov %s3370_s11  ;;  %s11751_s11 = smov %s3434_s18 }
 0x61f   : > { %s11752_s12 = smov %s3422_s15  ;;  %20 = sbr.rel (!%p18_p10) target bundleno = 7 (0x7), region = 86 }
 0x624   :  { %2856 = vsyncpa [#allocation3], 1 }
 0x625   :  { %2858 = vsyncpa [#allocation3 + $0x1], 1 }
 0x626   :  { %2859 = vsyncpa [#allocation6], 1 }
 0x627   :  { %2861 = vsyncpa [#allocation6 + $0x1], 1 }
 0x628   :  { %2862 = vsyncpa [#allocation4], 1 }
 0x629   :  { %2864 = vsyncpa [#allocation4 + $0x1], 1 }

</bundles_post_ra>
